<compile_context>
chip_gen: v5e
topology: v5e:2x2
jax: 0.10.0
libtpu: 0.0.40
codegen_flags: <defaults>
</compile_context>

<pallas_src>
import jax
import jax.numpy as jnp
from jax.experimental import pallas as pl
from jax.experimental.pallas import tpu as pltpu

F_IN = 5            # (z, y, x, distance-to-center, bias)
HIDDEN = 32         # synthetic CPPN hidden nodes
N_PASSES = 3        # cppn_n_passes
MAX_POTENTIAL = 1.0
TILE_MAX_BF16 = 8192   # pixels (lanes) per grid step on bf16 generations
TILE_MAX_F32 = 2048    # pixels per grid step on the f32 path (v5e / unknown)
N_INFO = 8             # per-channel scalar-table stride


def _round_up(n, m):
    return ((n + m - 1) // m) * m


def _cdiv(a, b):
    return (a + b - 1) // b


def _compute_dtype():
    """bf16 compute where the VPU/EUP have a bf16 datapath (v6e / v7x); f32 otherwise."""
    try:
        dev = jax.devices()[0]
        if dev.platform != "tpu":
            return jnp.float32
        kind = dev.device_kind.lower()
    except Exception:
        return jnp.float32
    if ("v6" in kind) or ("v7" in kind) or ("trillium" in kind):
        return jnp.bfloat16
    return jnp.float32


# ----------------------------- Pallas kernel --------------------------------
def _make_cppn_kernel(compute_dtype, n_passes, max_potential, tile):
    cdt = compute_dtype

    def kernel(tile_chan_ref, tile_pos_ref, chan_info_ref,
               w_in_t_ref, w_rec_t_ref, w_out_t_ref, o_ref):
        g = pl.program_id(0)
        c = tile_chan_ref[g]          # channel id for this grid step
        ti = tile_pos_ref[g]          # tile index within the channel
        base = c * N_INFO
        sz = chan_info_ref[base + 0]
        sy = chan_info_ref[base + 1]
        sx = chan_info_ref[base + 2]
        b_out = chan_info_ref[base + 3]
        cyx_f = chan_info_ref[base + 4]     # float(cy * cx)
        cx_f = chan_info_ref[base + 5]      # float(cx)
        inv_cyx = chan_info_ref[base + 6]   # 1 / (cy * cx)
        inv_cx = chan_info_ref[base + 7]    # 1 / cx

        # ---- in-kernel CPPN input generation: pixel id -> (z, y, x, dist, 1) ----
        # All values stay well below 2^24, so f32 integer arithmetic is exact and
        # the floor(div)-with-fixup decomposition is exact (no vector int division).
        lane = jax.lax.broadcasted_iota(jnp.int32, (F_IN, tile), 1)
        pf = (ti * tile).astype(jnp.float32) + lane.astype(jnp.float32)

        zi = jnp.floor(pf * inv_cyx)
        zi = jnp.where(zi * cyx_f > pf, zi - 1.0, zi)
        zi = jnp.where((zi + 1.0) * cyx_f <= pf, zi + 1.0, zi)
        rem = pf - zi * cyx_f
        yi = jnp.floor(rem * inv_cx)
        yi = jnp.where(yi * cx_f > rem, yi - 1.0, yi)
        yi = jnp.where((yi + 1.0) * cx_f <= rem, yi + 1.0, yi)
        xi = rem - yi * cx_f

        zc = zi * sz - 1.0
        yc = yi * sy - 1.0
        xc = xi * sx - 1.0
        dist = jnp.sqrt(zc * zc + yc * yc + xc * xc)

        row = jax.lax.broadcasted_iota(jnp.int32, (F_IN, tile), 0)
        x = jnp.where(row == 0, zc,
            jnp.where(row == 1, yc,
            jnp.where(row == 2, xc,
            jnp.where(row == 3, dist, 1.0))))          # (F_IN, tile) f32

        # ---- synthetic recurrent CPPN (pixels on the lane dim) -------------------
        x_c = x.astype(cdt)
        w_in_t = w_in_t_ref[0].astype(cdt)     # (HIDDEN, F_IN)  (b_h folded into bias col)
        w_rec_t = w_rec_t_ref[0].astype(cdt)   # (HIDDEN, HIDDEN)
        w_out_t = w_out_t_ref[0].astype(cdt)   # (1, HIDDEN)

        pre = jnp.dot(w_in_t, x_c, preferred_element_type=jnp.float32).astype(cdt)
        # First recurrent pass peeled: h0 == 0  =>  W_rec @ h0 == 0.
        h = jnp.tanh(pre)
        for _ in range(n_passes - 1):
            h = jnp.tanh(pre + jnp.dot(w_rec_t, h,
                                       preferred_element_type=jnp.float32).astype(cdt))
        out = jnp.tanh(jnp.dot(w_out_t, h,
                               preferred_element_type=jnp.float32) + b_out)   # (1, tile) f32
        # Lane-dense, unmasked store.
        o_ref[0] = (max_potential - max_potential * jnp.abs(out)).astype(jnp.float32)

    return kernel


def cppn_activate_ragged(tile_chan, tile_pos, chan_info, w_in_t, w_rec_t, w_out_t, *,
                         tile, n_pad, n_passes=N_PASSES, max_potential=MAX_POTENTIAL,
                         compute_dtype=jnp.float32):
    """Ragged grid over real tiles only; returns (C, 1, n_pad) per-pixel potentials.

    tile_chan / tile_pos : (num_tiles,) int32 schedule (channel, tile-in-channel)
    chan_info            : (C * N_INFO,) f32 per-channel geometry + b_out scalars
    """
    C = w_in_t.shape[0]
    num_tiles = tile_chan.shape[0]
    kernel = _make_cppn_kernel(compute_dtype, n_passes, max_potential, tile)
    return pl.pallas_call(
        kernel,
        out_shape=jax.ShapeDtypeStruct((C, 1, n_pad), jnp.float32),
        grid_spec=pltpu.PrefetchScalarGridSpec(
            num_scalar_prefetch=3,             # tile_chan, tile_pos, chan_info -> SMEM
            grid=(num_tiles,),
            in_specs=[
                pl.BlockSpec((1, HIDDEN, F_IN),
                             lambda g, tc, tp, ci: (tc[g], 0, 0)),   # W_in^T (+b_h folded)
                pl.BlockSpec((1, HIDDEN, HIDDEN),
                             lambda g, tc, tp, ci: (tc[g], 0, 0)),   # W_rec^T
                pl.BlockSpec((1, 1, HIDDEN),
                             lambda g, tc, tp, ci: (tc[g], 0, 0)),   # W_out^T
            ],
            out_specs=pl.BlockSpec((1, 1, tile),
                                   lambda g, tc, tp, ci: (tc[g], 0, tp[g])),  # lane-dense
        ),
        compiler_params=pltpu.CompilerParams(
            dimension_semantics=("parallel",)),
    )(tile_chan, tile_pos, chan_info, w_in_t, w_rec_t, w_out_t)


# ------------------------------- glue (JAX) ---------------------------------
def create_image_cppn_input(c_size):
    """Mimics pytorchneat.utils.create_image_cppn_input with
    is_distance_to_center=True, is_bias=True. Returns (Npix, F_IN).
    (Used only by the pure-jnp reference; the kernel generates inputs on-chip.)"""
    coord_ranges = [jnp.linspace(-1.0, 1.0, s) for s in c_size]
    mesh = jnp.meshgrid(*coord_ranges, indexing="ij")
    coords = jnp.stack(mesh, axis=-1)                               # (Z,Y,X,3)
    dist = jnp.sqrt(jnp.sum(coords ** 2, axis=-1, keepdims=True))   # (Z,Y,X,1)
    bias = jnp.ones_like(dist)
    cppn_in = jnp.concatenate([coords, dist, bias], axis=-1)        # (Z,Y,X,F_IN)
    return cppn_in.reshape(-1, F_IN)


def _channel_sizes(channel_params, output_size):
    C, Z, Y, X = output_size
    sizes = []
    for c in range(C):
        ratio = float(channel_params[c]["occupation_ratio"])
        sizes.append((max(int(Z * ratio), 1),
                      max(int(Y * ratio), 1),
                      max(int(X * ratio), 1)))
    return tuple(sizes)


def leniachem_initialization_forward(channel_params, output_size,
                                     cppn_n_passes=N_PASSES,
                                     max_potential=MAX_POTENTIAL):
    C, Z, Y, X = output_size
    sizes = _channel_sizes(channel_params, output_size)
    n_pix = [cz * cy * cx for (cz, cy, cx) in sizes]
    n_max = max(n_pix)
    cdt = _compute_dtype()
    tile_max = TILE_MAX_BF16 if cdt == jnp.bfloat16 else TILE_MAX_F32
    tile = min(tile_max, _round_up(n_max, 128))
    n_pad = _round_up(n_max, tile)

    # --- ragged tile schedule: one entry per REAL tile (no padded grid steps) ---
    tc_list, tp_list = [], []
    for c, n in enumerate(n_pix):
        for t in range(_cdiv(n, tile)):
            tc_list.append(c)
            tp_list.append(t)
    tile_chan = jnp.asarray(tc_list, jnp.int32)
    tile_pos = jnp.asarray(tp_list, jnp.int32)

    # --- per-channel geometry + output-bias scalar table (SMEM) -----------------
    # layout per channel: [scale_z, scale_y, scale_x, b_out, cy*cx, cx, 1/(cy*cx), 1/cx]
    geom_rows = []
    for (cz, cy, cx) in sizes:
        sz = 2.0 / (cz - 1) if cz > 1 else 0.0
        sy = 2.0 / (cy - 1) if cy > 1 else 0.0
        sx = 2.0 / (cx - 1) if cx > 1 else 0.0
        cyx = float(cy * cx)
        geom_rows.append([sz, sy, sx, 0.0, cyx, float(cx), 1.0 / cyx, 1.0 / cx])
    geom = jnp.asarray(geom_rows, jnp.float32)                                   # (C, 8)
    b_out = jnp.stack([jnp.asarray(p["b_out"], jnp.float32).reshape(())
                       for p in channel_params])                                 # (C,)
    chan_info = geom.at[:, 3].set(b_out).reshape(-1)                             # (C*8,)

    # --- stack per-channel weights, pre-transposed; fold b_h into the bias col ---
    w_in_t_list = []
    for p in channel_params:
        w_in = jnp.asarray(p["w_in"], jnp.float32)                     # (F_IN, HIDDEN)
        b_h = jnp.asarray(p["b_h"], jnp.float32).reshape(HIDDEN)
        w_in_t_list.append((w_in.at[F_IN - 1].add(b_h)).T)             # (HIDDEN, F_IN)
    w_in_t = jnp.stack(w_in_t_list)                                               # (C,H,F)
    w_rec_t = jnp.stack([jnp.asarray(p["w_rec"], jnp.float32).T for p in channel_params])
    w_out_t = jnp.stack([jnp.asarray(p["w_out"], jnp.float32).T for p in channel_params])

    @jax.jit
    def _fwd(tile_chan, tile_pos, chan_info, w_in_t, w_rec_t, w_out_t):
        vals = cppn_activate_ragged(
            tile_chan, tile_pos, chan_info, w_in_t, w_rec_t, w_out_t,
            tile=tile, n_pad=n_pad, n_passes=cppn_n_passes,
            max_potential=max_potential, compute_dtype=cdt)            # (C, 1, n_pad)

        # Assemble the (C, Z, Y, X) output inside the same jit.
        out_img = jnp.zeros(output_size, jnp.float32)
        for c, (cz, cy, cx) in enumerate(sizes):
            n = cz * cy * cx
            c_img = vals[c, 0, :n].reshape(cz, cy, cx)
            oz = (Z - cz) // 2
            oy = (Y - cy) // 2
            ox = (X - cx) // 2
            out_img = jax.lax.dynamic_update_slice(out_img, c_img[None], (c, oz, oy, ox))
        return out_img

    return _fwd(tile_chan, tile_pos, chan_info, w_in_t, w_rec_t, w_out_t)


# ----------------------------- pure-jnp reference ----------------------------
def _reference_forward(channel_params, output_size,
                       cppn_n_passes=N_PASSES, max_potential=MAX_POTENTIAL):
    """Row-major, f32, non-Pallas reference of the same synthetic CPPN forward."""
    C, Z, Y, X = output_size
    sizes = _channel_sizes(channel_params, output_size)
    out_img = jnp.zeros(output_size, jnp.float32)
    for c, (cz, cy, cx) in enumerate(sizes):
        p = channel_params[c]
        x = create_image_cppn_input((cz, cy, cx)).astype(jnp.float32)    # (n, F_IN)
        pre = x @ p["w_in"] + p["b_h"]
        h = jnp.zeros((x.shape[0], HIDDEN), jnp.float32)
        for _ in range(cppn_n_passes):
            h = jnp.tanh(pre + h @ p["w_rec"])
        out = jnp.tanh(h @ p["w_out"] + p["b_out"])                      # (n, 1)
        vals = max_potential - max_potential * jnp.abs(out[:, 0])
        c_img = vals.reshape(cz, cy, cx)
        oz = (Z - cz) // 2
        oy = (Y - cy) // 2
        ox = (X - cx) // 2
        out_img = out_img.at[c, oz:oz + cz, oy:oy + cy, ox:ox + cx].set(c_img)
    return out_img


# --------------------------------- demo --------------------------------------
if __name__ == "__main__":
    key = jax.random.PRNGKey(0)
    # (C, Z, Y, X) — small synthetic config; 24^3 exercises the multi-tile path.
    output_size = (4, 24, 24, 24)
    occupation_ratios = [1.0, 0.75, 0.5, 0.25]

    channel_params = []
    for c in range(output_size[0]):
        key, k0, k1, k2, k3, k4 = jax.random.split(key, 6)
        channel_params.append(dict(
            occupation_ratio=occupation_ratios[c],
            w_in=0.5 * jax.random.normal(k0, (F_IN, HIDDEN), jnp.float32),
            b_h=0.1 * jax.random.normal(k1, (1, HIDDEN), jnp.float32),
            w_rec=0.3 * jax.random.normal(k2, (HIDDEN, HIDDEN), jnp.float32),
            w_out=0.5 * jax.random.normal(k3, (HIDDEN, 1), jnp.float32),
            b_out=0.1 * jax.random.normal(k4, (1, 1), jnp.float32),
        ))

    out = leniachem_initialization_forward(channel_params, output_size)
    out = jax.block_until_ready(out)

    assert out.shape == output_size
    assert out.dtype == jnp.float32
    assert bool(jnp.all(jnp.isfinite(out)))
    # values are max_potential - max_potential*|tanh(.)| in the filled region -> [0, 1]
    assert bool(jnp.all(out >= 0.0)) and bool(jnp.all(out <= MAX_POTENTIAL))

    # sanity-check against the pure-jnp reference (loose tolerance when bf16 compute is used)
    ref = _reference_forward(channel_params, output_size)
    tol = 1e-1 if _compute_dtype() == jnp.bfloat16 else 2e-2
    max_err = float(jnp.max(jnp.abs(out - ref)))
    assert max_err < tol, f"kernel/reference mismatch: max abs err = {max_err}"

    print("KERNEL_OK")
</pallas_src>

<mosaic_0001>
module attributes {stable_mosaic.version = 11 : i64} {
  func.func @kernel(%arg0: i32, %arg1: memref<12xi32, #tpu.memory_space<smem>>, %arg2: memref<12xi32, #tpu.memory_space<smem>>, %arg3: memref<32xf32, #tpu.memory_space<smem>>, %arg4: memref<1x32x5xf32, #tpu.memory_space<vmem>>, %arg5: memref<1x32x32xf32, #tpu.memory_space<vmem>>, %arg6: memref<1x1x32xf32, #tpu.memory_space<vmem>>, %arg7: memref<1x1x2048xf32, #tpu.memory_space<vmem>>) attributes {dimension_semantics = [#tpu.dimension_semantics<parallel>], iteration_bounds = array<i64: 12>, scalar_prefetch = 3 : i64, scratch_operands = 0 : i64, tpu.core_type = #tpu.core_type<tc>, window_params = [{transform_indices = @transform_0, window_bounds = array<i64: 1, 32, 5>}, {transform_indices = @transform_1, window_bounds = array<i64: 1, 32, 32>}, {transform_indices = @transform_2, window_bounds = array<i64: 1, 1, 32>}, {transform_indices = @transform_3, window_bounds = array<i64: 1, 1, 2048>}]} {
    %0 = arith.index_cast %arg0 : i32 to index
    %1 = memref.load %arg1[%0] : memref<12xi32, #tpu.memory_space<smem>>
    %2 = arith.index_cast %arg0 : i32 to index
    %3 = memref.load %arg2[%2] : memref<12xi32, #tpu.memory_space<smem>>
    %c8_i32 = arith.constant 8 : i32
    %4 = arith.muli %1, %c8_i32 : i32
    %c0_i32 = arith.constant 0 : i32
    %5 = arith.addi %4, %c0_i32 : i32
    %6 = arith.index_cast %5 : i32 to index
    %7 = memref.load %arg3[%6] : memref<32xf32, #tpu.memory_space<smem>>
    %c1_i32 = arith.constant 1 : i32
    %8 = arith.addi %4, %c1_i32 : i32
    %9 = arith.index_cast %8 : i32 to index
    %10 = memref.load %arg3[%9] : memref<32xf32, #tpu.memory_space<smem>>
    %c2_i32 = arith.constant 2 : i32
    %11 = arith.addi %4, %c2_i32 : i32
    %12 = arith.index_cast %11 : i32 to index
    %13 = memref.load %arg3[%12] : memref<32xf32, #tpu.memory_space<smem>>
    %c3_i32 = arith.constant 3 : i32
    %14 = arith.addi %4, %c3_i32 : i32
    %15 = arith.index_cast %14 : i32 to index
    %16 = memref.load %arg3[%15] : memref<32xf32, #tpu.memory_space<smem>>
    %c4_i32 = arith.constant 4 : i32
    %17 = arith.addi %4, %c4_i32 : i32
    %18 = arith.index_cast %17 : i32 to index
    %19 = memref.load %arg3[%18] : memref<32xf32, #tpu.memory_space<smem>>
    %c5_i32 = arith.constant 5 : i32
    %20 = arith.addi %4, %c5_i32 : i32
    %21 = arith.index_cast %20 : i32 to index
    %22 = memref.load %arg3[%21] : memref<32xf32, #tpu.memory_space<smem>>
    %c6_i32 = arith.constant 6 : i32
    %23 = arith.addi %4, %c6_i32 : i32
    %24 = arith.index_cast %23 : i32 to index
    %25 = memref.load %arg3[%24] : memref<32xf32, #tpu.memory_space<smem>>
    %c7_i32 = arith.constant 7 : i32
    %26 = arith.addi %4, %c7_i32 : i32
    %27 = arith.index_cast %26 : i32 to index
    %28 = memref.load %arg3[%27] : memref<32xf32, #tpu.memory_space<smem>>
    %29 = tpu.iota {dimensions = array<i32: 1>} : vector<5x2048xi32>
    %c2048_i32 = arith.constant 2048 : i32
    %30 = arith.muli %3, %c2048_i32 : i32
    %31 = arith.sitofp %30 : i32 to f32
    %32 = arith.sitofp %29 : vector<5x2048xi32> to vector<5x2048xf32>
    %33 = vector.broadcast %31 : f32 to vector<5x2048xf32>
    %34 = arith.addf %33, %32 : vector<5x2048xf32>
    %35 = vector.broadcast %25 : f32 to vector<5x2048xf32>
    %36 = arith.mulf %34, %35 : vector<5x2048xf32>
    %37 = math.floor %36 : vector<5x2048xf32>
    %38 = vector.broadcast %19 : f32 to vector<5x2048xf32>
    %39 = arith.mulf %37, %38 : vector<5x2048xf32>
    %40 = arith.cmpf ogt, %39, %34 : vector<5x2048xf32>
    %cst = arith.constant 1.000000e+00 : f32
    %41 = vector.broadcast %cst : f32 to vector<5x2048xf32>
    %42 = arith.subf %37, %41 : vector<5x2048xf32>
    %43 = arith.select %40, %42, %37 : vector<5x2048xi1>, vector<5x2048xf32>
    %cst_0 = arith.constant 1.000000e+00 : f32
    %44 = vector.broadcast %cst_0 : f32 to vector<5x2048xf32>
    %45 = arith.addf %43, %44 : vector<5x2048xf32>
    %46 = vector.broadcast %19 : f32 to vector<5x2048xf32>
    %47 = arith.mulf %45, %46 : vector<5x2048xf32>
    %48 = arith.cmpf ole, %47, %34 : vector<5x2048xf32>
    %cst_1 = arith.constant 1.000000e+00 : f32
    %49 = vector.broadcast %cst_1 : f32 to vector<5x2048xf32>
    %50 = arith.addf %43, %49 : vector<5x2048xf32>
    %51 = arith.select %48, %50, %43 : vector<5x2048xi1>, vector<5x2048xf32>
    %52 = vector.broadcast %19 : f32 to vector<5x2048xf32>
    %53 = arith.mulf %51, %52 : vector<5x2048xf32>
    %54 = arith.subf %34, %53 : vector<5x2048xf32>
    %55 = vector.broadcast %28 : f32 to vector<5x2048xf32>
    %56 = arith.mulf %54, %55 : vector<5x2048xf32>
    %57 = math.floor %56 : vector<5x2048xf32>
    %58 = vector.broadcast %22 : f32 to vector<5x2048xf32>
    %59 = arith.mulf %57, %58 : vector<5x2048xf32>
    %60 = arith.cmpf ogt, %59, %54 : vector<5x2048xf32>
    %cst_2 = arith.constant 1.000000e+00 : f32
    %61 = vector.broadcast %cst_2 : f32 to vector<5x2048xf32>
    %62 = arith.subf %57, %61 : vector<5x2048xf32>
    %63 = arith.select %60, %62, %57 : vector<5x2048xi1>, vector<5x2048xf32>
    %cst_3 = arith.constant 1.000000e+00 : f32
    %64 = vector.broadcast %cst_3 : f32 to vector<5x2048xf32>
    %65 = arith.addf %63, %64 : vector<5x2048xf32>
    %66 = vector.broadcast %22 : f32 to vector<5x2048xf32>
    %67 = arith.mulf %65, %66 : vector<5x2048xf32>
    %68 = arith.cmpf ole, %67, %54 : vector<5x2048xf32>
    %cst_4 = arith.constant 1.000000e+00 : f32
    %69 = vector.broadcast %cst_4 : f32 to vector<5x2048xf32>
    %70 = arith.addf %63, %69 : vector<5x2048xf32>
    %71 = arith.select %68, %70, %63 : vector<5x2048xi1>, vector<5x2048xf32>
    %72 = vector.broadcast %22 : f32 to vector<5x2048xf32>
    %73 = arith.mulf %71, %72 : vector<5x2048xf32>
    %74 = arith.subf %54, %73 : vector<5x2048xf32>
    %75 = vector.broadcast %7 : f32 to vector<5x2048xf32>
    %76 = arith.mulf %51, %75 : vector<5x2048xf32>
    %cst_5 = arith.constant 1.000000e+00 : f32
    %77 = vector.broadcast %cst_5 : f32 to vector<5x2048xf32>
    %78 = arith.subf %76, %77 : vector<5x2048xf32>
    %79 = vector.broadcast %10 : f32 to vector<5x2048xf32>
    %80 = arith.mulf %71, %79 : vector<5x2048xf32>
    %cst_6 = arith.constant 1.000000e+00 : f32
    %81 = vector.broadcast %cst_6 : f32 to vector<5x2048xf32>
    %82 = arith.subf %80, %81 : vector<5x2048xf32>
    %83 = vector.broadcast %13 : f32 to vector<5x2048xf32>
    %84 = arith.mulf %74, %83 : vector<5x2048xf32>
    %cst_7 = arith.constant 1.000000e+00 : f32
    %85 = vector.broadcast %cst_7 : f32 to vector<5x2048xf32>
    %86 = arith.subf %84, %85 : vector<5x2048xf32>
    %87 = arith.mulf %78, %78 : vector<5x2048xf32>
    %88 = arith.mulf %82, %82 : vector<5x2048xf32>
    %89 = arith.addf %87, %88 : vector<5x2048xf32>
    %90 = arith.mulf %86, %86 : vector<5x2048xf32>
    %91 = arith.addf %89, %90 : vector<5x2048xf32>
    %92 = math.sqrt %91 : vector<5x2048xf32>
    %93 = tpu.iota {dimensions = array<i32: 0>} : vector<5x2048xi32>
    %c0_i32_8 = arith.constant 0 : i32
    %94 = vector.broadcast %c0_i32_8 : i32 to vector<5x2048xi32>
    %95 = arith.cmpi eq, %93, %94 : vector<5x2048xi32>
    %c1_i32_9 = arith.constant 1 : i32
    %96 = vector.broadcast %c1_i32_9 : i32 to vector<5x2048xi32>
    %97 = arith.cmpi eq, %93, %96 : vector<5x2048xi32>
    %c2_i32_10 = arith.constant 2 : i32
    %98 = vector.broadcast %c2_i32_10 : i32 to vector<5x2048xi32>
    %99 = arith.cmpi eq, %93, %98 : vector<5x2048xi32>
    %c3_i32_11 = arith.constant 3 : i32
    %100 = vector.broadcast %c3_i32_11 : i32 to vector<5x2048xi32>
    %101 = arith.cmpi eq, %93, %100 : vector<5x2048xi32>
    %cst_12 = arith.constant 1.000000e+00 : f32
    %102 = vector.broadcast %cst_12 : f32 to vector<5x2048xf32>
    %103 = arith.select %101, %92, %102 : vector<5x2048xi1>, vector<5x2048xf32>
    %104 = arith.select %99, %86, %103 : vector<5x2048xi1>, vector<5x2048xf32>
    %105 = arith.select %97, %82, %104 : vector<5x2048xi1>, vector<5x2048xf32>
    %106 = arith.select %95, %78, %105 : vector<5x2048xi1>, vector<5x2048xf32>
    %c0 = arith.constant 0 : index
    %c0_13 = arith.constant 0 : index
    %c0_14 = arith.constant 0 : index
    %107 = vector.load %arg4[%c0, %c0_13, %c0_14] : memref<1x32x5xf32, #tpu.memory_space<vmem>>, vector<1x32x5xf32>
    %108 = vector.shape_cast %107 : vector<1x32x5xf32> to vector<32x5xf32>
    %c0_15 = arith.constant 0 : index
    %c0_16 = arith.constant 0 : index
    %c0_17 = arith.constant 0 : index
    %109 = vector.load %arg5[%c0_15, %c0_16, %c0_17] : memref<1x32x32xf32, #tpu.memory_space<vmem>>, vector<1x32x32xf32>
    %110 = vector.shape_cast %109 : vector<1x32x32xf32> to vector<32x32xf32>
    %c0_18 = arith.constant 0 : index
    %c0_19 = arith.constant 0 : index
    %c0_20 = arith.constant 0 : index
    %111 = vector.load %arg6[%c0_18, %c0_19, %c0_20] : memref<1x1x32xf32, #tpu.memory_space<vmem>>, vector<1x1x32xf32>
    %112 = vector.shape_cast %111 : vector<1x1x32xf32> to vector<1x32xf32>
    %cst_21 = arith.constant dense<0.000000e+00> : vector<32x2048xf32>
    %113 = tpu.matmul %108, %106, %cst_21 {dimension_numbers = #tpu.dot_dimension_numbers<[1], [0], [0], [1], [0, 0, 1, 1], [], []>} : vector<32x5xf32>, vector<5x2048xf32>, vector<32x2048xf32> -> vector<32x2048xf32>
    %114 = math.tanh %113 : vector<32x2048xf32>
    %cst_22 = arith.constant dense<0.000000e+00> : vector<32x2048xf32>
    %115 = tpu.matmul %110, %114, %cst_22 {dimension_numbers = #tpu.dot_dimension_numbers<[1], [0], [0], [1], [0, 0, 1, 1], [], []>} : vector<32x32xf32>, vector<32x2048xf32>, vector<32x2048xf32> -> vector<32x2048xf32>
    %116 = arith.addf %113, %115 : vector<32x2048xf32>
    %117 = math.tanh %116 : vector<32x2048xf32>
    %cst_23 = arith.constant dense<0.000000e+00> : vector<32x2048xf32>
    %118 = tpu.matmul %110, %117, %cst_23 {dimension_numbers = #tpu.dot_dimension_numbers<[1], [0], [0], [1], [0, 0, 1, 1], [], []>} : vector<32x32xf32>, vector<32x2048xf32>, vector<32x2048xf32> -> vector<32x2048xf32>
    %119 = arith.addf %113, %118 : vector<32x2048xf32>
    %120 = math.tanh %119 : vector<32x2048xf32>
    %cst_24 = arith.constant dense<0.000000e+00> : vector<1x2048xf32>
    %121 = tpu.matmul %112, %120, %cst_24 {dimension_numbers = #tpu.dot_dimension_numbers<[1], [0], [0], [1], [0, 0, 1, 1], [], []>} : vector<1x32xf32>, vector<32x2048xf32>, vector<1x2048xf32> -> vector<1x2048xf32>
    %122 = vector.broadcast %16 : f32 to vector<1x2048xf32>
    %123 = arith.addf %121, %122 : vector<1x2048xf32>
    %124 = math.tanh %123 : vector<1x2048xf32>
    %125 = math.absf %124 : vector<1x2048xf32>
    %cst_25 = arith.constant 1.000000e+00 : f32
    %126 = vector.broadcast %cst_25 : f32 to vector<1x2048xf32>
    %127 = arith.mulf %126, %125 : vector<1x2048xf32>
    %cst_26 = arith.constant 1.000000e+00 : f32
    %128 = vector.broadcast %cst_26 : f32 to vector<1x2048xf32>
    %129 = arith.subf %128, %127 : vector<1x2048xf32>
    %c0_27 = arith.constant 0 : index
    %c0_28 = arith.constant 0 : index
    %c0_29 = arith.constant 0 : index
    %130 = vector.load %arg7[%c0_27, %c0_28, %c0_29] : memref<1x1x2048xf32, #tpu.memory_space<vmem>>, vector<1x1x2048xf32>
    %131 = vector.shape_cast %130 : vector<1x1x2048xf32> to vector<1x2048xf32>
    %132 = vector.shape_cast %129 : vector<1x2048xf32> to vector<1x1x2048xf32>
    tpu.vector_store %arg7[%c0_27, %c0_28, %c0_29], %132 {strides = array<i32>} : memref<1x1x2048xf32, #tpu.memory_space<vmem>>, vector<1x1x2048xf32>,
    return
  }
  func.func @transform_0(%arg0: i32, %arg1: memref<12xi32, #tpu.memory_space<smem>>, %arg2: memref<12xi32, #tpu.memory_space<smem>>, %arg3: memref<32xf32, #tpu.memory_space<smem>>) -> (i32, i32, i32) {
    %0 = arith.index_cast %arg0 : i32 to index
    %1 = memref.load %arg1[%0] : memref<12xi32, #tpu.memory_space<smem>>
    %c0_i32 = arith.constant 0 : i32
    %c0_i32_0 = arith.constant 0 : i32
    %c0_i32_1 = arith.constant 0 : i32
    return %1, %c0_i32, %c0_i32_0 : i32, i32, i32
  }
  func.func @transform_1(%arg0: i32, %arg1: memref<12xi32, #tpu.memory_space<smem>>, %arg2: memref<12xi32, #tpu.memory_space<smem>>, %arg3: memref<32xf32, #tpu.memory_space<smem>>) -> (i32, i32, i32) {
    %0 = arith.index_cast %arg0 : i32 to index
    %1 = memref.load %arg1[%0] : memref<12xi32, #tpu.memory_space<smem>>
    %c0_i32 = arith.constant 0 : i32
    %c0_i32_0 = arith.constant 0 : i32
    %c0_i32_1 = arith.constant 0 : i32
    return %1, %c0_i32, %c0_i32_0 : i32, i32, i32
  }
  func.func @transform_2(%arg0: i32, %arg1: memref<12xi32, #tpu.memory_space<smem>>, %arg2: memref<12xi32, #tpu.memory_space<smem>>, %arg3: memref<32xf32, #tpu.memory_space<smem>>) -> (i32, i32, i32) {
    %0 = arith.index_cast %arg0 : i32 to index
    %1 = memref.load %arg1[%0] : memref<12xi32, #tpu.memory_space<smem>>
    %c0_i32 = arith.constant 0 : i32
    %c0_i32_0 = arith.constant 0 : i32
    %c0_i32_1 = arith.constant 0 : i32
    return %1, %c0_i32, %c0_i32_0 : i32, i32, i32
  }
  func.func @transform_3(%arg0: i32, %arg1: memref<12xi32, #tpu.memory_space<smem>>, %arg2: memref<12xi32, #tpu.memory_space<smem>>, %arg3: memref<32xf32, #tpu.memory_space<smem>>) -> (i32, i32, i32) {
    %0 = arith.index_cast %arg0 : i32 to index
    %1 = memref.load %arg1[%0] : memref<12xi32, #tpu.memory_space<smem>>
    %2 = arith.index_cast %arg0 : i32 to index
    %3 = memref.load %arg2[%2] : memref<12xi32, #tpu.memory_space<smem>>
    %c0_i32 = arith.constant 0 : i32
    %c0_i32_0 = arith.constant 0 : i32
    return %1, %c0_i32, %3 : i32, i32, i32
  }
}

</mosaic_0001>

<bundles_post_ra>
// kernel: squeeze.7
= control target key start
LH: loop header
LB: loop body
LE: loop exit
PB: predicated region body
PF: predicated region fallthrough
CT: control target
= control target key end

     0   :  { %s312_s8 = smov 124   ;;  %s313_s9 = smov 112   ;;  %vm230_vm0 = vcmask 1031168   ;;  %vm7_vm1 = vcmask 48128   ;;  %vm234_vm2 = vcmask 15360   ;;  %vm237_vm3 = vcmask 48144   ;;  %s505_s0 = inlined_call_operand.vmem [shape: f32[216], index: 0, kind: input, shape index: {}]   ;;  %s506_s1 = inlined_call_operand.vmem [shape: f32[1,6,6,6], index: 1, kind: output, shape index: {}]  }
   0x1   :  { %v4_v0 = vld [vmem:[%s505_s0] sm:$0x3]  ;;  %s311_s0 = smov 118   ;;  %s314_s10 = smov 116  }
   0x2   :  { %5 = vst [vmem:[#allocation0] sm:$0x3] %v4_v0  ;;  %s315_s11 = smov 122   ;;  %s316_s12 = smov 110  }
   0x3   :  { %s317_s13 = smov 104   ;;  %s318_s14 = smov 106  }
   0x4   :  { %s319_s15 = smov 100   ;;  %s320_s16 = smov 94  }
   0x5   :  { %s321_s17 = smov 98   ;;  %s322_s18 = smov 92  }
   0x6   :  { %s323_s19 = smov 86   ;;  %s324_s20 = smov 88  }
   0x7   :  { %s325_s21 = smov 82   ;;  %s326_s22 = smov 76  }
   0x8   :  { %s327_s23 = smov 80   ;;  %s328_s24 = smov 74  }
   0x9   :  { %v23_v1 = vld [vmem:[#allocation0 + $0x1] sm:$0x1]   ;;  %v29_v4 = vld [vmem:[#allocation0] sm:$0x1]   ;;  %s329_s25 = smov 68   ;;  %s330_s26 = smov 70  }
   0xa   :  { %v10_v2 = vld [vmem:[#allocation0 + $0x1] sm:$0x1]   ;;  %24 = vrot.lane.b32.xlu1 %v23_v1, %s311_s0  ;;  %v16_v5 = vld [vmem:[#allocation0] sm:$0x1]   ;;  %s331_s27 = smov 64   ;;  %s332_s28 = smov 2  }
   0xb   :  { %11 = vrot.lane.b32.xlu0 %v10_v2, %s312_s8  ;;  %v36_v3 = vld [vmem:[#allocation0 + $0x1] sm:$0x1]   ;;  %v42_v6 = vld [vmem:[#allocation0] sm:$0x1]   ;;  %s333_s29 = smov 62   ;;  %s334_s30 = smov 58  }
   0xc   :  { %37 = vrot.lane.b32.xlu2 %v36_v3, %s313_s9  ;;  %v55_v7 = vld [vmem:[#allocation0] sm:$0x1]   ;;  %v49_v8 = vld [vmem:[#allocation0 + $0x1] sm:$0x1]   ;;  %s335_s2 = smov 52   ;;  %s336_s3 = smov 56  }
   0xd   :  { %v62_v9 = vld [vmem:[#allocation0 + $0x1] sm:$0x1]   ;;  %v68_v11 = vld [vmem:[#allocation0] sm:$0x1]   ;;  %s337_s4 = smov 50   ;;  %s338_s5 = smov 44  }
   0xe   :  { %v75_v10 = vld [vmem:[#allocation0 + $0x1] sm:$0x1]   ;;  %v81_v12 = vld [vmem:[#allocation0] sm:$0x1]   ;;  %s339_s6 = smov 46   ;;  %s340_s7 = smov 38  }
   0xf   :  { %v94_v13 = vld [vmem:[#allocation0] sm:$0x1]   ;;  %v88_v14 = vld [vmem:[#allocation0 + $0x1] sm:$0x1]   ;;  %s341_s0 = smov 26   ;;  %s342_s8 = smov 32  }
  0x10   :  { %v101_v15 = vld [vmem:[#allocation0 + $0x1] sm:$0x1]   ;;  %v107_v17 = vld [vmem:[#allocation0] sm:$0x1]   ;;  %s343_s9 = smov 20  }
  0x11   :  { %v114_v16 = vld [vmem:[#allocation0 + $0x1] sm:$0x1]   ;;  %v120_v18 = vld [vmem:[#allocation0] sm:$0x1]  }
  0x12   :  { %30 = vrot.lane.b32.xlu1 %v29_v4, %s314_s10  ;;  %v133_v19 = vld [vmem:[#allocation0] sm:$0x1]   ;;  %v127_v20 = vld [vmem:[#allocation0 + $0x1] sm:$0x1]   ;;  %s344_s10 = smov 8  }
  0x13   :  { %17 = vrot.lane.b32.xlu0 %v16_v5, %s315_s11  ;;  %v140_v21 = vld [vmem:[#allocation0 + $0x1] sm:$0x1]   ;;  %v227_v22 = vld [vmem:[#allocation0] sm:$0x1]   ;;  %s345_s11 = smov 14  }
  0x14   :  { %43 = vrot.lane.b32.xlu2 %v42_v6, %s316_s12  ;;  %v229_v23 = vld [vmem:[#allocation0 + $0x1] sm:$0x1]   ;;  %v146_v25 = vld [vmem:[#allocation0] sm:$0x1]  }
  0x15   :  { %v231_v24 = vsel %vm230_vm0, %v229_v23, %v227_v22  ;;  %v153_v26 = vld [vmem:[#allocation0 + $0x1] sm:$0x1]   ;;  %v159_v28 = vld [vmem:[#allocation0] sm:$0x1]  }
  0x16   :  { %v166_v27 = vld [vmem:[#allocation0 + $0x1] sm:$0x1]   ;;  %v172_v29 = vld [vmem:[#allocation0] sm:$0x1]  }
  0x17   :  { %v185_v30 = vld [vmem:[#allocation0] sm:$0x1]   ;;  %v179_v31 = vld [vmem:[#allocation0 + $0x1] sm:$0x1]  }
  0x18   :  { %v191_v32 = vld [vmem:[#allocation0] sm:$0x1]  }
  0x19   :  { %v203_v33 = vld [vmem:[#allocation0] sm:$0x1]  }
  0x1a   :  { %56 = vrot.lane.b32.xlu1 %v55_v7, %s317_s13  ;;  %v197_v34 = vld [vmem:[#allocation0] sm:$0x1]  }
  0x1b   :  { %50 = vrot.lane.b32.xlu0 %v49_v8, %s318_s14  ;;  %v209_v35 = vld [vmem:[#allocation0] sm:$0x1]  }
  0x1c   :  { %63 = vrot.lane.b32.xlu2 %v62_v9, %s319_s15  ;;  %v221_v36 = vld [vmem:[#allocation0] sm:$0x1]  }
  0x1d   :  { %v215_v37 = vld [vmem:[#allocation0] sm:$0x1]  }
  0x1e   :  { %v6_v1 = vld [vmem:[#allocation0] sm:$0x1]  }
  0x1f   :  { %8 = vst.msk [vmem:[%s506_s1] sm:$0x1] %vm7_vm1, %v6_v1  }
  0x22   :  { %76 = vrot.lane.b32.xlu1 %v75_v10, %s320_s16 }
  0x23   :  { %69 = vrot.lane.b32.xlu0 %v68_v11, %s321_s17 }
  0x24   :  { %82 = vrot.lane.b32.xlu2 %v81_v12, %s322_s18 }
  0x2a   :  { %95 = vrot.lane.b32.xlu1 %v94_v13, %s323_s19 }
  0x2b   :  { %89 = vrot.lane.b32.xlu0 %v88_v14, %s324_s20 }
  0x2c   :  { %102 = vrot.lane.b32.xlu2 %v101_v15, %s325_s21 }
  0x32   :  { %115 = vrot.lane.b32.xlu1 %v114_v16, %s326_s22 }
  0x33   :  { %108 = vrot.lane.b32.xlu0 %v107_v17, %s327_s23 }
  0x34   :  { %121 = vrot.lane.b32.xlu2 %v120_v18, %s328_s24 }
  0x3a   :  { %134 = vrot.lane.b32.xlu1 %v133_v19, %s329_s25 }
  0x3b   :  { %128 = vrot.lane.b32.xlu0 %v127_v20, %s330_s26 }
  0x3c   :  { %141 = vrot.lane.b32.xlu2 %v140_v21, %s331_s27 }
  0x42   :  { %232 = vrot.lane.b32.xlu1 %v231_v24, %s332_s28 }
  0x43   :  { %147 = vrot.lane.b32.xlu0 %v146_v25, %s333_s29 }
  0x44   :  { %154 = vrot.lane.b32.xlu2 %v153_v26, %s334_s30 }
  0x4a   :  { %167 = vrot.lane.b32.xlu1 %v166_v27, %s335_s2 }
  0x4b   :  { %160 = vrot.lane.b32.xlu0 %v159_v28, %s336_s3 }
  0x4c   :  { %173 = vrot.lane.b32.xlu2 %v172_v29, %s337_s4 }
  0x52   :  { %186 = vrot.lane.b32.xlu1 %v185_v30, %s338_s5 }
  0x53   :  { %180 = vrot.lane.b32.xlu0 %v179_v31, %s339_s6 }
  0x54   :  { %192 = vrot.lane.b32.xlu2 %v191_v32, %s340_s7 }
  0x5a   :  { %204 = vrot.lane.b32.xlu1 %v203_v33, %s341_s0 }
  0x5b   :  { %198 = vrot.lane.b32.xlu0 %v197_v34, %s342_s8 }
  0x5c   :  { %210 = vrot.lane.b32.xlu2 %v209_v35, %s343_s9 }
  0x62   :  { %222 = vrot.lane.b32.xlu1 %v221_v36, %s344_s10 }
  0x63   :  { %216 = vrot.lane.b32.xlu0 %v215_v37, %s345_s11 }
  0x66   :  { %v38_v38 = vpop.permute.xlu2 %37  }
  0x67   :  { %244 = vst.msk [vmem:[%s506_s1 + $0x20] sm:$0x1] %vm7_vm1, %v38_v38  }
  0x6e   :  { %v44_v39 = vpop.permute.xlu2 %43  }
  0x6f   :  { %245 = vst.msk [vmem:[%s506_s1 + $0x3] sm:$0x1] %vm7_vm1, %v44_v39  }
  0x76   :  { %v64_v40 = vpop.permute.xlu2 %63  }
  0x77   :  { %248 = vst.msk [vmem:[%s506_s1 + $0x22] sm:$0x1] %vm7_vm1, %v64_v40  }
  0x7c   :  { %v25_v41 = vpop.permute.xlu1 %24  }
  0x7d   :  { %v12_v42 = vpop.permute.xlu0 %11   ;;  %242 = vst.msk [vmem:[%s506_s1 + $0x1d] sm:$0x1] %vm7_vm1, %v25_v41  }
  0x7e   :  { %240 = vst.msk [vmem:[%s506_s1 + $0x1c] sm:$0x1] %vm7_vm1, %v12_v42   ;;  %v83_v43 = vpop.permute.xlu2 %82  }
  0x7f   :  { %251 = vst.msk [vmem:[%s506_s1 + $0x8] sm:$0x1] %vm7_vm1, %v83_v43  }
  0x84   :  { %v31_v44 = vpop.permute.xlu1 %30  }
  0x85   :  { %v18_v45 = vpop.permute.xlu0 %17   ;;  %243 = vst.msk [vmem:[%s506_s1 + $0x2] sm:$0x1] %vm7_vm1, %v31_v44  }
  0x86   :  { %241 = vst.msk [vmem:[%s506_s1 + $0x1] sm:$0x1] %vm7_vm1, %v18_v45   ;;  %v103_v46 = vpop.permute.xlu2 %102  }
  0x87   :  { %254 = vst.msk [vmem:[%s506_s1 + $0x25] sm:$0x1] %vm7_vm1, %v103_v46  }
  0x8c   :  { %v57_v47 = vpop.permute.xlu1 %56  }
  0x8d   :  { %v51_v48 = vpop.permute.xlu0 %50   ;;  %247 = vst.msk [vmem:[%s506_s1 + $0x4] sm:$0x1] %vm7_vm1, %v57_v47  }
  0x8e   :  { %246 = vst.msk [vmem:[%s506_s1 + $0x21] sm:$0x1] %vm7_vm1, %v51_v48   ;;  %v122_v49 = vpop.permute.xlu2 %121  }
  0x8f   :  { %257 = vst.msk [vmem:[%s506_s1 + $0xb] sm:$0x1] %vm7_vm1, %v122_v49  }
  0x94   :  { %v77_v50 = vpop.permute.xlu1 %76  }
  0x95   :  { %v70_v51 = vpop.permute.xlu0 %69   ;;  %250 = vst.msk [vmem:[%s506_s1 + $0x23] sm:$0x1] %vm7_vm1, %v77_v50  }
  0x96   :  { %249 = vst.msk [vmem:[%s506_s1 + $0x5] sm:$0x1] %vm7_vm1, %v70_v51   ;;  %v142_v52 = vpop.permute.xlu2 %141  }
  0x97   :  { %260 = vst.msk [vmem:[%s506_s1 + $0x2a] sm:$0x1] %vm7_vm1, %v142_v52  }
  0x9c   :  { %v96_v53 = vpop.permute.xlu1 %95  }
  0x9d   :  { %v90_v54 = vpop.permute.xlu0 %89   ;;  %253 = vst.msk [vmem:[%s506_s1 + $0x9] sm:$0x1] %vm7_vm1, %v96_v53  }
  0x9e   :  { %252 = vst.msk [vmem:[%s506_s1 + $0x24] sm:$0x1] %vm7_vm1, %v90_v54   ;;  %v155_v55 = vpop.permute.xlu2 %154  }
  0x9f   :  { %262 = vst.msk [vmem:[%s506_s1 + $0x2b] sm:$0x1] %vm7_vm1, %v155_v55  }
  0xa4   :  { %v116_v56 = vpop.permute.xlu1 %115  }
  0xa5   :  { %v109_v57 = vpop.permute.xlu0 %108   ;;  %256 = vst.msk [vmem:[%s506_s1 + $0x28] sm:$0x1] %vm7_vm1, %v116_v56  }
  0xa6   :  { %255 = vst.msk [vmem:[%s506_s1 + $0xa] sm:$0x1] %vm7_vm1, %v109_v57   ;;  %v174_v58 = vpop.permute.xlu2 %173  }
  0xa7   :  { %265 = vst.msk [vmem:[%s506_s1 + $0x11] sm:$0x1] %vm7_vm1, %v174_v58  }
  0xac   :  { %v135_v59 = vpop.permute.xlu1 %134  }
  0xad   :  { %v129_v60 = vpop.permute.xlu0 %128   ;;  %259 = vst.msk [vmem:[%s506_s1 + $0xc] sm:$0x1] %vm7_vm1, %v135_v59  }
  0xae   :  { %258 = vst.msk [vmem:[%s506_s1 + $0x29] sm:$0x1] %vm7_vm1, %v129_v60   ;;  %v193_v61 = vpop.permute.xlu2 %192  }
  0xaf   :  { %268 = vst.msk [vmem:[%s506_s1 + $0x13] sm:$0x1] %vm7_vm1, %v193_v61  }
  0xb4   :  { %v233_v62 = vpop.permute.xlu1 %232  }
  0xb5   :  { %v148_v63 = vpop.permute.xlu0 %147   ;;  %274 = vst.msk [vmem:[%s506_s1 + $0x1b] sm:$0x1] %vm234_vm2, %v233_v62  }
  0xb6   :  { %275 = vst.msk [vmem:[%s506_s1 + $0x1b] sm:$0x1] %vm237_vm3, %v233_v62   ;;  %v211_v0 = vpop.permute.xlu2 %210  }
  0xb7   :  { %261 = vst.msk [vmem:[%s506_s1 + $0xd] sm:$0x1] %vm7_vm1, %v148_v63  }
  0xb8   :  { %271 = vst.msk [vmem:[%s506_s1 + $0x18] sm:$0x1] %vm7_vm1, %v211_v0  }
  0xbc   :  { %v168_v2 = vpop.permute.xlu1 %167  }
  0xbd   :  { %v161_v3 = vpop.permute.xlu0 %160   ;;  %264 = vst.msk [vmem:[%s506_s1 + $0x2c] sm:$0x1] %vm7_vm1, %v168_v2  }
  0xbe   :  { %263 = vst.msk [vmem:[%s506_s1 + $0x10] sm:$0x1] %vm7_vm1, %v161_v3  }
  0xc4   :  { %v187_v4 = vpop.permute.xlu1 %186  }
  0xc5   :  { %v181_v5 = vpop.permute.xlu0 %180   ;;  %267 = vst.msk [vmem:[%s506_s1 + $0x12] sm:$0x1] %vm7_vm1, %v187_v4  }
  0xc6   :  { %266 = vst.msk [vmem:[%s506_s1 + $0x2d] sm:$0x1] %vm7_vm1, %v181_v5  }
  0xcc   :  { %v205_v6 = vpop.permute.xlu1 %204  }
  0xcd   :  { %v199_v7 = vpop.permute.xlu0 %198   ;;  %270 = vst.msk [vmem:[%s506_s1 + $0x15] sm:$0x1] %vm7_vm1, %v205_v6  }
  0xce   :  { %269 = vst.msk [vmem:[%s506_s1 + $0x14] sm:$0x1] %vm7_vm1, %v199_v7  }
  0xd4   :  { %v223_v8 = vpop.permute.xlu1 %222  }
  0xd5   :  { %v217_v9 = vpop.permute.xlu0 %216   ;;  %273 = vst.msk [vmem:[%s506_s1 + $0x1a] sm:$0x1] %vm7_vm1, %v223_v8  }
  0xd6   :  { %272 = vst.msk [vmem:[%s506_s1 + $0x19] sm:$0x1] %vm7_vm1, %v217_v9  }

// kernel: squeeze.6
= control target key start
LH: loop header
LB: loop body
LE: loop exit
PB: predicated region body
PF: predicated region fallthrough
CT: control target
= control target key end

     0   :  { %s479_s10 = smov 124   ;;  %s480_s11 = smov 116   ;;  %vm297_vm0 = vcmask 982016   ;;  %vm319_vm1 = vcmask 1014784   ;;  %vm3_vm2 = vcmask 97280   ;;  %vm301_vm3 = vcmask 64512   ;;  %s928_s0 = inlined_call_operand.vmem [shape: f32[1728], index: 0, kind: input, shape index: {}]   ;;  %s929_s1 = inlined_call_operand.vmem [shape: f32[1,12,12,12], index: 1, kind: output, shape index: {}]  }
   0x1   :  { %v339_v0 = vld.sshfl [vmem:[%s928_s0 + $0x1] sm:$0xff pattern:$0xcccc9306]   ;;  %v31_v1 = vld [vmem:[%s928_s0] ss:$3 sm:$0x1f]  }
   0x2   :  { %11 = vrot.lane.b32.xlu0 %v339_v0, %s479_s10  ;;  %32 = vrot.lane.b32.xlu1 %v31_v1, %s480_s11  ;;  %v343_v2 = vld.sshfl [vmem:[%s928_s0 + $0x2] sm:$0xff pattern:$0x99999063]   ;;  %s481_s14 = smov 108   ;;  %s482_s15 = smov 120   ;;  %vm308_vm4 = vcmask 97344  }
   0x3   :  { %54 = vrot.lane.b32.xlu2 %v343_v2, %s481_s14  ;;  %s483_s16 = smov 112   ;;  %v63_v3 = vld [vmem:[%s928_s0] ss:$3 sm:$0x1f]   ;;  %s484_s19 = smov 104   ;;  %vm323_vm5 = vcmask 31744  }
   0x4   :  { %v365_v4 = vld [vmem:[%s928_s0 + $0x2] ss:$3 sm:$0xf]   ;;  %s485_s22 = smov 100   ;;  %s486_s23 = smov 96   ;;  %vm330_vm6 = vcmask 97312  }
   0x5   :  { %v93_v5 = vld [vmem:[%s928_s0] ss:$3 sm:$0x1f]   ;;  %s487_s26 = smov 92   ;;  %s488_s29 = smov 88  }
   0x6   :  { %v375_v6 = vld [vmem:[%s928_s0 + $0x2] ss:$3 sm:$0xf]   ;;  %s489_s30 = smov 84   ;;  %s490_s4 = smov 80  }
   0x7   :  { %v123_v7 = vld [vmem:[%s928_s0] ss:$3 sm:$0x1f]   ;;  %v383_v8 = vld [vmem:[%s928_s0 + $0x2] ss:$3 sm:$0xf]  }
   0x8   :  { %s491_s7 = smov 76   ;;  %s492_s8 = smov 72   ;;  %v150_v9 = vld [vmem:[%s928_s0] ss:$3 sm:$0x1f]  }
   0x9   :  { %v388_v10 = vld.sshfl [vmem:[%s928_s0 + $0x1] sm:$0xff pattern:$0x99999063]   ;;  %s493_s13 = smov 68   ;;  %s495_s17 = smov 60  }
   0xa   :  { %22 = vrot.lane.b32.xlu0 %v343_v2, %s482_s15  ;;  %43 = vrot.lane.b32.xlu1 %v339_v0, %s483_s16  ;;  %v392_v11 = vld [vmem:[%s928_s0 + $0x2] ss:$3 sm:$0xf]   ;;  %s494_s16 = smov 64   ;;  %v320_v15 = vsel %vm319_vm1, %v343_v2, %v388_v10  ;;  %s498_s24 = smov 4  }
   0xb   :  { %64 = vrot.lane.b32.xlu2 %v63_v3, %s484_s19  ;;  %v178_v12 = vld [vmem:[%s928_s0] ss:$3 sm:$0x1f]   ;;  %s499_s25 = smov 52   ;;  %s501_s2 = smov 44  }
   0xc   :  { %v294_v13 = vld.sshfl [vmem:[%s928_s0] sm:$0xff pattern:$0xcccc9306]   ;;  %v401_v16 = vld [vmem:[%s928_s0 + $0x2] ss:$3 sm:$0xf]  }
   0xd   :  { %v298_v14 = vsel %vm297_vm0, %v339_v0, %v294_v13  ;;  %v206_v17 = vld [vmem:[%s928_s0] ss:$3 sm:$0x1f]   ;;  %s502_s3 = smov 40   ;;  %s503_s6 = smov 36  }
   0xe   :  { %v410_v18 = vld [vmem:[%s928_s0 + $0x2] ss:$3 sm:$0xf]   ;;  %s506_s11 = smov 24   ;;  %s507_s12 = smov 20  }
   0xf   :  { %v420_v19 = vld [vmem:[%s928_s0 + $0x2] ss:$3 sm:$0xf]   ;;  %v2_v51 = vld [vmem:[%s928_s0] ss:$3 sm:$0x1f]  }
  0x10   :  { %v430_v20 = vld [vmem:[%s928_s0 + $0x2] ss:$3 sm:$0xf]   ;;  %4 = vst.msk [vmem:[%s929_s1] ss:$40 sm:$0x3] %vm3_vm2, %v2_v51  }
  0x11   :  { %337 = vst.msk [vmem:[%s929_s1 - $0x4] ss:$44 sm:$0xc] %vm3_vm2, %v2_v51  }
  0x12   :  { %75 = vrot.lane.b32.xlu0 %v339_v0, %s485_s22  ;;  %86 = vrot.lane.b32.xlu1 %v365_v4, %s486_s23  ;;  %s496_s22 = smov 56   ;;  %s497_s23 = smov 8   ;;  %338 = vst.msk [vmem:[%s929_s1 + $0xa4] sm:$0x10] %vm3_vm2, %v2_v51  }
  0x13   :  { %94 = vrot.lane.b32.xlu2 %v93_v5, %s487_s26 }
  0x1a   :  { %105 = vrot.lane.b32.xlu0 %v339_v0, %s488_s29  ;;  %116 = vrot.lane.b32.xlu1 %v375_v6, %s489_s30  ;;  %s500_s30 = smov 48  }
  0x1b   :  { %124 = vrot.lane.b32.xlu2 %v123_v7, %s490_s4 }
  0x22   :  { %132 = vrot.lane.b32.xlu0 %v339_v0, %s491_s7  ;;  %143 = vrot.lane.b32.xlu1 %v383_v8, %s492_s8  ;;  %s504_s7 = smov 32   ;;  %s505_s8 = smov 28  }
  0x23   :  { %151 = vrot.lane.b32.xlu2 %v150_v9, %s493_s13  ;;  %s508_s13 = smov 16  }
  0x2a   :  { %160 = vrot.lane.b32.xlu0 %v388_v10, %s494_s16  ;;  %171 = vrot.lane.b32.xlu1 %v392_v11, %s495_s17  ;;  %s509_s16 = smov 12  }
  0x2b   :  { %179 = vrot.lane.b32.xlu2 %v178_v12, %s496_s22 }
  0x32   :  { %299 = vrot.lane.b32.xlu0 %v298_v14, %s497_s23  ;;  %321 = vrot.lane.b32.xlu1 %v320_v15, %s498_s24 }
  0x33   :  { %188 = vrot.lane.b32.xlu2 %v388_v10, %s499_s25 }
  0x3a   :  { %199 = vrot.lane.b32.xlu0 %v401_v16, %s500_s30  ;;  %207 = vrot.lane.b32.xlu1 %v206_v17, %s501_s2 }
  0x3b   :  { %216 = vrot.lane.b32.xlu2 %v388_v10, %s502_s3 }
  0x42   :  { %227 = vrot.lane.b32.xlu0 %v410_v18, %s503_s6  ;;  %235 = vrot.lane.b32.xlu1 %v294_v13, %s504_s7 }
  0x43   :  { %246 = vrot.lane.b32.xlu2 %v388_v10, %s505_s8 }
  0x4a   :  { %257 = vrot.lane.b32.xlu0 %v420_v19, %s506_s11  ;;  %265 = vrot.lane.b32.xlu1 %v294_v13, %s507_s12 }
  0x4b   :  { %276 = vrot.lane.b32.xlu2 %v388_v10, %s508_s13 }
  0x52   :  { %287 = vrot.lane.b32.xlu0 %v430_v20, %s509_s16 }
  0x5d   :  { %v55_v21 = vpop.permute.xlu2 %54  }
  0x5e   :  { %355 = vst.msk [vmem:[%s929_s1 + $0x47] ss:$44 sm:$0x3] %vm3_vm2, %v55_v21  }
  0x5f   :  { %356 = vst.msk [vmem:[%s929_s1 + $0x19] sm:$0x4] %vm3_vm2, %v55_v21  }
  0x60   :  { %357 = vst.msk [vmem:[%s929_s1 + $0x98] sm:$0x8] %vm3_vm2, %v55_v21  }
  0x65   :  { %v65_v22 = vpop.permute.xlu2 %64  }
  0x66   :  { %358 = vst.msk [vmem:[%s929_s1 + $0x2] ss:$40 sm:$0x3] %vm3_vm2, %v65_v22  }
  0x67   :  { %359 = vst.msk [vmem:[%s929_s1 - $0x2] ss:$44 sm:$0xc] %vm3_vm2, %v65_v22  }
  0x68   :  { %360 = vst.msk [vmem:[%s929_s1 + $0xa6] sm:$0x10] %vm3_vm2, %v65_v22  }
  0x6d   :  { %v95_v23 = vpop.permute.xlu2 %94  }
  0x6e   :  { %368 = vst.msk [vmem:[%s929_s1 + $0x3] ss:$40 sm:$0x3] %vm3_vm2, %v95_v23  }
  0x6f   :  { %369 = vst.msk [vmem:[%s929_s1 - $0x1] ss:$44 sm:$0xc] %vm3_vm2, %v95_v23  }
  0x70   :  { %370 = vst.msk [vmem:[%s929_s1 + $0xa7] sm:$0x10] %vm3_vm2, %v95_v23  }
  0x74   :  { %v12_v24 = vpop.permute.xlu0 %11   ;;  %v33_v25 = vpop.permute.xlu1 %32  }
  0x75   :  { %340 = vst.msk [vmem:[%s929_s1 + $0x63] ss:$-88 sm:$0x3] %vm3_vm2, %v12_v24   ;;  %v125_v26 = vpop.permute.xlu2 %124  }
  0x76   :  { %341 = vst.msk [vmem:[%s929_s1 - $0x71] ss:$84 sm:$0xc] %vm3_vm2, %v12_v24  }
  0x77   :  { %342 = vst.msk [vmem:[%s929_s1 + $0xb3] sm:$0x10] %vm3_vm2, %v12_v24  }
  0x78   :  { %347 = vst.msk [vmem:[%s929_s1 + $0x1] ss:$40 sm:$0x3] %vm3_vm2, %v33_v25  }
  0x79   :  { %348 = vst.msk [vmem:[%s929_s1 - $0x3] ss:$44 sm:$0xc] %vm3_vm2, %v33_v25  }
  0x7a   :  { %349 = vst.msk [vmem:[%s929_s1 + $0xa5] sm:$0x10] %vm3_vm2, %v33_v25  }
  0x7b   :  { %378 = vst.msk [vmem:[%s929_s1 + $0x4] ss:$44 sm:$0x3] %vm3_vm2, %v125_v26  }
  0x7c   :  { %v23_v27 = vpop.permute.xlu0 %22   ;;  %v44_v28 = vpop.permute.xlu1 %43   ;;  %129 = vst.msk [vmem:[%s929_s1] ss:$44 sm:$0x1c] %vm3_vm2, %v125_v26  }
  0x7d   :  { %344 = vst.msk [vmem:[%s929_s1 + $0x46] ss:$44 sm:$0x3] %vm3_vm2, %v23_v27   ;;  %v152_v29 = vpop.permute.xlu2 %151  }
  0x7e   :  { %345 = vst.msk [vmem:[%s929_s1 + $0x18] sm:$0x4] %vm3_vm2, %v23_v27  }
  0x7f   :  { %346 = vst.msk [vmem:[%s929_s1 + $0x97] sm:$0x8] %vm3_vm2, %v23_v27  }
  0x80   :  { %351 = vst.msk [vmem:[%s929_s1 + $0x64] ss:$-84 sm:$0x3] %vm3_vm2, %v44_v28  }
  0x81   :  { %352 = vst.msk [vmem:[%s929_s1 - $0x78] ss:$88 sm:$0xc] %vm3_vm2, %v44_v28  }
  0x82   :  { %353 = vst.msk [vmem:[%s929_s1 + $0xb4] sm:$0x10] %vm3_vm2, %v44_v28  }
  0x83   :  { %386 = vst.msk [vmem:[%s929_s1 + $0x5] ss:$44 sm:$0x3] %vm3_vm2, %v152_v29  }
  0x84   :  { %v76_v30 = vpop.permute.xlu0 %75   ;;  %v87_v31 = vpop.permute.xlu1 %86   ;;  %387 = vst.msk [vmem:[%s929_s1 + $0x1] ss:$44 sm:$0x1c] %vm3_vm2, %v152_v29  }
  0x85   :  { %362 = vst.msk [vmem:[%s929_s1 + $0x65] ss:$-84 sm:$0x3] %vm3_vm2, %v76_v30   ;;  %v180_v32 = vpop.permute.xlu2 %179  }
  0x86   :  { %363 = vst.msk [vmem:[%s929_s1 - $0x77] ss:$88 sm:$0xc] %vm3_vm2, %v76_v30  }
  0x87   :  { %364 = vst.msk [vmem:[%s929_s1 + $0xb5] sm:$0x10] %vm3_vm2, %v76_v30  }
  0x88   :  { %366 = vst.msk [vmem:[%s929_s1 + $0x20] ss:$40 sm:$0x3] %vm3_vm2, %v87_v31  }
  0x89   :  { %367 = vst.msk [vmem:[%s929_s1 + $0x1c] ss:$44 sm:$0xc] %vm3_vm2, %v87_v31  }
  0x8a   :  { %395 = vst.msk [vmem:[%s929_s1 + $0x6] ss:$44 sm:$0x3] %vm3_vm2, %v180_v32  }
  0x8b   :  { %396 = vst.msk [vmem:[%s929_s1 + $0x2] ss:$44 sm:$0x1c] %vm3_vm2, %v180_v32  }
  0x8c   :  { %v106_v33 = vpop.permute.xlu0 %105   ;;  %v117_v34 = vpop.permute.xlu1 %116  }
  0x8d   :  { %372 = vst.msk [vmem:[%s929_s1 + $0x66] ss:$-84 sm:$0x3] %vm3_vm2, %v106_v33   ;;  %v189_v35 = vpop.permute.xlu2 %188  }
  0x8e   :  { %373 = vst.msk [vmem:[%s929_s1 - $0x76] ss:$88 sm:$0xc] %vm3_vm2, %v106_v33  }
  0x8f   :  { %374 = vst.msk [vmem:[%s929_s1 + $0xb6] sm:$0x10] %vm3_vm2, %v106_v33  }
  0x90   :  { %376 = vst.msk [vmem:[%s929_s1 + $0x21] ss:$40 sm:$0x3] %vm3_vm2, %v117_v34  }
  0x91   :  { %377 = vst.msk [vmem:[%s929_s1 + $0x1d] ss:$44 sm:$0xc] %vm3_vm2, %v117_v34  }
  0x92   :  { %398 = vst.msk [vmem:[%s929_s1 + $0x41] ss:$40 sm:$0x3] %vm3_vm2, %v189_v35  }
  0x93   :  { %399 = vst.msk [vmem:[%s929_s1 + $0x13] sm:$0x4] %vm3_vm2, %v189_v35  }
  0x94   :  { %v133_v36 = vpop.permute.xlu0 %132   ;;  %v144_v37 = vpop.permute.xlu1 %143   ;;  %400 = vst.msk [vmem:[%s929_s1 + $0x92] sm:$0x8] %vm3_vm2, %v189_v35  }
  0x95   :  { %380 = vst.msk [vmem:[%s929_s1 + $0x67] ss:$-84 sm:$0x3] %vm3_vm2, %v133_v36   ;;  %v217_v38 = vpop.permute.xlu2 %216  }
  0x96   :  { %381 = vst.msk [vmem:[%s929_s1 - $0x75] ss:$88 sm:$0xc] %vm3_vm2, %v133_v36  }
  0x97   :  { %382 = vst.msk [vmem:[%s929_s1 + $0xb7] sm:$0x10] %vm3_vm2, %v133_v36  }
  0x98   :  { %384 = vst.msk [vmem:[%s929_s1 + $0x22] ss:$40 sm:$0x3] %vm3_vm2, %v144_v37  }
  0x99   :  { %385 = vst.msk [vmem:[%s929_s1 + $0x1e] ss:$44 sm:$0xc] %vm3_vm2, %v144_v37  }
  0x9a   :  { %407 = vst.msk [vmem:[%s929_s1 + $0x42] ss:$40 sm:$0x3] %vm3_vm2, %v217_v38  }
  0x9b   :  { %408 = vst.msk [vmem:[%s929_s1 + $0x14] sm:$0x4] %vm3_vm2, %v217_v38  }
  0x9c   :  { %v161_v39 = vpop.permute.xlu0 %160   ;;  %v172_v40 = vpop.permute.xlu1 %171   ;;  %409 = vst.msk [vmem:[%s929_s1 + $0x93] sm:$0x8] %vm3_vm2, %v217_v38  }
  0x9d   :  { %389 = vst.msk [vmem:[%s929_s1 + $0x40] ss:$40 sm:$0x3] %vm3_vm2, %v161_v39   ;;  %v247_v41 = vpop.permute.xlu2 %246  }
  0x9e   :  { %390 = vst.msk [vmem:[%s929_s1 + $0x12] sm:$0x4] %vm3_vm2, %v161_v39  }
  0x9f   :  { %391 = vst.msk [vmem:[%s929_s1 + $0x91] sm:$0x8] %vm3_vm2, %v161_v39  }
  0xa0   :  { %393 = vst.msk [vmem:[%s929_s1 + $0x23] ss:$40 sm:$0x3] %vm3_vm2, %v172_v40  }
  0xa1   :  { %394 = vst.msk [vmem:[%s929_s1 + $0x1f] ss:$44 sm:$0xc] %vm3_vm2, %v172_v40  }
  0xa2   :  { %417 = vst.msk [vmem:[%s929_s1 + $0x43] ss:$40 sm:$0x3] %vm3_vm2, %v247_v41  }
  0xa3   :  { %418 = vst.msk [vmem:[%s929_s1 + $0x15] sm:$0x4] %vm3_vm2, %v247_v41  }
  0xa4   :  { %v300_v42 = vpop.permute.xlu0 %299   ;;  %v322_v43 = vpop.permute.xlu1 %321   ;;  %419 = vst.msk [vmem:[%s929_s1 + $0x94] sm:$0x8] %vm3_vm2, %v247_v41  }
  0xa5   :  { %434 = vst.msk [vmem:[%s929_s1 + $0x62] ss:$-88 sm:$0x3] %vm301_vm3, %v300_v42   ;;  %v277_v44 = vpop.permute.xlu2 %276  }
  0xa6   :  { %435 = vst.msk [vmem:[%s929_s1 - $0x72] ss:$84 sm:$0xc] %vm301_vm3, %v300_v42  }
  0xa7   :  { %436 = vst.msk [vmem:[%s929_s1 + $0xb2] sm:$0x10] %vm301_vm3, %v300_v42  }
  0xa8   :  { %437 = vst.msk [vmem:[%s929_s1 + $0x62] ss:$-88 sm:$0x3] %vm308_vm4, %v300_v42  }
  0xa9   :  { %438 = vst.msk [vmem:[%s929_s1 - $0x72] ss:$84 sm:$0xc] %vm308_vm4, %v300_v42  }
  0xaa   :  { %439 = vst.msk [vmem:[%s929_s1 + $0xb2] sm:$0x10] %vm308_vm4, %v300_v42  }
  0xab   :  { %442 = vst.msk [vmem:[%s929_s1 + $0x45] ss:$44 sm:$0x3] %vm323_vm5, %v322_v43  }
  0xac   :  { %443 = vst.msk [vmem:[%s929_s1 + $0x17] sm:$0x4] %vm323_vm5, %v322_v43   ;;  %v200_v45 = vpop.permute.xlu0 %199   ;;  %v208_v46 = vpop.permute.xlu1 %207  }
  0xad   :  { %444 = vst.msk [vmem:[%s929_s1 + $0x96] sm:$0x8] %vm323_vm5, %v322_v43  }
  0xae   :  { %445 = vst.msk [vmem:[%s929_s1 + $0x45] ss:$44 sm:$0x3] %vm330_vm6, %v322_v43  }
  0xaf   :  { %446 = vst.msk [vmem:[%s929_s1 + $0x17] sm:$0x4] %vm330_vm6, %v322_v43  }
  0xb0   :  { %447 = vst.msk [vmem:[%s929_s1 + $0x96] sm:$0x8] %vm330_vm6, %v322_v43  }
  0xb1   :  { %402 = vst.msk [vmem:[%s929_s1 + $0x24] ss:$44 sm:$0x3] %vm3_vm2, %v200_v45  }
  0xb2   :  { %403 = vst.msk [vmem:[%s929_s1 + $0x20] ss:$44 sm:$0xc] %vm3_vm2, %v200_v45  }
  0xb3   :  { %404 = vst.msk [vmem:[%s929_s1 + $0x7] ss:$44 sm:$0x3] %vm3_vm2, %v208_v46  }
  0xb4   :  { %405 = vst.msk [vmem:[%s929_s1 + $0x3] ss:$44 sm:$0x1c] %vm3_vm2, %v208_v46   ;;  %v228_v47 = vpop.permute.xlu0 %227   ;;  %v236_v48 = vpop.permute.xlu1 %235  }
  0xb5   :  { %411 = vst.msk [vmem:[%s929_s1 + $0x25] ss:$44 sm:$0x3] %vm3_vm2, %v228_v47  }
  0xb6   :  { %412 = vst.msk [vmem:[%s929_s1 + $0x21] ss:$44 sm:$0xc] %vm3_vm2, %v228_v47  }
  0xb7   :  { %413 = vst.msk [vmem:[%s929_s1 + $0x60] ss:$-88 sm:$0x3] %vm3_vm2, %v236_v48  }
  0xb8   :  { %414 = vst.msk [vmem:[%s929_s1 - $0x74] ss:$84 sm:$0xc] %vm3_vm2, %v236_v48  }
  0xb9   :  { %415 = vst.msk [vmem:[%s929_s1 + $0xb0] sm:$0x10] %vm3_vm2, %v236_v48  }
  0xba   :  { %427 = vst.msk [vmem:[%s929_s1 + $0x44] ss:$44 sm:$0x3] %vm3_vm2, %v277_v44  }
  0xbb   :  { %428 = vst.msk [vmem:[%s929_s1 + $0x16] sm:$0x4] %vm3_vm2, %v277_v44  }
  0xbc   :  { %v258_v49 = vpop.permute.xlu0 %257   ;;  %429 = vst.msk [vmem:[%s929_s1 + $0x95] sm:$0x8] %vm3_vm2, %v277_v44   ;;  %v266_v50 = vpop.permute.xlu1 %265  }
  0xbd   :  { %421 = vst.msk [vmem:[%s929_s1 + $0x26] ss:$44 sm:$0x3] %vm3_vm2, %v258_v49  }
  0xbe   :  { %422 = vst.msk [vmem:[%s929_s1 + $0x22] ss:$44 sm:$0xc] %vm3_vm2, %v258_v49  }
  0xbf   :  { %423 = vst.msk [vmem:[%s929_s1 + $0x61] ss:$-88 sm:$0x3] %vm3_vm2, %v266_v50  }
  0xc0   :  { %424 = vst.msk [vmem:[%s929_s1 - $0x73] ss:$84 sm:$0xc] %vm3_vm2, %v266_v50  }
  0xc1   :  { %425 = vst.msk [vmem:[%s929_s1 + $0xb1] sm:$0x10] %vm3_vm2, %v266_v50  }
  0xc4   :  { %v288_v52 = vpop.permute.xlu0 %287  }
  0xc5   :  { %431 = vst.msk [vmem:[%s929_s1 + $0x27] ss:$44 sm:$0x3] %vm3_vm2, %v288_v52  }
  0xc6   :  { %432 = vst.msk [vmem:[%s929_s1 + $0x23] ss:$44 sm:$0xc] %vm3_vm2, %v288_v52  }

// kernel: squeeze.5
= control target key start
LH: loop header
LB: loop body
LE: loop exit
PB: predicated region body
PF: predicated region fallthrough
CT: control target
= control target key end

     0   :  { %vm15_vm0 = vcmask 1043458   ;;  %vm19_vm1 = vcmask 1044484   ;;  %s47_s6 = smov 3  ;;  %s50_s7 = smov 12  ;;  %vm35_vm2 = vcmask 1044483   ;;  %vm182_vm3 = vcmask 1045508   ;;  %s3797_s0 = inlined_call_operand.vmem [shape: f32[5832], index: 0, kind: input, shape index: {}]   ;;  %s3798_s1 = inlined_call_operand.vmem [shape: f32[1,18,18,18], index: 1, kind: output, shape index: {}]  }
   0x1   :  { %v1477_v0 = vld [vmem:[%s3797_s0 + $0x18] ss:$-9 sm:%s47_s6]   ;;  %s10_s12 = smov 3  ;;  %v1479_v3 = vld [vmem:[%s3797_s0 + $0x1d] sm:$0x10]   ;;  %s13_s17 = smov 12 }
   0x2   :  { %v1478_v1 = vld [vmem:[%s3797_s0 + $0x72] ss:$-36 sm:%s50_s7]   ;;  %v1468_v7 = vld [vmem:[%s3797_s0 + $0x28] sm:$0x10]   ;;  %s68_s22 = smov 3  ;;  %s71_s23 = smov 12 }
   0x3   :  { %v53_v2 = vsel %vm15_vm0, %v1478_v1, %v1477_v0  ;;  %v1466_v4 = vld [vmem:[%s3797_s0 + $0x23] ss:$-27 sm:%s10_s12]   ;;  %s1942_s24 = smov 122   ;;  %v1483_v9 = vld [vmem:[%s3797_s0 + $0xe] ss:$27 sm:%s68_s22]   ;;  %s33_s29 = smov 24 }
   0x4   :  { %v57_v5 = vsel %vm19_vm1, %v1479_v3, %v53_v2  ;;  %v1467_v6 = vld [vmem:[%s3797_s0 + $0x2c] ss:$-9 sm:%s13_s17]   ;;  %s1943_s30 = smov 126   ;;  %v1485_v13 = vld [vmem:[%s3797_s0 + $0x13] sm:$0x10]   ;;  %s152_s6 = smov 3 }
   0x5   :  { %58 = vrot.lane.b32.xlu1 %v57_v5, %s1942_s24  ;;  %v16_v8 = vsel %vm15_vm0, %v1467_v6, %v1466_v4  ;;  %v1484_v11 = vld [vmem:[%s3797_s0 + $0x56] ss:$-27 sm:%s71_s23]   ;;  %s155_s9 = smov 12  ;;  %s131_s10 = smov 3  ;;  %v1491_v17 = vld [vmem:[%s3797_s0 + $0x9] sm:$0x10]  }
   0x6   :  { %v20_v10 = vsel %vm19_vm1, %v1468_v7, %v16_v8  ;;  %v74_v12 = vsel %vm15_vm0, %v1484_v11, %v1483_v9  ;;  %v1472_v14 = vld [vmem:[%s3797_s0 + $0x22] ss:$-9 sm:$0x7]   ;;  %v1473_v15 = vld [vmem:[%s3797_s0 + $0x97] ss:$-36 sm:%s33_s29]   ;;  %s89_s11 = smov 3 }
   0x7   :  { %21 = vrot.lane.b32.xlu0 %v20_v10, %s1943_s30  ;;  %v78_v16 = vsel %vm19_vm1, %v1485_v13, %v74_v12  ;;  %s92_s12 = smov 12  ;;  %s134_s15 = smov 12  ;;  %v1489_v18 = vld [vmem:[%s3797_s0 + $0x4] ss:$27 sm:%s89_s11]   ;;  %v36_v20 = vsel %vm35_vm2, %v1473_v15, %v1472_v14  ;;  %v1509_v28 = vld [vmem:[%s3797_s0 + $0x21] sm:$0x10]  }
   0x8   :  { %v1490_v19 = vld [vmem:[%s3797_s0 - $0xe] ss:$18 sm:%s92_s12]   ;;  %v1507_v21 = vld [vmem:[%s3797_s0 + $0xa] ss:$-9 sm:%s152_s6]   ;;  %s1944_s24 = smov 120   ;;  %s1945_s29 = smov 118  }
   0x9   :  { %v1508_v22 = vld [vmem:[%s3797_s0 + $0x2e] ss:$-9 sm:%s155_s9]   ;;  %v95_v23 = vsel %vm15_vm0, %v1490_v19, %v1489_v18  ;;  %s110_s30 = smov 3  ;;  %s1946_s2 = smov 124   ;;  %v1497_v29 = vld [vmem:[%s3797_s0 - $0x1] sm:$0x10]  }
   0xa   :  { %v1501_v24 = vld [vmem:[%s3797_s0 + $0xb] ss:$27 sm:%s131_s10]   ;;  %v99_v25 = vsel %vm19_vm1, %v1491_v17, %v95_v23  ;;  %v1502_v26 = vld [vmem:[%s3797_s0 - $0x34] ss:$27 sm:%s134_s15]   ;;  %v158_v27 = vsel %vm15_vm0, %v1508_v22, %v1507_v21  ;;  %s113_s5 = smov 12  ;;  %s194_s14 = smov 3 }
   0xb   :  { %100 = vrot.lane.b32.xlu2 %v99_v25, %s1945_s29  ;;  %v1495_v30 = vld [vmem:[%s3797_s0 + $0x15] ss:$-9 sm:%s110_s30]   ;;  %v137_v32 = vsel %vm15_vm0, %v1502_v26, %v1501_v24  ;;  %v1503_v33 = vld [vmem:[%s3797_s0 + $0x10] sm:$0x10]   ;;  %v162_v35 = vsel %vm19_vm1, %v1509_v28, %v158_v27  ;;  %s197_s15 = smov 12  ;;  %s172_s16 = smov 3 }
   0xc   :  { %v1496_v31 = vld [vmem:[%s3797_s0 + $0x39] ss:$-9 sm:%s113_s5]   ;;  %s175_s17 = smov 12  ;;  %v141_v37 = vsel %vm19_vm1, %v1503_v33, %v137_v32  ;;  %s217_s18 = smov 24  ;;  %v1520_v47 = vld [vmem:[%s3797_s0 + $0xd] sm:$0x10]  }
   0xd   :  { %79 = vrot.lane.b32.xlu1 %v78_v16, %s1944_s24  ;;  %v116_v34 = vsel %vm15_vm0, %v1496_v31, %v1495_v30  ;;  %v1518_v38 = vld [vmem:[%s3797_s0 + $0x2c] ss:$-9 sm:%s194_s14]   ;;  %s1947_s23 = smov 112   ;;  %s180_s26 = smov 48  ;;  %v1531_v60 = vld [vmem:[%s3797_s0 + $0x1d] sm:$0x10]  }
   0xe   :  { %v120_v36 = vsel %vm19_vm1, %v1497_v29, %v116_v34  ;;  %v173_v39 = vld [vmem:[%s3797_s0] ss:$45 sm:%s172_s16]   ;;  %s1948_s29 = smov 116   ;;  %s1949_s30 = smov 114   ;;  %v1537_v62 = vld [vmem:[%s3797_s0 + $0x13] sm:$0x10]  }
   0xf   :  { %37 = vrot.lane.b32.xlu0 %v36_v20, %s1946_s2  ;;  %v1513_v40 = vld [vmem:[%s3797_s0 + $0x24] ss:$-9 sm:%s175_s17]   ;;  %v1524_v42 = vld [vmem:[%s3797_s0 + $0x22] ss:$-9 sm:$0x7]   ;;  %s273_s6 = smov 3 }
  0x10   :  { %v1519_v41 = vld [vmem:[%s3797_s0 - $0x1c] ss:$18 sm:%s197_s15]   ;;  %v1525_v43 = vld [vmem:[%s3797_s0 + $0x97] ss:$-36 sm:%s217_s18]   ;;  %s276_s7 = smov 12  ;;  %v178_v44 = vsel %vm15_vm0, %v1513_v40, %v173_v39  ;;  %s252_s12 = smov 3 }
  0x11   :  { %v1514_v45 = vld [vmem:[%s3797_s0 + $0x48] ss:$-9 sm:%s180_s26]   ;;  %v200_v46 = vsel %vm15_vm0, %v1519_v41, %v1518_v38  ;;  %s231_s13 = smov 3  ;;  %v220_v48 = vsel %vm35_vm2, %v1525_v43, %v1524_v42  ;;  %s234_s14 = smov 12  ;;  %v1561_v9 = vld [vmem:[%s3797_s0 + $0x21] sm:$0x10]  }
  0x12   :  { %v1541_v49 = vld [vmem:[%s3797_s0 + $0x4] ss:$27 sm:%s273_s6]   ;;  %s255_s19 = smov 12  ;;  %v183_v51 = vsel %vm182_vm3, %v1514_v45, %v178_v44  ;;  %v204_v52 = vsel %vm19_vm1, %v1520_v47, %v200_v46  ;;  %s1950_s24 = smov 106   ;;  %v1543_v58 = vld [vmem:[%s3797_s0 + $0x9] sm:$0x10]  }
  0x13   :  { %121 = vrot.lane.b32.xlu2 %v120_v36, %s1948_s29  ;;  %v1542_v50 = vld [vmem:[%s3797_s0 - $0xe] ss:$18 sm:%s276_s7]   ;;  %s1951_s29 = smov 110   ;;  %s336_s4 = smov 3  ;;  %v1549_v11 = vld [vmem:[%s3797_s0 - $0x1] sm:$0x10]  }
  0x14   :  { %v1535_v53 = vld [vmem:[%s3797_s0 + $0xe] ss:$27 sm:%s252_s12]   ;;  %v1536_v56 = vld [vmem:[%s3797_s0 + $0x56] ss:$-27 sm:%s255_s19]   ;;  %v279_v57 = vsel %vm15_vm0, %v1542_v50, %v1541_v49  ;;  %s339_s5 = smov 12  ;;  %s315_s10 = smov 3 }
  0x15   :  { %163 = vrot.lane.b32.xlu1 %v162_v35, %s1947_s23  ;;  %v1529_v54 = vld [vmem:[%s3797_s0 + $0x18] ss:$18 sm:%s231_s13]   ;;  %v258_v61 = vsel %vm15_vm0, %v1536_v56, %v1535_v53  ;;  %s294_s11 = smov 3  ;;  %v283_v63 = vsel %vm19_vm1, %v1543_v58, %v279_v57  ;;  %s297_s12 = smov 12  ;;  %v1555_v13 = vld [vmem:[%s3797_s0 + $0x19] sm:$0x10]  }
  0x16   :  { %v1530_v55 = vld [vmem:[%s3797_s0 + $0x21] ss:$-9 sm:%s234_s14]   ;;  %s318_s17 = smov 12  ;;  %v262_v3 = vsel %vm19_vm1, %v1537_v62, %v258_v61  ;;  %v1547_v5 = vld [vmem:[%s3797_s0 + $0x15] ss:$-9 sm:%s294_s11]   ;;  %s1953_s22 = smov 100  }
  0x17   :  { %142 = vrot.lane.b32.xlu0 %v141_v37, %s1949_s30  ;;  %s1952_s30 = smov 108   ;;  %v237_v59 = vsel %vm15_vm0, %v1530_v55, %v1529_v54  ;;  %v1559_v0 = vld [vmem:[%s3797_s0 + $0xa] ss:$-9 sm:%s336_s4]   ;;  %s1954_s27 = smov 104   ;;  %v1572_v28 = vld [vmem:[%s3797_s0 + $0xd] sm:$0x10]  }
  0x18   :  { %v1560_v1 = vld [vmem:[%s3797_s0 + $0x2e] ss:$-9 sm:%s339_s5]   ;;  %v241_v2 = vsel %vm19_vm1, %v1531_v60, %v237_v59  ;;  %v1553_v4 = vld [vmem:[%s3797_s0 + $0x14] ss:$-9 sm:%s315_s10]   ;;  %s1955_s28 = smov 102   ;;  %s399_s2 = smov 3 }
  0x19   :  { %v1548_v6 = vld [vmem:[%s3797_s0 + $0x39] ss:$-9 sm:%s297_s12]   ;;  %v342_v8 = vsel %vm15_vm0, %v1560_v1, %v1559_v0  ;;  %s402_s3 = smov 12  ;;  %s378_s8 = smov 3  ;;  %v1578_v24 = vld [vmem:[%s3797_s0 + $0x27] sm:$0x10]  }
  0x1a   :  { %v1554_v7 = vld [vmem:[%s3797_s0 + $0x6e] ss:$-36 sm:%s318_s17]   ;;  %v300_v10 = vsel %vm15_vm0, %v1548_v6, %v1547_v5  ;;  %s356_s9 = smov 3  ;;  %v346_v14 = vsel %vm19_vm1, %v1561_v9, %v342_v8  ;;  %s359_s10 = smov 12  ;;  %v1596_v39 = vld [vmem:[%s3797_s0 + $0x9] sm:$0x10]  }
  0x1b   :  { %184 = vrot.lane.b32.xlu2 %v183_v51, %s1951_s29  ;;  %v321_v12 = vsel %vm15_vm0, %v1554_v7, %v1553_v4  ;;  %v1576_v15 = vld [vmem:[%s3797_s0 + $0x7] ss:$27 sm:%s399_s2]   ;;  %s381_s15 = smov 12  ;;  %v304_v17 = vsel %vm19_vm1, %v1549_v11, %v300_v10  ;;  %s1956_s20 = smov 94   ;;  %v1584_v41 = vld [vmem:[%s3797_s0 + $0x1d] sm:$0x10]  }
  0x1c   :  { %v1577_v16 = vld [vmem:[%s3797_s0 + $0x2b] ss:$-9 sm:%s402_s3]   ;;  %v325_v18 = vsel %vm19_vm1, %v1555_v13, %v321_v12  ;;  %v1565_v21 = vld [vmem:[%s3797_s0 + $0x24] ss:$-9 sm:%s359_s10]   ;;  %s364_s23 = smov 48  ;;  %s1957_s26 = smov 98  }
  0x1d   :  { %221 = vrot.lane.b32.xlu1 %v220_v48, %s1950_s24  ;;  %v1570_v19 = vld [vmem:[%s3797_s0 + $0x2c] ss:$-9 sm:%s378_s8]   ;;  %v405_v23 = vsel %vm15_vm0, %v1577_v16, %v1576_v15  ;;  %s465_s2 = smov 12  ;;  %s441_s7 = smov 3  ;;  %v1590_v43 = vld [vmem:[%s3797_s0 + $0x13] sm:$0x10]  }
  0x1e   :  { %v357_v20 = vld [vmem:[%s3797_s0] ss:$45 sm:%s356_s9]   ;;  %s420_s8 = smov 3  ;;  %v409_v29 = vsel %vm19_vm1, %v1578_v24, %v405_v23  ;;  %s423_s9 = smov 12  ;;  %v1606_v56 = vld [vmem:[%s3797_s0 + $0x19] sm:$0x10]  }
  0x1f   :  { %205 = vrot.lane.b32.xlu0 %v204_v52, %s1952_s30  ;;  %v1571_v22 = vld [vmem:[%s3797_s0 - $0x1c] ss:$18 sm:%s381_s15]   ;;  %s462_s30 = smov 3  ;;  %v362_v25 = vsel %vm15_vm0, %v1565_v21, %v357_v20  ;;  %s444_s14 = smov 12  ;;  %v1612_v52 = vld [vmem:[%s3797_s0 + $0x21] sm:$0x10]  }
  0x20   :  { %v1566_v26 = vld [vmem:[%s3797_s0 + $0x48] ss:$-9 sm:%s364_s23]   ;;  %v384_v27 = vsel %vm15_vm0, %v1571_v22, %v1570_v19  ;;  %s1959_s19 = smov 88   ;;  %v1583_v36 = vld [vmem:[%s3797_s0 + $0x21] ss:$-9 sm:%s423_s9]   ;;  %s1960_s24 = smov 92  }
  0x21   :  { %v1594_v30 = vld [vmem:[%s3797_s0 + $0x4] ss:$27 sm:%s462_s30]   ;;  %v367_v32 = vsel %vm182_vm3, %v1566_v26, %v362_v25  ;;  %v388_v33 = vsel %vm19_vm1, %v1572_v28, %v384_v27  ;;  %v1589_v37 = vld [vmem:[%s3797_s0 + $0x56] ss:$-27 sm:%s444_s14]   ;;  %s1961_s25 = smov 90   ;;  %s518_s3 = smov 3 }
  0x22   :  { %v1595_v31 = vld [vmem:[%s3797_s0 - $0xe] ss:$18 sm:%s465_s2]   ;;  %s521_s4 = smov 12  ;;  %s497_s5 = smov 3  ;;  %v1610_v47 = vld [vmem:[%s3797_s0 + $0xa] ss:$-9 sm:%s518_s3]  }
  0x23   :  { %242 = vrot.lane.b32.xlu2 %v241_v2, %s1954_s27  ;;  %s1958_s27 = smov 96   ;;  %v1588_v34 = vld [vmem:[%s3797_s0 + $0xe] ss:$27 sm:%s441_s7]   ;;  %v468_v38 = vsel %vm15_vm0, %v1595_v31, %v1594_v30  ;;  %s500_s6 = smov 12  ;;  %vm648_vm4 = vcmask 1044482   ;;  %vm3_vm5 = vcmask 146432  }
  0x24   :  { %v1582_v35 = vld [vmem:[%s3797_s0 + $0x18] ss:$18 sm:%s420_s8]   ;;  %v447_v42 = vsel %vm15_vm0, %v1589_v37, %v1588_v34  ;;  %v472_v44 = vsel %vm19_vm1, %v1596_v39, %v468_v38  ;;  %s1962_s11 = smov 82   ;;  %v1604_v49 = vld [vmem:[%s3797_s0 + $0x14] ss:$-9 sm:%s497_s5]   ;;  %s485_s14 = smov 24 }
  0x25   :  { %284 = vrot.lane.b32.xlu1 %v283_v63, %s1953_s22  ;;  %v426_v40 = vsel %vm15_vm0, %v1583_v36, %v1582_v35  ;;  %v451_v46 = vsel %vm19_vm1, %v1590_v43, %v447_v42  ;;  %v1611_v48 = vld [vmem:[%s3797_s0 + $0x2e] ss:$-9 sm:%s521_s4]   ;;  %s1963_s17 = smov 86   ;;  %s1964_s18 = smov 84   ;;  %v1629_v1 = vld [vmem:[%s3797_s0 + $0x27] sm:$0x10]  }
  0x26   :  { %v430_v45 = vsel %vm19_vm1, %v1584_v41, %v426_v40  ;;  %v1605_v50 = vld [vmem:[%s3797_s0 + $0x6e] ss:$-36 sm:%s500_s6]   ;;  %v524_v51 = vsel %vm15_vm0, %v1611_v48, %v1610_v47  ;;  %s581_s21 = smov 3  ;;  %s584_s22 = smov 12  ;;  %v1601_v54 = vld [vmem:[%s3797_s0 + $0x93] ss:$-36 sm:%s485_s14]  }
  0x27   :  { %263 = vrot.lane.b32.xlu0 %v262_v3, %s1955_s28  ;;  %v1600_v53 = vld [vmem:[%s3797_s0 + $0x1e] ss:$-9 sm:$0x7]   ;;  %v503_v55 = vsel %vm15_vm0, %v1605_v50, %v1604_v49  ;;  %s560_s29 = smov 3  ;;  %s538_s30 = smov 3  ;;  %v528_v57 = vsel %vm19_vm1, %v1612_v52, %v524_v51  ;;  %vm1237_vm6 = vcmask 949248  }
  0x28   :  { %s541_s2 = smov 12  ;;  %v1627_v58 = vld [vmem:[%s3797_s0 + $0x7] ss:$27 sm:%s581_s21]   ;;  %s563_s7 = smov 12  ;;  %v488_v60 = vsel %vm35_vm2, %v1601_v54, %v1600_v53  ;;  %v507_v61 = vsel %vm19_vm1, %v1606_v56, %v503_v55  ;;  %v1623_v10 = vld [vmem:[%s3797_s0 + $0x16] sm:$0x10]  }
  0x29   :  { %v1628_v59 = vld [vmem:[%s3797_s0 + $0x2b] ss:$-9 sm:%s584_s22]   ;;  %s662_s12 = smov 24  ;;  %s1965_s13 = smov 76   ;;  %v1616_v0 = vld [vmem:[%s3797_s0 + $0x24] ss:$-9 sm:%s541_s2]  }
  0x2a   :  { %v1621_v62 = vld [vmem:[%s3797_s0 + $0x11] ss:$27 sm:%s560_s29]   ;;  %s546_s16 = smov 48  ;;  %v1622_v2 = vld [vmem:[%s3797_s0 - $0x2e] ss:$27 sm:%s563_s7]   ;;  %s1966_s21 = smov 80   ;;  %v587_v3 = vsel %vm15_vm0, %v1628_v59, %v1627_v58 }
  0x2b   :  { %305 = vrot.lane.b32.xlu2 %v304_v17, %s1957_s26  ;;  %v539_v63 = vld [vmem:[%s3797_s0] ss:$45 sm:%s538_s30]   ;;  %s1967_s22 = smov 78   ;;  %v1650_v4 = vld [vmem:[%s3797_s0 + $0x1e] ss:$-9 sm:$0x7]   ;;  %v566_v9 = vsel %vm15_vm0, %v1622_v2, %v1621_v62  ;;  %v591_v11 = vsel %vm19_vm1, %v1629_v1, %v587_v3 }
  0x2c   :  { %v1651_v5 = vld [vmem:[%s3797_s0 + $0x93] ss:$-36 sm:%s662_s12]   ;;  %v544_v6 = vsel %vm15_vm0, %v1616_v0, %v539_v63  ;;  %s623_s2 = smov 3  ;;  %s602_s3 = smov 3  ;;  %v570_v13 = vsel %vm19_vm1, %v1623_v10, %v566_v9  ;;  %v1635_v21 = vld [vmem:[%s3797_s0 + $0x1d] sm:$0x10]  }
  0x2d   :  { %347 = vrot.lane.b32.xlu1 %v346_v14, %s1956_s20  ;;  %v1617_v7 = vld [vmem:[%s3797_s0 + $0x48] ss:$-9 sm:%s546_s16]   ;;  %v2322_v8 = vsel %vm35_vm2, %v1651_v5, %v1650_v4  ;;  %s605_s4 = smov 12  ;;  %s626_s5 = smov 12  ;;  %v1641_v23 = vld [vmem:[%s3797_s0 + $0x13] sm:$0x10]  }
  0x2e   :  { %v549_v12 = vsel %vm182_vm3, %v1617_v7, %v544_v6  ;;  %s644_s6 = smov 3  ;;  %v1639_v14 = vld [vmem:[%s3797_s0 + $0xe] ss:$27 sm:%s623_s2]   ;;  %v1640_v17 = vld [vmem:[%s3797_s0 + $0x56] ss:$-27 sm:%s626_s5]   ;;  %s1969_s16 = smov 74  }
  0x2f   :  { %326 = vrot.lane.b32.xlu0 %v325_v18, %s1958_s27  ;;  %v1633_v15 = vld [vmem:[%s3797_s0 + $0x18] ss:$18 sm:%s602_s3]   ;;  %v629_v22 = vsel %vm15_vm0, %v1640_v17, %v1639_v14  ;;  %s698_s27 = smov 12  ;;  %s674_s28 = smov 3  ;;  %v1656_v34 = vld [vmem:[%s3797_s0 - $0x2] sm:$0x10]  }
  0x30   :  { %v1634_v16 = vld [vmem:[%s3797_s0 + $0x21] ss:$-9 sm:%s605_s4]   ;;  %v1646_v19 = vld [vmem:[%s3797_s0 + $0x31] ss:$-9 sm:$0x1c]   ;;  %s677_s29 = smov 12  ;;  %v633_v26 = vsel %vm19_vm1, %v1641_v23, %v629_v22 }
  0x31   :  { %v1645_v18 = vld [vmem:[%s3797_s0 + $0x28] ss:$-36 sm:%s644_s6]   ;;  %v608_v20 = vsel %vm15_vm0, %v1634_v16, %v1633_v15  ;;  %s758_s5 = smov 3  ;;  %s761_s6 = smov 12  ;;  %v1674_v48 = vld [vmem:[%s3797_s0 + $0x16] sm:$0x10]  }
  0x32   :  { %v649_v24 = vsel %vm648_vm4, %v1646_v19, %v1645_v18  ;;  %v612_v25 = vsel %vm19_vm1, %v1635_v21, %v608_v20  ;;  %v1661_v28 = vld [vmem:[%s3797_s0 + $0x2e] ss:$-9 sm:%s698_s27]   ;;  %s1971_s7 = smov 64   ;;  %s737_s10 = smov 3  ;;  %v1679_v37 = vld [vmem:[%s3797_s0 + $0x2b] ss:$-9 sm:%s761_s6]  }
  0x33   :  { %368 = vrot.lane.b32.xlu2 %v367_v32, %s1960_s24  ;;  %v1655_v30 = vld [vmem:[%s3797_s0 + $0x38] ss:$-9 sm:%s677_s29]   ;;  %s740_s14 = smov 12  ;;  %s1973_s15 = smov 66   ;;  %v1662_v32 = vld [vmem:[%s3797_s0 + $0x21] sm:$0x10]  }
  0x34   :  { %s716_s23 = smov 3  ;;  %s719_s24 = smov 12  ;;  %v1678_v36 = vld [vmem:[%s3797_s0 + $0x22] ss:$-27 sm:%s758_s5]   ;;  %v1673_v42 = vld [vmem:[%s3797_s0 - $0x2e] ss:$27 sm:%s740_s14]  }
  0x35   :  { %410 = vrot.lane.b32.xlu1 %v409_v29, %s1959_s19  ;;  %v1654_v29 = vld [vmem:[%s3797_s0 + $0x14] ss:$-9 sm:%s674_s28]   ;;  %s2378_s19 = smov 3  ;;  %s2393_s29 = smov 3  ;;  %v764_v43 = vsel %vm15_vm0, %v1679_v37, %v1678_v36  ;;  %v1692_v62 = vld [vmem:[%s3797_s0 + $0x13] sm:$0x10]  }
  0x36   :  { %v1672_v39 = vld [vmem:[%s3797_s0 + $0x11] ss:$27 sm:%s737_s10]   ;;  %v1666_v40 = vld [vmem:[%s3797_s0 + $0x1b] ss:$-27 sm:%s716_s23]   ;;  %s2402_s5 = smov 12  ;;  %s1974_s6 = smov 58  }
  0x37   :  { %389 = vrot.lane.b32.xlu0 %v388_v33, %s1961_s25  ;;  %v680_v33 = vsel %vm15_vm0, %v1655_v30, %v1654_v29  ;;  %v1667_v41 = vld [vmem:[%s3797_s0 + $0x24] ss:$-9 sm:%s719_s24]   ;;  %s2407_s9 = smov 3  ;;  %s2409_s10 = smov 12  ;;  %v743_v47 = vsel %vm15_vm0, %v1673_v42, %v1672_v39  ;;  %v1715_v9 = vld [vmem:[%s3797_s0 + $0xf] sm:$0x10]  }
  0x38   :  { %v684_v38 = vsel %vm19_vm1, %v1656_v34, %v680_v33  ;;  %s779_s14 = smov 3  ;;  %s782_s20 = smov 12  ;;  %v747_v51 = vsel %vm19_vm1, %v1674_v48, %v743_v47  ;;  %v1690_v52 = vld [vmem:[%s3797_s0 + $0xe] ss:$27 sm:%s2378_s19]   ;;  %v1713_v0 = vld [vmem:[%s3797_s0 + $0x25] ss:$-27 sm:%s2393_s29]  }
  0x39   :  { %s2423_s24 = smov 3  ;;  %s2425_s25 = smov 12  ;;  %v1684_v53 = vld [vmem:[%s3797_s0 + $0x18] ss:$18 sm:%s779_s14]   ;;  %v1707_v4 = vld [vmem:[%s3797_s0 + $0x14] ss:$-9 sm:%s2407_s9]  }
  0x3a   :  { %s2431_s28 = smov 3  ;;  %s2434_s30 = smov 12  ;;  %v1685_v55 = vld [vmem:[%s3797_s0 + $0x21] ss:$-9 sm:%s782_s20]   ;;  %v1721_v29 = vld [vmem:[%s3797_s0 + $0x20] sm:$0x10]  }
  0x3b   :  { %431 = vrot.lane.b32.xlu2 %v430_v45, %s1963_s17  ;;  %s1970_s17 = smov 72   ;;  %v722_v45 = vsel %vm15_vm0, %v1667_v41, %v1666_v40  ;;  %s2437_s2 = smov 3  ;;  %v785_v59 = vsel %vm15_vm0, %v1685_v55, %v1684_v53  ;;  %v1714_v1 = vld [vmem:[%s3797_s0 - $0x35] ss:$27 sm:%s2402_s5]   ;;  %v1709_v14 = vld [vmem:[%s3797_s0 - $0x2] sm:$0x10]  }
  0x3c   :  { %s2439_s3 = smov 12  ;;  %s2449_s8 = smov 3  ;;  %v1701_v5 = vld [vmem:[%s3797_s0 + $0x3] ss:$27 sm:%s2437_s2]   ;;  %v1751_v40 = vld [vmem:[%s3797_s0 + $0x12] sm:$0x10]  }
  0x3d   :  { %473 = vrot.lane.b32.xlu1 %v472_v44, %s1962_s11  ;;  %s1968_s11 = smov 70   ;;  %v1680_v44 = vld [vmem:[%s3797_s0 + $0x27] sm:$0x10]   ;;  %s2464_s20 = smov 3  ;;  %v1731_v16 = vld [vmem:[%s3797_s0 + $0x22] ss:$-27 sm:%s2423_s24]  }
  0x3e   :  { %v768_v49 = vsel %vm19_vm1, %v1680_v44, %v764_v43  ;;  %s1979_s23 = smov 54   ;;  %s2471_s4 = smov 3  ;;  %v1702_v6 = vld [vmem:[%s3797_s0 - $0xf] ss:$18 sm:%s2439_s3]   ;;  %vm1153_vm7 = vcmask 916480   ;;  %vm1195_vm8 = vcmask 932864  }
  0x3f   :  { %452 = vrot.lane.b32.xlu0 %v451_v46, %s1964_s18  ;;  %s2376_s18 = smov 3  ;;  %v1668_v46 = vld [vmem:[%s3797_s0 + $0x20] sm:$0x10]   ;;  %s2487_s14 = smov 3  ;;  %v1708_v7 = vld [vmem:[%s3797_s0 + $0x38] ss:$-9 sm:%s2409_s10]  }
  0x40   :  { %v726_v50 = vsel %vm19_vm1, %v1668_v46, %v722_v45  ;;  %v1696_v54 = vld [vmem:[%s3797_s0 + $0x28] ss:$-36 sm:%s2376_s18]   ;;  %s2509_s19 = smov 3  ;;  %s2522_s2 = smov 3  ;;  %v1745_v45 = vld [vmem:[%s3797_s0 + $0x13] sm:$0x10]  }
  0x41   :  { %s2528_s3 = smov 12  ;;  %s1981_s10 = smov 50   ;;  %v1732_v17 = vld [vmem:[%s3797_s0 + $0x2b] ss:$-9 sm:%s2425_s25]   ;;  %v1808_v46 = vld [vmem:[%s3797_s0 + $0x17] ss:$-9 sm:%s2487_s14]  }
  0x42   :  { %s2536_s5 = smov 12  ;;  %s2542_s9 = smov 3  ;;  %v1725_v20 = vld [vmem:[%s3797_s0 + $0x2c] ss:$-27 sm:%s2431_s28]   ;;  %vm1363_vm9 = vcmask 998400   ;;  %vm1321_vm10 = vcmask 982016  }
  0x43   :  { %489 = vrot.lane.b32.xlu2 %v488_v60, %s1966_s21  ;;  %s2466_s21 = smov 12  ;;  %v1686_v60 = vld [vmem:[%s3797_s0 + $0x1d] sm:$0x10]   ;;  %s2544_s18 = smov 12  ;;  %v1719_v21 = vld [vmem:[%s3797_s0 + $0x1b] ss:$-27 sm:%s2471_s4]  }
  0x44   :  { %v789_v2 = vsel %vm19_vm1, %v1686_v60, %v785_v59  ;;  %s2550_s29 = smov 3  ;;  %s2560_s12 = smov 12  ;;  %v1726_v23 = vld [vmem:[%s3797_s0 - $0x2e] ss:$27 sm:%s2434_s30]   ;;  %vm1279_vm11 = vcmask 965632   ;;  %vm1446_vm12 = vcmask 1031168  }
  0x45   :  { %529 = vrot.lane.b32.xlu1 %v528_v57, %s1965_s13  ;;  %s1972_s13 = smov 68   ;;  %v1697_v57 = vld [vmem:[%s3797_s0 + $0x31] ss:$-9 sm:$0x1c]   ;;  %s2571_s26 = smov 3  ;;  %vm1405_vm13 = vcmask 1014784  }
  0x46   :  { %v826_v63 = vsel %vm648_vm4, %v1697_v57, %v1696_v54  ;;  %s2593_s4 = smov 3  ;;  %s2595_s27 = smov 12  ;;  %v1749_v34 = vld [vmem:[%s3797_s0 + $0xd] ss:$27 sm:%s2449_s8]   ;;  %vm1157_vm14 = vcmask 130048   ;;  %vm1164_vm15 = vcmask 146560  }
  0x47   :  { %508 = vrot.lane.b32.xlu0 %v507_v61, %s1967_s22  ;;  %s695_s22 = smov 3  ;;  %s1984_s30 = smov 44   ;;  %v1737_v39 = vld [vmem:[%s3797_s0 + $0x18] ss:$18 sm:%s2542_s9]   ;;  %vm1241_vm2 = vcmask 97280   ;;  %vm1248_vm3 = vcmask 146528  }
  0x48   :  { %v1660_v27 = vld [vmem:[%s3797_s0 + $0xa] ss:$-9 sm:%s695_s22]   ;;  %s2384_s22 = smov 12  ;;  %s2615_s24 = smov 12  ;;  %v1800_v59 = vld [vmem:[%s3797_s0 + $0x22] ss:$-9 sm:%s2536_s5]  }
  0x49   :  { %v701_v31 = vsel %vm15_vm0, %v1661_v28, %v1660_v27  ;;  %v1691_v56 = vld [vmem:[%s3797_s0 + $0x56] ss:$-27 sm:%s2384_s22]   ;;  %s1978_s22 = smov 56   ;;  %s2617_s28 = smov 3  ;;  %vm1199_vm4 = vcmask 113664  }
  0x4a   :  { %v705_v35 = vsel %vm19_vm1, %v1662_v32, %v701_v31  ;;  %v806_v61 = vsel %vm15_vm0, %v1691_v56, %v1690_v52  ;;  %v927_v31 = vsel %vm15_vm0, %v1726_v23, %v1725_v20  ;;  %v1727_v32 = vld [vmem:[%s3797_s0 + $0x16] sm:$0x10]   ;;  %s2648_s8 = smov 3  ;;  %s2674_s9 = smov 3  ;;  %v1738_v41 = vld [vmem:[%s3797_s0 + $0x21] ss:$-9 sm:%s2544_s18]  }
  0x4b   :  { %550 = vrot.lane.b32.xlu2 %v549_v12, %s1969_s16  ;;  %v810_v3 = vsel %vm19_vm1, %v1692_v62, %v806_v61  ;;  %s1980_s16 = smov 46   ;;  %v1703_v12 = vld [vmem:[%s3797_s0 + $0x8] sm:$0x10]   ;;  %v931_v37 = vsel %vm19_vm1, %v1727_v32, %v927_v31  ;;  %s2687_s18 = smov 12  ;;  %v1744_v42 = vld [vmem:[%s3797_s0 + $0x56] ss:$-27 sm:%s2466_s21]   ;;  %v969_v52 = vsel %vm15_vm0, %v1738_v41, %v1737_v39 }
  0x4c   :  { %s1987_s25 = smov 38   ;;  %s1988_s21 = smov 36   ;;  %v1811_v48 = vld [vmem:[%s3797_s0 + $0x18] ss:$-9 sm:%s2509_s19]   ;;  %v1810_v62 = vld [vmem:[%s3797_s0 + $0x1c] sm:$0x10]  }
  0x4d   :  { %592 = vrot.lane.b32.xlu1 %v591_v11, %s1968_s11  ;;  %s1977_s11 = smov 52   ;;  %v843_v11 = vsel %vm15_vm0, %v1702_v6, %v1701_v5  ;;  %v1796_v56 = vld [vmem:[%s3797_s0 + $0x18] ss:$18 sm:%s2522_s2]   ;;  %v1798_v6 = vld [vmem:[%s3797_s0 + $0x1d] sm:$0x10]   ;;  %s2926_s19 = smov 3 }
  0x4e   :  { %v847_v18 = vsel %vm19_vm1, %v1703_v12, %v843_v11  ;;  %v1797_v57 = vld [vmem:[%s3797_s0 + $0x21] ss:$-9 sm:%s2528_s3]   ;;  %v1849_v31 = vld [vmem:[%s3797_s0 - $0x1] sm:$0x10]   ;;  %v1837_v39 = vld [vmem:[%s3797_s0 + $0x9] sm:$0x10]  }
  0x4f   :  { %571 = vrot.lane.b32.xlu0 %v570_v13, %s1970_s17  ;;  %v864_v13 = vsel %vm15_vm0, %v1708_v7, %v1707_v4  ;;  %s2609_s17 = smov 3  ;;  %v1785_v60 = vld [vmem:[%s3797_s0 + $0x2b] ss:$-9 sm:%s2615_s24]   ;;  %s2770_s24 = smov 3  ;;  %v1178_v11 = vsel %vm15_vm0, %v1797_v57, %v1796_v56 }
  0x50   :  { %v868_v19 = vsel %vm19_vm1, %v1709_v14, %v864_v13  ;;  %v1784_v53 = vld [vmem:[%s3797_s0 + $0x22] ss:$-27 sm:%s2609_s17]   ;;  %s2743_s17 = smov 12  ;;  %s2998_s14 = smov 3 }
  0x51   :  { %v1136_v7 = vsel %vm15_vm0, %v1785_v60, %v1784_v53  ;;  %v1801_v13 = vld [vmem:[%s3797_s0 + $0x1e] sm:$0x10]   ;;  %v1868_v56 = vld [vmem:[%s3797_s0 + $0x24] ss:$-9 sm:%s2687_s18]   ;;  %s2000_s18 = smov 2  }
  0x52   :  { %v1755_v60 = vld [vmem:[%s3797_s0 + $0x3] ss:$27 sm:%s2648_s8]   ;;  %s1996_s8 = smov 10  }
  0x53   :  { %613 = vrot.lane.b32.xlu2 %v612_v25, %s1972_s13  ;;  %s1975_s13 = smov 62   ;;  %v948_v25 = vsel %vm15_vm0, %v1732_v17, %v1731_v16  ;;  %v1844_v17 = vld [vmem:[%s3797_s0 + $0x14] ss:$-9 sm:%s2550_s29]  }
  0x55   :  { %650 = vrot.lane.b32.xlu1 %v649_v24, %s1971_s7  ;;  %s2477_s7 = smov 12 }
  0x56   :  { %v1720_v22 = vld [vmem:[%s3797_s0 + $0x24] ss:$-9 sm:%s2477_s7]   ;;  %s2601_s7 = smov 3 }
  0x57   :  { %634 = vrot.lane.b32.xlu0 %v633_v26, %s1973_s15  ;;  %s1976_s15 = smov 60   ;;  %v1733_v26 = vld [vmem:[%s3797_s0 + $0x27] sm:$0x10]   ;;  %v906_v28 = vsel %vm15_vm0, %v1720_v22, %v1719_v21 }
  0x58   :  { %v952_v33 = vsel %vm19_vm1, %v1733_v26, %v948_v25  ;;  %v910_v36 = vsel %vm19_vm1, %v1721_v29, %v906_v28  ;;  %v1182_v25 = vsel %vm19_vm1, %v1798_v6, %v1178_v11  ;;  %v1833_v28 = vld [vmem:[%s3797_s0 - $0xf] ss:$18 sm:%s2595_s27]   ;;  %s1997_s27 = smov 8  }
  0x59   :  { %v1835_v32 = vld [vmem:[%s3797_s0 + $0x4] ss:$27 sm:%s2601_s7]   ;;  %v1856_v11 = vld [vmem:[%s3797_s0 + $0xa] ss:$27 sm:%s2926_s19]   ;;  %s3052_s19 = smov 12 }
  0x5b   :  { %666 = vrot.lane.b32.xlu2 %v2322_v8, %s1975_s13  ;;  %v885_v8 = vsel %vm15_vm0, %v1714_v1, %v1713_v0  ;;  %s2582_s13 = smov 12  ;;  %v1787_v0 = vld [vmem:[%s3797_s0 + $0x23] ss:$-27 sm:%s2617_s28]  }
  0x5c   :  { %v889_v15 = vsel %vm19_vm1, %v1715_v9, %v885_v8  ;;  %v1786_v8 = vld [vmem:[%s3797_s0 + $0x27] sm:$0x10]   ;;  %v1848_v20 = vld [vmem:[%s3797_s0 + $0x39] ss:$-9 sm:%s2582_s13]  }
  0x5d   :  { %706 = vrot.lane.b32.xlu1 %v705_v35, %s1974_s6  ;;  %s1982_s6 = smov 48   ;;  %v1140_v22 = vsel %vm19_vm1, %v1786_v8, %v1136_v7  ;;  %v1872_v8 = vld [vmem:[%s3797_s0 + $0x21] sm:$0x10]  }
  0x5f   :  { %685 = vrot.lane.b32.xlu0 %v684_v38, %s1976_s15  ;;  %s2458_s15 = smov 12  ;;  %v1743_v38 = vld [vmem:[%s3797_s0 + $0xe] ss:$27 sm:%s2464_s20]   ;;  %s1986_s20 = smov 34  }
  0x60   :  { %v1750_v35 = vld [vmem:[%s3797_s0 - $0x32] ss:$27 sm:%s2458_s15]   ;;  %s2700_s15 = smov 12  ;;  %v990_v55 = vsel %vm15_vm0, %v1744_v42, %v1743_v38  ;;  %v1834_v38 = vld [vmem:[%s3797_s0 + $0x8] sm:$0x10]  }
  0x61   :  { %v1011_v44 = vsel %vm15_vm0, %v1750_v35, %v1749_v34 }
  0x62   :  { %v1015_v61 = vsel %vm19_vm1, %v1751_v40, %v1011_v44 }
  0x63   :  { %727 = vrot.lane.b32.xlu2 %v726_v50, %s1978_s22  ;;  %s2530_s22 = smov 3  ;;  %v1739_v50 = vld [vmem:[%s3797_s0 + $0x1d] sm:$0x10]  }
  0x64   :  { %v973_v1 = vsel %vm19_vm1, %v1739_v50, %v969_v52 }
  0x65   :  { %769 = vrot.lane.b32.xlu1 %v768_v49, %s1977_s11  ;;  %v101_v58 = vpop.permute.xlu2 %100   ;;  %s2511_s11 = smov 12 }
  0x66   :  { %1492 = vst.msk [vmem:[%s3798_s1 + $0x23] ss:$258 sm:$0x3] %vm3_vm5, %v101_v58   ;;  %v1812_v49 = vld [vmem:[%s3797_s0 + $0x72] ss:$-36 sm:%s2511_s11]   ;;  %s1989_s11 = smov 28  }
  0x67   :  { %748 = vrot.lane.b32.xlu0 %v747_v51, %s1979_s23  ;;  %1493 = vst.msk [vmem:[%s3798_s1 - $0x87] ss:$170 sm:$0xc] %vm3_vm5, %v101_v58   ;;  %s2498_s23 = smov 12  ;;  %v1232_v5 = vsel %vm15_vm0, %v1812_v49, %v1811_v48  ;;  %v1822_v48 = vld [vmem:[%s3797_s0 + $0x12] sm:$0x10]  }
  0x68   :  { %1494 = vst.msk [vmem:[%s3798_s1 + $0x77] sm:$0x10] %vm3_vm5, %v101_v58   ;;  %v1809_v47 = vld [vmem:[%s3797_s0 + $0x71] ss:$-36 sm:%s2498_s23]   ;;  %s2914_s23 = smov 3 }
  0x69   :  { %v1799_v58 = vld [vmem:[%s3797_s0 + $0x19] ss:$18 sm:%s2530_s22]   ;;  %v1220_v4 = vsel %vm15_vm0, %v1809_v47, %v1808_v46  ;;  %s2830_s22 = smov 3 }
  0x6a   :  { %v1190_v12 = vsel %vm15_vm0, %v1800_v59, %v1799_v58  ;;  %v1825_v49 = vld [vmem:[%s3797_s0 + $0x13] sm:$0x10]  }
  0x6b   :  { %790 = vrot.lane.b32.xlu2 %v789_v2, %s1981_s10  ;;  %s1983_s10 = smov 40   ;;  %v1194_v26 = vsel %vm19_vm1, %v1801_v13, %v1190_v12 }
  0x6c   :  { %v1196_v35 = vsel %vm1195_vm8, %v1194_v26, %v1182_v25  ;;  %v1861_v26 = vld [vmem:[%s3797_s0 + $0x10] sm:$0x10]   ;;  %vm1416_vm8 = vcmask 146464  }
  0x6d   :  { %827 = vrot.lane.b32.xlu1 %v826_v63, %s1980_s16  ;;  %v122_v10 = vpop.permute.xlu2 %121   ;;  %s2603_s16 = smov 12  ;;  %v1813_v63 = vld [vmem:[%s3797_s0 + $0x1d] sm:$0x10]  }
  0x6e   :  { %1498 = vst.msk [vmem:[%s3798_s1 + $0xc6] ss:$-88 sm:$0x3] %vm3_vm5, %v122_v10   ;;  %v1236_v16 = vsel %vm19_vm1, %v1813_v63, %v1232_v5  ;;  %v1871_v63 = vld [vmem:[%s3797_s0 + $0x25] ss:$-9 sm:%s2700_s15]   ;;  %s3009_s15 = smov 12 }
  0x6f   :  { %811 = vrot.lane.b32.xlu0 %v810_v3, %s1982_s6  ;;  %1499 = vst.msk [vmem:[%s3798_s1 + $0x220] ss:$-88 sm:$0xc] %vm3_vm5, %v122_v10   ;;  %s2650_s6 = smov 12  ;;  %v994_v3 = vsel %vm19_vm1, %v1745_v45, %v990_v55  ;;  %v1424_v55 = vld [vmem:[%s3797_s0] ss:$27 sm:%s2674_s9]  }
  0x70   :  { %1500 = vst.msk [vmem:[%s3798_s1 + $0x18] sm:$0x10] %vm3_vm5, %v122_v10   ;;  %v1789_v10 = vld [vmem:[%s3797_s0 + $0x28] sm:$0x10]   ;;  %v1869_v5 = vld [vmem:[%s3797_s0 + $0x20] sm:$0x10]   ;;  %v1429_v6 = vsel %vm15_vm0, %v1868_v56, %v1424_v55 }
  0x73   :  { %848 = vrot.lane.b32.xlu2 %v847_v18, %s1984_s30  ;;  %s2629_s30 = smov 12  ;;  %v1845_v18 = vld [vmem:[%s3797_s0 + $0x38] ss:$-9 sm:%s2560_s12]   ;;  %s1992_s12 = smov 12  }
  0x74   :  { %v1788_v2 = vld [vmem:[%s3797_s0 + $0x2c] ss:$-9 sm:%s2629_s30]   ;;  %s2796_s30 = smov 12 }
  0x75   :  { %890 = vrot.lane.b32.xlu1 %v889_v15, %s1983_s10  ;;  %s1985_s10 = smov 42   ;;  %v2623_v27 = vpop.permute.xlu2 %184   ;;  %v1148_v9 = vsel %vm15_vm0, %v1788_v2, %v1787_v0  ;;  %v1224_v15 = vsel %vm19_vm1, %v1810_v62, %v1220_v4  ;;  %v1824_v58 = vld [vmem:[%s3797_s0 - $0x31] ss:$27 sm:%s2796_s30]  }
  0x76   :  { %1515 = vst.msk [vmem:[%s3798_s1 + $0x1] ss:$422 sm:$0x3] %vm3_vm5, %v2623_v27   ;;  %v1152_v23 = vsel %vm19_vm1, %v1789_v10, %v1148_v9  ;;  %v1238_v29 = vsel %vm1237_vm6, %v1236_v16, %v1224_v15  ;;  %v1756_v2 = vld [vmem:[%s3797_s0 - $0xf] ss:$18 sm:%s2650_s6]   ;;  %v1433_v16 = vsel %vm19_vm1, %v1869_v5, %v1429_v6  ;;  %s1998_s6 = smov 26  }
  0x77   :  { %869 = vrot.lane.b32.xlu0 %v868_v19, %s1985_s10  ;;  %v59_v24 = vpop.permute.xlu1 %58   ;;  %s2689_s10 = smov 3  ;;  %1516 = vst.msk [vmem:[%s3798_s1 + $0x15b] ss:$-88 sm:$0xc] %vm3_vm5, %v2623_v27   ;;  %v1847_v19 = vld [vmem:[%s3797_s0 + $0x15] ss:$-9 sm:%s2571_s26]   ;;  %v1154_v34 = vsel %vm1153_vm7, %v1152_v23, %v1140_v22  ;;  %v1032_v10 = vsel %vm15_vm0, %v1756_v2, %v1755_v60 }
  0x78   :  { %1480 = vst.msk [vmem:[%s3798_s1 + $0xe1] ss:$-88 sm:$0x3] %vm3_vm5, %v59_v24   ;;  %v1757_v4 = vld [vmem:[%s3797_s0 + $0x8] sm:$0x10]   ;;  %s1112_s26 = smov 12 }
  0x79   :  { %1481 = vst.msk [vmem:[%s3798_s1 + $0x433] ss:$-340 sm:$0xc] %vm3_vm5, %v59_v24   ;;  %v22_v30 = vpop.permute.xlu0 %21   ;;  %v1860_v23 = vld [vmem:[%s3797_s0 - $0x34] ss:$27 sm:%s3009_s15]   ;;  %vm1206_vm6 = vcmask 146544  }
  0x7a   :  { %1482 = vst.msk [vmem:[%s3798_s1 + $0x135] sm:$0x10] %vm3_vm5, %v59_v24   ;;  %vm1409_vm7 = vcmask 31744  }
  0x7b   :  { %1469 = vst.msk [vmem:[%s3798_s1 + $0x147] ss:$-252 sm:$0x3] %vm3_vm5, %v22_v30   ;;  %911 = vrot.lane.b32.xlu2 %v910_v36, %s1987_s25  ;;  %v1346_v36 = vsel %vm15_vm0, %v1845_v18, %v1844_v17  ;;  %s1109_s25 = smov 3 }
  0x7c   :  { %1470 = vst.msk [vmem:[%s3798_s1 + $0x1a5] ss:$-88 sm:$0xc] %vm3_vm5, %v22_v30  }
  0x7d   :  { %1471 = vst.msk [vmem:[%s3798_s1 + $0x19b] sm:$0x10] %vm3_vm5, %v22_v30   ;;  %953 = vrot.lane.b32.xlu1 %v952_v33, %s1986_s20  ;;  %s2730_s20 = smov 3  ;;  %v2736_v51 = vpop.permute.xlu2 %242   ;;  %v1846_v30 = vld [vmem:[%s3797_s0 - $0x2] sm:$0x10]  }
  0x7e   :  { %1517 = vst.msk [vmem:[%s3798_s1 + $0x2b5] ss:$-88 sm:$0x30] %vm3_vm5, %v2623_v27   ;;  %v1832_v27 = vld [vmem:[%s3797_s0 + $0x3] ss:$27 sm:%s2593_s4]   ;;  %v1350_v45 = vsel %vm19_vm1, %v1846_v30, %v1346_v36  ;;  %s3040_s4 = smov 3 }
  0x7f   :  { %932 = vrot.lane.b32.xlu0 %v931_v37, %s1988_s21  ;;  %v80_v43 = vpop.permute.xlu1 %79   ;;  %s1990_s21 = smov 32   ;;  %1532 = vst.msk [vmem:[%s3798_s1 + $0xe2] ss:$170 sm:$0x3] %vm3_vm5, %v2736_v51   ;;  %v1836_v33 = vld [vmem:[%s3797_s0 - $0xe] ss:$18 sm:%s2603_s16]   ;;  %v1358_v37 = vsel %vm15_vm0, %v1848_v20, %v1847_v19  ;;  %v1304_v41 = vsel %vm15_vm0, %v1833_v28, %v1832_v27  ;;  %v1036_v20 = vsel %vm19_vm1, %v1757_v4, %v1032_v10 }
  0x80   :  { %1486 = vst.msk [vmem:[%s3798_s1 + $0x82] ss:$258 sm:$0x3] %vm3_vm5, %v80_v43   ;;  %s2900_s16 = smov 12  ;;  %v1820_v40 = vld [vmem:[%s3797_s0 + $0xd] ss:$27 sm:%s2730_s20]   ;;  %v1316_v42 = vsel %vm15_vm0, %v1836_v33, %v1835_v32  ;;  %v1362_v46 = vsel %vm19_vm1, %v1849_v31, %v1358_v37  ;;  %v1308_v53 = vsel %vm19_vm1, %v1834_v38, %v1304_v41 }
  0x81   :  { %1487 = vst.msk [vmem:[%s3798_s1 + $0x324] ss:$-252 sm:$0xc] %vm3_vm5, %v80_v43   ;;  %v38_v54 = vpop.permute.xlu0 %37   ;;  %s2924_s20 = smov 12  ;;  %v1364_v59 = vsel %vm1363_vm9, %v1362_v46, %v1350_v45  ;;  %v1859_v19 = vld [vmem:[%s3797_s0 + $0xb] ss:$27 sm:%s2998_s14]  }
  0x82   :  { %1488 = vst.msk [vmem:[%s3798_s1 + $0xd6] sm:$0x10] %vm3_vm5, %v80_v43   ;;  %v1821_v43 = vld [vmem:[%s3797_s0 - $0x32] ss:$27 sm:%s2743_s17]   ;;  %s1994_s17 = smov 14   ;;  %v1400_v25 = vsel %vm15_vm0, %v1860_v23, %v1859_v19  ;;  %s2002_s14 = smov 24  }
  0x83   :  { %1474 = vst.msk [vmem:[%s3798_s1 + $0x140] ss:$-88 sm:$0x3] %vm3_vm5, %v38_v54   ;;  %974 = vrot.lane.b32.xlu2 %v973_v1, %s1990_s21  ;;  %s1993_s21 = smov 16   ;;  %v1262_v47 = vsel %vm15_vm0, %v1821_v43, %v1820_v40  ;;  %v1767_v28 = vld [vmem:[%s3797_s0 + $0x25] ss:$-27 sm:%s2914_s23]  }
  0x84   :  { %1475 = vst.msk [vmem:[%s3798_s1 - $0x16e] ss:$258 sm:$0xc] %vm3_vm5, %v38_v54   ;;  %v1266_v57 = vsel %vm19_vm1, %v1822_v48, %v1262_v47  ;;  %v1761_v30 = vld [vmem:[%s3797_s0 + $0x14] ss:$-9 sm:%s3040_s4]   ;;  %vm1367_vm9 = vcmask 48128  }
  0x85   :  { %1476 = vst.msk [vmem:[%s3798_s1 + $0x3a] sm:$0x10] %vm3_vm5, %v38_v54   ;;  %1016 = vrot.lane.b32.xlu1 %v1015_v61, %s1989_s11  ;;  %s1991_s11 = smov 30   ;;  %v2859_v21 = vpop.permute.xlu2 %305   ;;  %v1320_v54 = vsel %vm19_vm1, %v1837_v39, %v1316_v42  ;;  %v1870_v61 = vld [vmem:[%s3797_s0 + $0x1] ss:$27 sm:%s2689_s10]   ;;  %s2996_s10 = smov 12 }
  0x86   :  { %1533 = vst.msk [vmem:[%s3798_s1 + $0x140] ss:$-88 sm:$0xc] %vm3_vm5, %v2736_v51   ;;  %v1322_v1 = vsel %vm1321_vm10, %v1320_v54, %v1308_v53  ;;  %v1441_v7 = vsel %vm15_vm0, %v1871_v63, %v1870_v61  ;;  %v1857_v13 = vld [vmem:[%s3797_s0 - $0x35] ss:$27 sm:%s2996_s10]   ;;  %vm1374_vm10 = vcmask 146480  }
  0x87   :  { %995 = vrot.lane.b32.xlu0 %v994_v3, %s1991_s11  ;;  %v164_v14 = vpop.permute.xlu1 %163   ;;  %1534 = vst.msk [vmem:[%s3798_s1 + $0x136] sm:$0x10] %vm3_vm5, %v2736_v51   ;;  %v1823_v51 = vld [vmem:[%s3797_s0 + $0xe] ss:$27 sm:%s2770_s24]   ;;  %v1445_v17 = vsel %vm19_vm1, %v1872_v8, %v1441_v7  ;;  %v1388_v18 = vsel %vm15_vm0, %v1857_v13, %v1856_v11 }
  0x88   :  { %1510 = vst.msk [vmem:[%s3798_s1 + $0x60] ss:$-88 sm:$0x3] %vm3_vm5, %v164_v14   ;;  %v1274_v62 = vsel %vm15_vm0, %v1824_v58, %v1823_v51  ;;  %v1447_v27 = vsel %vm1446_vm12, %v1445_v17, %v1433_v16  ;;  %v1762_v32 = vld [vmem:[%s3797_s0 + $0x38] ss:$-9 sm:%s3052_s19]   ;;  %vm1332_vm12 = vcmask 146496  }
  0x89   :  { %1511 = vst.msk [vmem:[%s3798_s1 + $0x1ba] ss:$-88 sm:$0xc] %vm3_vm5, %v164_v14   ;;  %v143_v24 = vpop.permute.xlu0 %142   ;;  %v1278_v0 = vsel %vm19_vm1, %v1825_v49, %v1274_v62  ;;  %v1768_v33 = vld [vmem:[%s3797_s0 - $0x35] ss:$27 sm:%s2924_s20]   ;;  %s1999_s20 = smov 4   ;;  %v1053_v38 = vsel %vm15_vm0, %v1762_v32, %v1761_v30 }
  0x8a   :  { %1512 = vst.msk [vmem:[%s3798_s1 + $0x158] sm:$0x10] %vm3_vm5, %v164_v14   ;;  %v1280_v3 = vsel %vm1279_vm11, %v1278_v0, %v1266_v57  ;;  %v1858_v14 = vld [vmem:[%s3797_s0 + $0xf] sm:$0x10]   ;;  %v1774_v36 = vld [vmem:[%s3797_s0 + $0x20] sm:$0x10]   ;;  %v1074_v41 = vsel %vm15_vm0, %v1768_v33, %v1767_v28 }
  0x8b   :  { %1504 = vst.msk [vmem:[%s3798_s1 + $0x67] ss:$258 sm:$0x3] %vm3_vm5, %v143_v24   ;;  %1155 = vrot.lane.b32.xlu2 %v1154_v34, %s1993_s21  ;;  %s1995_s21 = smov 6   ;;  %v1392_v22 = vsel %vm19_vm1, %v1858_v14, %v1388_v18  ;;  %v1763_v39 = vld [vmem:[%s3797_s0 - $0x2] sm:$0x10]  }
  0x8c   :  { %1505 = vst.msk [vmem:[%s3798_s1 - $0x1f5] ss:$258 sm:$0xc] %vm3_vm5, %v143_v24   ;;  %v1769_v42 = vld [vmem:[%s3797_s0 + $0xf] sm:$0x10]   ;;  %vm1325_vm11 = vcmask 64512  }
  0x8d   :  { %1506 = vst.msk [vmem:[%s3798_s1 + $0xb5] sm:$0x10] %vm3_vm5, %v143_v24   ;;  %1239 = vrot.lane.b32.xlu1 %v1238_v29, %s1992_s12  ;;  %v2957_v50 = vpop.permute.xlu2 %368   ;;  %v1773_v24 = vld [vmem:[%s3797_s0 + $0x24] ss:$-9 sm:%s2900_s16]   ;;  %v1404_v29 = vsel %vm19_vm1, %v1861_v26, %v1400_v25  ;;  %v1078_v45 = vsel %vm19_vm1, %v1769_v42, %v1074_v41 }
  0x8e   :  { %1550 = vst.msk [vmem:[%s3798_s1 + $0xc7] ss:$-88 sm:$0x3] %vm3_vm5, %v2859_v21   ;;  %v1406_v31 = vsel %vm1405_vm13, %v1404_v29, %v1392_v22  ;;  %v1778_v46 = vld [vmem:[%s3797_s0 + $0x2c] ss:$-27 sm:%s1109_s25]   ;;  %vm1450_vm13 = vcmask 15360  }
  0x8f   :  { %1197 = vrot.lane.b32.xlu0 %v1196_v35, %s1994_s17  ;;  %v222_v44 = vpop.permute.xlu1 %221   ;;  %1551 = vst.msk [vmem:[%s3798_s1 + $0x221] ss:$-88 sm:$0xc] %vm3_vm5, %v2859_v21   ;;  %v1779_v47 = vld [vmem:[%s3797_s0 - $0x2e] ss:$27 sm:%s1112_s26]   ;;  %s2003_s17 = smov 22  }
  0x90   :  { %1526 = vst.msk [vmem:[%s3798_s1 + $0x141] ss:$-88 sm:$0x3] %vm3_vm5, %v222_v44   ;;  %v1780_v51 = vld [vmem:[%s3797_s0 + $0x16] sm:$0x10]  }
  0x91   :  { %1527 = vst.msk [vmem:[%s3798_s1 - $0x16d] ss:$258 sm:$0xc] %vm3_vm5, %v222_v44   ;;  %v206_v52 = vpop.permute.xlu0 %205   ;;  %v2_v30 = vld [vmem:[%s3797_s0] ss:$9 sm:$0x3f]  }
  0x92   :  { %1528 = vst.msk [vmem:[%s3798_s1 + $0x3b] sm:$0x10] %vm3_vm5, %v222_v44   ;;  %v1057_v44 = vsel %vm19_vm1, %v1763_v39, %v1053_v38 }
  0x93   :  { %1521 = vst.msk [vmem:[%s3798_s1 + $0x1a0] ss:$-88 sm:$0x3] %vm3_vm5, %v206_v52   ;;  %1281 = vrot.lane.b32.xlu2 %v1280_v3, %s1996_s8 }
  0x94   :  { %1522 = vst.msk [vmem:[%s3798_s1 - $0x108] ss:$170 sm:$0xc] %vm3_vm5, %v206_v52  }
  0x95   :  { %1523 = vst.msk [vmem:[%s3798_s1 + $0x9a] sm:$0x10] %vm3_vm5, %v206_v52   ;;  %1365 = vrot.lane.b32.xlu1 %v1364_v59, %s1995_s21  ;;  %v3059_v12 = vpop.permute.xlu2 %431   ;;  %s2001_s21 = smov 20  }
  0x96   :  { %1552 = vst.msk [vmem:[%s3798_s1 + $0x19] sm:$0x10] %vm3_vm5, %v2859_v21   ;;  %v1089_v21 = vld [vmem:[%s3797_s0] ss:$27 sm:%s2830_s22]  }
  0x97   :  { %1323 = vrot.lane.b32.xlu0 %v1322_v1, %s1997_s27  ;;  %v285_v9 = vpop.permute.xlu1 %284   ;;  %1567 = vst.msk [vmem:[%s3798_s1 + $0x2] ss:$422 sm:$0x3] %vm3_vm5, %v2957_v50   ;;  %v1094_v35 = vsel %vm15_vm0, %v1773_v24, %v1089_v21 }
  0x98   :  { %1544 = vst.msk [vmem:[%s3798_s1 + $0x24] ss:$258 sm:$0x3] %vm3_vm5, %v285_v9   ;;  %v1098_v43 = vsel %vm19_vm1, %v1774_v36, %v1094_v35 }
  0x99   :  { %v264_v15 = vpop.permute.xlu0 %263   ;;  %1545 = vst.msk [vmem:[%s3798_s1 - $0x86] ss:$170 sm:$0xc] %vm3_vm5, %v285_v9  }
  0x9a   :  { %1546 = vst.msk [vmem:[%s3798_s1 + $0x78] sm:$0x10] %vm3_vm5, %v285_v9  }
  0x9b   :  { %1538 = vst.msk [vmem:[%s3798_s1 + $0x83] ss:$258 sm:$0x3] %vm3_vm5, %v264_v15   ;;  %1407 = vrot.lane.b32.xlu2 %v1406_v31, %s1999_s20 }
  0x9c   :  { %1539 = vst.msk [vmem:[%s3798_s1 + $0x325] ss:$-252 sm:$0xc] %vm3_vm5, %v264_v15  }
  0x9d   :  { %1037 = vrot.lane.b32.xlu1 %v1036_v20, %s1998_s6  ;;  %1540 = vst.msk [vmem:[%s3798_s1 + $0xd7] sm:$0x10] %vm3_vm5, %v264_v15   ;;  %v490_v37 = vpop.permute.xlu2 %489   ;;  %s2004_s6 = smov 18  }
  0x9e   :  { %1568 = vst.msk [vmem:[%s3798_s1 + $0x15c] ss:$-88 sm:$0xc] %vm3_vm5, %v2957_v50  }
  0x9f   :  { %1448 = vrot.lane.b32.xlu0 %v1447_v27, %s2000_s18  ;;  %v348_v34 = vpop.permute.xlu1 %347   ;;  %1569 = vst.msk [vmem:[%s3798_s1 + $0x2b6] ss:$-88 sm:$0x30] %vm3_vm5, %v2957_v50   ;;  %v1115_v50 = vsel %vm15_vm0, %v1779_v47, %v1778_v46  ;;  %vm1283_vm0 = vcmask 80896  }
  0xa0   :  { %1562 = vst.msk [vmem:[%s3798_s1 + $0x61] ss:$-88 sm:$0x3] %vm3_vm5, %v348_v34   ;;  %v1119_v53 = vsel %vm19_vm1, %v1780_v51, %v1115_v50  ;;  %vm1290_vm1 = vcmask 146512  }
  0xa1   :  { %v327_v40 = vpop.permute.xlu0 %326   ;;  %1563 = vst.msk [vmem:[%s3798_s1 + $0x1bb] ss:$-88 sm:$0xc] %vm3_vm5, %v348_v34  }
  0xa2   :  { %1564 = vst.msk [vmem:[%s3798_s1 + $0x159] sm:$0x10] %vm3_vm5, %v348_v34  }
  0xa3   :  { %1556 = vst.msk [vmem:[%s3798_s1 + $0xc0] ss:$-88 sm:$0x3] %vm3_vm5, %v327_v40   ;;  %1058 = vrot.lane.b32.xlu2 %v1057_v44, %s2002_s14 }
  0xa4   :  { %1557 = vst.msk [vmem:[%s3798_s1 + $0x41e] ss:$-346 sm:$0xc] %vm3_vm5, %v327_v40  }
  0xa5   :  { %1099 = vrot.lane.b32.xlu1 %v1098_v43, %s2001_s21  ;;  %1558 = vst.msk [vmem:[%s3798_s1 + $0x10e] sm:$0x10] %vm3_vm5, %v327_v40   ;;  %v551_v49 = vpop.permute.xlu2 %550  }
  0xa6   :  { %1585 = vst.msk [vmem:[%s3798_s1 + $0xe3] ss:$170 sm:$0x3] %vm3_vm5, %v3059_v12  }
  0xa7   :  { %1079 = vrot.lane.b32.xlu0 %v1078_v45, %s2003_s17  ;;  %v411_v48 = vpop.permute.xlu1 %410   ;;  %1586 = vst.msk [vmem:[%s3798_s1 + $0x141] ss:$-88 sm:$0xc] %vm3_vm5, %v3059_v12  }
  0xa8   :  { %1587 = vst.msk [vmem:[%s3798_s1 + $0x137] sm:$0x10] %vm3_vm5, %v3059_v12  }
  0xa9   :  { %v390_v52 = vpop.permute.xlu0 %389   ;;  %1579 = vst.msk [vmem:[%s3798_s1 + $0x40] ss:$258 sm:$0x3] %vm3_vm5, %v411_v48  }
  0xaa   :  { %1580 = vst.msk [vmem:[%s3798_s1 + $0x1a0] ss:$-88 sm:$0xc] %vm3_vm5, %v411_v48  }
  0xab   :  { %1581 = vst.msk [vmem:[%s3798_s1 + $0x196] sm:$0x10] %vm3_vm5, %v411_v48   ;;  %1120 = vrot.lane.b32.xlu2 %v1119_v53, %s2004_s6 }
  0xac   :  { %1573 = vst.msk [vmem:[%s3798_s1 + $0x1a1] ss:$-88 sm:$0x3] %vm3_vm5, %v390_v52  }
  0xad   :  { %1574 = vst.msk [vmem:[%s3798_s1 - $0x107] ss:$170 sm:$0xc] %vm3_vm5, %v390_v52   ;;  %v614_v55 = vpop.permute.xlu2 %613  }
  0xae   :  { %1575 = vst.msk [vmem:[%s3798_s1 + $0x9b] sm:$0x10] %vm3_vm5, %v390_v52  }
  0xaf   :  { %v474_v54 = vpop.permute.xlu1 %473   ;;  %1602 = vst.msk [vmem:[%s3798_s1 + $0x120] ss:$-88 sm:$0x7] %vm3_vm5, %v490_v37  }
  0xb0   :  { %1603 = vst.msk [vmem:[%s3798_s1 + $0x56e] ss:$-340 sm:$0x18] %vm3_vm5, %v490_v37  }
  0xb1   :  { %v453_v56 = vpop.permute.xlu0 %452   ;;  %1597 = vst.msk [vmem:[%s3798_s1 + $0x25] ss:$258 sm:$0x3] %vm3_vm5, %v474_v54  }
  0xb2   :  { %1598 = vst.msk [vmem:[%s3798_s1 - $0x85] ss:$170 sm:$0xc] %vm3_vm5, %v474_v54  }
  0xb3   :  { %1599 = vst.msk [vmem:[%s3798_s1 + $0x79] sm:$0x10] %vm3_vm5, %v474_v54  }
  0xb4   :  { %1591 = vst.msk [vmem:[%s3798_s1 + $0x84] ss:$258 sm:$0x3] %vm3_vm5, %v453_v56  }
  0xb5   :  { %1592 = vst.msk [vmem:[%s3798_s1 + $0x326] ss:$-252 sm:$0xc] %vm3_vm5, %v453_v56   ;;  %v667_v58 = vpop.permute.xlu2 %666  }
  0xb6   :  { %1593 = vst.msk [vmem:[%s3798_s1 + $0xd8] sm:$0x10] %vm3_vm5, %v453_v56  }
  0xb7   :  { %v530_v57 = vpop.permute.xlu1 %529   ;;  %1618 = vst.msk [vmem:[%s3798_s1 + $0x3] ss:$422 sm:$0x3] %vm3_vm5, %v551_v49  }
  0xb8   :  { %1619 = vst.msk [vmem:[%s3798_s1 + $0x15d] ss:$-88 sm:$0xc] %vm3_vm5, %v551_v49  }
  0xb9   :  { %v509_v59 = vpop.permute.xlu0 %508   ;;  %1620 = vst.msk [vmem:[%s3798_s1 + $0x2b7] ss:$-88 sm:$0x30] %vm3_vm5, %v551_v49  }
  0xba   :  { %1613 = vst.msk [vmem:[%s3798_s1 + $0x62] ss:$-88 sm:$0x3] %vm3_vm5, %v530_v57  }
  0xbb   :  { %1614 = vst.msk [vmem:[%s3798_s1 + $0x1bc] ss:$-88 sm:$0xc] %vm3_vm5, %v530_v57  }
  0xbc   :  { %1615 = vst.msk [vmem:[%s3798_s1 + $0x15a] sm:$0x10] %vm3_vm5, %v530_v57  }
  0xbd   :  { %1607 = vst.msk [vmem:[%s3798_s1 + $0xc1] ss:$-88 sm:$0x3] %vm3_vm5, %v509_v59   ;;  %v728_v61 = vpop.permute.xlu2 %727  }
  0xbe   :  { %1608 = vst.msk [vmem:[%s3798_s1 + $0x41f] ss:$-346 sm:$0xc] %vm3_vm5, %v509_v59  }
  0xbf   :  { %v593_v60 = vpop.permute.xlu1 %592   ;;  %1609 = vst.msk [vmem:[%s3798_s1 + $0x10f] sm:$0x10] %vm3_vm5, %v509_v59  }
  0xc0   :  { %1636 = vst.msk [vmem:[%s3798_s1 + $0xe4] ss:$170 sm:$0x3] %vm3_vm5, %v614_v55  }
  0xc1   :  { %v572_v62 = vpop.permute.xlu0 %571   ;;  %1637 = vst.msk [vmem:[%s3798_s1 + $0x142] ss:$-88 sm:$0xc] %vm3_vm5, %v614_v55  }
  0xc2   :  { %1638 = vst.msk [vmem:[%s3798_s1 + $0x138] sm:$0x10] %vm3_vm5, %v614_v55  }
  0xc3   :  { %1630 = vst.msk [vmem:[%s3798_s1 + $0x41] ss:$258 sm:$0x3] %vm3_vm5, %v593_v60  }
  0xc4   :  { %1631 = vst.msk [vmem:[%s3798_s1 + $0x1a1] ss:$-88 sm:$0xc] %vm3_vm5, %v593_v60  }
  0xc5   :  { %1632 = vst.msk [vmem:[%s3798_s1 + $0x197] sm:$0x10] %vm3_vm5, %v593_v60   ;;  %v791_v0 = vpop.permute.xlu2 %790  }
  0xc6   :  { %1624 = vst.msk [vmem:[%s3798_s1 + $0xa0] ss:$258 sm:$0x3] %vm3_vm5, %v572_v62  }
  0xc7   :  { %v651_v63 = vpop.permute.xlu1 %650   ;;  %1625 = vst.msk [vmem:[%s3798_s1 - $0x1b6] ss:$258 sm:$0xc] %vm3_vm5, %v572_v62  }
  0xc8   :  { %1626 = vst.msk [vmem:[%s3798_s1 + $0xf4] sm:$0x10] %vm3_vm5, %v572_v62  }
  0xc9   :  { %v635_v1 = vpop.permute.xlu0 %634   ;;  %1652 = vst.msk [vmem:[%s3798_s1 + $0x121] ss:$-88 sm:$0x7] %vm3_vm5, %v667_v58  }
  0xca   :  { %1653 = vst.msk [vmem:[%s3798_s1 + $0x56f] ss:$-340 sm:$0x18] %vm3_vm5, %v667_v58  }
  0xcb   :  { %1647 = vst.msk [vmem:[%s3798_s1 + $0x180] ss:$-346 sm:$0x3] %vm3_vm5, %v651_v63  }
  0xcc   :  { %1648 = vst.msk [vmem:[%s3798_s1 + $0x1d8] ss:$-88 sm:$0xc] %vm3_vm5, %v651_v63  }
  0xcd   :  { %1649 = vst.msk [vmem:[%s3798_s1 + $0x7a] sm:$0x10] %vm3_vm5, %v651_v63   ;;  %v849_v3 = vpop.permute.xlu2 %848  }
  0xce   :  { %1642 = vst.msk [vmem:[%s3798_s1 + $0x85] ss:$258 sm:$0x3] %vm3_vm5, %v635_v1  }
  0xcf   :  { %v707_v2 = vpop.permute.xlu1 %706   ;;  %1643 = vst.msk [vmem:[%s3798_s1 + $0x327] ss:$-252 sm:$0xc] %vm3_vm5, %v635_v1  }
  0xd0   :  { %1644 = vst.msk [vmem:[%s3798_s1 + $0xd9] sm:$0x10] %vm3_vm5, %v635_v1  }
  0xd1   :  { %v686_v4 = vpop.permute.xlu0 %685   ;;  %1669 = vst.msk [vmem:[%s3798_s1 + $0x100] ss:$-252 sm:$0x3] %vm3_vm5, %v728_v61  }
  0xd2   :  { %1670 = vst.msk [vmem:[%s3798_s1 + $0x15e] ss:$-88 sm:$0xc] %vm3_vm5, %v728_v61  }
  0xd3   :  { %1671 = vst.msk [vmem:[%s3798_s1 + $0x154] sm:$0x10] %vm3_vm5, %v728_v61  }
  0xd4   :  { %1663 = vst.msk [vmem:[%s3798_s1 + $0x63] ss:$-88 sm:$0x3] %vm3_vm5, %v707_v2  }
  0xd5   :  { %1664 = vst.msk [vmem:[%s3798_s1 + $0x1bd] ss:$-88 sm:$0xc] %vm3_vm5, %v707_v2   ;;  %v912_v6 = vpop.permute.xlu2 %911  }
  0xd6   :  { %1665 = vst.msk [vmem:[%s3798_s1 + $0x15b] sm:$0x10] %vm3_vm5, %v707_v2  }
  0xd7   :  { %v770_v5 = vpop.permute.xlu1 %769   ;;  %1657 = vst.msk [vmem:[%s3798_s1 + $0xc2] ss:$-88 sm:$0x3] %vm3_vm5, %v686_v4  }
  0xd8   :  { %1658 = vst.msk [vmem:[%s3798_s1 + $0x21c] ss:$-88 sm:$0xc] %vm3_vm5, %v686_v4  }
  0xd9   :  { %v749_v7 = vpop.permute.xlu0 %748   ;;  %1659 = vst.msk [vmem:[%s3798_s1 + $0x14] sm:$0x10] %vm3_vm5, %v686_v4  }
  0xda   :  { %1687 = vst.msk [vmem:[%s3798_s1 + $0xe5] ss:$170 sm:$0x3] %vm3_vm5, %v791_v0  }
  0xdb   :  { %1688 = vst.msk [vmem:[%s3798_s1 + $0x143] ss:$-88 sm:$0xc] %vm3_vm5, %v791_v0  }
  0xdc   :  { %1689 = vst.msk [vmem:[%s3798_s1 + $0x139] sm:$0x10] %vm3_vm5, %v791_v0  }
  0xdd   :  { %1681 = vst.msk [vmem:[%s3798_s1 + $0x144] ss:$-252 sm:$0x3] %vm3_vm5, %v770_v5   ;;  %v975_v9 = vpop.permute.xlu2 %974  }
  0xde   :  { %1682 = vst.msk [vmem:[%s3798_s1 + $0x1a2] ss:$-88 sm:$0xc] %vm3_vm5, %v770_v5  }
  0xdf   :  { %v828_v8 = vpop.permute.xlu1 %827   ;;  %1683 = vst.msk [vmem:[%s3798_s1 + $0x198] sm:$0x10] %vm3_vm5, %v770_v5  }
  0xe0   :  { %1675 = vst.msk [vmem:[%s3798_s1 + $0xa1] ss:$258 sm:$0x3] %vm3_vm5, %v749_v7  }
  0xe1   :  { %v812_v10 = vpop.permute.xlu0 %811   ;;  %1676 = vst.msk [vmem:[%s3798_s1 - $0x1b5] ss:$258 sm:$0xc] %vm3_vm5, %v749_v7  }
  0xe2   :  { %1677 = vst.msk [vmem:[%s3798_s1 + $0xf5] sm:$0x10] %vm3_vm5, %v749_v7  }
  0xe3   :  { %1704 = vst.msk [vmem:[%s3798_s1 + $0x20] ss:$258 sm:$0x3] %vm3_vm5, %v849_v3  }
  0xe4   :  { %1705 = vst.msk [vmem:[%s3798_s1 - $0x8a] ss:$170 sm:$0xc] %vm3_vm5, %v849_v3  }
  0xe5   :  { %1706 = vst.msk [vmem:[%s3798_s1 + $0x74] sm:$0x10] %vm3_vm5, %v849_v3   ;;  %v1156_v12 = vpop.permute.xlu2 %1155  }
  0xe6   :  { %1698 = vst.msk [vmem:[%s3798_s1 + $0x181] ss:$-346 sm:$0x3] %vm3_vm5, %v828_v8  }
  0xe7   :  { %v891_v11 = vpop.permute.xlu1 %890   ;;  %1699 = vst.msk [vmem:[%s3798_s1 + $0x1d9] ss:$-88 sm:$0xc] %vm3_vm5, %v828_v8  }
  0xe8   :  { %1700 = vst.msk [vmem:[%s3798_s1 + $0x7b] sm:$0x10] %vm3_vm5, %v828_v8  }
  0xe9   :  { %v870_v13 = vpop.permute.xlu0 %869   ;;  %1693 = vst.msk [vmem:[%s3798_s1 + $0x86] ss:$258 sm:$0x3] %vm3_vm5, %v812_v10  }
  0xea   :  { %1694 = vst.msk [vmem:[%s3798_s1 + $0x328] ss:$-252 sm:$0xc] %vm3_vm5, %v812_v10  }
  0xeb   :  { %1695 = vst.msk [vmem:[%s3798_s1 + $0xda] sm:$0x10] %vm3_vm5, %v812_v10  }
  0xec   :  { %1722 = vst.msk [vmem:[%s3798_s1 + $0x101] ss:$-252 sm:$0x3] %vm3_vm5, %v912_v6  }
  0xed   :  { %1723 = vst.msk [vmem:[%s3798_s1 + $0x15f] ss:$-88 sm:$0xc] %vm3_vm5, %v912_v6   ;;  %v1282_v15 = vpop.permute.xlu2 %1281  }
  0xee   :  { %1724 = vst.msk [vmem:[%s3798_s1 + $0x155] sm:$0x10] %vm3_vm5, %v912_v6  }
  0xef   :  { %v954_v14 = vpop.permute.xlu1 %953   ;;  %1716 = vst.msk [vmem:[%s3798_s1 + $0x160] ss:$-252 sm:$0x3] %vm3_vm5, %v891_v11  }
  0xf0   :  { %1717 = vst.msk [vmem:[%s3798_s1 - $0x1f8] ss:$258 sm:$0xc] %vm3_vm5, %v891_v11  }
  0xf1   :  { %v933_v16 = vpop.permute.xlu0 %932   ;;  %1718 = vst.msk [vmem:[%s3798_s1 + $0xb2] sm:$0x10] %vm3_vm5, %v891_v11  }
  0xf2   :  { %1710 = vst.msk [vmem:[%s3798_s1 + $0xc3] ss:$-88 sm:$0x3] %vm3_vm5, %v870_v13  }
  0xf3   :  { %1711 = vst.msk [vmem:[%s3798_s1 + $0x21d] ss:$-88 sm:$0xc] %vm3_vm5, %v870_v13  }
  0xf4   :  { %1712 = vst.msk [vmem:[%s3798_s1 + $0x15] sm:$0x10] %vm3_vm5, %v870_v13  }
  0xf5   :  { %1740 = vst.msk [vmem:[%s3798_s1 + $0xe6] ss:$170 sm:$0x3] %vm3_vm5, %v975_v9   ;;  %v1408_v19 = vpop.permute.xlu2 %1407  }
  0xf6   :  { %1741 = vst.msk [vmem:[%s3798_s1 + $0x144] ss:$-88 sm:$0xc] %vm3_vm5, %v975_v9  }
  0xf7   :  { %v1017_v17 = vpop.permute.xlu1 %1016   ;;  %1742 = vst.msk [vmem:[%s3798_s1 + $0x13a] sm:$0x10] %vm3_vm5, %v975_v9  }
  0xf8   :  { %1734 = vst.msk [vmem:[%s3798_s1 + $0x145] ss:$-252 sm:$0x3] %vm3_vm5, %v954_v14  }
  0xf9   :  { %v996_v18 = vpop.permute.xlu0 %995   ;;  %1735 = vst.msk [vmem:[%s3798_s1 + $0x1a3] ss:$-88 sm:$0xc] %vm3_vm5, %v954_v14  }
  0xfa   :  { %1736 = vst.msk [vmem:[%s3798_s1 + $0x199] sm:$0x10] %vm3_vm5, %v954_v14  }
  0xfb   :  { %1728 = vst.msk [vmem:[%s3798_s1 + $0x1a4] ss:$-252 sm:$0x3] %vm3_vm5, %v933_v16  }
  0xfc   :  { %1729 = vst.msk [vmem:[%s3798_s1 - $0x1b4] ss:$258 sm:$0xc] %vm3_vm5, %v933_v16  }
  0xfd   :  { %1730 = vst.msk [vmem:[%s3798_s1 + $0xf6] sm:$0x10] %vm3_vm5, %v933_v16   ;;  %v1059_v24 = vpop.permute.xlu2 %1058  }
  0xfe   :  { %1790 = vst.msk [vmem:[%s3798_s1 + $0x146] ss:$-252 sm:$0x3] %vm1157_vm14, %v1156_v12  }
  0xff   :  { %v1240_v20 = vpop.permute.xlu1 %1239   ;;  %1791 = vst.msk [vmem:[%s3798_s1 + $0x1a4] ss:$-88 sm:$0xc] %vm1157_vm14, %v1156_v12  }
 0x100   :  { %1792 = vst.msk [vmem:[%s3798_s1 + $0x19a] sm:$0x10] %vm1157_vm14, %v1156_v12   ;;  %vm1457_vm14 = vcmask 146448  }
 0x101   :  { %v1198_v21 = vpop.permute.xlu0 %1197   ;;  %1793 = vst.msk [vmem:[%s3798_s1 + $0x146] ss:$-252 sm:$0x3] %vm1164_vm15, %v1156_v12  }
 0x102   :  { %1794 = vst.msk [vmem:[%s3798_s1 + $0x1a4] ss:$-88 sm:$0xc] %vm1164_vm15, %v1156_v12  }
 0x103   :  { %1795 = vst.msk [vmem:[%s3798_s1 + $0x19a] sm:$0x10] %vm1164_vm15, %v1156_v12  }
 0x104   :  { %1752 = vst.msk [vmem:[%s3798_s1 + $0x80] ss:$258 sm:$0x3] %vm3_vm5, %v1017_v17  }
 0x105   :  { %1753 = vst.msk [vmem:[%s3798_s1 - $0x1dc] ss:$258 sm:$0xc] %vm3_vm5, %v1017_v17   ;;  %v1121_v27 = vpop.permute.xlu2 %1120  }
 0x106   :  { %1754 = vst.msk [vmem:[%s3798_s1 + $0xd4] sm:$0x10] %vm3_vm5, %v1017_v17  }
 0x107   :  { %v1366_v22 = vpop.permute.xlu1 %1365   ;;  %1746 = vst.msk [vmem:[%s3798_s1 + $0x87] ss:$258 sm:$0x3] %vm3_vm5, %v996_v18  }
 0x108   :  { %1747 = vst.msk [vmem:[%s3798_s1 + $0x329] ss:$-252 sm:$0xc] %vm3_vm5, %v996_v18  }
 0x109   :  { %v1324_v23 = vpop.permute.xlu0 %1323   ;;  %1748 = vst.msk [vmem:[%s3798_s1 + $0xdb] sm:$0x10] %vm3_vm5, %v996_v18  }
 0x10a   :  { %1826 = vst.msk [vmem:[%s3798_s1 + $0x81] ss:$258 sm:$0x3] %vm1283_vm0, %v1282_v15  }
 0x10b   :  { %1827 = vst.msk [vmem:[%s3798_s1 - $0x1db] ss:$258 sm:$0xc] %vm1283_vm0, %v1282_v15  }
 0x10c   :  { %1828 = vst.msk [vmem:[%s3798_s1 + $0xd5] sm:$0x10] %vm1283_vm0, %v1282_v15  }
 0x10d   :  { %1829 = vst.msk [vmem:[%s3798_s1 + $0x81] ss:$258 sm:$0x3] %vm1290_vm1, %v1282_v15  }
 0x10e   :  { %1830 = vst.msk [vmem:[%s3798_s1 - $0x1db] ss:$258 sm:$0xc] %vm1290_vm1, %v1282_v15  }
 0x10f   :  { %1831 = vst.msk [vmem:[%s3798_s1 + $0xd5] sm:$0x10] %vm1290_vm1, %v1282_v15   ;;  %v1038_v25 = vpop.permute.xlu1 %1037  }
 0x110   :  { %1814 = vst.msk [vmem:[%s3798_s1 + $0xe0] ss:$-88 sm:$0x3] %vm1241_vm2, %v1240_v20  }
 0x111   :  { %1815 = vst.msk [vmem:[%s3798_s1 + $0x432] ss:$-340 sm:$0xc] %vm1241_vm2, %v1240_v20   ;;  %v1449_v26 = vpop.permute.xlu0 %1448  }
 0x112   :  { %1816 = vst.msk [vmem:[%s3798_s1 + $0x134] sm:$0x10] %vm1241_vm2, %v1240_v20  }
 0x113   :  { %1817 = vst.msk [vmem:[%s3798_s1 + $0xe0] ss:$-88 sm:$0x3] %vm1248_vm3, %v1240_v20  }
 0x114   :  { %1818 = vst.msk [vmem:[%s3798_s1 + $0x432] ss:$-340 sm:$0xc] %vm1248_vm3, %v1240_v20  }
 0x115   :  { %1819 = vst.msk [vmem:[%s3798_s1 + $0x134] sm:$0x10] %vm1248_vm3, %v1240_v20  }
 0x116   :  { %1802 = vst.msk [vmem:[%s3798_s1 + $0xe7] ss:$170 sm:$0x3] %vm1199_vm4, %v1198_v21  }
 0x117   :  { %1803 = vst.msk [vmem:[%s3798_s1 + $0x145] ss:$-88 sm:$0xc] %vm1199_vm4, %v1198_v21   ;;  %v1100_v28 = vpop.permute.xlu1 %1099  }
 0x118   :  { %1804 = vst.msk [vmem:[%s3798_s1 + $0x13b] sm:$0x10] %vm1199_vm4, %v1198_v21  }
 0x119   :  { %1805 = vst.msk [vmem:[%s3798_s1 + $0xe7] ss:$170 sm:$0x3] %vm1206_vm6, %v1198_v21   ;;  %v1080_v29 = vpop.permute.xlu0 %1079  }
 0x11a   :  { %1806 = vst.msk [vmem:[%s3798_s1 + $0x145] ss:$-88 sm:$0xc] %vm1206_vm6, %v1198_v21  }
 0x11b   :  { %1807 = vst.msk [vmem:[%s3798_s1 + $0x13b] sm:$0x10] %vm1206_vm6, %v1198_v21  }
 0x11c   :  { %1862 = vst.msk [vmem:[%s3798_s1 + $0x66] ss:$258 sm:$0x3] %vm1409_vm7, %v1408_v19  }
 0x11d   :  { %1863 = vst.msk [vmem:[%s3798_s1 - $0x1f6] ss:$258 sm:$0xc] %vm1409_vm7, %v1408_v19  }
 0x11e   :  { %1864 = vst.msk [vmem:[%s3798_s1 + $0xb4] sm:$0x10] %vm1409_vm7, %v1408_v19  }
 0x11f   :  { %1865 = vst.msk [vmem:[%s3798_s1 + $0x66] ss:$258 sm:$0x3] %vm1416_vm8, %v1408_v19  }
 0x120   :  { %1866 = vst.msk [vmem:[%s3798_s1 - $0x1f6] ss:$258 sm:$0xc] %vm1416_vm8, %v1408_v19  }
 0x121   :  { %1867 = vst.msk [vmem:[%s3798_s1 + $0xb4] sm:$0x10] %vm1416_vm8, %v1408_v19  }
 0x122   :  { %1850 = vst.msk [vmem:[%s3798_s1 + $0xc5] ss:$-88 sm:$0x3] %vm1367_vm9, %v1366_v22  }
 0x123   :  { %1851 = vst.msk [vmem:[%s3798_s1 + $0x21f] ss:$-88 sm:$0xc] %vm1367_vm9, %v1366_v22  }
 0x124   :  { %1852 = vst.msk [vmem:[%s3798_s1 + $0x17] sm:$0x10] %vm1367_vm9, %v1366_v22  }
 0x125   :  { %1853 = vst.msk [vmem:[%s3798_s1 + $0xc5] ss:$-88 sm:$0x3] %vm1374_vm10, %v1366_v22  }
 0x126   :  { %1854 = vst.msk [vmem:[%s3798_s1 + $0x21f] ss:$-88 sm:$0xc] %vm1374_vm10, %v1366_v22  }
 0x127   :  { %1855 = vst.msk [vmem:[%s3798_s1 + $0x17] sm:$0x10] %vm1374_vm10, %v1366_v22  }
 0x128   :  { %1838 = vst.msk [vmem:[%s3798_s1 + $0x22] ss:$258 sm:$0x3] %vm1325_vm11, %v1324_v23  }
 0x129   :  { %1839 = vst.msk [vmem:[%s3798_s1 - $0x88] ss:$170 sm:$0xc] %vm1325_vm11, %v1324_v23  }
 0x12a   :  { %1840 = vst.msk [vmem:[%s3798_s1 + $0x76] sm:$0x10] %vm1325_vm11, %v1324_v23  }
 0x12b   :  { %1841 = vst.msk [vmem:[%s3798_s1 + $0x22] ss:$258 sm:$0x3] %vm1332_vm12, %v1324_v23  }
 0x12c   :  { %1842 = vst.msk [vmem:[%s3798_s1 - $0x88] ss:$170 sm:$0xc] %vm1332_vm12, %v1324_v23  }
 0x12d   :  { %1843 = vst.msk [vmem:[%s3798_s1 + $0x76] sm:$0x10] %vm1332_vm12, %v1324_v23  }
 0x12e   :  { %1764 = vst.msk [vmem:[%s3798_s1 + $0xc4] ss:$-88 sm:$0x3] %vm3_vm5, %v1059_v24  }
 0x12f   :  { %1765 = vst.msk [vmem:[%s3798_s1 + $0x21e] ss:$-88 sm:$0xc] %vm3_vm5, %v1059_v24  }
 0x130   :  { %1766 = vst.msk [vmem:[%s3798_s1 + $0x16] sm:$0x10] %vm3_vm5, %v1059_v24  }
 0x131   :  { %1758 = vst.msk [vmem:[%s3798_s1 + $0x21] ss:$258 sm:$0x3] %vm3_vm5, %v1038_v25  }
 0x132   :  { %1759 = vst.msk [vmem:[%s3798_s1 - $0x89] ss:$170 sm:$0xc] %vm3_vm5, %v1038_v25  }
 0x133   :  { %1760 = vst.msk [vmem:[%s3798_s1 + $0x75] sm:$0x10] %vm3_vm5, %v1038_v25  }
 0x134   :  { %1873 = vst.msk [vmem:[%s3798_s1 + $0x7] ss:$258 sm:$0x3] %vm1450_vm13, %v1449_v26  }
 0x135   :  { %1874 = vst.msk [vmem:[%s3798_s1 + $0x161] ss:$-88 sm:$0xc] %vm1450_vm13, %v1449_v26  }
 0x136   :  { %1875 = vst.msk [vmem:[%s3798_s1 + $0x157] sm:$0x10] %vm1450_vm13, %v1449_v26  }
 0x137   :  { %1876 = vst.msk [vmem:[%s3798_s1 + $0x7] ss:$258 sm:$0x3] %vm1457_vm14, %v1449_v26  }
 0x138   :  { %1877 = vst.msk [vmem:[%s3798_s1 + $0x161] ss:$-88 sm:$0xc] %vm1457_vm14, %v1449_v26  }
 0x139   :  { %1878 = vst.msk [vmem:[%s3798_s1 + $0x157] sm:$0x10] %vm1457_vm14, %v1449_v26  }
 0x13a   :  { %1781 = vst.msk [vmem:[%s3798_s1 + $0x1a5] ss:$-252 sm:$0x3] %vm3_vm5, %v1121_v27  }
 0x13b   :  { %1782 = vst.msk [vmem:[%s3798_s1 - $0x1b3] ss:$258 sm:$0xc] %vm3_vm5, %v1121_v27  }
 0x13c   :  { %1783 = vst.msk [vmem:[%s3798_s1 + $0xf7] sm:$0x10] %vm3_vm5, %v1121_v27  }
 0x13d   :  { %1775 = vst.msk [vmem:[%s3798_s1 + $0x6] ss:$258 sm:$0x3] %vm3_vm5, %v1100_v28  }
 0x13e   :  { %1776 = vst.msk [vmem:[%s3798_s1 + $0x160] ss:$-88 sm:$0xc] %vm3_vm5, %v1100_v28  }
 0x13f   :  { %1777 = vst.msk [vmem:[%s3798_s1 + $0x156] sm:$0x10] %vm3_vm5, %v1100_v28  }
 0x140   :  { %1770 = vst.msk [vmem:[%s3798_s1 + $0x161] ss:$-252 sm:$0x3] %vm3_vm5, %v1080_v29  }
 0x141   :  { %1771 = vst.msk [vmem:[%s3798_s1 - $0x1f7] ss:$258 sm:$0xc] %vm3_vm5, %v1080_v29  }
 0x142   :  { %1772 = vst.msk [vmem:[%s3798_s1 + $0xb3] sm:$0x10] %vm3_vm5, %v1080_v29  }
 0x143   :  { %4 = vst.msk [vmem:[%s3798_s1] ss:$82 sm:$0x3] %vm3_vm5, %v2_v30  }
 0x144   :  { %1464 = vst.msk [vmem:[%s3798_s1 + $0x6] ss:$82 sm:$0xc] %vm3_vm5, %v2_v30  }
 0x145   :  { %1465 = vst.msk [vmem:[%s3798_s1 + $0xc] ss:$82 sm:$0x30] %vm3_vm5, %v2_v30  }

// kernel: squeeze.4
= control target key start
LH: loop header
LB: loop body
LE: loop exit
PB: predicated region body
PF: predicated region fallthrough
CT: control target
= control target key end

     0   :  { %s1499_s10 = smov 120   ;;  %s1500_s19 = smov 112   ;;  %vm3_vm0 = vcmask 195584   ;;  %vm841_vm1 = vcmask 916480   ;;  %vm962_vm2 = vcmask 982016   ;;  %vm845_vm3 = vcmask 130048   ;;  %s3159_s0 = inlined_call_operand.vmem [shape: f32[13824], index: 0, kind: input, shape index: {}]   ;;  %s3160_s1 = inlined_call_operand.vmem [shape: f32[1,24,24,24], index: 1, kind: output, shape index: {}]  }
   0x1   :  { %v1108_v0 = vld [vmem:[%s3159_s0 + $0x32] ss:$3 sm:$0xff]   ;;  %v1098_v1 = vld [vmem:[%s3159_s0 + $0x2] ss:$3 sm:$0xff]   ;;  %v1113_v3 = vld [vmem:[%s3159_s0 + $0x4a] ss:$3 sm:$0xff]  }
   0x2   :  { %76 = vrot.lane.b32.xlu1 %v1108_v0, %s1499_s10  ;;  %50 = vrot.lane.b32.xlu0 %v1098_v1, %s1499_s10  ;;  %v1118_v2 = vld [vmem:[%s3159_s0 + $0x62] ss:$3 sm:$0xf]   ;;  %v1103_v4 = vld [vmem:[%s3159_s0 + $0x1a] ss:$3 sm:$0xff]   ;;  %s1501_s3 = smov 104  }
   0x3   :  { %102 = vrot.lane.b32.xlu2 %v1118_v2, %s1499_s10  ;;  %v1121_v5 = vld [vmem:[%s3159_s0 + $0x1] ss:$3 sm:$0xff]   ;;  %v1131_v6 = vld [vmem:[%s3159_s0 + $0x31] ss:$3 sm:$0xff]   ;;  %v1126_v7 = vld [vmem:[%s3159_s0 + $0x19] ss:$3 sm:$0xff]  }
   0x4   :  { %v1136_v8 = vld [vmem:[%s3159_s0 + $0x49] ss:$3 sm:$0xff]   ;;  %v1141_v10 = vld [vmem:[%s3159_s0 + $0x61] ss:$3 sm:$0xf]   ;;  %s1502_s16 = smov 96  }
   0x5   :  { %v170_v9 = vld [vmem:[%s3159_s0] ss:$3 sm:$0xff]   ;;  %v1148_v11 = vld [vmem:[%s3159_s0 + $0x18] ss:$3 sm:$0xff]   ;;  %v1158_v12 = vld [vmem:[%s3159_s0 + $0x48] ss:$3 sm:$0xff]  }
   0x6   :  { %v1153_v13 = vld [vmem:[%s3159_s0 + $0x30] ss:$3 sm:$0xff]   ;;  %v1163_v14 = vld [vmem:[%s3159_s0 + $0x60] ss:$3 sm:$0xf]   ;;  %s1503_s23 = smov 88  }
   0x7   :  { %v1171_v15 = vld [vmem:[%s3159_s0 + $0x1a] ss:$3 sm:$0xff]   ;;  %v1166_v16 = vld [vmem:[%s3159_s0 + $0x2] ss:$3 sm:$0xff]   ;;  %v1176_v17 = vld [vmem:[%s3159_s0 + $0x32] ss:$3 sm:$0xff]  }
   0x8   :  { %v1186_v18 = vld [vmem:[%s3159_s0 + $0x62] ss:$3 sm:$0xf]   ;;  %v1181_v19 = vld [vmem:[%s3159_s0 + $0x4a] ss:$3 sm:$0xff]   ;;  %s1504_s7 = smov 80  }
   0x9   :  { %v1189_v20 = vld [vmem:[%s3159_s0 + $0x1] ss:$3 sm:$0xff]   ;;  %v1199_v21 = vld [vmem:[%s3159_s0 + $0x31] ss:$3 sm:$0xff]   ;;  %v1194_v22 = vld [vmem:[%s3159_s0 + $0x19] ss:$3 sm:$0xff]  }
   0xa   :  { %89 = vrot.lane.b32.xlu1 %v1113_v3, %s1499_s10  ;;  %63 = vrot.lane.b32.xlu0 %v1103_v4, %s1499_s10  ;;  %v1204_v23 = vld [vmem:[%s3159_s0 + $0x49] ss:$3 sm:$0xff]   ;;  %v1209_v25 = vld [vmem:[%s3159_s0 + $0x61] ss:$3 sm:$0xf]   ;;  %s1505_s20 = smov 72  }
   0xb   :  { %111 = vrot.lane.b32.xlu2 %v1121_v5, %s1500_s19  ;;  %v352_v24 = vld [vmem:[%s3159_s0] ss:$3 sm:$0xff]   ;;  %v1216_v26 = vld [vmem:[%s3159_s0 + $0x18] ss:$3 sm:$0xff]   ;;  %v1226_v27 = vld [vmem:[%s3159_s0 + $0x48] ss:$3 sm:$0xff]  }
   0xc   :  { %v1221_v28 = vld [vmem:[%s3159_s0 + $0x30] ss:$3 sm:$0xff]   ;;  %v1231_v29 = vld [vmem:[%s3159_s0 + $0x60] ss:$3 sm:$0xf]   ;;  %s1506_s27 = smov 64  }
   0xd   :  { %v1239_v30 = vld [vmem:[%s3159_s0 + $0x1a] ss:$3 sm:$0xff]   ;;  %v1234_v31 = vld [vmem:[%s3159_s0 + $0x2] ss:$3 sm:$0xff]   ;;  %v1244_v32 = vld [vmem:[%s3159_s0 + $0x32] ss:$3 sm:$0xff]  }
   0xe   :  { %v1254_v33 = vld [vmem:[%s3159_s0 + $0x62] ss:$3 sm:$0xf]   ;;  %v1249_v34 = vld [vmem:[%s3159_s0 + $0x4a] ss:$3 sm:$0xff]   ;;  %s1507_s21 = smov 56  }
   0xf   :  { %v1257_v35 = vld [vmem:[%s3159_s0 + $0x1] ss:$3 sm:$0xff]   ;;  %v1267_v36 = vld [vmem:[%s3159_s0 + $0x31] ss:$3 sm:$0xff]   ;;  %v1262_v38 = vld [vmem:[%s3159_s0 + $0x19] ss:$3 sm:$0xff]  }
  0x10   :  { %v1272_v39 = vld [vmem:[%s3159_s0 + $0x49] ss:$3 sm:$0xff]   ;;  %v1277_v42 = vld [vmem:[%s3159_s0 + $0x61] ss:$3 sm:$0xf]   ;;  %s1509_s25 = smov 40  }
  0x11   :  { %v534_v40 = vld [vmem:[%s3159_s0] ss:$3 sm:$0xff]   ;;  %v1284_v43 = vld [vmem:[%s3159_s0 + $0x18] ss:$3 sm:$0xff]   ;;  %v1294_v44 = vld [vmem:[%s3159_s0 + $0x48] ss:$3 sm:$0xff]  }
  0x12   :  { %137 = vrot.lane.b32.xlu1 %v1131_v6, %s1500_s19  ;;  %124 = vrot.lane.b32.xlu0 %v1126_v7, %s1500_s19  ;;  %v1289_v46 = vld [vmem:[%s3159_s0 + $0x30] ss:$3 sm:$0xff]   ;;  %v1299_v47 = vld [vmem:[%s3159_s0 + $0x60] ss:$3 sm:$0xf]   ;;  %s1513_s22 = smov 8  }
  0x13   :  { %150 = vrot.lane.b32.xlu2 %v1136_v8, %s1500_s19  ;;  %v1307_v50 = vld [vmem:[%s3159_s0 + $0x1a] ss:$3 sm:$0xff]   ;;  %v1302_v52 = vld [vmem:[%s3159_s0 + $0x2] ss:$3 sm:$0xff]   ;;  %v1312_v53 = vld [vmem:[%s3159_s0 + $0x32] ss:$3 sm:$0xff]  }
  0x14   :  { %v1322_v56 = vld [vmem:[%s3159_s0 + $0x62] ss:$3 sm:$0xf]   ;;  %v1317_v58 = vld [vmem:[%s3159_s0 + $0x4a] ss:$3 sm:$0xff]   ;;  %vm854_vm4 = vcmask 195712  }
  0x15   :  { %v1325_v59 = vld [vmem:[%s3159_s0 + $0x1] ss:$3 sm:$0xff]   ;;  %v1335_v62 = vld [vmem:[%s3159_s0 + $0x31] ss:$3 sm:$0xff]   ;;  %v1330_v0 = vld [vmem:[%s3159_s0 + $0x19] ss:$3 sm:$0xff]  }
  0x16   :  { %v1340_v3 = vld [vmem:[%s3159_s0 + $0x49] ss:$3 sm:$0xff]   ;;  %v1345_v6 = vld [vmem:[%s3159_s0 + $0x61] ss:$3 sm:$0xf]   ;;  %vm966_vm5 = vcmask 64512  }
  0x17   :  { %v716_v4 = vld [vmem:[%s3159_s0] ss:$3 sm:$0xff]   ;;  %vm975_vm6 = vcmask 195648  }
  0x1a   :  { %171 = vrot.lane.b32.xlu1 %v170_v9, %s1501_s3  ;;  %163 = vrot.lane.b32.xlu0 %v1141_v10, %s1500_s19  ;;  %v1362_v9 = vld [vmem:[%s3159_s0 + $0x48] ss:$3 sm:$0xff]   ;;  %v1352_v10 = vld [vmem:[%s3159_s0 + $0x18] ss:$3 sm:$0xff]   ;;  %s1512_s19 = smov 16  }
  0x1b   :  { %184 = vrot.lane.b32.xlu2 %v1148_v11, %s1501_s3 }
  0x22   :  { %210 = vrot.lane.b32.xlu1 %v1158_v12, %s1501_s3  ;;  %197 = vrot.lane.b32.xlu0 %v1153_v13, %s1501_s3  ;;  %v1357_v12 = vld [vmem:[%s3159_s0 + $0x30] ss:$3 sm:$0xff]  }
  0x23   :  { %223 = vrot.lane.b32.xlu2 %v1163_v14, %s1501_s3 }
  0x2a   :  { %245 = vrot.lane.b32.xlu1 %v1171_v15, %s1502_s16  ;;  %232 = vrot.lane.b32.xlu0 %v1166_v16, %s1502_s16  ;;  %v1375_v15 = vld [vmem:[%s3159_s0 + $0x1a] ss:$3 sm:$0xff]   ;;  %v1370_v16 = vld [vmem:[%s3159_s0 + $0x2] ss:$3 sm:$0xff]  }
  0x2b   :  { %258 = vrot.lane.b32.xlu2 %v1176_v17, %s1502_s16  ;;  %v1413_v17 = vld [vmem:[%s3159_s0 + $0x31] ss:$3 sm:$0xff]  }
  0x32   :  { %284 = vrot.lane.b32.xlu1 %v1186_v18, %s1502_s16  ;;  %271 = vrot.lane.b32.xlu0 %v1181_v19, %s1502_s16  ;;  %v1414_v18 = vld [vmem:[%s3159_s0 + $0x32] ss:$3 sm:$0xff]   ;;  %v1367_v19 = vld [vmem:[%s3159_s0 + $0x60] ss:$3 sm:$0xf]  }
  0x33   :  { %293 = vrot.lane.b32.xlu2 %v1189_v20, %s1503_s23 }
  0x3a   :  { %319 = vrot.lane.b32.xlu1 %v1199_v21, %s1503_s23  ;;  %306 = vrot.lane.b32.xlu0 %v1194_v22, %s1503_s23  ;;  %v1403_v21 = vld [vmem:[%s3159_s0 + $0x19] ss:$3 sm:$0xff]  }
  0x3b   :  { %332 = vrot.lane.b32.xlu2 %v1204_v23, %s1503_s23 }
  0x42   :  { %353 = vrot.lane.b32.xlu1 %v352_v24, %s1504_s7  ;;  %345 = vrot.lane.b32.xlu0 %v1209_v25, %s1503_s23  ;;  %v1404_v24 = vld [vmem:[%s3159_s0 + $0x1a] ss:$3 sm:$0xff]   ;;  %v894_v25 = vsel %vm841_vm1, %v1414_v18, %v1413_v17 }
  0x43   :  { %366 = vrot.lane.b32.xlu2 %v1216_v26, %s1504_s7  ;;  %v868_v26 = vsel %vm841_vm1, %v1404_v24, %v1403_v21 }
  0x4a   :  { %392 = vrot.lane.b32.xlu1 %v1226_v27, %s1504_s7  ;;  %379 = vrot.lane.b32.xlu0 %v1221_v28, %s1504_s7  ;;  %v959_v27 = vld [vmem:[%s3159_s0] ss:$3 sm:$0xff]   ;;  %v1439_v28 = vld [vmem:[%s3159_s0 + $0x1] ss:$3 sm:$0xff]  }
  0x4b   :  { %405 = vrot.lane.b32.xlu2 %v1231_v29, %s1504_s7  ;;  %s1510_s7 = smov 32   ;;  %v1433_v29 = vld [vmem:[%s3159_s0 + $0x61] ss:$3 sm:$0xf]  }
  0x52   :  { %427 = vrot.lane.b32.xlu1 %v1239_v30, %s1505_s20  ;;  %414 = vrot.lane.b32.xlu0 %v1234_v31, %s1505_s20  ;;  %v1434_v30 = vld [vmem:[%s3159_s0 + $0x62] ss:$3 sm:$0xf]  }
  0x53   :  { %440 = vrot.lane.b32.xlu2 %v1244_v32, %s1505_s20 }
  0x5a   :  { %466 = vrot.lane.b32.xlu1 %v1254_v33, %s1505_s20  ;;  %453 = vrot.lane.b32.xlu0 %v1249_v34, %s1505_s20  ;;  %v1393_v33 = vld [vmem:[%s3159_s0 + $0x1] ss:$3 sm:$0xff]   ;;  %v1394_v34 = vld [vmem:[%s3159_s0 + $0x2] ss:$3 sm:$0xff]  }
  0x5b   :  { %475 = vrot.lane.b32.xlu2 %v1257_v35, %s1506_s27 }
  0x5d   :  { %v103_v37 = vpop.permute.xlu2 %102  }
  0x5e   :  { %1119 = vst.msk [vmem:[%s3160_s1 + $0x20b] ss:$16 sm:$0x3] %vm3_vm0, %v103_v37  }
  0x5f   :  { %1120 = vst.msk [vmem:[%s3160_s1 + $0x20b] ss:$16 sm:$0xc] %vm3_vm0, %v103_v37   ;;  %v963_v37 = vsel %vm962_vm2, %v1439_v28, %v959_v27 }
  0x62   :  { %501 = vrot.lane.b32.xlu1 %v1267_v36, %s1506_s27  ;;  %488 = vrot.lane.b32.xlu0 %v1262_v38, %s1506_s27  ;;  %v842_v36 = vsel %vm841_vm1, %v1394_v34, %v1393_v33  ;;  %v946_v38 = vsel %vm841_vm1, %v1434_v30, %v1433_v29 }
  0x63   :  { %514 = vrot.lane.b32.xlu2 %v1272_v39, %s1506_s27  ;;  %v1468_v39 = vld [vmem:[%s3159_s0 + $0x48] ss:$3 sm:$0xff]  }
  0x65   :  { %v112_v41 = vpop.permute.xlu2 %111  }
  0x66   :  { %1122 = vst.msk [vmem:[%s3160_s1 + $0x6] ss:$16 sm:$0x3] %vm3_vm0, %v112_v41  }
  0x67   :  { %1123 = vst.msk [vmem:[%s3160_s1 + $0x6] ss:$16 sm:$0xc] %vm3_vm0, %v112_v41  }
  0x68   :  { %1124 = vst.msk [vmem:[%s3160_s1 + $0x6] ss:$16 sm:$0x30] %vm3_vm0, %v112_v41  }
  0x69   :  { %1125 = vst.msk [vmem:[%s3160_s1 + $0x6] ss:$16 sm:$0xc0] %vm3_vm0, %v112_v41   ;;  %v1458_v41 = vld [vmem:[%s3159_s0 + $0x30] ss:$3 sm:$0xff]  }
  0x6a   :  { %535 = vrot.lane.b32.xlu1 %v534_v40, %s1507_s21  ;;  %527 = vrot.lane.b32.xlu0 %v1277_v42, %s1506_s27  ;;  %s1508_s27 = smov 48   ;;  %v1469_v40 = vld [vmem:[%s3159_s0 + $0x49] ss:$3 sm:$0xff]  }
  0x6b   :  { %548 = vrot.lane.b32.xlu2 %v1284_v43, %s1507_s21 }
  0x6d   :  { %v151_v45 = vpop.permute.xlu2 %150  }
  0x6e   :  { %1137 = vst.msk [vmem:[%s3160_s1 + $0x186] ss:$16 sm:$0x3] %vm3_vm0, %v151_v45  }
  0x6f   :  { %1138 = vst.msk [vmem:[%s3160_s1 + $0x186] ss:$16 sm:$0xc] %vm3_vm0, %v151_v45  }
  0x70   :  { %1139 = vst.msk [vmem:[%s3160_s1 + $0x186] ss:$16 sm:$0x30] %vm3_vm0, %v151_v45  }
  0x71   :  { %1140 = vst.msk [vmem:[%s3160_s1 + $0x186] ss:$16 sm:$0xc0] %vm3_vm0, %v151_v45   ;;  %v1423_v45 = vld [vmem:[%s3159_s0 + $0x49] ss:$3 sm:$0xff]  }
  0x72   :  { %574 = vrot.lane.b32.xlu1 %v1294_v44, %s1507_s21  ;;  %561 = vrot.lane.b32.xlu0 %v1289_v46, %s1507_s21  ;;  %v1459_v44 = vld [vmem:[%s3159_s0 + $0x31] ss:$3 sm:$0xff]  }
  0x73   :  { %587 = vrot.lane.b32.xlu2 %v1299_v47, %s1507_s21  ;;  %s1511_s21 = smov 24   ;;  %v1041_v47 = vsel %vm962_vm2, %v1469_v40, %v1468_v39 }
  0x74   :  { %v77_v48 = vpop.permute.xlu1 %76   ;;  %v51_v49 = vpop.permute.xlu0 %50  }
  0x75   :  { %1109 = vst.msk [vmem:[%s3160_s1 + $0x10b] ss:$16 sm:$0x3] %vm3_vm0, %v77_v48   ;;  %v185_v51 = vpop.permute.xlu2 %184  }
  0x76   :  { %1110 = vst.msk [vmem:[%s3160_s1 + $0x10b] ss:$16 sm:$0xc] %vm3_vm0, %v77_v48  }
  0x77   :  { %1111 = vst.msk [vmem:[%s3160_s1 + $0x10b] ss:$16 sm:$0x30] %vm3_vm0, %v77_v48  }
  0x78   :  { %1112 = vst.msk [vmem:[%s3160_s1 + $0x10b] ss:$16 sm:$0xc0] %vm3_vm0, %v77_v48   ;;  %v1015_v48 = vsel %vm962_vm2, %v1459_v44, %v1458_v41  ;;  %v1085_v44 = vld [vmem:[%s3159_s0 + $0x30] ss:$3 sm:$0xff]  }
  0x79   :  { %1099 = vst.msk [vmem:[%s3160_s1 + $0xb] ss:$16 sm:$0x3] %vm3_vm0, %v51_v49  }
  0x7a   :  { %1100 = vst.msk [vmem:[%s3160_s1 + $0xb] ss:$16 sm:$0xc] %vm3_vm0, %v51_v49   ;;  %609 = vrot.lane.b32.xlu1 %v1307_v50, %s1508_s27  ;;  %596 = vrot.lane.b32.xlu0 %v1302_v52, %s1508_s27 }
  0x7b   :  { %1101 = vst.msk [vmem:[%s3160_s1 + $0xb] ss:$16 sm:$0x30] %vm3_vm0, %v51_v49   ;;  %622 = vrot.lane.b32.xlu2 %v1312_v53, %s1508_s27  ;;  %v1385_v53 = vld [vmem:[%s3159_s0 + $0x4a] ss:$3 sm:$0xff]  }
  0x7c   :  { %1102 = vst.msk [vmem:[%s3160_s1 + $0xb] ss:$16 sm:$0xc0] %vm3_vm0, %v51_v49   ;;  %v90_v54 = vpop.permute.xlu1 %89   ;;  %v64_v55 = vpop.permute.xlu0 %63   ;;  %v1424_v49 = vld [vmem:[%s3159_s0 + $0x4a] ss:$3 sm:$0xff]  }
  0x7d   :  { %1114 = vst.msk [vmem:[%s3160_s1 + $0x18b] ss:$16 sm:$0x3] %vm3_vm0, %v90_v54   ;;  %v224_v57 = vpop.permute.xlu2 %223   ;;  %v920_v50 = vsel %vm841_vm1, %v1424_v49, %v1423_v45  ;;  %v1090_v45 = vld [vmem:[%s3159_s0 + $0x48] ss:$3 sm:$0xff]  }
  0x7e   :  { %1115 = vst.msk [vmem:[%s3160_s1 + $0x18b] ss:$16 sm:$0xc] %vm3_vm0, %v90_v54  }
  0x7f   :  { %1116 = vst.msk [vmem:[%s3160_s1 + $0x18b] ss:$16 sm:$0x30] %vm3_vm0, %v90_v54  }
  0x80   :  { %1117 = vst.msk [vmem:[%s3160_s1 + $0x18b] ss:$16 sm:$0xc0] %vm3_vm0, %v90_v54   ;;  %v1380_v54 = vld [vmem:[%s3159_s0 + $0x32] ss:$3 sm:$0xff]  }
  0x81   :  { %1104 = vst.msk [vmem:[%s3160_s1 + $0x8b] ss:$16 sm:$0x3] %vm3_vm0, %v64_v55  }
  0x82   :  { %1105 = vst.msk [vmem:[%s3160_s1 + $0x8b] ss:$16 sm:$0xc] %vm3_vm0, %v64_v55   ;;  %648 = vrot.lane.b32.xlu1 %v1322_v56, %s1508_s27  ;;  %635 = vrot.lane.b32.xlu0 %v1317_v58, %s1508_s27 }
  0x83   :  { %1106 = vst.msk [vmem:[%s3160_s1 + $0x8b] ss:$16 sm:$0x30] %vm3_vm0, %v64_v55   ;;  %657 = vrot.lane.b32.xlu2 %v1325_v59, %s1509_s25 }
  0x84   :  { %1107 = vst.msk [vmem:[%s3160_s1 + $0x8b] ss:$16 sm:$0xc0] %vm3_vm0, %v64_v55   ;;  %v138_v60 = vpop.permute.xlu1 %137   ;;  %v125_v61 = vpop.permute.xlu0 %124   ;;  %v1448_v55 = vld [vmem:[%s3159_s0 + $0x18] ss:$3 sm:$0xff]  }
  0x85   :  { %1132 = vst.msk [vmem:[%s3160_s1 + $0x106] ss:$16 sm:$0x3] %vm3_vm0, %v138_v60   ;;  %v1793_v63 = vpop.permute.xlu2 %258  }
  0x86   :  { %1133 = vst.msk [vmem:[%s3160_s1 + $0x106] ss:$16 sm:$0xc] %vm3_vm0, %v138_v60  }
  0x87   :  { %1134 = vst.msk [vmem:[%s3160_s1 + $0x106] ss:$16 sm:$0x30] %vm3_vm0, %v138_v60  }
  0x88   :  { %1135 = vst.msk [vmem:[%s3160_s1 + $0x106] ss:$16 sm:$0xc0] %vm3_vm0, %v138_v60  }
  0x89   :  { %1127 = vst.msk [vmem:[%s3160_s1 + $0x86] ss:$16 sm:$0x3] %vm3_vm0, %v125_v61  }
  0x8a   :  { %1128 = vst.msk [vmem:[%s3160_s1 + $0x86] ss:$16 sm:$0xc] %vm3_vm0, %v125_v61   ;;  %683 = vrot.lane.b32.xlu1 %v1335_v62, %s1509_s25  ;;  %670 = vrot.lane.b32.xlu0 %v1330_v0, %s1509_s25  ;;  %v1479_v0 = vld [vmem:[%s3159_s0 + $0x61] ss:$3 sm:$0xf]  }
  0x8b   :  { %1129 = vst.msk [vmem:[%s3160_s1 + $0x86] ss:$16 sm:$0x30] %vm3_vm0, %v125_v61   ;;  %696 = vrot.lane.b32.xlu2 %v1340_v3, %s1509_s25 }
  0x8c   :  { %1130 = vst.msk [vmem:[%s3160_s1 + $0x86] ss:$16 sm:$0xc0] %vm3_vm0, %v125_v61   ;;  %v172_v1 = vpop.permute.xlu1 %171   ;;  %v164_v2 = vpop.permute.xlu0 %163  }
  0x8d   :  { %1149 = vst.msk [vmem:[%s3160_s1 + $0x81] ss:$16 sm:$0x3] %vm3_vm0, %v185_v51   ;;  %v1839_v5 = vpop.permute.xlu2 %293  }
  0x8e   :  { %1150 = vst.msk [vmem:[%s3160_s1 + $0x81] ss:$16 sm:$0xc] %vm3_vm0, %v185_v51  }
  0x8f   :  { %1151 = vst.msk [vmem:[%s3160_s1 + $0x81] ss:$16 sm:$0x30] %vm3_vm0, %v185_v51  }
  0x90   :  { %1152 = vst.msk [vmem:[%s3160_s1 + $0x81] ss:$16 sm:$0xc0] %vm3_vm0, %v185_v51  }
  0x91   :  { %1144 = vst.msk [vmem:[%s3160_s1 + $0x1] ss:$16 sm:$0x3] %vm3_vm0, %v172_v1  }
  0x92   :  { %1145 = vst.msk [vmem:[%s3160_s1 + $0x1] ss:$16 sm:$0xc] %vm3_vm0, %v172_v1   ;;  %717 = vrot.lane.b32.xlu1 %v716_v4, %s1510_s7  ;;  %709 = vrot.lane.b32.xlu0 %v1345_v6, %s1509_s25 }
  0x93   :  { %1146 = vst.msk [vmem:[%s3160_s1 + $0x1] ss:$16 sm:$0x30] %vm3_vm0, %v172_v1   ;;  %730 = vrot.lane.b32.xlu2 %v1352_v10, %s1510_s7 }
  0x94   :  { %1147 = vst.msk [vmem:[%s3160_s1 + $0x1] ss:$16 sm:$0xc0] %vm3_vm0, %v172_v1   ;;  %v211_v7 = vpop.permute.xlu1 %210   ;;  %v198_v8 = vpop.permute.xlu0 %197  }
  0x95   :  { %1142 = vst.msk [vmem:[%s3160_s1 + $0x206] ss:$16 sm:$0x3] %vm3_vm0, %v164_v2   ;;  %v1884_v11 = vpop.permute.xlu2 %332  }
  0x96   :  { %1143 = vst.msk [vmem:[%s3160_s1 + $0x206] ss:$16 sm:$0xc] %vm3_vm0, %v164_v2  }
  0x97   :  { %1164 = vst.msk [vmem:[%s3160_s1 + $0x201] ss:$16 sm:$0x3] %vm3_vm0, %v224_v57  }
  0x98   :  { %1165 = vst.msk [vmem:[%s3160_s1 + $0x201] ss:$16 sm:$0xc] %vm3_vm0, %v224_v57   ;;  %v1449_v57 = vld [vmem:[%s3159_s0 + $0x19] ss:$3 sm:$0xff]  }
  0x99   :  { %1159 = vst.msk [vmem:[%s3160_s1 + $0x181] ss:$16 sm:$0x3] %vm3_vm0, %v211_v7   ;;  %v989_v60 = vsel %vm962_vm2, %v1449_v57, %v1448_v55 }
  0x9a   :  { %1160 = vst.msk [vmem:[%s3160_s1 + $0x181] ss:$16 sm:$0xc] %vm3_vm0, %v211_v7   ;;  %756 = vrot.lane.b32.xlu1 %v1362_v9, %s1510_s7  ;;  %743 = vrot.lane.b32.xlu0 %v1357_v12, %s1510_s7 }
  0x9b   :  { %1161 = vst.msk [vmem:[%s3160_s1 + $0x181] ss:$16 sm:$0x30] %vm3_vm0, %v211_v7   ;;  %769 = vrot.lane.b32.xlu2 %v1367_v19, %s1510_s7 }
  0x9c   :  { %1162 = vst.msk [vmem:[%s3160_s1 + $0x181] ss:$16 sm:$0xc0] %vm3_vm0, %v211_v7   ;;  %v246_v13 = vpop.permute.xlu1 %245   ;;  %v233_v14 = vpop.permute.xlu0 %232  }
  0x9d   :  { %1154 = vst.msk [vmem:[%s3160_s1 + $0x101] ss:$16 sm:$0x3] %vm3_vm0, %v198_v8   ;;  %v1959_v20 = vpop.permute.xlu2 %366  }
  0x9e   :  { %1155 = vst.msk [vmem:[%s3160_s1 + $0x101] ss:$16 sm:$0xc] %vm3_vm0, %v198_v8  }
  0x9f   :  { %1156 = vst.msk [vmem:[%s3160_s1 + $0x101] ss:$16 sm:$0x30] %vm3_vm0, %v198_v8  }
  0xa0   :  { %1157 = vst.msk [vmem:[%s3160_s1 + $0x101] ss:$16 sm:$0xc0] %vm3_vm0, %v198_v8  }
  0xa1   :  { %1177 = vst.msk [vmem:[%s3160_s1 + $0x10c] ss:$16 sm:$0x3] %vm3_vm0, %v1793_v63  }
  0xa2   :  { %1178 = vst.msk [vmem:[%s3160_s1 + $0x10c] ss:$16 sm:$0xc] %vm3_vm0, %v1793_v63   ;;  %791 = vrot.lane.b32.xlu1 %v1375_v15, %s1511_s21  ;;  %778 = vrot.lane.b32.xlu0 %v1370_v16, %s1511_s21 }
  0xa3   :  { %1179 = vst.msk [vmem:[%s3160_s1 + $0x10c] ss:$16 sm:$0x30] %vm3_vm0, %v1793_v63   ;;  %843 = vrot.lane.b32.xlu2 %v842_v36, %s1512_s19 }
  0xa4   :  { %1180 = vst.msk [vmem:[%s3160_s1 + $0x10c] ss:$16 sm:$0xc0] %vm3_vm0, %v1793_v63   ;;  %v285_v22 = vpop.permute.xlu1 %284   ;;  %v272_v23 = vpop.permute.xlu0 %271   ;;  %v1478_v63 = vld [vmem:[%s3159_s0 + $0x60] ss:$3 sm:$0xf]  }
  0xa5   :  { %1172 = vst.msk [vmem:[%s3160_s1 + $0x8c] ss:$16 sm:$0x3] %vm3_vm0, %v246_v13   ;;  %v2037_v35 = vpop.permute.xlu2 %405   ;;  %v1067_v2 = vsel %vm962_vm2, %v1479_v0, %v1478_v63 }
  0xa6   :  { %1173 = vst.msk [vmem:[%s3160_s1 + $0x8c] ss:$16 sm:$0xc] %vm3_vm0, %v246_v13  }
  0xa7   :  { %1174 = vst.msk [vmem:[%s3160_s1 + $0x8c] ss:$16 sm:$0x30] %vm3_vm0, %v246_v13  }
  0xa8   :  { %1175 = vst.msk [vmem:[%s3160_s1 + $0x8c] ss:$16 sm:$0xc0] %vm3_vm0, %v246_v13  }
  0xa9   :  { %1167 = vst.msk [vmem:[%s3160_s1 + $0xc] ss:$16 sm:$0x3] %vm3_vm0, %v233_v14  }
  0xaa   :  { %1168 = vst.msk [vmem:[%s3160_s1 + $0xc] ss:$16 sm:$0xc] %vm3_vm0, %v233_v14   ;;  %895 = vrot.lane.b32.xlu1 %v894_v25, %s1512_s19  ;;  %869 = vrot.lane.b32.xlu0 %v868_v26, %s1512_s19 }
  0xab   :  { %1169 = vst.msk [vmem:[%s3160_s1 + $0xc] ss:$16 sm:$0x30] %vm3_vm0, %v233_v14   ;;  %921 = vrot.lane.b32.xlu2 %v920_v50, %s1512_s19 }
  0xac   :  { %1170 = vst.msk [vmem:[%s3160_s1 + $0xc] ss:$16 sm:$0xc0] %vm3_vm0, %v233_v14   ;;  %v320_v31 = vpop.permute.xlu1 %319   ;;  %v307_v32 = vpop.permute.xlu0 %306  }
  0xad   :  { %1190 = vst.msk [vmem:[%s3160_s1 + $0x7] ss:$16 sm:$0x3] %vm3_vm0, %v1839_v5   ;;  %v2099_v46 = vpop.permute.xlu2 %440  }
  0xae   :  { %1191 = vst.msk [vmem:[%s3160_s1 + $0x7] ss:$16 sm:$0xc] %vm3_vm0, %v1839_v5  }
  0xaf   :  { %1192 = vst.msk [vmem:[%s3160_s1 + $0x7] ss:$16 sm:$0x30] %vm3_vm0, %v1839_v5  }
  0xb0   :  { %1193 = vst.msk [vmem:[%s3160_s1 + $0x7] ss:$16 sm:$0xc0] %vm3_vm0, %v1839_v5   ;;  %v1390_v5 = vld [vmem:[%s3159_s0 + $0x62] ss:$3 sm:$0xf]  }
  0xb1   :  { %1187 = vst.msk [vmem:[%s3160_s1 + $0x20c] ss:$16 sm:$0x3] %vm3_vm0, %v285_v22  }
  0xb2   :  { %1188 = vst.msk [vmem:[%s3160_s1 + $0x20c] ss:$16 sm:$0xc] %vm3_vm0, %v285_v22   ;;  %964 = vrot.lane.b32.xlu1 %v963_v37, %s1513_s22  ;;  %947 = vrot.lane.b32.xlu0 %v946_v38, %s1512_s19 }
  0xb3   :  { %1182 = vst.msk [vmem:[%s3160_s1 + $0x18c] ss:$16 sm:$0x3] %vm3_vm0, %v272_v23   ;;  %990 = vrot.lane.b32.xlu2 %v989_v60, %s1513_s22 }
  0xb4   :  { %1183 = vst.msk [vmem:[%s3160_s1 + $0x18c] ss:$16 sm:$0xc] %vm3_vm0, %v272_v23   ;;  %v354_v42 = vpop.permute.xlu1 %353   ;;  %v346_v43 = vpop.permute.xlu0 %345  }
  0xb5   :  { %1184 = vst.msk [vmem:[%s3160_s1 + $0x18c] ss:$16 sm:$0x30] %vm3_vm0, %v272_v23   ;;  %v476_v56 = vpop.permute.xlu2 %475  }
  0xb6   :  { %1185 = vst.msk [vmem:[%s3160_s1 + $0x18c] ss:$16 sm:$0xc0] %vm3_vm0, %v272_v23  }
  0xb7   :  { %1205 = vst.msk [vmem:[%s3160_s1 + $0x187] ss:$16 sm:$0x3] %vm3_vm0, %v1884_v11  }
  0xb8   :  { %1206 = vst.msk [vmem:[%s3160_s1 + $0x187] ss:$16 sm:$0xc] %vm3_vm0, %v1884_v11  }
  0xb9   :  { %1207 = vst.msk [vmem:[%s3160_s1 + $0x187] ss:$16 sm:$0x30] %vm3_vm0, %v1884_v11  }
  0xba   :  { %1208 = vst.msk [vmem:[%s3160_s1 + $0x187] ss:$16 sm:$0xc0] %vm3_vm0, %v1884_v11   ;;  %1042 = vrot.lane.b32.xlu1 %v1041_v47, %s1513_s22  ;;  %1016 = vrot.lane.b32.xlu0 %v1015_v48, %s1513_s22 }
  0xbb   :  { %1200 = vst.msk [vmem:[%s3160_s1 + $0x107] ss:$16 sm:$0x3] %vm3_vm0, %v320_v31   ;;  %1068 = vrot.lane.b32.xlu2 %v1067_v2, %s1513_s22 }
  0xbc   :  { %1201 = vst.msk [vmem:[%s3160_s1 + $0x107] ss:$16 sm:$0xc] %vm3_vm0, %v320_v31   ;;  %v393_v51 = vpop.permute.xlu1 %392   ;;  %v380_v52 = vpop.permute.xlu0 %379  }
  0xbd   :  { %1202 = vst.msk [vmem:[%s3160_s1 + $0x107] ss:$16 sm:$0x30] %vm3_vm0, %v320_v31   ;;  %v515_v1 = vpop.permute.xlu2 %514  }
  0xbe   :  { %1203 = vst.msk [vmem:[%s3160_s1 + $0x107] ss:$16 sm:$0xc0] %vm3_vm0, %v320_v31  }
  0xbf   :  { %1195 = vst.msk [vmem:[%s3160_s1 + $0x87] ss:$16 sm:$0x3] %vm3_vm0, %v307_v32  }
  0xc0   :  { %1196 = vst.msk [vmem:[%s3160_s1 + $0x87] ss:$16 sm:$0xc] %vm3_vm0, %v307_v32  }
  0xc1   :  { %1197 = vst.msk [vmem:[%s3160_s1 + $0x87] ss:$16 sm:$0x30] %vm3_vm0, %v307_v32  }
  0xc2   :  { %1198 = vst.msk [vmem:[%s3160_s1 + $0x87] ss:$16 sm:$0xc0] %vm3_vm0, %v307_v32   ;;  %817 = vrot.lane.b32.xlu1 %v1385_v53, %s1511_s21  ;;  %804 = vrot.lane.b32.xlu0 %v1380_v54, %s1511_s21 }
  0xc3   :  { %1217 = vst.msk [vmem:[%s3160_s1 + $0x82] ss:$16 sm:$0x3] %vm3_vm0, %v1959_v20   ;;  %830 = vrot.lane.b32.xlu2 %v1390_v5, %s1511_s21 }
  0xc4   :  { %1218 = vst.msk [vmem:[%s3160_s1 + $0x82] ss:$16 sm:$0xc] %vm3_vm0, %v1959_v20   ;;  %v428_v58 = vpop.permute.xlu1 %427   ;;  %v415_v59 = vpop.permute.xlu0 %414  }
  0xc5   :  { %1219 = vst.msk [vmem:[%s3160_s1 + $0x82] ss:$16 sm:$0x30] %vm3_vm0, %v1959_v20   ;;  %v549_v6 = vpop.permute.xlu2 %548  }
  0xc6   :  { %1220 = vst.msk [vmem:[%s3160_s1 + $0x82] ss:$16 sm:$0xc0] %vm3_vm0, %v1959_v20  }
  0xc7   :  { %1212 = vst.msk [vmem:[%s3160_s1 + $0x2] ss:$16 sm:$0x3] %vm3_vm0, %v354_v42  }
  0xc8   :  { %1213 = vst.msk [vmem:[%s3160_s1 + $0x2] ss:$16 sm:$0xc] %vm3_vm0, %v354_v42  }
  0xc9   :  { %1214 = vst.msk [vmem:[%s3160_s1 + $0x2] ss:$16 sm:$0x30] %vm3_vm0, %v354_v42  }
  0xca   :  { %1215 = vst.msk [vmem:[%s3160_s1 + $0x2] ss:$16 sm:$0xc0] %vm3_vm0, %v354_v42   ;;  %v2_v42 = vld [vmem:[%s3159_s0] ss:$3 sm:$0xff]  }
  0xcb   :  { %1210 = vst.msk [vmem:[%s3160_s1 + $0x207] ss:$16 sm:$0x3] %vm3_vm0, %v346_v43  }
  0xcc   :  { %1211 = vst.msk [vmem:[%s3160_s1 + $0x207] ss:$16 sm:$0xc] %vm3_vm0, %v346_v43   ;;  %v467_v61 = vpop.permute.xlu1 %466   ;;  %v454_v62 = vpop.permute.xlu0 %453   ;;  %v1080_v43 = vld [vmem:[%s3159_s0 + $0x18] ss:$3 sm:$0xff]  }
  0xcd   :  { %1232 = vst.msk [vmem:[%s3160_s1 + $0x202] ss:$16 sm:$0x3] %vm3_vm0, %v2037_v35   ;;  %v588_v9 = vpop.permute.xlu2 %587  }
  0xce   :  { %1233 = vst.msk [vmem:[%s3160_s1 + $0x202] ss:$16 sm:$0xc] %vm3_vm0, %v2037_v35  }
  0xcf   :  { %1227 = vst.msk [vmem:[%s3160_s1 + $0x182] ss:$16 sm:$0x3] %vm3_vm0, %v393_v51  }
  0xd0   :  { %1228 = vst.msk [vmem:[%s3160_s1 + $0x182] ss:$16 sm:$0xc] %vm3_vm0, %v393_v51  }
  0xd1   :  { %1229 = vst.msk [vmem:[%s3160_s1 + $0x182] ss:$16 sm:$0x30] %vm3_vm0, %v393_v51  }
  0xd2   :  { %1230 = vst.msk [vmem:[%s3160_s1 + $0x182] ss:$16 sm:$0xc0] %vm3_vm0, %v393_v51  }
  0xd3   :  { %1222 = vst.msk [vmem:[%s3160_s1 + $0x102] ss:$16 sm:$0x3] %vm3_vm0, %v380_v52  }
  0xd4   :  { %1223 = vst.msk [vmem:[%s3160_s1 + $0x102] ss:$16 sm:$0xc] %vm3_vm0, %v380_v52   ;;  %v502_v3 = vpop.permute.xlu1 %501   ;;  %v489_v4 = vpop.permute.xlu0 %488  }
  0xd5   :  { %1224 = vst.msk [vmem:[%s3160_s1 + $0x102] ss:$16 sm:$0x30] %vm3_vm0, %v380_v52   ;;  %v623_v12 = vpop.permute.xlu2 %622  }
  0xd6   :  { %1225 = vst.msk [vmem:[%s3160_s1 + $0x102] ss:$16 sm:$0xc0] %vm3_vm0, %v380_v52  }
  0xd7   :  { %1245 = vst.msk [vmem:[%s3160_s1 + $0x10d] ss:$16 sm:$0x3] %vm3_vm0, %v2099_v46  }
  0xd8   :  { %1246 = vst.msk [vmem:[%s3160_s1 + $0x10d] ss:$16 sm:$0xc] %vm3_vm0, %v2099_v46  }
  0xd9   :  { %1247 = vst.msk [vmem:[%s3160_s1 + $0x10d] ss:$16 sm:$0x30] %vm3_vm0, %v2099_v46  }
  0xda   :  { %1248 = vst.msk [vmem:[%s3160_s1 + $0x10d] ss:$16 sm:$0xc0] %vm3_vm0, %v2099_v46   ;;  %v1095_v46 = vld [vmem:[%s3159_s0 + $0x60] ss:$3 sm:$0xf]  }
  0xdb   :  { %1240 = vst.msk [vmem:[%s3160_s1 + $0x8d] ss:$16 sm:$0x3] %vm3_vm0, %v428_v58  }
  0xdc   :  { %1241 = vst.msk [vmem:[%s3160_s1 + $0x8d] ss:$16 sm:$0xc] %vm3_vm0, %v428_v58   ;;  %v536_v7 = vpop.permute.xlu1 %535   ;;  %v528_v8 = vpop.permute.xlu0 %527  }
  0xdd   :  { %1242 = vst.msk [vmem:[%s3160_s1 + $0x8d] ss:$16 sm:$0x30] %vm3_vm0, %v428_v58   ;;  %v658_v15 = vpop.permute.xlu2 %657  }
  0xde   :  { %1243 = vst.msk [vmem:[%s3160_s1 + $0x8d] ss:$16 sm:$0xc0] %vm3_vm0, %v428_v58  }
  0xdf   :  { %1235 = vst.msk [vmem:[%s3160_s1 + $0xd] ss:$16 sm:$0x3] %vm3_vm0, %v415_v59  }
  0xe0   :  { %1236 = vst.msk [vmem:[%s3160_s1 + $0xd] ss:$16 sm:$0xc] %vm3_vm0, %v415_v59  }
  0xe1   :  { %1237 = vst.msk [vmem:[%s3160_s1 + $0xd] ss:$16 sm:$0x30] %vm3_vm0, %v415_v59  }
  0xe2   :  { %1238 = vst.msk [vmem:[%s3160_s1 + $0xd] ss:$16 sm:$0xc0] %vm3_vm0, %v415_v59  }
  0xe3   :  { %1258 = vst.msk [vmem:[%s3160_s1 + $0x8] ss:$16 sm:$0x3] %vm3_vm0, %v476_v56  }
  0xe4   :  { %1259 = vst.msk [vmem:[%s3160_s1 + $0x8] ss:$16 sm:$0xc] %vm3_vm0, %v476_v56   ;;  %v575_v10 = vpop.permute.xlu1 %574   ;;  %v562_v11 = vpop.permute.xlu0 %561  }
  0xe5   :  { %1260 = vst.msk [vmem:[%s3160_s1 + $0x8] ss:$16 sm:$0x30] %vm3_vm0, %v476_v56   ;;  %v697_v18 = vpop.permute.xlu2 %696  }
  0xe6   :  { %1261 = vst.msk [vmem:[%s3160_s1 + $0x8] ss:$16 sm:$0xc0] %vm3_vm0, %v476_v56  }
  0xe7   :  { %1255 = vst.msk [vmem:[%s3160_s1 + $0x20d] ss:$16 sm:$0x3] %vm3_vm0, %v467_v61  }
  0xe8   :  { %1256 = vst.msk [vmem:[%s3160_s1 + $0x20d] ss:$16 sm:$0xc] %vm3_vm0, %v467_v61  }
  0xe9   :  { %1250 = vst.msk [vmem:[%s3160_s1 + $0x18d] ss:$16 sm:$0x3] %vm3_vm0, %v454_v62  }
  0xea   :  { %1251 = vst.msk [vmem:[%s3160_s1 + $0x18d] ss:$16 sm:$0xc] %vm3_vm0, %v454_v62  }
  0xeb   :  { %1252 = vst.msk [vmem:[%s3160_s1 + $0x18d] ss:$16 sm:$0x30] %vm3_vm0, %v454_v62  }
  0xec   :  { %1253 = vst.msk [vmem:[%s3160_s1 + $0x18d] ss:$16 sm:$0xc0] %vm3_vm0, %v454_v62   ;;  %v610_v13 = vpop.permute.xlu1 %609   ;;  %v597_v14 = vpop.permute.xlu0 %596  }
  0xed   :  { %1273 = vst.msk [vmem:[%s3160_s1 + $0x188] ss:$16 sm:$0x3] %vm3_vm0, %v515_v1   ;;  %v731_v21 = vpop.permute.xlu2 %730  }
  0xee   :  { %1274 = vst.msk [vmem:[%s3160_s1 + $0x188] ss:$16 sm:$0xc] %vm3_vm0, %v515_v1  }
  0xef   :  { %1275 = vst.msk [vmem:[%s3160_s1 + $0x188] ss:$16 sm:$0x30] %vm3_vm0, %v515_v1  }
  0xf0   :  { %1276 = vst.msk [vmem:[%s3160_s1 + $0x188] ss:$16 sm:$0xc0] %vm3_vm0, %v515_v1  }
  0xf1   :  { %1268 = vst.msk [vmem:[%s3160_s1 + $0x108] ss:$16 sm:$0x3] %vm3_vm0, %v502_v3  }
  0xf2   :  { %1269 = vst.msk [vmem:[%s3160_s1 + $0x108] ss:$16 sm:$0xc] %vm3_vm0, %v502_v3  }
  0xf3   :  { %1270 = vst.msk [vmem:[%s3160_s1 + $0x108] ss:$16 sm:$0x30] %vm3_vm0, %v502_v3  }
  0xf4   :  { %1271 = vst.msk [vmem:[%s3160_s1 + $0x108] ss:$16 sm:$0xc0] %vm3_vm0, %v502_v3   ;;  %v649_v16 = vpop.permute.xlu1 %648   ;;  %v636_v17 = vpop.permute.xlu0 %635  }
  0xf5   :  { %1263 = vst.msk [vmem:[%s3160_s1 + $0x88] ss:$16 sm:$0x3] %vm3_vm0, %v489_v4   ;;  %v770_v24 = vpop.permute.xlu2 %769  }
  0xf6   :  { %1264 = vst.msk [vmem:[%s3160_s1 + $0x88] ss:$16 sm:$0xc] %vm3_vm0, %v489_v4  }
  0xf7   :  { %1265 = vst.msk [vmem:[%s3160_s1 + $0x88] ss:$16 sm:$0x30] %vm3_vm0, %v489_v4  }
  0xf8   :  { %1266 = vst.msk [vmem:[%s3160_s1 + $0x88] ss:$16 sm:$0xc0] %vm3_vm0, %v489_v4  }
  0xf9   :  { %1285 = vst.msk [vmem:[%s3160_s1 + $0x83] ss:$16 sm:$0x3] %vm3_vm0, %v549_v6  }
  0xfa   :  { %1286 = vst.msk [vmem:[%s3160_s1 + $0x83] ss:$16 sm:$0xc] %vm3_vm0, %v549_v6  }
  0xfb   :  { %1287 = vst.msk [vmem:[%s3160_s1 + $0x83] ss:$16 sm:$0x30] %vm3_vm0, %v549_v6  }
  0xfc   :  { %1288 = vst.msk [vmem:[%s3160_s1 + $0x83] ss:$16 sm:$0xc0] %vm3_vm0, %v549_v6   ;;  %v684_v19 = vpop.permute.xlu1 %683   ;;  %v671_v20 = vpop.permute.xlu0 %670  }
  0xfd   :  { %1280 = vst.msk [vmem:[%s3160_s1 + $0x3] ss:$16 sm:$0x3] %vm3_vm0, %v536_v7   ;;  %v844_v27 = vpop.permute.xlu2 %843  }
  0xfe   :  { %1281 = vst.msk [vmem:[%s3160_s1 + $0x3] ss:$16 sm:$0xc] %vm3_vm0, %v536_v7  }
  0xff   :  { %1282 = vst.msk [vmem:[%s3160_s1 + $0x3] ss:$16 sm:$0x30] %vm3_vm0, %v536_v7  }
 0x100   :  { %1283 = vst.msk [vmem:[%s3160_s1 + $0x3] ss:$16 sm:$0xc0] %vm3_vm0, %v536_v7  }
 0x101   :  { %1278 = vst.msk [vmem:[%s3160_s1 + $0x208] ss:$16 sm:$0x3] %vm3_vm0, %v528_v8  }
 0x102   :  { %1279 = vst.msk [vmem:[%s3160_s1 + $0x208] ss:$16 sm:$0xc] %vm3_vm0, %v528_v8  }
 0x103   :  { %1300 = vst.msk [vmem:[%s3160_s1 + $0x203] ss:$16 sm:$0x3] %vm3_vm0, %v588_v9  }
 0x104   :  { %1301 = vst.msk [vmem:[%s3160_s1 + $0x203] ss:$16 sm:$0xc] %vm3_vm0, %v588_v9   ;;  %v718_v22 = vpop.permute.xlu1 %717   ;;  %v710_v23 = vpop.permute.xlu0 %709  }
 0x105   :  { %1295 = vst.msk [vmem:[%s3160_s1 + $0x183] ss:$16 sm:$0x3] %vm3_vm0, %v575_v10   ;;  %v922_v30 = vpop.permute.xlu2 %921  }
 0x106   :  { %1296 = vst.msk [vmem:[%s3160_s1 + $0x183] ss:$16 sm:$0xc] %vm3_vm0, %v575_v10  }
 0x107   :  { %1297 = vst.msk [vmem:[%s3160_s1 + $0x183] ss:$16 sm:$0x30] %vm3_vm0, %v575_v10  }
 0x108   :  { %1298 = vst.msk [vmem:[%s3160_s1 + $0x183] ss:$16 sm:$0xc0] %vm3_vm0, %v575_v10  }
 0x109   :  { %1290 = vst.msk [vmem:[%s3160_s1 + $0x103] ss:$16 sm:$0x3] %vm3_vm0, %v562_v11  }
 0x10a   :  { %1291 = vst.msk [vmem:[%s3160_s1 + $0x103] ss:$16 sm:$0xc] %vm3_vm0, %v562_v11  }
 0x10b   :  { %1292 = vst.msk [vmem:[%s3160_s1 + $0x103] ss:$16 sm:$0x30] %vm3_vm0, %v562_v11  }
 0x10c   :  { %1293 = vst.msk [vmem:[%s3160_s1 + $0x103] ss:$16 sm:$0xc0] %vm3_vm0, %v562_v11   ;;  %v757_v25 = vpop.permute.xlu1 %756   ;;  %v744_v26 = vpop.permute.xlu0 %743  }
 0x10d   :  { %1313 = vst.msk [vmem:[%s3160_s1 + $0x10e] ss:$16 sm:$0x3] %vm3_vm0, %v623_v12   ;;  %v991_v33 = vpop.permute.xlu2 %990  }
 0x10e   :  { %1314 = vst.msk [vmem:[%s3160_s1 + $0x10e] ss:$16 sm:$0xc] %vm3_vm0, %v623_v12  }
 0x10f   :  { %1315 = vst.msk [vmem:[%s3160_s1 + $0x10e] ss:$16 sm:$0x30] %vm3_vm0, %v623_v12  }
 0x110   :  { %1316 = vst.msk [vmem:[%s3160_s1 + $0x10e] ss:$16 sm:$0xc0] %vm3_vm0, %v623_v12  }
 0x111   :  { %1308 = vst.msk [vmem:[%s3160_s1 + $0x8e] ss:$16 sm:$0x3] %vm3_vm0, %v610_v13  }
 0x112   :  { %1309 = vst.msk [vmem:[%s3160_s1 + $0x8e] ss:$16 sm:$0xc] %vm3_vm0, %v610_v13  }
 0x113   :  { %1310 = vst.msk [vmem:[%s3160_s1 + $0x8e] ss:$16 sm:$0x30] %vm3_vm0, %v610_v13  }
 0x114   :  { %1311 = vst.msk [vmem:[%s3160_s1 + $0x8e] ss:$16 sm:$0xc0] %vm3_vm0, %v610_v13   ;;  %v792_v28 = vpop.permute.xlu1 %791   ;;  %v779_v29 = vpop.permute.xlu0 %778  }
 0x115   :  { %1303 = vst.msk [vmem:[%s3160_s1 + $0xe] ss:$16 sm:$0x3] %vm3_vm0, %v597_v14   ;;  %v1069_v36 = vpop.permute.xlu2 %1068  }
 0x116   :  { %1304 = vst.msk [vmem:[%s3160_s1 + $0xe] ss:$16 sm:$0xc] %vm3_vm0, %v597_v14  }
 0x117   :  { %1305 = vst.msk [vmem:[%s3160_s1 + $0xe] ss:$16 sm:$0x30] %vm3_vm0, %v597_v14  }
 0x118   :  { %1306 = vst.msk [vmem:[%s3160_s1 + $0xe] ss:$16 sm:$0xc0] %vm3_vm0, %v597_v14  }
 0x119   :  { %1326 = vst.msk [vmem:[%s3160_s1 + $0x9] ss:$16 sm:$0x3] %vm3_vm0, %v658_v15  }
 0x11a   :  { %1327 = vst.msk [vmem:[%s3160_s1 + $0x9] ss:$16 sm:$0xc] %vm3_vm0, %v658_v15  }
 0x11b   :  { %1328 = vst.msk [vmem:[%s3160_s1 + $0x9] ss:$16 sm:$0x30] %vm3_vm0, %v658_v15  }
 0x11c   :  { %1329 = vst.msk [vmem:[%s3160_s1 + $0x9] ss:$16 sm:$0xc0] %vm3_vm0, %v658_v15   ;;  %v896_v31 = vpop.permute.xlu1 %895   ;;  %v870_v32 = vpop.permute.xlu0 %869  }
 0x11d   :  { %1323 = vst.msk [vmem:[%s3160_s1 + $0x20e] ss:$16 sm:$0x3] %vm3_vm0, %v649_v16   ;;  %v831_v39 = vpop.permute.xlu2 %830  }
 0x11e   :  { %1324 = vst.msk [vmem:[%s3160_s1 + $0x20e] ss:$16 sm:$0xc] %vm3_vm0, %v649_v16  }
 0x11f   :  { %1318 = vst.msk [vmem:[%s3160_s1 + $0x18e] ss:$16 sm:$0x3] %vm3_vm0, %v636_v17  }
 0x120   :  { %1319 = vst.msk [vmem:[%s3160_s1 + $0x18e] ss:$16 sm:$0xc] %vm3_vm0, %v636_v17  }
 0x121   :  { %1320 = vst.msk [vmem:[%s3160_s1 + $0x18e] ss:$16 sm:$0x30] %vm3_vm0, %v636_v17  }
 0x122   :  { %1321 = vst.msk [vmem:[%s3160_s1 + $0x18e] ss:$16 sm:$0xc0] %vm3_vm0, %v636_v17  }
 0x123   :  { %1341 = vst.msk [vmem:[%s3160_s1 + $0x189] ss:$16 sm:$0x3] %vm3_vm0, %v697_v18  }
 0x124   :  { %1342 = vst.msk [vmem:[%s3160_s1 + $0x189] ss:$16 sm:$0xc] %vm3_vm0, %v697_v18   ;;  %v965_v34 = vpop.permute.xlu1 %964   ;;  %v948_v35 = vpop.permute.xlu0 %947  }
 0x125   :  { %1343 = vst.msk [vmem:[%s3160_s1 + $0x189] ss:$16 sm:$0x30] %vm3_vm0, %v697_v18  }
 0x126   :  { %1344 = vst.msk [vmem:[%s3160_s1 + $0x189] ss:$16 sm:$0xc0] %vm3_vm0, %v697_v18  }
 0x127   :  { %1336 = vst.msk [vmem:[%s3160_s1 + $0x109] ss:$16 sm:$0x3] %vm3_vm0, %v684_v19  }
 0x128   :  { %1337 = vst.msk [vmem:[%s3160_s1 + $0x109] ss:$16 sm:$0xc] %vm3_vm0, %v684_v19  }
 0x129   :  { %1338 = vst.msk [vmem:[%s3160_s1 + $0x109] ss:$16 sm:$0x30] %vm3_vm0, %v684_v19  }
 0x12a   :  { %1339 = vst.msk [vmem:[%s3160_s1 + $0x109] ss:$16 sm:$0xc0] %vm3_vm0, %v684_v19  }
 0x12b   :  { %1331 = vst.msk [vmem:[%s3160_s1 + $0x89] ss:$16 sm:$0x3] %vm3_vm0, %v671_v20  }
 0x12c   :  { %1332 = vst.msk [vmem:[%s3160_s1 + $0x89] ss:$16 sm:$0xc] %vm3_vm0, %v671_v20   ;;  %v1043_v37 = vpop.permute.xlu1 %1042   ;;  %v1017_v38 = vpop.permute.xlu0 %1016  }
 0x12d   :  { %1333 = vst.msk [vmem:[%s3160_s1 + $0x89] ss:$16 sm:$0x30] %vm3_vm0, %v671_v20  }
 0x12e   :  { %1334 = vst.msk [vmem:[%s3160_s1 + $0x89] ss:$16 sm:$0xc0] %vm3_vm0, %v671_v20  }
 0x12f   :  { %1353 = vst.msk [vmem:[%s3160_s1 + $0x84] ss:$16 sm:$0x3] %vm3_vm0, %v731_v21  }
 0x130   :  { %1354 = vst.msk [vmem:[%s3160_s1 + $0x84] ss:$16 sm:$0xc] %vm3_vm0, %v731_v21  }
 0x131   :  { %1355 = vst.msk [vmem:[%s3160_s1 + $0x84] ss:$16 sm:$0x30] %vm3_vm0, %v731_v21  }
 0x132   :  { %1356 = vst.msk [vmem:[%s3160_s1 + $0x84] ss:$16 sm:$0xc0] %vm3_vm0, %v731_v21  }
 0x133   :  { %1348 = vst.msk [vmem:[%s3160_s1 + $0x4] ss:$16 sm:$0x3] %vm3_vm0, %v718_v22  }
 0x134   :  { %1349 = vst.msk [vmem:[%s3160_s1 + $0x4] ss:$16 sm:$0xc] %vm3_vm0, %v718_v22   ;;  %v818_v40 = vpop.permute.xlu1 %817   ;;  %v805_v41 = vpop.permute.xlu0 %804  }
 0x135   :  { %1350 = vst.msk [vmem:[%s3160_s1 + $0x4] ss:$16 sm:$0x30] %vm3_vm0, %v718_v22  }
 0x136   :  { %1351 = vst.msk [vmem:[%s3160_s1 + $0x4] ss:$16 sm:$0xc0] %vm3_vm0, %v718_v22  }
 0x137   :  { %1346 = vst.msk [vmem:[%s3160_s1 + $0x209] ss:$16 sm:$0x3] %vm3_vm0, %v710_v23  }
 0x138   :  { %1347 = vst.msk [vmem:[%s3160_s1 + $0x209] ss:$16 sm:$0xc] %vm3_vm0, %v710_v23  }
 0x139   :  { %1368 = vst.msk [vmem:[%s3160_s1 + $0x204] ss:$16 sm:$0x3] %vm3_vm0, %v770_v24  }
 0x13a   :  { %1369 = vst.msk [vmem:[%s3160_s1 + $0x204] ss:$16 sm:$0xc] %vm3_vm0, %v770_v24  }
 0x13b   :  { %1363 = vst.msk [vmem:[%s3160_s1 + $0x184] ss:$16 sm:$0x3] %vm3_vm0, %v757_v25  }
 0x13c   :  { %1364 = vst.msk [vmem:[%s3160_s1 + $0x184] ss:$16 sm:$0xc] %vm3_vm0, %v757_v25  }
 0x13d   :  { %1365 = vst.msk [vmem:[%s3160_s1 + $0x184] ss:$16 sm:$0x30] %vm3_vm0, %v757_v25  }
 0x13e   :  { %1366 = vst.msk [vmem:[%s3160_s1 + $0x184] ss:$16 sm:$0xc0] %vm3_vm0, %v757_v25  }
 0x13f   :  { %1358 = vst.msk [vmem:[%s3160_s1 + $0x104] ss:$16 sm:$0x3] %vm3_vm0, %v744_v26  }
 0x140   :  { %1359 = vst.msk [vmem:[%s3160_s1 + $0x104] ss:$16 sm:$0xc] %vm3_vm0, %v744_v26  }
 0x141   :  { %1360 = vst.msk [vmem:[%s3160_s1 + $0x104] ss:$16 sm:$0x30] %vm3_vm0, %v744_v26  }
 0x142   :  { %1361 = vst.msk [vmem:[%s3160_s1 + $0x104] ss:$16 sm:$0xc0] %vm3_vm0, %v744_v26  }
 0x143   :  { %1395 = vst.msk [vmem:[%s3160_s1 + $0xa] ss:$16 sm:$0x3] %vm845_vm3, %v844_v27  }
 0x144   :  { %1396 = vst.msk [vmem:[%s3160_s1 + $0xa] ss:$16 sm:$0xc] %vm845_vm3, %v844_v27  }
 0x145   :  { %1397 = vst.msk [vmem:[%s3160_s1 + $0xa] ss:$16 sm:$0x30] %vm845_vm3, %v844_v27  }
 0x146   :  { %1398 = vst.msk [vmem:[%s3160_s1 + $0xa] ss:$16 sm:$0xc0] %vm845_vm3, %v844_v27  }
 0x147   :  { %1399 = vst.msk [vmem:[%s3160_s1 + $0xa] ss:$16 sm:$0x3] %vm854_vm4, %v844_v27  }
 0x148   :  { %1400 = vst.msk [vmem:[%s3160_s1 + $0xa] ss:$16 sm:$0xc] %vm854_vm4, %v844_v27  }
 0x149   :  { %1401 = vst.msk [vmem:[%s3160_s1 + $0xa] ss:$16 sm:$0x30] %vm854_vm4, %v844_v27  }
 0x14a   :  { %1402 = vst.msk [vmem:[%s3160_s1 + $0xa] ss:$16 sm:$0xc0] %vm854_vm4, %v844_v27  }
 0x14b   :  { %1376 = vst.msk [vmem:[%s3160_s1 + $0x8f] ss:$16 sm:$0x3] %vm3_vm0, %v792_v28  }
 0x14c   :  { %1377 = vst.msk [vmem:[%s3160_s1 + $0x8f] ss:$16 sm:$0xc] %vm3_vm0, %v792_v28  }
 0x14d   :  { %1378 = vst.msk [vmem:[%s3160_s1 + $0x8f] ss:$16 sm:$0x30] %vm3_vm0, %v792_v28  }
 0x14e   :  { %1379 = vst.msk [vmem:[%s3160_s1 + $0x8f] ss:$16 sm:$0xc0] %vm3_vm0, %v792_v28  }
 0x14f   :  { %1371 = vst.msk [vmem:[%s3160_s1 + $0xf] ss:$16 sm:$0x3] %vm3_vm0, %v779_v29  }
 0x150   :  { %1372 = vst.msk [vmem:[%s3160_s1 + $0xf] ss:$16 sm:$0xc] %vm3_vm0, %v779_v29  }
 0x151   :  { %1373 = vst.msk [vmem:[%s3160_s1 + $0xf] ss:$16 sm:$0x30] %vm3_vm0, %v779_v29  }
 0x152   :  { %1374 = vst.msk [vmem:[%s3160_s1 + $0xf] ss:$16 sm:$0xc0] %vm3_vm0, %v779_v29  }
 0x153   :  { %1425 = vst.msk [vmem:[%s3160_s1 + $0x18a] ss:$16 sm:$0x3] %vm845_vm3, %v922_v30  }
 0x154   :  { %1426 = vst.msk [vmem:[%s3160_s1 + $0x18a] ss:$16 sm:$0xc] %vm845_vm3, %v922_v30  }
 0x155   :  { %1427 = vst.msk [vmem:[%s3160_s1 + $0x18a] ss:$16 sm:$0x30] %vm845_vm3, %v922_v30  }
 0x156   :  { %1428 = vst.msk [vmem:[%s3160_s1 + $0x18a] ss:$16 sm:$0xc0] %vm845_vm3, %v922_v30  }
 0x157   :  { %1429 = vst.msk [vmem:[%s3160_s1 + $0x18a] ss:$16 sm:$0x3] %vm854_vm4, %v922_v30  }
 0x158   :  { %1430 = vst.msk [vmem:[%s3160_s1 + $0x18a] ss:$16 sm:$0xc] %vm854_vm4, %v922_v30  }
 0x159   :  { %1431 = vst.msk [vmem:[%s3160_s1 + $0x18a] ss:$16 sm:$0x30] %vm854_vm4, %v922_v30  }
 0x15a   :  { %1432 = vst.msk [vmem:[%s3160_s1 + $0x18a] ss:$16 sm:$0xc0] %vm854_vm4, %v922_v30  }
 0x15b   :  { %1415 = vst.msk [vmem:[%s3160_s1 + $0x10a] ss:$16 sm:$0x3] %vm845_vm3, %v896_v31  }
 0x15c   :  { %1416 = vst.msk [vmem:[%s3160_s1 + $0x10a] ss:$16 sm:$0xc] %vm845_vm3, %v896_v31  }
 0x15d   :  { %1417 = vst.msk [vmem:[%s3160_s1 + $0x10a] ss:$16 sm:$0x30] %vm845_vm3, %v896_v31  }
 0x15e   :  { %1418 = vst.msk [vmem:[%s3160_s1 + $0x10a] ss:$16 sm:$0xc0] %vm845_vm3, %v896_v31  }
 0x15f   :  { %1419 = vst.msk [vmem:[%s3160_s1 + $0x10a] ss:$16 sm:$0x3] %vm854_vm4, %v896_v31  }
 0x160   :  { %1420 = vst.msk [vmem:[%s3160_s1 + $0x10a] ss:$16 sm:$0xc] %vm854_vm4, %v896_v31  }
 0x161   :  { %1421 = vst.msk [vmem:[%s3160_s1 + $0x10a] ss:$16 sm:$0x30] %vm854_vm4, %v896_v31  }
 0x162   :  { %1422 = vst.msk [vmem:[%s3160_s1 + $0x10a] ss:$16 sm:$0xc0] %vm854_vm4, %v896_v31  }
 0x163   :  { %1405 = vst.msk [vmem:[%s3160_s1 + $0x8a] ss:$16 sm:$0x3] %vm845_vm3, %v870_v32  }
 0x164   :  { %1406 = vst.msk [vmem:[%s3160_s1 + $0x8a] ss:$16 sm:$0xc] %vm845_vm3, %v870_v32  }
 0x165   :  { %1407 = vst.msk [vmem:[%s3160_s1 + $0x8a] ss:$16 sm:$0x30] %vm845_vm3, %v870_v32  }
 0x166   :  { %1408 = vst.msk [vmem:[%s3160_s1 + $0x8a] ss:$16 sm:$0xc0] %vm845_vm3, %v870_v32  }
 0x167   :  { %1409 = vst.msk [vmem:[%s3160_s1 + $0x8a] ss:$16 sm:$0x3] %vm854_vm4, %v870_v32  }
 0x168   :  { %1410 = vst.msk [vmem:[%s3160_s1 + $0x8a] ss:$16 sm:$0xc] %vm854_vm4, %v870_v32  }
 0x169   :  { %1411 = vst.msk [vmem:[%s3160_s1 + $0x8a] ss:$16 sm:$0x30] %vm854_vm4, %v870_v32  }
 0x16a   :  { %1412 = vst.msk [vmem:[%s3160_s1 + $0x8a] ss:$16 sm:$0xc0] %vm854_vm4, %v870_v32  }
 0x16b   :  { %1450 = vst.msk [vmem:[%s3160_s1 + $0x85] ss:$16 sm:$0x3] %vm966_vm5, %v991_v33  }
 0x16c   :  { %1451 = vst.msk [vmem:[%s3160_s1 + $0x85] ss:$16 sm:$0xc] %vm966_vm5, %v991_v33  }
 0x16d   :  { %1452 = vst.msk [vmem:[%s3160_s1 + $0x85] ss:$16 sm:$0x30] %vm966_vm5, %v991_v33  }
 0x16e   :  { %1453 = vst.msk [vmem:[%s3160_s1 + $0x85] ss:$16 sm:$0xc0] %vm966_vm5, %v991_v33  }
 0x16f   :  { %1454 = vst.msk [vmem:[%s3160_s1 + $0x85] ss:$16 sm:$0x3] %vm975_vm6, %v991_v33  }
 0x170   :  { %1455 = vst.msk [vmem:[%s3160_s1 + $0x85] ss:$16 sm:$0xc] %vm975_vm6, %v991_v33  }
 0x171   :  { %1456 = vst.msk [vmem:[%s3160_s1 + $0x85] ss:$16 sm:$0x30] %vm975_vm6, %v991_v33  }
 0x172   :  { %1457 = vst.msk [vmem:[%s3160_s1 + $0x85] ss:$16 sm:$0xc0] %vm975_vm6, %v991_v33  }
 0x173   :  { %1440 = vst.msk [vmem:[%s3160_s1 + $0x5] ss:$16 sm:$0x3] %vm966_vm5, %v965_v34  }
 0x174   :  { %1441 = vst.msk [vmem:[%s3160_s1 + $0x5] ss:$16 sm:$0xc] %vm966_vm5, %v965_v34  }
 0x175   :  { %1442 = vst.msk [vmem:[%s3160_s1 + $0x5] ss:$16 sm:$0x30] %vm966_vm5, %v965_v34  }
 0x176   :  { %1443 = vst.msk [vmem:[%s3160_s1 + $0x5] ss:$16 sm:$0xc0] %vm966_vm5, %v965_v34  }
 0x177   :  { %1444 = vst.msk [vmem:[%s3160_s1 + $0x5] ss:$16 sm:$0x3] %vm975_vm6, %v965_v34  }
 0x178   :  { %1445 = vst.msk [vmem:[%s3160_s1 + $0x5] ss:$16 sm:$0xc] %vm975_vm6, %v965_v34  }
 0x179   :  { %1446 = vst.msk [vmem:[%s3160_s1 + $0x5] ss:$16 sm:$0x30] %vm975_vm6, %v965_v34  }
 0x17a   :  { %1447 = vst.msk [vmem:[%s3160_s1 + $0x5] ss:$16 sm:$0xc0] %vm975_vm6, %v965_v34  }
 0x17b   :  { %1435 = vst.msk [vmem:[%s3160_s1 + $0x20a] ss:$16 sm:$0x3] %vm845_vm3, %v948_v35  }
 0x17c   :  { %1436 = vst.msk [vmem:[%s3160_s1 + $0x20a] ss:$16 sm:$0xc] %vm845_vm3, %v948_v35  }
 0x17d   :  { %1437 = vst.msk [vmem:[%s3160_s1 + $0x20a] ss:$16 sm:$0x3] %vm854_vm4, %v948_v35  }
 0x17e   :  { %1438 = vst.msk [vmem:[%s3160_s1 + $0x20a] ss:$16 sm:$0xc] %vm854_vm4, %v948_v35  }
 0x17f   :  { %1480 = vst.msk [vmem:[%s3160_s1 + $0x205] ss:$16 sm:$0x3] %vm966_vm5, %v1069_v36  }
 0x180   :  { %1481 = vst.msk [vmem:[%s3160_s1 + $0x205] ss:$16 sm:$0xc] %vm966_vm5, %v1069_v36  }
 0x181   :  { %1482 = vst.msk [vmem:[%s3160_s1 + $0x205] ss:$16 sm:$0x3] %vm975_vm6, %v1069_v36  }
 0x182   :  { %1483 = vst.msk [vmem:[%s3160_s1 + $0x205] ss:$16 sm:$0xc] %vm975_vm6, %v1069_v36  }
 0x183   :  { %1470 = vst.msk [vmem:[%s3160_s1 + $0x185] ss:$16 sm:$0x3] %vm966_vm5, %v1043_v37  }
 0x184   :  { %1471 = vst.msk [vmem:[%s3160_s1 + $0x185] ss:$16 sm:$0xc] %vm966_vm5, %v1043_v37  }
 0x185   :  { %1472 = vst.msk [vmem:[%s3160_s1 + $0x185] ss:$16 sm:$0x30] %vm966_vm5, %v1043_v37  }
 0x186   :  { %1473 = vst.msk [vmem:[%s3160_s1 + $0x185] ss:$16 sm:$0xc0] %vm966_vm5, %v1043_v37  }
 0x187   :  { %1474 = vst.msk [vmem:[%s3160_s1 + $0x185] ss:$16 sm:$0x3] %vm975_vm6, %v1043_v37  }
 0x188   :  { %1475 = vst.msk [vmem:[%s3160_s1 + $0x185] ss:$16 sm:$0xc] %vm975_vm6, %v1043_v37  }
 0x189   :  { %1476 = vst.msk [vmem:[%s3160_s1 + $0x185] ss:$16 sm:$0x30] %vm975_vm6, %v1043_v37  }
 0x18a   :  { %1477 = vst.msk [vmem:[%s3160_s1 + $0x185] ss:$16 sm:$0xc0] %vm975_vm6, %v1043_v37  }
 0x18b   :  { %1460 = vst.msk [vmem:[%s3160_s1 + $0x105] ss:$16 sm:$0x3] %vm966_vm5, %v1017_v38  }
 0x18c   :  { %1461 = vst.msk [vmem:[%s3160_s1 + $0x105] ss:$16 sm:$0xc] %vm966_vm5, %v1017_v38  }
 0x18d   :  { %1462 = vst.msk [vmem:[%s3160_s1 + $0x105] ss:$16 sm:$0x30] %vm966_vm5, %v1017_v38  }
 0x18e   :  { %1463 = vst.msk [vmem:[%s3160_s1 + $0x105] ss:$16 sm:$0xc0] %vm966_vm5, %v1017_v38  }
 0x18f   :  { %1464 = vst.msk [vmem:[%s3160_s1 + $0x105] ss:$16 sm:$0x3] %vm975_vm6, %v1017_v38  }
 0x190   :  { %1465 = vst.msk [vmem:[%s3160_s1 + $0x105] ss:$16 sm:$0xc] %vm975_vm6, %v1017_v38  }
 0x191   :  { %1466 = vst.msk [vmem:[%s3160_s1 + $0x105] ss:$16 sm:$0x30] %vm975_vm6, %v1017_v38  }
 0x192   :  { %1467 = vst.msk [vmem:[%s3160_s1 + $0x105] ss:$16 sm:$0xc0] %vm975_vm6, %v1017_v38  }
 0x193   :  { %1391 = vst.msk [vmem:[%s3160_s1 + $0x20f] ss:$16 sm:$0x3] %vm3_vm0, %v831_v39  }
 0x194   :  { %1392 = vst.msk [vmem:[%s3160_s1 + $0x20f] ss:$16 sm:$0xc] %vm3_vm0, %v831_v39  }
 0x195   :  { %1386 = vst.msk [vmem:[%s3160_s1 + $0x18f] ss:$16 sm:$0x3] %vm3_vm0, %v818_v40  }
 0x196   :  { %1387 = vst.msk [vmem:[%s3160_s1 + $0x18f] ss:$16 sm:$0xc] %vm3_vm0, %v818_v40  }
 0x197   :  { %1388 = vst.msk [vmem:[%s3160_s1 + $0x18f] ss:$16 sm:$0x30] %vm3_vm0, %v818_v40  }
 0x198   :  { %1389 = vst.msk [vmem:[%s3160_s1 + $0x18f] ss:$16 sm:$0xc0] %vm3_vm0, %v818_v40  }
 0x199   :  { %1381 = vst.msk [vmem:[%s3160_s1 + $0x10f] ss:$16 sm:$0x3] %vm3_vm0, %v805_v41  }
 0x19a   :  { %1382 = vst.msk [vmem:[%s3160_s1 + $0x10f] ss:$16 sm:$0xc] %vm3_vm0, %v805_v41  }
 0x19b   :  { %1383 = vst.msk [vmem:[%s3160_s1 + $0x10f] ss:$16 sm:$0x30] %vm3_vm0, %v805_v41  }
 0x19c   :  { %1384 = vst.msk [vmem:[%s3160_s1 + $0x10f] ss:$16 sm:$0xc0] %vm3_vm0, %v805_v41  }
 0x19d   :  { %4 = vst.msk [vmem:[%s3160_s1] ss:$16 sm:$0x3] %vm3_vm0, %v2_v42  }
 0x19e   :  { %5 = vst.msk [vmem:[%s3160_s1] ss:$16 sm:$0xc] %vm3_vm0, %v2_v42  }
 0x19f   :  { %6 = vst.msk [vmem:[%s3160_s1] ss:$16 sm:$0x30] %vm3_vm0, %v2_v42  }
 0x1a0   :  { %7 = vst.msk [vmem:[%s3160_s1] ss:$16 sm:$0xc0] %vm3_vm0, %v2_v42  }
 0x1a1   :  { %1081 = vst.msk [vmem:[%s3160_s1 + $0x80] ss:$16 sm:$0x3] %vm3_vm0, %v1080_v43  }
 0x1a2   :  { %1082 = vst.msk [vmem:[%s3160_s1 + $0x80] ss:$16 sm:$0xc] %vm3_vm0, %v1080_v43  }
 0x1a3   :  { %1083 = vst.msk [vmem:[%s3160_s1 + $0x80] ss:$16 sm:$0x30] %vm3_vm0, %v1080_v43  }
 0x1a4   :  { %1084 = vst.msk [vmem:[%s3160_s1 + $0x80] ss:$16 sm:$0xc0] %vm3_vm0, %v1080_v43  }
 0x1a5   :  { %1086 = vst.msk [vmem:[%s3160_s1 + $0x100] ss:$16 sm:$0x3] %vm3_vm0, %v1085_v44  }
 0x1a6   :  { %1087 = vst.msk [vmem:[%s3160_s1 + $0x100] ss:$16 sm:$0xc] %vm3_vm0, %v1085_v44  }
 0x1a7   :  { %1088 = vst.msk [vmem:[%s3160_s1 + $0x100] ss:$16 sm:$0x30] %vm3_vm0, %v1085_v44  }
 0x1a8   :  { %1089 = vst.msk [vmem:[%s3160_s1 + $0x100] ss:$16 sm:$0xc0] %vm3_vm0, %v1085_v44  }
 0x1a9   :  { %1091 = vst.msk [vmem:[%s3160_s1 + $0x180] ss:$16 sm:$0x3] %vm3_vm0, %v1090_v45  }
 0x1aa   :  { %1092 = vst.msk [vmem:[%s3160_s1 + $0x180] ss:$16 sm:$0xc] %vm3_vm0, %v1090_v45  }
 0x1ab   :  { %1093 = vst.msk [vmem:[%s3160_s1 + $0x180] ss:$16 sm:$0x30] %vm3_vm0, %v1090_v45  }
 0x1ac   :  { %1094 = vst.msk [vmem:[%s3160_s1 + $0x180] ss:$16 sm:$0xc0] %vm3_vm0, %v1090_v45  }
 0x1ad   :  { %1096 = vst.msk [vmem:[%s3160_s1 + $0x200] ss:$16 sm:$0x3] %vm3_vm0, %v1095_v46  }
 0x1ae   :  { %1097 = vst.msk [vmem:[%s3160_s1 + $0x200] ss:$16 sm:$0xc] %vm3_vm0, %v1095_v46  }

// kernel: _fwd.1
= control target key start
LH: loop header
LB: loop body
LE: loop exit
PB: predicated region body
PF: predicated region fallthrough
CT: control target
= control target key end

     0   :  { %s4561_s27 = smov [#allocation3]   ;;  %s4562_s28 = smov [#allocation4]   ;;  %s6750_s0 = inlined_call_operand.hbm [shape: s32[12], index: 0, kind: input, shape index: {}]   ;;  %s6751_s3 = inlined_call_operand.vmem [shape: f32[4,32,5], index: 3, kind: input, shape index: {}]   ;;  %s6752_s4 = inlined_call_operand.hbm [shape: f32[4,32,32], index: 4, kind: input, shape index: {}]   ;;  %s6753_s5 = inlined_call_operand.hbm [shape: f32[4,1,32], index: 5, kind: input, shape index: {}]   ;;  %s6754_s6 = inlined_call_operand.vmem [shape: f32[4,1,14336], index: 6, kind: output, shape index: {}]   ;;  %s6755_s1 = inlined_call_operand.hbm [shape: s32[12], index: 1, kind: input, shape index: {}]   ;;  %s6756_s2 = inlined_call_operand.hbm [shape: f32[32], index: 2, kind: input, shape index: {}]  }
   0x1   :  { %s12_s23 = sshll.u32 %s6750_s0, 4  ;;  %s17_s26 = sshll.u32 %s6755_s1, 4  ;;  %s13_s23 = int_to_ptr.hbm [resolvable:$true] %s12_s23  ;;  %s18_s26 = int_to_ptr.hbm [resolvable:$true] %s17_s26 }
   0x2   :  { %15 = dma.hbm_to_smem %s13_s23, 16, %s4561_s27, [#allocation2] }
   0x3   :  { %20 = dma.hbm_to_smem %s18_s26, 16, %s4562_s28, [#allocation2] }
   0x4   :  { %s22_s7 = sshll.u32 %s6756_s2, 4  ;;  %s4563_s8 = smov [#allocation5]   ;;  %s23_s7 = int_to_ptr.hbm [resolvable:$true] %s22_s7 }
   0x5   :  { %25 = dma.hbm_to_smem %s23_s7, 16, %s4563_s8, [#allocation2] }
   0x6   :  { %4523 = dma.done.wait [#allocation2], 48 }
   0x7   :  { %4524 = vsyncadd [#allocation2], 4294967248 }
   0x8   :  { %28 = sfence }
   0x9   :  { %29 = vsyncpa [#allocation7], 0 }
   0xa   :  { %31 = vsyncpa [#allocation7 + $0x1], 0 }
   0xb   :  { %32 = vsyncpa [#allocation9], 0 }
   0xc   :  { %34 = vsyncpa [#allocation9 + $0x1], 0  ;;  %s4610_s0 = smov 0   ;;  %s4612_s1 = smov 0  }
   0xd   :  { %s4614_s9 = smov 0   ;;  %s4616_s10 = smov 0  }
   0xe   :  { %s4618_s11 = smov 0   ;;  %s4620_s2 = smov 0  }
   0xf   :  { %s4622_s12 = smov 0  }
  0x10 LB: > { %s4646_s13 = sadd.s32 1, %s4559_s12   ;;  %s72_s14 = sld [smem:[#allocation3 + %s4559_s12]]  ;;  %s4559_s12 = sphi %s4622_s12, %s6898_s12   ;;  %s4555_s2 = sphi %s4620_s2, %s6897_s2   ;;  %s4551_s11 = sphi %s4618_s11, %s6896_s11   ;;  %s4547_s10 = sphi %s4616_s10, %s6895_s10   ;;  %s4543_s9 = sphi %s4614_s9, %s6894_s9   ;;  %s4539_s1 = sphi %s4612_s1, %s6893_s1   ;;  %s4535_s0 = sphi %s4610_s0, %s6892_s0  }
  0x11   : > { %s73_s15 = sld [smem:[#allocation3 + %s4646_s13]]  ;;  %s77_s16 = sadd.s32 1, %s4555_s2 }
  0x12   : > { %p84_p0 = scmp.ne.s32.totalorder %s4555_s2, %s4551_s11  ;;  %p85_p1 = scmp.eq.s32.totalorder %s4559_s12, 0 }
  0x13   : > { %p90_p2 = scmp.ne.s32.totalorder %s4551_s11, %s4547_s10  ;;  %p3881_p4 = scmp.lt.s32.totalorder %s4559_s12, 12 }
  0x14   : > { %p4658_p3 = por %p85_p1, %p84_p0  ;;  %s184_s18 = sand.u32 1, %s4555_s2  }
  0x15   : > { %s3543_s19 = sshll.u32 %s184_s18, 5  ;;  %p3546_p7 = scmp.ge.s32.totalorder %s4559_s12, 1 }
  0x16   : > { %s188_s21 = scalar_lea.vmem [#allocation6], %s3543_s19  ;;  %p4683_p6 = pnand %p3881_p4, %p4658_p3 }
  0x17   : > { %s74_s20 = ssub.s32 %s72_s14, %s73_s15  ;;  %s4664_s22 = sshll.u32 %s188_s21, 4  ;;  %s198_s22 = int_to_ptr.vmem [resolvable:$true] %s4664_s22 }
  0x18   : > { %p75_p5 = scmp.eq.s32.totalorder %s74_s20, 0  ;;  %p223_p8 = scmp.lt.s32.totalorder %s4559_s12, 13 }
  0x19   : > { %s3862_s23 = scalar_select %p4658_p3, [#allocation3], [#allocation10] }
  0x1a   : > { %s4669_s24 = scalar_select %p75_p5, %s4555_s2, %s77_s16  }
  0x1b   : > { %s3863_s25 = scalar_select %p4658_p3, %s4559_s12, 0 }
  0x1c   : > { %s6900_s23 = smov (!%p3881_p4, %s3862_s23), [#allocation12]  ;;  %p4689_p9 = pnand %p3546_p7, %p223_p8 }
  0x1d   : > { %s6902_s25 = smov (!%p3881_p4, %s3863_s25), 0  ;;  %s4694_s30 = sadd.s32 4294967295, %s4559_s12  }
  0x1e   : > { %s189_s27 = sld [smem:[%s6900_s23 + %s6902_s25]]  ;;  %p91_p10 = scmp.eq.s32.totalorder %s4694_s30, 0 }
  0x1f   : > { %s100_s16 = sld [smem:[#allocation3 + %s4559_s12]]  ;;  %s185_s19 = scalar_lea.sflag [#allocation7], %s184_s18 }
  0x20   : > { %p4706_p11 = por %p91_p10, %p90_p2  ;;  %p4439_p13 = pneg %p4683_p6 }
  0x24   : > { %s3859_s29 = sshll.u32 %s189_s27, 5  ;;  %s4442_s27 = scalar_lea.hbm %s6752_s4, 128 }
  0x25   : > { %s194_s14 = scalar_lea.hbm %s6752_s4, %s3859_s29 }
  0x26   : > { %s195_s15 = sshll.u32 %s194_s14, 4  ;;  %s196_s15 = int_to_ptr.hbm [resolvable:$true] %s195_s15 }
  0x27   : > { %s4435_s20 = sshra.s32 %s196_s15, 4  ;;  %s4436_s20 = int_to_ptr.hbm [resolvable:$true] %s4435_s20 }
  0x28   : > { %s4437_s21 = scalar_lea.hbm %s4436_s20, 32  ;;  %p4443_p2 = scmp.lt.s32.totalorder %s4436_s20, %s6752_s4 }
  0x29   : > { %p4438_p12 = scmp.ne.s32.totalorder %s4436_s20, %s4437_s21  ;;  %p4444_p5 = scmp.lt.s32.totalorder %s4442_s27, %s4437_s21 }
  0x2b   : > { %p4440_p0 = pnand %p4439_p13, %p4438_p12  ;;  %p4445_p7 = por %p4444_p5, %p4443_p2 }
  0x2d   : > { %p4441_p3 = pneg %p4440_p0 }
  0x2f   : > { %p4446_p8 = pnand %p4445_p7, %p4441_p3 }
  0x31   : > { %4449 = shalt.err (!%p4446_p8)
}
  0x32   : > { %s4564_s18 = smov 128   ;;  %s4565_s7 = smov 8  }
  0x33   : > { %3875 = dma.hbm_to_vmem [thread:$0]  (!%p4683_p6), %s196_s15, 512, %s198_s22, %s185_s19, %s4564_s18, %s4564_s18, %s4565_s7  }
  0x34   : > { %s101_s8 = sld [smem:[#allocation3 + %s4646_s13]]  ;;  %p112_p12 = scmp.ne.s32.totalorder %s4543_s9, %s4539_s1 }
  0x35   : > { %p118_p13 = scmp.ne.s32.totalorder %s4539_s1, %s4535_s0  ;;  %s105_s23 = sadd.s32 1, %s4543_s9 }
  0x36   : > { %p114_p0 = por %p112_p12, %p85_p1  ;;  %s207_s25 = sand.u32 1, %s4543_s9  }
  0x37   : > { %p4731_p3 = por %p118_p13, %p91_p10  ;;  %s210_s15 = scalar_lea.vmem [#allocation8], %s207_s25 }
  0x38   : > { %s3865_s20 = scalar_select %p114_p0, [#allocation3], [#allocation11] }
  0x39   : > { %s3866_s27 = scalar_select %p114_p0, %s4559_s12, 0 }
  0x3a   : > { %s102_s21 = ssub.s32 %s100_s16, %s101_s8  ;;  %s6904_s20 = smov (!%p3881_p4, %s3865_s20), [#allocation13] }
  0x3b   : > { %p103_p2 = scmp.eq.s32.totalorder %s102_s21, 0  ;;  %s6906_s27 = smov (!%p3881_p4, %s3866_s27), 0 }
  0x3c   : > { %p4747_p6 = pnand %p3881_p4, %p114_p0  ;;  %s211_s22 = sld [smem:[%s6904_s20 + %s6906_s27]] }
  0x3d   : > { %s4739_s26 = scalar_select %p103_p2, %s4543_s9, %s105_s23  }
  0x3e   : > { %s218_s19 = sshll.u32 %s210_s15, 4  ;;  %s208_s7 = scalar_lea.sflag [#allocation9], %s207_s25  ;;  %s219_s19 = int_to_ptr.vmem [resolvable:$true] %s218_s19 }
  0x3f   : > { %p4469_p4 = pneg %p4747_p6  ;;  %s4472_s23 = scalar_lea.hbm %s6753_s5, 4 }
  0x42   : > { %s214_s10 = scalar_lea.hbm %s6753_s5, %s211_s22 }
  0x43   : > { %s216_s18 = sshll.u32 %s214_s10, 4  ;;  %s217_s18 = int_to_ptr.hbm [resolvable:$true] %s216_s18 }
  0x44   : > { %s4465_s8 = sshra.s32 %s217_s18, 4  ;;  %s4466_s8 = int_to_ptr.hbm [resolvable:$true] %s4465_s8 }
  0x45   : > { %s4467_s21 = scalar_lea.hbm %s4466_s8, 1  ;;  %p4473_p7 = scmp.lt.s32.totalorder %s4466_s8, %s6753_s5 }
  0x46   : > { %p4468_p1 = scmp.ne.s32.totalorder %s4466_s8, %s4467_s21  ;;  %p4474_p8 = scmp.lt.s32.totalorder %s4472_s23, %s4467_s21 }
  0x48   : > { %p4470_p10 = pnand %p4469_p4, %p4468_p1  ;;  %p4475_p12 = por %p4474_p8, %p4473_p7 }
  0x4a   : > { %p4471_p5 = pneg %p4470_p10 }
  0x4c   : > { %p4476_p13 = pnand %p4475_p12, %p4471_p5 }
  0x4e   : > { %4479 = shalt.err (!%p4476_p13)
}
  0x4f   : > { %3880 = dma.hbm_to_vmem [thread:$0]  (!%p4747_p6), %s217_s18, 16, %s219_s19, %s208_s7  }
  0x50   : > { %227 = sbr.rel (%p4689_p9) target bundleno = 994 (0x3e2), region = 32 }
  0x55   : > { %s229_s25 = sand.u32 1, %s4551_s11  }
  0x56   : > { %s3547_s22 = sshll.u32 %s229_s25, 5  ;;  %s230_s16 = scalar_lea.sflag [#allocation7], %s229_s25 }
  0x57   : > { %s4767_s29 = scalar_lea.vmem [#allocation6], %s3547_s22 }
  0x58   : > { %4526 = dma.done.wait (%p4706_p11), %s230_s16, 512  }
  0x59   : > { %4528 = vsyncadd (%p4706_p11), %s230_s16, 4294966784  ;;  %s239_s10 = sand.u32 1, %s4539_s1  }
  0x5a   : > { %s240_s0 = scalar_lea.sflag [#allocation9], %s239_s10  ;;  %s4774_s19 = scalar_lea.vmem [#allocation8], %s239_s10 }
  0x5b   : > { %4530 = dma.done.wait (%p4731_p3), %s240_s0, 16  }
  0x5c   : > { %4532 = vsyncadd (%p4731_p3), %s240_s0, 4294967280  ;;  %s303_s28 = sld [smem:[#allocation3 + %s4694_s30]]  ;;  %v321_v0 = vlaneseq }
  0x5d   : > { %s304_s18 = sld [smem:[#allocation4 + %s4694_s30]] }
  0x5e   : > { %v4783_v1 = vand.u32 127, %v321_v0 }
  0x60   : > { %v323_v2 = vadd.s32 128, %v4783_v1  ;;  %v324_v3 = vadd.s32 256, %v4783_v1  ;;  %v325_v4 = vadd.s32 384, %v4783_v1  ;;  %v340_v5 = vcvt.s32.f32 %v4783_v1 }
  0x61   : > { %v328_v24 = vadd.s32 768, %v4783_v1  ;;  %v329_v25 = vadd.s32 896, %v4783_v1  ;;  %v4871_v60 = vadd.s32 512, %v4783_v1 }
  0x62   : > { %s4785_s17 = sshll.u32 %s303_s28, 3  ;;  %v341_v6 = vcvt.s32.f32 %v323_v2  ;;  %v342_v7 = vcvt.s32.f32 %v324_v3  ;;  %v343_v8 = vcvt.s32.f32 %v325_v4 }
  0x63   : > { %s313_s7 = sadd.s32 4, %s4785_s17  ;;  %s317_s8 = sadd.s32 6, %s4785_s17  ;;  %v346_v34 = vcvt.s32.f32 %v328_v24  ;;  %v347_v35 = vcvt.s32.f32 %v329_v25 }
  0x64   : > { %s314_s14 = sld [smem:[#allocation5 + %s313_s7]]  ;;  %s3552_s12 = sshll.u32 %s304_s18, 11 }
  0x65   : > { %s318_s21 = sld [smem:[#allocation5 + %s317_s8]]  ;;  %s339_s20 = scvt.s32.f32 %s3552_s12 }
  0x66   : > { %s319_s23 = sadd.s32 7, %s4785_s17  ;;  %s4825_s27 = sld [smem:[#allocation5 + %s4785_s17]] }
  0x67   : > { %v4793_v9 = vstv %s339_s20  ;;  %s315_s15 = sadd.s32 5, %s4785_s17  ;;  %s307_s25 = sadd.s32 1, %s4785_s17 }
  0x68   : > { %v4796_v10 = vadd.f32 %v4793_v9, %v340_v5  ;;  %v4799_v11 = vadd.f32 %v4793_v9, %v341_v6  ;;  %v4802_v12 = vadd.f32 %v4793_v9, %v342_v7  ;;  %v4807_v14 = vadd.f32 %v4793_v9, %v343_v8  ;;  %s4831_s22 = sld [smem:[#allocation5 + %s319_s23]]  ;;  %s309_s16 = sadd.s32 2, %s4785_s17 }
  0x69   : > { %s4838_s10 = sld [smem:[#allocation5 + %s315_s15]]  ;;  %v4843_v44 = vadd.f32 %v4793_v9, %v346_v34  ;;  %v4852_v49 = vadd.f32 %v4793_v9, %v347_v35 }
  0x6a   : > { %v4815_v18 = vstv %s314_s14  ;;  %s4840_s0 = sld [smem:[#allocation5 + %s307_s25]] }
  0x6b   : > { %v4804_v13 = vstv %s318_s21  ;;  %s4845_s28 = sld [smem:[#allocation5 + %s309_s16]] }
  0x6c   : > { %v374_v15 = vmul.f32 %v4804_v13, %v4796_v10  ;;  %v375_v16 = vmul.f32 %v4804_v13, %v4799_v11  ;;  %v376_v17 = vmul.f32 %v4804_v13, %v4802_v12  ;;  %v377_v19 = vmul.f32 %v4804_v13, %v4807_v14  ;;  %s5011_s18 = sld [smem:[#allocation3 + %s4694_s30]] }
  0x6d   : > { %v380_v50 = vmul.f32 %v4804_v13, %v4843_v44  ;;  %v4865_v55 = vstv %s4825_s27  ;;  %v381_v59 = vmul.f32 %v4804_v13, %v4852_v49  ;;  %s6684_s12 = sld [smem:[#allocation3 + %s4694_s30]] }
  0x6e   : > { %v390_v20 = vfloor.f32 %v374_v15  ;;  %v391_v21 = vfloor.f32 %v375_v16  ;;  %v392_v22 = vfloor.f32 %v376_v17  ;;  %v393_v23 = vfloor.f32 %v377_v19 }
  0x6f   : > { %v4862_v54 = vstv %s4831_s22  ;;  %v4877_v62 = vstv %s4838_s10  ;;  %v396_v2 = vfloor.f32 %v380_v50  ;;  %v4902_v17 = vfloor.f32 %v381_v59 }
  0x70   : > { %v407_v26 = vmul.f32 %v4815_v18, %v390_v20  ;;  %v3553_v27 = vadd.f32 -1.0, %v390_v20  ;;  %v408_v28 = vmul.f32 %v4815_v18, %v391_v21  ;;  %v3554_v29 = vadd.f32 -1.0, %v391_v21 }
  0x71   : > { %v409_v30 = vmul.f32 %v4815_v18, %v392_v22  ;;  %v3555_v31 = vadd.f32 -1.0, %v392_v22  ;;  %v410_v32 = vmul.f32 %v4815_v18, %v393_v23  ;;  %v3556_v33 = vadd.f32 -1.0, %v393_v23 }
  0x72   : > { %vm423_vm0 = vcmp.gt.f32.partialorder %v407_v26, %v4796_v10  ;;  %vm424_vm1 = vcmp.gt.f32.partialorder %v408_v28, %v4799_v11  ;;  %v4889_v8 = vstv %s4840_s0  ;;  %v344_v19 = vcvt.s32.f32 %v4871_v60  ;;  %p282_p9 = scmp.lt.s32.totalorder %s5011_s18, 3 }
  0x73   : > { %v455_v36 = vsel %vm423_vm0, %v3553_v27, %v390_v20  ;;  %v456_v37 = vsel %vm424_vm1, %v3554_v29, %v391_v21  ;;  %vm425_vm2 = vcmp.gt.f32.partialorder %v409_v30, %v4802_v12  ;;  %vm426_vm3 = vcmp.gt.f32.partialorder %v410_v32, %v4807_v14  ;;  %p293_p11 = scmp.lt.s32.totalorder %s6684_s12, 3 }
  0x74   : > { %v471_v38 = vadd.f32 1.0, %v455_v36  ;;  %v472_v39 = vadd.f32 1.0, %v456_v37  ;;  %v457_v40 = vsel %vm425_vm2, %v3555_v31, %v392_v22  ;;  %v458_v41 = vsel %vm426_vm3, %v3556_v33, %v393_v23  ;;  %s6908_s18 = smov (!%p282_p9, %s5011_s18), 3 }
  0x75   : > { %v473_v42 = vadd.f32 1.0, %v457_v40  ;;  %v474_v43 = vadd.f32 1.0, %v458_v41  ;;  %v413_v22 = vmul.f32 %v4815_v18, %v396_v2  ;;  %v3559_v23 = vadd.f32 -1.0, %v396_v2  ;;  %s3860_s7 = sshll.u32 %s6908_s18, 5  ;;  %s6910_s12 = smov (!%p293_p11, %s6684_s12), 3 }
  0x76   : > { %v487_v45 = vmul.f32 %v471_v38, %v4815_v18  ;;  %v488_v46 = vmul.f32 %v472_v39, %v4815_v18  ;;  %s5115_s21 = scalar_lea.vmem %s6751_s3, %s3860_s7  ;;  %s3861_s20 = smul.u32 112, %s6910_s12 }
  0x77   : > { %v489_v47 = vmul.f32 %v473_v42, %v4815_v18  ;;  %v490_v48 = vmul.f32 %v474_v43, %v4815_v18  ;;  %vm429_vm8 = vcmp.gt.f32.partialorder %v413_v22, %v4843_v44 }
  0x78   : > { %vm503_vm4 = vcmp.le.f32.partialorder %v487_v45, %v4796_v10  ;;  %vm504_vm5 = vcmp.le.f32.partialorder %v488_v46, %v4799_v11  ;;  %v461_v34 = vsel %vm429_vm8, %v3559_v23, %v396_v2  ;;  %v414_v46 = vmul.f32 %v4815_v18, %v4902_v17 }
  0x79   : > { %v519_v51 = vsel %vm503_vm4, %v471_v38, %v455_v36  ;;  %v520_v52 = vsel %vm504_vm5, %v472_v39, %v456_v37  ;;  %vm505_vm6 = vcmp.le.f32.partialorder %v489_v47, %v4802_v12  ;;  %vm506_vm7 = vcmp.le.f32.partialorder %v490_v48, %v4807_v14 }
  0x7a   : > { %v535_v53 = vmul.f32 %v519_v51, %v4815_v18  ;;  %v536_v56 = vmul.f32 %v520_v52, %v4815_v18  ;;  %v521_v57 = vsel %vm505_vm6, %v473_v42, %v457_v40  ;;  %v522_v58 = vsel %vm506_vm7, %v474_v43, %v458_v41 }
  0x7b   : > { %v762_v3 = vmul.f32 %v4865_v55, %v519_v51  ;;  %v763_v4 = vmul.f32 %v4865_v55, %v520_v52  ;;  %v537_v5 = vmul.f32 %v521_v57, %v4815_v18  ;;  %v538_v6 = vmul.f32 %v522_v58, %v4815_v18 }
  0x7c   : > { %v4874_v61 = vsub.f32 %v4796_v10, %v535_v53  ;;  %v4880_v63 = vsub.f32 %v4799_v11, %v536_v56  ;;  %v4892_v10 = vstv %s4845_s28  ;;  %v764_v31 = vmul.f32 %v4865_v55, %v521_v57 }
  0x7d   : > { %v4897_v15 = vsub.f32 %v4802_v12, %v537_v5  ;;  %v4900_v16 = vsub.f32 %v4807_v14, %v538_v6  ;;  %v4906_v24 = vadd.f32 -1.0, %v762_v3  ;;  %v4908_v25 = vadd.f32 -1.0, %v763_v4 }
  0x7e   : > { %v568_v7 = vmul.f32 %v4862_v54, %v4874_v61  ;;  %v569_v11 = vmul.f32 %v4862_v54, %v4880_v63  ;;  %v765_v33 = vmul.f32 %v4865_v55, %v522_v58  ;;  %v477_v45 = vadd.f32 1.0, %v461_v34 }
  0x7f   : > { %v570_v12 = vmul.f32 %v4862_v54, %v4897_v15  ;;  %v571_v14 = vmul.f32 %v4862_v54, %v4900_v16  ;;  %v860_v43 = vmul.f32 %v4906_v24, %v4906_v24  ;;  %v4931_v52 = vadd.f32 -1.0, %v764_v31 }
  0x80   : > { %v584_v20 = vfloor.f32 %v568_v7  ;;  %v585_v21 = vfloor.f32 %v569_v11  ;;  %v493_v56 = vmul.f32 %v477_v45, %v4815_v18  ;;  %v861_v57 = vmul.f32 %v4908_v25, %v4908_v25 }
  0x81   : > { %v586_v30 = vfloor.f32 %v570_v12  ;;  %v587_v32 = vfloor.f32 %v571_v14  ;;  %v3560_v4 = vadd.f32 -1.0, %v4902_v17  ;;  %v4942_v7 = vadd.f32 -1.0, %v765_v33 }
  0x82   : > { %v601_v26 = vmul.f32 %v4877_v62, %v584_v20  ;;  %v3569_v27 = vadd.f32 -1.0, %v584_v20  ;;  %v602_v28 = vmul.f32 %v4877_v62, %v585_v21  ;;  %v3570_v29 = vadd.f32 -1.0, %v585_v21 }
  0x83   : > { %v603_v37 = vmul.f32 %v4877_v62, %v586_v30  ;;  %v3571_v38 = vadd.f32 -1.0, %v586_v30  ;;  %v604_v41 = vmul.f32 %v4877_v62, %v587_v32  ;;  %v3572_v42 = vadd.f32 -1.0, %v587_v32 }
  0x84   : > { %vm617_vm9 = vcmp.gt.f32.partialorder %v601_v26, %v4874_v61  ;;  %vm618_vm10 = vcmp.gt.f32.partialorder %v602_v28, %v4880_v63  ;;  %vm430_vm15 = vcmp.gt.f32.partialorder %v414_v46, %v4852_v49  ;;  %vm509_vm0 = vcmp.le.f32.partialorder %v493_v56, %v4843_v44 }
  0x85   : > { %v649_v35 = vsel %vm617_vm9, %v3569_v27, %v584_v20  ;;  %v650_v36 = vsel %vm618_vm10, %v3570_v29, %v585_v21  ;;  %vm619_vm11 = vcmp.gt.f32.partialorder %v603_v37, %v4897_v15  ;;  %vm620_vm12 = vcmp.gt.f32.partialorder %v604_v41, %v4900_v16 }
  0x86   : > { %v665_v39 = vadd.f32 1.0, %v649_v35  ;;  %v666_v40 = vadd.f32 1.0, %v650_v36  ;;  %v651_v50 = vsel %vm619_vm11, %v3571_v38, %v586_v30  ;;  %v652_v53 = vsel %vm620_vm12, %v3572_v42, %v587_v32 }
  0x87   : > { %v667_v51 = vadd.f32 1.0, %v651_v50  ;;  %v668_v58 = vadd.f32 1.0, %v652_v53  ;;  %v862_v21 = vmul.f32 %v4931_v52, %v4931_v52  ;;  %v4959_v28 = vsel %vm430_vm15, %v3560_v4, %v4902_v17 }
  0x88   : > { %v681_v47 = vmul.f32 %v665_v39, %v4877_v62  ;;  %v682_v48 = vmul.f32 %v666_v40, %v4877_v62  ;;  %v525_v31 = vsel %vm509_vm0, %v477_v45, %v461_v34 }
  0x89   : > { %v683_v3 = vmul.f32 %v667_v51, %v4877_v62  ;;  %v684_v12 = vmul.f32 %v668_v58, %v4877_v62  ;;  %v541_v46 = vmul.f32 %v525_v31, %v4815_v18 }
  0x8a   : > { %vm697_vm13 = vcmp.le.f32.partialorder %v681_v47, %v4874_v61  ;;  %vm698_vm14 = vcmp.le.f32.partialorder %v682_v48, %v4880_v63 }
  0x8b   : > { %v713_v59 = vsel %vm697_vm13, %v665_v39, %v649_v35  ;;  %v714_v2 = vsel %vm698_vm14, %v666_v40, %v650_v36  ;;  %vm699_vm1 = vcmp.le.f32.partialorder %v683_v3, %v4897_v15  ;;  %vm700_vm2 = vcmp.le.f32.partialorder %v684_v12, %v4900_v16 }
  0x8c   : > { %v729_v5 = vmul.f32 %v713_v59, %v4877_v62  ;;  %v795_v6 = vmul.f32 %v4889_v8, %v713_v59  ;;  %v730_v11 = vmul.f32 %v714_v2, %v4877_v62  ;;  %v796_v20 = vmul.f32 %v4889_v8, %v714_v2 }
  0x8d   : > { %v715_v27 = vsel %vm699_vm1, %v667_v51, %v651_v50  ;;  %v716_v37 = vsel %vm700_vm2, %v668_v58, %v652_v53  ;;  %v4997_v53 = vadd.f32 %v4793_v9, %v344_v19  ;;  %v5003_v58 = vsub.f32 %v4843_v44, %v541_v46 }
  0x8e   : > { %v745_v22 = vsub.f32 %v4874_v61, %v729_v5  ;;  %v4951_v23 = vadd.f32 -1.0, %v795_v6  ;;  %v746_v14 = vsub.f32 %v4880_v63, %v730_v11  ;;  %v4956_v26 = vadd.f32 -1.0, %v796_v20 }
  0x8f   : > { %v731_v61 = vmul.f32 %v715_v27, %v4877_v62  ;;  %v797_v63 = vmul.f32 %v4889_v8, %v715_v27  ;;  %v732_v34 = vmul.f32 %v716_v37, %v4877_v62  ;;  %v798_v45 = vmul.f32 %v4889_v8, %v716_v37 }
  0x90   : > { %v828_v29 = vmul.f32 %v4892_v10, %v745_v22  ;;  %v876_v30 = vmul.f32 %v4951_v23, %v4951_v23  ;;  %v829_v32 = vmul.f32 %v4892_v10, %v746_v14  ;;  %v877_v33 = vmul.f32 %v4956_v26, %v4956_v26 }
  0x91   : > { %v747_v36 = vsub.f32 %v4897_v15, %v731_v61  ;;  %v4975_v40 = vadd.f32 -1.0, %v797_v63  ;;  %v748_v47 = vsub.f32 %v4900_v16, %v732_v34  ;;  %v4992_v51 = vadd.f32 -1.0, %v798_v45 }
  0x92   : > { %v4970_v35 = vadd.f32 -1.0, %v828_v29  ;;  %v892_v17 = vadd.f32 %v876_v30, %v860_v43  ;;  %v4973_v38 = vadd.f32 -1.0, %v829_v32  ;;  %v893_v39 = vadd.f32 %v877_v33, %v861_v57 }
  0x93   : > { %v830_v42 = vmul.f32 %v4892_v10, %v747_v36  ;;  %v878_v43 = vmul.f32 %v4975_v40, %v4975_v40  ;;  %v831_v57 = vmul.f32 %v4892_v10, %v748_v47  ;;  %v478_v16 = vadd.f32 1.0, %v4959_v28 }
  0x94   : > { %v908_v41 = vmul.f32 %v4970_v35, %v4970_v35  ;;  %v909_v15 = vmul.f32 %v4973_v38, %v4973_v38  ;;  %v863_v2 = vmul.f32 %v4942_v7, %v4942_v7  ;;  %v879_v44 = vmul.f32 %v4992_v51, %v4992_v51 }
  0x95   : > { %v4990_v50 = vadd.f32 -1.0, %v830_v42  ;;  %v894_v59 = vadd.f32 %v878_v43, %v862_v21  ;;  %v5015_v19 = vadd.f32 -1.0, %v831_v57  ;;  %v768_v3 = vmul.f32 %v4865_v55, %v525_v31 }
  0x96   : > { %v4988_v48 = vadd.f32 %v908_v41, %v892_v17  ;;  %v4999_v56 = vadd.f32 %v909_v15, %v893_v39  ;;  %v574_v4 = vmul.f32 %v4862_v54, %v5003_v58  ;;  %v494_v5 = vmul.f32 %v478_v16, %v4815_v18 }
  0x97   : > { %v910_v60 = vmul.f32 %v4990_v50, %v4990_v50  ;;  %v378_v6 = vmul.f32 %v4804_v13, %v4997_v53  ;;  %v895_v20 = vadd.f32 %v879_v44, %v863_v2  ;;  %v911_v21 = vmul.f32 %v5015_v19, %v5015_v19 }
  0x98   : > { %3943 = vrsqrt.f32 %v4988_v48  ;;  %v590_v22 = vfloor.f32 %v574_v4  ;;  %vm510_vm3 = vcmp.le.f32.partialorder %v494_v5, %v4852_v49  ;;  %v950_v27 = vand.u32 2147483648, %v4988_v48 }
  0x99   : > { %3945 = vrsqrt.f32 %v4999_v56  ;;  %v5025_v11 = vadd.f32 %v910_v60, %v894_v59  ;;  %v394_v12 = vfloor.f32 %v378_v6  ;;  %v5032_v29 = vshrl.u32 %v321_v0, 7 }
  0x9a   : > { %v5035_v30 = vadd.f32 -1.0, %v768_v3  ;;  %v5038_v32 = vadd.f32 %v911_v21, %v895_v20  ;;  %v607_v33 = vmul.f32 %v4877_v62, %v590_v22  ;;  %v3575_v63 = vadd.f32 -1.0, %v590_v22 }
  0x9b   : > { %3947 = vrsqrt.f32 %v5025_v11  ;;  %vm947_vm4 = vcmp.eq.f32.partialorder %v4988_v48, inf  ;;  %v526_v0 = vsel %vm510_vm3, %v478_v16, %v4959_v28  ;;  %v411_v36 = vmul.f32 %v4815_v18, %v394_v12 }
  0x9c   : > { %v3557_v37 = vadd.f32 -1.0, %v394_v12  ;;  %vm949_vm5 = vcmp.eq.f32.partialorder %v4988_v48, 0.0  ;;  %vm959_vm6 = vcmp.eq.f32.partialorder %v4999_v56, inf  ;;  %v962_v34 = vand.u32 2147483648, %v4999_v56 }
  0x9d   : > { %3949 = vrsqrt.f32 %v5038_v32  ;;  %v5051_v41 = vadd.s32 640, %v4783_v1  ;;  %vm1137_vm7 = vcmp.eq.s32.totalorder %v5032_v29, 3  ;;  %vm961_vm8 = vcmp.eq.f32.partialorder %v4999_v56, 0.0 }
  0x9e   : > { %v3944_v14 = vpop.eup %3943  ;;  %vm623_vm9 = vcmp.gt.f32.partialorder %v607_v33, %v5003_v58  ;;  %v5058_v28 = vmul.f32 %v5035_v30, %v5035_v30  ;;  %v542_v45 = vmul.f32 %v526_v0, %v4815_v18  ;;  %vm1136_vm10 = vcmp.eq.s32.totalorder %v5032_v29, 2 }
  0x9f   : > { %v3946_v61 = vpop.eup %3945  ;;  %v941_v31 = vmul.f32 %v3944_v14, %v4988_v48  ;;  %v974_v15 = vand.u32 2147483648, %v5025_v11  ;;  %v655_v43 = vsel %vm623_vm9, %v3575_v63, %v590_v22  ;;  %vm427_vm11 = vcmp.gt.f32.partialorder %v411_v36, %v4997_v53 }
  0xa0   : > { %v953_v17 = vmul.f32 %v3946_v61, %v4999_v56  ;;  %vm1135_vm12 = vcmp.eq.s32.totalorder %v5032_v29, 1  ;;  %v671_v16 = vadd.f32 1.0, %v655_v43  ;;  %v5066_v59 = vsub.f32 %v4852_v49, %v542_v45 }
  0xa1   : > { %v942_v39 = vmul.f32 %v3944_v14, %v941_v31  ;;  %v3948_v47 = vpop.eup %3947  ;;  %v5068_v2 = vsel %vm427_vm11, %v3557_v37, %v394_v12  ;;  %vm1134_vm13 = vcmp.eq.s32.totalorder %v5032_v29, 0  ;;  %v986_v3 = vand.u32 2147483648, %v5038_v32 }
  0xa2   : > { %v954_v42 = vmul.f32 %v3946_v61, %v953_v17  ;;  %v965_v44 = vmul.f32 %v3948_v47, %v5025_v11  ;;  %v5079_v4 = vadd.f32 1.0, %v5068_v2  ;;  %vm1224_vm14 = vcmask 1044480  }
  0xa3   : > { %v943_v46 = vmul.f32 0.5, %v942_v39  ;;  %vm971_vm15 = vcmp.eq.f32.partialorder %v5025_v11, inf  ;;  %v687_v49 = vmul.f32 %v671_v16, %v4877_v62  ;;  %v575_v6 = vmul.f32 %v4862_v54, %v5066_v59  ;;  %v3950_v21 = vpop.eup %3949 }
  0xa4   : > { %v955_v57 = vmul.f32 0.5, %v954_v42  ;;  %v5086_v20 = vmul.f32 %v4865_v55, %v526_v0  ;;  %v966_v12 = vmul.f32 %v3948_v47, %v965_v44  ;;  %vm973_vm0 = vcmp.eq.f32.partialorder %v5025_v11, 0.0 }
  0xa5   : > { %v944_v60 = vsub.f32 1.5, %v943_v46  ;;  %vm1211_vm1 = vcmask 39936   ;;  %v491_v31 = vmul.f32 %v5079_v4, %v4815_v18  ;;  %v345_v33 = vcvt.s32.f32 %v5051_v41 }
  0xa6   : > { %v956_v5 = vsub.f32 1.5, %v955_v57  ;;  %v977_v17 = vmul.f32 %v3950_v21, %v5038_v32  ;;  %vm703_vm2 = vcmp.le.f32.partialorder %v687_v49, %v5003_v58  ;;  %v591_v36 = vfloor.f32 %v575_v6 }
  0xa7   : > { %v945_v22 = vmul.f32 %v3944_v14, %v944_v60  ;;  %v967_v37 = vmul.f32 0.5, %v966_v12  ;;  %vm983_vm3 = vcmp.eq.f32.partialorder %v5038_v32, inf  ;;  %v719_v14 = vsel %vm703_vm2, %v671_v16, %v655_v43 }
  0xa8   : > { %v957_v63 = vmul.f32 %v3946_v61, %v956_v5  ;;  %vm507_vm9 = vcmp.le.f32.partialorder %v491_v31, %v4997_v53  ;;  %v978_v42 = vmul.f32 %v3950_v21, %v977_v17  ;;  %v735_v41 = vmul.f32 %v719_v14, %v4877_v62 }
  0xa9   : > { %v946_v0 = vmul.f32 %v945_v22, %v4988_v48  ;;  %v801_v61 = vmul.f32 %v4889_v8, %v719_v14  ;;  %v968_v46 = vsub.f32 1.5, %v967_v37  ;;  %v608_v57 = vmul.f32 %v4877_v62, %v591_v36 }
  0xaa   : > { %v958_v39 = vmul.f32 %v957_v63, %v4999_v56  ;;  %v3576_v60 = vadd.f32 -1.0, %v591_v36  ;;  %v979_v44 = vmul.f32 0.5, %v978_v42  ;;  %v751_v5 = vsub.f32 %v5003_v58, %v735_v41 }
  0xab   : > { %v948_v45 = vsel %vm947_vm4, %v4988_v48, %v946_v0  ;;  %v5124_v6 = vadd.f32 -1.0, %v801_v61  ;;  %vm624_vm4 = vcmp.gt.f32.partialorder %v608_v57, %v5066_v59  ;;  %v5205_v57 = vadd.f32 -1.0, %v5086_v20 }
  0xac   : > { %v951_v43 = vsel %vm949_vm5, %v950_v27, %v948_v45  ;;  %v960_v16 = vsel %vm959_vm6, %v4999_v56, %v958_v39  ;;  %v969_v27 = vmul.f32 %v3948_v47, %v968_v46  ;;  %v980_v63 = vsub.f32 1.5, %v979_v44  ;;  %v5140_v47 = vld [vmem:[%s5115_s21] sm:$0xff] }
  0xad   : > { %v1138_v49 = vsel %vm1137_vm7, %v951_v43, 1.0  ;;  %v963_v48 = vsel %vm961_vm8, %v962_v34, %v960_v16  ;;  %v834_v58 = vmul.f32 %v4892_v10, %v751_v5  ;;  %vm985_vm5 = vcmp.eq.f32.partialorder %v5038_v32, 0.0 }
  0xae   : > { %v1154_v22 = vsel %vm1136_vm10, %v4970_v35, %v1138_v49  ;;  %v1139_v12 = vsel %vm1137_vm7, %v963_v48, 1.0  ;;  %v970_v34 = vmul.f32 %v969_v27, %v5025_v11  ;;  %v882_v35 = vmul.f32 %v5124_v6, %v5124_v6 }
  0xaf   : > { %v1170_v17 = vsel %vm1135_vm12, %v4951_v23, %v1154_v22  ;;  %v1155_v56 = vsel %vm1136_vm10, %v4973_v38, %v1139_v12  ;;  %v981_v23 = vmul.f32 %v3950_v21, %v980_v63  ;;  %v5150_v14 = vadd.f32 -1.0, %v834_v58 }
  0xb0   : > { %v1186_v0 = vsel %vm1134_vm13, %v4906_v24, %v1170_v17  ;;  %v1171_v37 = vsel %vm1135_vm12, %v4956_v26, %v1155_v56  ;;  %v972_v39 = vsel %vm971_vm15, %v5025_v11, %v970_v34  ;;  %v898_v42 = vadd.f32 %v882_v35, %v5058_v28 }
  0xb1   : > { %3633 = vmatpush.msk.msra.mxu0 %vm1224_vm14, %v1186_v0  ;;  %v1187_v38 = vsel %vm1134_vm13, %v4908_v25, %v1171_v37  ;;  %v975_v24 = vsel %vm973_vm0, %v974_v15, %v972_v39  ;;  %v982_v26 = vmul.f32 %v981_v23, %v5038_v32  ;;  %v914_v25 = vmul.f32 %v5150_v14, %v5150_v14  ;;  %v5261_v39 = vld [vmem:[%s5115_s21 + $0x10] sm:$0xff] }
  0xb2   : > { %3638 = vmatpush.msk.msra.mxu1 %vm1224_vm14, %v1187_v38  ;;  %3634 = vmatmul.msk.f32.vlgmr.msra.gmra.mxu0 %vm1211_vm1, %v5140_v47  ;;  %v1140_v28 = vsel %vm1137_vm7, %v975_v24, 1.0  ;;  %v656_v21 = vsel %vm624_vm4, %v3576_v60, %v591_v36  ;;  %v523_v11 = vsel %vm507_vm9, %v5079_v4, %v5068_v2  ;;  %v5181_v15 = vadd.f32 %v4793_v9, %v345_v33 }
  0xb3   : > { %3639 = vmatmul.msk.f32.vlgmr.msra.gmra.mxu1 %vm1211_vm1, %v5140_v47  ;;  %v1156_v41 = vsel %vm1136_vm10, %v4990_v50, %v1140_v28  ;;  %v984_v61 = vsel %vm983_vm3, %v5038_v32, %v982_v26  ;;  %v5189_v45 = vadd.f32 %v914_v25, %v898_v42  ;;  %v672_v36 = vadd.f32 1.0, %v656_v21  ;;  %v5212_v32 = vld [vmem:[%s5115_s21 + $0x8] sm:$0xff] }
  0xb4   : > { %v1172_v31 = vsel %vm1135_vm12, %v4975_v40, %v1156_v41  ;;  %v987_v2 = vsel %vm985_vm5, %v986_v3, %v984_v61  ;;  %v539_v4 = vmul.f32 %v523_v11, %v4815_v18  ;;  %v332_v33 = vadd.s32 1280, %v4783_v1 }
  0xb5   : > { %v1188_v50 = vsel %vm1134_vm13, %v4931_v52, %v1172_v31  ;;  %v1141_v46 = vsel %vm1137_vm7, %v987_v2, 1.0  ;;  %3951 = vrsqrt.f32 %v5189_v45  ;;  %v688_v3 = vmul.f32 %v672_v36, %v4877_v62 }
  0xb6   : > { %3643 = vmatpush.msk.msra.mxu2 %vm1224_vm14, %v1188_v50  ;;  %v1157_v40 = vsel %vm1136_vm10, %v5015_v19, %v1141_v46  ;;  %v5221_v20 = vsub.f32 %v4997_v53, %v539_v4  ;;  %v379_v60 = vmul.f32 %v4804_v13, %v5181_v15  ;;  %v350_v43 = vcvt.s32.f32 %v332_v33 }
  0xb7   : > { %v1173_v52 = vsel %vm1135_vm12, %v4992_v51, %v1157_v40  ;;  %3644 = vmatmul.msk.f32.vlgmr.msra.gmra.mxu2 %vm1211_vm1, %v5140_v47  ;;  %vm704_vm6 = vcmp.le.f32.partialorder %v688_v3, %v5066_v59  ;;  %v333_v16 = vadd.s32 1408, %v4783_v1  ;;  %v867_v53 = vmul.f32 %v5205_v57, %v5205_v57 }
  0xb8   : > { %v1189_v19 = vsel %vm1134_vm13, %v4942_v7, %v1173_v52  ;;  %v720_v51 = vsel %vm704_vm6, %v672_v36, %v656_v21  ;;  %v572_v44 = vmul.f32 %v4862_v54, %v5221_v20  ;;  %v395_v5 = vfloor.f32 %v379_v60 }
  0xb9   : > { %3648 = vmatpush.msk.msra.mxu3 %vm1224_vm14, %v1189_v19  ;;  %v736_v7 = vmul.f32 %v720_v51, %v4877_v62  ;;  %v802_v49 = vmul.f32 %v4889_v8, %v720_v51  ;;  %v5244_v48 = vadd.f32 %v4793_v9, %v350_v43  ;;  %v351_v27 = vcvt.s32.f32 %v333_v16 }
  0xba   : > { %3635 = vmatmul.msk.f32.gmra.mxu0 %vm1211_vm1, %v5212_v32  ;;  %3649 = vmatmul.msk.f32.vlgmr.msra.gmra.mxu3 %vm1211_vm1, %v5140_v47  ;;  %v588_v12 = vfloor.f32 %v572_v44  ;;  %v766_v63 = vmul.f32 %v4865_v55, %v523_v11  ;;  %v412_v58 = vmul.f32 %v4815_v18, %v395_v5  ;;  %v3558_v17 = vadd.f32 -1.0, %v395_v5 }
  0xbb   : > { %3640 = vmatmul.msk.f32.gmra.mxu1 %vm1211_vm1, %v5212_v32  ;;  %v3952_v22 = vpop.eup %3951  ;;  %v752_v34 = vsub.f32 %v5066_v59, %v736_v7  ;;  %v5250_v35 = vadd.f32 -1.0, %v802_v49  ;;  %v384_v0 = vmul.f32 %v4804_v13, %v5244_v48  ;;  %vm1019_vm8 = vcmp.eq.f32.partialorder %v5189_v45, inf  ;;  %v5295_v7 = vld [vmem:[%s5115_s21 + $0x18] sm:$0xff] }
  0xbc   : > { %v1013_v56 = vmul.f32 %v3952_v22, %v5189_v45  ;;  %v605_v37 = vmul.f32 %v4877_v62, %v588_v12  ;;  %v3573_v23 = vadd.f32 -1.0, %v588_v12  ;;  %vm428_vm11 = vcmp.gt.f32.partialorder %v412_v58, %v5181_v15 }
  0xbd   : > { %v5258_v38 = vadd.f32 %v4793_v9, %v351_v27  ;;  %v835_v59 = vmul.f32 %v4892_v10, %v752_v34  ;;  %v883_v24 = vmul.f32 %v5250_v35, %v5250_v35  ;;  %v460_v26 = vsel %vm428_vm11, %v3558_v17, %v395_v5 }
  0xbe   : > { %v1014_v42 = vmul.f32 %v3952_v22, %v1013_v56  ;;  %vm621_vm15 = vcmp.gt.f32.partialorder %v605_v37, %v5221_v20  ;;  %v476_v25 = vadd.f32 1.0, %v460_v26  ;;  %v400_v28 = vfloor.f32 %v384_v0 }
  0xbf   : > { %3645 = vmatmul.msk.f32.gmra.mxu2 %vm1211_vm1, %v5212_v32  ;;  %v385_v21 = vmul.f32 %v4804_v13, %v5258_v38  ;;  %v5271_v41 = vadd.f32 -1.0, %v835_v59  ;;  %v899_v61 = vadd.f32 %v883_v24, %v867_v53  ;;  %v653_v36 = vsel %vm621_vm15, %v3573_v23, %v588_v12 }
  0xc0   : > { %v1015_v11 = vmul.f32 0.5, %v1014_v42  ;;  %v669_v31 = vadd.f32 1.0, %v653_v36  ;;  %v492_v2 = vmul.f32 %v476_v25, %v4815_v18  ;;  %v417_v4 = vmul.f32 %v4815_v18, %v400_v28 }
  0xc1   : > { %v3563_v33 = vadd.f32 -1.0, %v400_v28  ;;  %v1022_v46 = vand.u32 2147483648, %v5189_v45  ;;  %v915_v40 = vmul.f32 %v5271_v41, %v5271_v41  ;;  %v5284_v3 = vadd.f32 -1.0, %v766_v63 }
  0xc2   : > { %3636 = vmatmul.msk.f32.gmra.mxu0 %vm1211_vm1, %v5261_v39  ;;  %3650 = vmatmul.msk.f32.gmra.mxu3 %vm1211_vm1, %v5212_v32  ;;  %v1016_v50 = vsub.f32 1.5, %v1015_v11  ;;  %v685_v52 = vmul.f32 %v669_v31, %v4877_v62  ;;  %vm508_vm0 = vcmp.le.f32.partialorder %v492_v2, %v5181_v15  ;;  %vm433_vm2 = vcmp.gt.f32.partialorder %v417_v4, %v5244_v48 }
  0xc3   : > { %3641 = vmatmul.msk.f32.gmra.mxu1 %vm1211_vm1, %v5261_v39  ;;  %v330_v60 = vadd.s32 1024, %v4783_v1  ;;  %v5290_v43 = vadd.f32 %v915_v40, %v899_v61  ;;  %v524_v16 = vsel %vm508_vm0, %v476_v25, %v460_v26  ;;  %v465_v51 = vsel %vm433_vm2, %v3563_v33, %v400_v28 }
  0xc4   : > { %v1017_v19 = vmul.f32 %v3952_v22, %v1016_v50  ;;  %vm701_vm3 = vcmp.le.f32.partialorder %v685_v52, %v5221_v20  ;;  %v540_v53 = vmul.f32 %v524_v16, %v4815_v18  ;;  %v481_v44 = vadd.f32 1.0, %v465_v51 }
  0xc5   : > { %v401_v5 = vfloor.f32 %v385_v21  ;;  %vm1021_vm9 = vcmp.eq.f32.partialorder %v5189_v45, 0.0  ;;  %3953 = vrsqrt.f32 %v5290_v43  ;;  %v864_v27 = vmul.f32 %v5284_v3, %v5284_v3 }
  0xc6   : > { %v1018_v49 = vmul.f32 %v1017_v19, %v5189_v45  ;;  %v717_v22 = vsel %vm701_vm3, %v669_v31, %v653_v36  ;;  %v5305_v12 = vsub.f32 %v5181_v15, %v540_v53  ;;  %v348_v63 = vcvt.s32.f32 %v330_v60 }
  0xc7   : > { %3646 = vmatmul.msk.f32.gmra.mxu2 %vm1211_vm1, %v5261_v39  ;;  %v5308_v58 = vadd.s32 1152, %v4783_v1  ;;  %v733_v56 = vmul.f32 %v717_v22, %v4877_v62  ;;  %v799_v34 = vmul.f32 %v4889_v8, %v717_v22  ;;  %v497_v0 = vmul.f32 %v481_v44, %v4815_v18 }
  0xc8   : > { %v1020_v17 = vsel %vm1019_vm8, %v5189_v45, %v1018_v49  ;;  %v573_v15 = vmul.f32 %v4862_v54, %v5305_v12  ;;  %v767_v23 = vmul.f32 %v4865_v55, %v524_v16  ;;  %v418_v42 = vmul.f32 %v4815_v18, %v401_v5 }
  0xc9   : > { %v1023_v37 = vsel %vm1021_vm9, %v1022_v46, %v1020_v17  ;;  %v749_v59 = vsub.f32 %v5221_v20, %v733_v56  ;;  %v5329_v24 = vadd.f32 -1.0, %v799_v34  ;;  %vm513_vm4 = vcmp.le.f32.partialorder %v497_v0, %v5244_v48 }
  0xca   : > { %3637 = vmatmul.msk.f32.gmra.mxu0 %vm1211_vm1, %v5295_v7  ;;  %3651 = vmatmul.msk.f32.gmra.mxu3 %vm1211_vm1, %v5261_v39  ;;  %v1144_v45 = vsel %vm1137_vm7, %v1023_v37, 1.0  ;;  %v589_v25 = vfloor.f32 %v573_v15  ;;  %v5335_v28 = vsel %vm513_vm4, %v481_v44, %v465_v51  ;;  %vm434_vm5 = vcmp.gt.f32.partialorder %v418_v42, %v5258_v38 }
  0xcb   : > { %3642 = vmatmul.msk.f32.gmra.mxu1 %vm1211_vm1, %v5295_v7  ;;  %v1160_v26 = vsel %vm1136_vm10, %v5150_v14, %v1144_v45  ;;  %v3954_v21 = vpop.eup %3953  ;;  %v832_v20 = vmul.f32 %v4892_v10, %v749_v59  ;;  %v880_v61 = vmul.f32 %v5329_v24, %v5329_v24  ;;  %v545_v36 = vmul.f32 %v5335_v28, %v4815_v18 }
  0xcc   : > { %v1176_v11 = vsel %vm1135_vm12, %v5124_v6, %v1160_v26  ;;  %v1025_v31 = vmul.f32 %v3954_v21, %v5290_v43  ;;  %v606_v2 = vmul.f32 %v4877_v62, %v589_v25  ;;  %v3574_v4 = vadd.f32 -1.0, %v589_v25 }
  0xcd   : > { %v1192_v14 = vsel %vm1134_vm13, %v5035_v30, %v1176_v11  ;;  %v5352_v6 = vadd.f32 -1.0, %v832_v20  ;;  %v896_v33 = vadd.f32 %v880_v61, %v864_v27  ;;  %v5355_v50 = vsub.f32 %v5244_v48, %v545_v36 }
  0xce   : > { %3663 = vmatpush.msk.msrb.mxu2 %vm1224_vm14, %v1192_v14  ;;  %v3564_v46 = vadd.f32 -1.0, %v401_v5  ;;  %v1026_v40 = vmul.f32 %v3954_v21, %v1025_v31  ;;  %vm622_vm6 = vcmp.gt.f32.partialorder %v606_v2, %v5305_v12  ;;  %v5360_v30 = vadd.f32 -1.0, %v767_v23 }
  0xcf   : > { %3647 = vmatmul.msk.f32.gmra.mxu2 %vm1211_vm1, %v5295_v7  ;;  %v5363_v52 = vadd.f32 %v4793_v9, %v348_v63  ;;  %v912_v60 = vmul.f32 %v5352_v6, %v5352_v6  ;;  %v654_v19 = vsel %vm622_vm6, %v3574_v4, %v589_v25  ;;  %v578_v48 = vmul.f32 %v4862_v54, %v5355_v50 }
  0xd0   : > { %v466_v16 = vsel %vm434_vm5, %v3564_v46, %v401_v5  ;;  %v1027_v51 = vmul.f32 0.5, %v1026_v40  ;;  %v670_v53 = vadd.f32 1.0, %v654_v19  ;;  %vm1031_vm8 = vcmp.eq.f32.partialorder %v5290_v43, inf }
  0xd1   : > { %v482_v44 = vadd.f32 1.0, %v466_v16  ;;  %v382_v49 = vmul.f32 %v4804_v13, %v5363_v52  ;;  %v5376_v27 = vadd.f32 %v912_v60, %v896_v33  ;;  %v594_v22 = vfloor.f32 %v578_v48 }
  0xd2   : > { %3652 = vmatmul.msk.f32.gmra.mxu3 %vm1211_vm1, %v5295_v7  ;;  %v349_v63 = vcvt.s32.f32 %v5308_v58  ;;  %v1028_v17 = vsub.f32 1.5, %v1027_v51  ;;  %v686_v56 = vmul.f32 %v670_v53, %v4877_v62  ;;  %vm1033_vm11 = vcmp.eq.f32.partialorder %v5290_v43, 0.0 }
  0xd3   : > { %v498_v5 = vmul.f32 %v482_v44, %v4815_v18  ;;  %v398_v34 = vfloor.f32 %v382_v49  ;;  %v1034_v0 = vand.u32 2147483648, %v5290_v43  ;;  %3955 = vrsqrt.f32 %v5376_v27 }
  0xd4   : > { %v865_v37 = vmul.f32 %v5360_v30, %v5360_v30  ;;  %v1029_v15 = vmul.f32 %v3954_v21, %v1028_v17  ;;  %vm702_vm15 = vcmp.le.f32.partialorder %v686_v56, %v5305_v12  ;;  %v611_v58 = vmul.f32 %v4877_v62, %v594_v22 }
  0xd5   : > { %v3579_v23 = vadd.f32 -1.0, %v594_v22  ;;  %v718_v42 = vsel %vm702_vm15, %v670_v53, %v654_v19  ;;  %vm514_vm0 = vcmp.le.f32.partialorder %v498_v5, %v5258_v38  ;;  %v415_v45 = vmul.f32 %v4815_v18, %v398_v34 }
  0xd6   : > { %v5391_v59 = vadd.f32 %v4793_v9, %v349_v63  ;;  %v1030_v26 = vmul.f32 %v1029_v15, %v5290_v43  ;;  %v734_v25 = vmul.f32 %v718_v42, %v4877_v62  ;;  %v800_v11 = vmul.f32 %v4889_v8, %v718_v42 }
  0xd7   : > { %3664 = vmatmul.msk.f32.vlgmr.msrb.gmra.mxu2 %vm1211_vm1, %v5140_v47  ;;  %vm627_vm2 = vcmp.gt.f32.partialorder %v611_v58, %v5355_v50  ;;  %v530_v20 = vsel %vm514_vm0, %v482_v44, %v466_v16  ;;  %vm431_vm3 = vcmp.gt.f32.partialorder %v415_v45, %v5363_v52  ;;  %v3561_v61 = vadd.f32 -1.0, %v398_v34 }
  0xd8   : > { %v659_v21 = vsel %vm627_vm2, %v3579_v23, %v594_v22  ;;  %v1032_v36 = vsel %vm1031_vm8, %v5290_v43, %v1030_v26  ;;  %v750_v14 = vsub.f32 %v5305_v12, %v734_v25  ;;  %v5404_v31 = vadd.f32 -1.0, %v800_v11 }
  0xd9   : > { %v675_v2 = vadd.f32 1.0, %v659_v21  ;;  %v3956_v4 = vpop.eup %3955  ;;  %v1035_v33 = vsel %vm1033_vm11, %v1034_v0, %v1032_v36  ;;  %v772_v46 = vmul.f32 %v4865_v55, %v5335_v28  ;;  %v546_v40 = vmul.f32 %v530_v20, %v4815_v18 }
  0xda   : > { %v773_v60 = vmul.f32 %v4865_v55, %v530_v20  ;;  %v1145_v19 = vsel %vm1137_vm7, %v1035_v33, 1.0  ;;  %v989_v48 = vmul.f32 %v3956_v4, %v5376_v27  ;;  %v833_v12 = vmul.f32 %v4892_v10, %v750_v14 }
  0xdb   : > { %v881_v16 = vmul.f32 %v5404_v31, %v5404_v31  ;;  %v1161_v43 = vsel %vm1136_vm10, %v5271_v41, %v1145_v19  ;;  %v691_v28 = vmul.f32 %v675_v2, %v4877_v62  ;;  %v5422_v51 = vadd.f32 -1.0, %v772_v46 }
  0xdc   : > { %v5425_v53 = vsub.f32 %v5258_v38, %v546_v40  ;;  %v1177_v44 = vsel %vm1135_vm12, %v5250_v35, %v1161_v43  ;;  %v990_v49 = vmul.f32 %v3956_v4, %v989_v48  ;;  %v5430_v22 = vadd.f32 -1.0, %v833_v12 }
  0xdd   : > { %v897_v63 = vadd.f32 %v881_v16, %v865_v37  ;;  %v1193_v17 = vsel %vm1134_vm13, %v5205_v57, %v1177_v44  ;;  %vm707_vm9 = vcmp.le.f32.partialorder %v691_v28, %v5355_v50  ;;  %v383_v38 = vmul.f32 %v4804_v13, %v5391_v59 }
  0xde   : > { %v579_v41 = vmul.f32 %v4862_v54, %v5425_v53  ;;  %3668 = vmatpush.msk.msrb.mxu3 %vm1224_vm14, %v1193_v17  ;;  %v991_v56 = vmul.f32 0.5, %v990_v49  ;;  %v913_v35 = vmul.f32 %v5430_v22, %v5430_v22  ;;  %v723_v5 = vsel %vm707_vm9, %v675_v2, %v659_v21 }
  0xdf   : > { %3665 = vmatmul.msk.f32.gmra.mxu2 %vm1211_vm1, %v5212_v32  ;;  %v870_v57 = vmul.f32 %v5422_v51, %v5422_v51  ;;  %3669 = vmatmul.msk.f32.vlgmr.msrb.gmra.mxu3 %vm1211_vm1, %v5140_v47  ;;  %v739_v0 = vmul.f32 %v723_v5, %v4877_v62  ;;  %v805_v37 = vmul.f32 %v4889_v8, %v723_v5  ;;  %v5455_v26 = vadd.f32 -1.0, %v773_v60 }
  0xe0   : > { %v595_v15 = vfloor.f32 %v579_v41  ;;  %v463_v58 = vsel %vm431_vm3, %v3561_v61, %v398_v34  ;;  %v992_v23 = vsub.f32 1.5, %v991_v56  ;;  %v5453_v42 = vadd.f32 %v913_v35, %v897_v63 }
  0xe1   : > { %v479_v25 = vadd.f32 1.0, %v463_v58  ;;  %v755_v11 = vsub.f32 %v5355_v50, %v739_v0  ;;  %v5458_v21 = vadd.f32 -1.0, %v805_v37  ;;  %vm995_vm4 = vcmp.eq.f32.partialorder %v5376_v27, inf }
  0xe2   : > { %v612_v20 = vmul.f32 %v4877_v62, %v595_v15  ;;  %v3580_v36 = vadd.f32 -1.0, %v595_v15  ;;  %v993_v14 = vmul.f32 %v3956_v4, %v992_v23  ;;  %vm997_vm5 = vcmp.eq.f32.partialorder %v5376_v27, 0.0 }
  0xe3   : > { %3957 = vrsqrt.f32 %v5453_v42  ;;  %v998_v34 = vand.u32 2147483648, %v5376_v27  ;;  %v838_v45 = vmul.f32 %v4892_v10, %v755_v11  ;;  %v886_v61 = vmul.f32 %v5458_v21, %v5458_v21 }
  0xe4   : > { %vm628_vm6 = vcmp.gt.f32.partialorder %v612_v20, %v5425_v53  ;;  %v994_v50 = vmul.f32 %v993_v14, %v5376_v27  ;;  %v495_v4 = vmul.f32 %v479_v25, %v4815_v18  ;;  %v399_v33 = vfloor.f32 %v383_v38 }
  0xe5   : > { %v660_v2 = vsel %vm628_vm6, %v3580_v36, %v595_v15  ;;  %v5471_v46 = vadd.f32 -1.0, %v838_v45  ;;  %v902_v40 = vadd.f32 %v886_v61, %v870_v57  ;;  %v871_v19 = vmul.f32 %v5455_v26, %v5455_v26 }
  0xe6   : > { %v676_v60 = vadd.f32 1.0, %v660_v2  ;;  %v996_v48 = vsel %vm995_vm4, %v5376_v27, %v994_v50  ;;  %vm511_vm8 = vcmp.le.f32.partialorder %v495_v4, %v5363_v52  ;;  %v416_v12 = vmul.f32 %v4815_v18, %v399_v33 }
  0xe7   : > { %3666 = vmatmul.msk.f32.gmra.mxu2 %vm1211_vm1, %v5261_v39  ;;  %v336_v16 = vadd.s32 1792, %v4783_v1  ;;  %v999_v43 = vsel %vm997_vm5, %v998_v34, %v996_v48  ;;  %3670 = vmatmul.msk.f32.gmra.mxu3 %vm1211_vm1, %v5212_v32  ;;  %v918_v28 = vmul.f32 %v5471_v46, %v5471_v46  ;;  %v527_v49 = vsel %vm511_vm8, %v479_v25, %v463_v58 }
  0xe8   : > { %v692_v44 = vmul.f32 %v676_v60, %v4877_v62  ;;  %v1142_v17 = vsel %vm1137_vm7, %v999_v43, 1.0  ;;  %v543_v41 = vmul.f32 %v527_v49, %v4815_v18  ;;  %vm432_vm11 = vcmp.gt.f32.partialorder %v416_v12, %v5391_v59 }
  0xe9   : > { %v3958_v63 = vpop.eup %3957  ;;  %v3562_v38 = vadd.f32 -1.0, %v399_v33  ;;  %v1158_v27 = vsel %vm1136_vm10, %v5352_v6, %v1142_v17  ;;  %v5496_v35 = vadd.f32 %v918_v28, %v902_v40  ;;  %vm1007_vm0 = vcmp.eq.f32.partialorder %v5453_v42, inf }
  0xea   : > { %v1001_v56 = vmul.f32 %v3958_v63, %v5453_v42  ;;  %vm708_vm15 = vcmp.le.f32.partialorder %v692_v44, %v5425_v53  ;;  %v1174_v5 = vsel %vm1135_vm12, %v5329_v24, %v1158_v27  ;;  %v5504_v0 = vsub.f32 %v5363_v52, %v543_v41 }
  0xeb   : > { %v724_v57 = vsel %vm708_vm15, %v676_v60, %v660_v2  ;;  %v770_v37 = vmul.f32 %v4865_v55, %v527_v49  ;;  %v1190_v6 = vsel %vm1134_vm13, %v5284_v3, %v1174_v5  ;;  %3959 = vrsqrt.f32 %v5496_v35 }
  0xec   : > { %v1002_v15 = vmul.f32 %v3958_v63, %v1001_v56  ;;  %v740_v58 = vmul.f32 %v724_v57, %v4877_v62  ;;  %3653 = vmatpush.msk.msrb.mxu0 %vm1224_vm14, %v1190_v6  ;;  %vm1009_vm2 = vcmp.eq.f32.partialorder %v5453_v42, 0.0  ;;  %v806_v24 = vmul.f32 %v4889_v8, %v724_v57 }
  0xed   : > { %v576_v52 = vmul.f32 %v4862_v54, %v5504_v0  ;;  %v464_v23 = vsel %vm432_vm11, %v3562_v38, %v399_v33  ;;  %3654 = vmatmul.msk.f32.vlgmr.msrb.gmra.mxu0 %vm1211_vm1, %v5140_v47  ;;  %v354_v20 = vcvt.s32.f32 %v336_v16  ;;  %v1010_v36 = vand.u32 2147483648, %v5453_v42 }
  0xee   : > { %v1003_v25 = vmul.f32 0.5, %v1002_v15  ;;  %v756_v3 = vsub.f32 %v5425_v53, %v740_v58  ;;  %v480_v11 = vadd.f32 1.0, %v464_v23  ;;  %v5525_v14 = vadd.f32 -1.0, %v806_v24 }
  0xef   : > { %3667 = vmatmul.msk.f32.gmra.mxu2 %vm1211_vm1, %v5295_v7  ;;  %v592_v34 = vfloor.f32 %v576_v52  ;;  %v5527_v45 = vadd.f32 -1.0, %v770_v37  ;;  %3671 = vmatmul.msk.f32.gmra.mxu3 %vm1211_vm1, %v5261_v39  ;;  %v5534_v2 = vadd.f32 %v4793_v9, %v354_v20  ;;  %v337_v60 = vadd.s32 1920, %v4783_v1 }
  0xf0   : > { %v1004_v61 = vsub.f32 1.5, %v1003_v25  ;;  %v839_v50 = vmul.f32 %v4892_v10, %v756_v3  ;;  %v496_v53 = vmul.f32 %v480_v11, %v4815_v18  ;;  %v887_v4 = vmul.f32 %v5525_v14, %v5525_v14 }
  0xf1   : > { %v609_v33 = vmul.f32 %v4877_v62, %v592_v34  ;;  %v3577_v40 = vadd.f32 -1.0, %v592_v34  ;;  %v3960_v48 = vpop.eup %3959  ;;  %v388_v43 = vmul.f32 %v4804_v13, %v5534_v2  ;;  %v5553_v56 = vmul.f32 %v5527_v45, %v5527_v45 }
  0xf2   : > { %v1005_v12 = vmul.f32 %v3958_v63, %v1004_v61  ;;  %v5540_v16 = vadd.f32 -1.0, %v839_v50  ;;  %vm512_vm3 = vcmp.le.f32.partialorder %v496_v53, %v5391_v59  ;;  %v1061_v28 = vmul.f32 %v3960_v48, %v5496_v35 }
  0xf3   : > { %v903_v44 = vadd.f32 %v887_v4, %v871_v19  ;;  %vm625_vm9 = vcmp.gt.f32.partialorder %v609_v33, %v5504_v0  ;;  %v528_v49 = vsel %vm512_vm3, %v480_v11, %v464_v23  ;;  %v5556_v5 = vadd.s32 1536, %v4783_v1 }
  0xf4   : > { %v1006_v17 = vmul.f32 %v1005_v12, %v5453_v42  ;;  %v919_v41 = vmul.f32 %v5540_v16, %v5540_v16  ;;  %v657_v38 = vsel %vm625_vm9, %v3577_v40, %v592_v34  ;;  %v544_v63 = vmul.f32 %v528_v49, %v4815_v18 }
  0xf5   : > { %v1062_v27 = vmul.f32 %v3960_v48, %v1061_v28  ;;  %3655 = vmatmul.msk.f32.gmra.mxu0 %vm1211_vm1, %v5212_v32  ;;  %v673_v37 = vadd.f32 1.0, %v657_v38  ;;  %v404_v24 = vfloor.f32 %v388_v43  ;;  %v355_v52 = vcvt.s32.f32 %v337_v60 }
  0xf6   : > { %v1008_v19 = vsel %vm1007_vm0, %v5453_v42, %v1006_v17  ;;  %v5563_v57 = vadd.f32 %v919_v41, %v903_v44  ;;  %v5566_v6 = vsub.f32 %v5391_v59, %v544_v63  ;;  %vm1067_vm4 = vcmp.eq.f32.partialorder %v5496_v35, inf }
  0xf7   : > { %v1011_v15 = vsel %vm1009_vm2, %v1010_v36, %v1008_v19  ;;  %v1063_v58 = vmul.f32 0.5, %v1062_v27  ;;  %3672 = vmatmul.msk.f32.gmra.mxu3 %vm1211_vm1, %v5295_v7  ;;  %v771_v25 = vmul.f32 %v4865_v55, %v528_v49  ;;  %vm1069_vm5 = vcmp.eq.f32.partialorder %v5496_v35, 0.0 }
  0xf8   : > { %v1143_v23 = vsel %vm1137_vm7, %v1011_v15, 1.0  ;;  %3961 = vrsqrt.f32 %v5563_v57  ;;  %v689_v3 = vmul.f32 %v673_v37, %v4877_v62  ;;  %v1070_v20 = vand.u32 2147483648, %v5496_v35 }
  0xf9   : > { %v1159_v59 = vsel %vm1136_vm10, %v5430_v22, %v1143_v23  ;;  %v1064_v42 = vsub.f32 1.5, %v1063_v58  ;;  %v577_v36 = vmul.f32 %v4862_v54, %v5566_v6  ;;  %v421_v34 = vmul.f32 %v4815_v18, %v404_v24 }
  0xfa   : > { %v1175_v11 = vsel %vm1135_vm12, %v5404_v31, %v1159_v59  ;;  %vm705_vm6 = vcmp.le.f32.partialorder %v689_v3, %v5504_v0  ;;  %v3567_v50 = vadd.f32 -1.0, %v404_v24  ;;  %v5594_v31 = vadd.f32 -1.0, %v771_v25 }
  0xfb   : > { %v1191_v22 = vsel %vm1134_vm13, %v5360_v30, %v1175_v11  ;;  %v1065_v61 = vmul.f32 %v3960_v48, %v1064_v42  ;;  %v721_v53 = vsel %vm705_vm6, %v673_v37, %v657_v38  ;;  %v593_v4 = vfloor.f32 %v577_v36 }
  0xfc   : > { %3658 = vmatpush.msk.msrb.mxu1 %vm1224_vm14, %v1191_v22  ;;  %vm437_vm8 = vcmp.gt.f32.partialorder %v421_v34, %v5534_v2  ;;  %v737_v40 = vmul.f32 %v721_v53, %v4877_v62  ;;  %v803_v30 = vmul.f32 %v4889_v8, %v721_v53  ;;  %v5606_v44 = vadd.f32 %v4793_v9, %v355_v52 }
  0xfd   : > { %3659 = vmatmul.msk.f32.vlgmr.msrb.gmra.mxu1 %vm1211_vm1, %v5140_v47  ;;  %v1066_v33 = vmul.f32 %v1065_v61, %v5496_v35  ;;  %v469_v60 = vsel %vm437_vm8, %v3567_v50, %v404_v24  ;;  %3656 = vmatmul.msk.f32.gmra.mxu0 %vm1211_vm1, %v5261_v39  ;;  %v610_v12 = vmul.f32 %v4877_v62, %v593_v4  ;;  %v3578_v43 = vadd.f32 -1.0, %v593_v4 }
  0xfe   : > { %v3962_v48 = vpop.eup %3961  ;;  %v485_v28 = vadd.f32 1.0, %v469_v60  ;;  %v753_v41 = vsub.f32 %v5504_v0, %v737_v40  ;;  %v5613_v38 = vadd.f32 -1.0, %v803_v30  ;;  %vm1079_vm11 = vcmp.eq.f32.partialorder %v5563_v57, inf }
  0xff   : > { %v1068_v49 = vsel %vm1067_vm4, %v5496_v35, %v1066_v33  ;;  %v1073_v17 = vmul.f32 %v3962_v48, %v5563_v57  ;;  %vm626_vm15 = vcmp.gt.f32.partialorder %v610_v12, %v5566_v6  ;;  %v389_v19 = vmul.f32 %v4804_v13, %v5606_v44 }
 0x100   : > { %v1071_v63 = vsel %vm1069_vm5, %v1070_v20, %v1068_v49  ;;  %v501_v27 = vmul.f32 %v485_v28, %v4815_v18  ;;  %v836_v0 = vmul.f32 %v4892_v10, %v753_v41  ;;  %v884_v58 = vmul.f32 %v5613_v38, %v5613_v38 }
 0x101   : > { %v1148_v37 = vsel %vm1137_vm7, %v1071_v63, 1.0  ;;  %v1074_v15 = vmul.f32 %v3962_v48, %v1073_v17  ;;  %v658_v24 = vsel %vm626_vm15, %v3578_v43, %v593_v4  ;;  %v405_v52 = vfloor.f32 %v389_v19 }
 0x102   : > { %v1164_v35 = vsel %vm1136_vm10, %v5471_v46, %v1148_v37  ;;  %vm517_vm0 = vcmp.le.f32.partialorder %v501_v27, %v5534_v2  ;;  %v5634_v59 = vadd.f32 -1.0, %v836_v0  ;;  %v900_v42 = vadd.f32 %v884_v58, %v5553_v56 }
 0x103   : > { %v1180_v23 = vsel %vm1135_vm12, %v5458_v21, %v1164_v35  ;;  %v1075_v25 = vmul.f32 0.5, %v1074_v15  ;;  %v674_v11 = vadd.f32 1.0, %v658_v24  ;;  %v533_v20 = vsel %vm517_vm0, %v485_v28, %v469_v60 }
 0x104   : > { %v1196_v3 = vsel %vm1134_vm13, %v5422_v51, %v1180_v23  ;;  %v422_v46 = vmul.f32 %v4815_v18, %v405_v52  ;;  %v916_v21 = vmul.f32 %v5634_v59, %v5634_v59  ;;  %v549_v34 = vmul.f32 %v533_v20, %v4815_v18 }
 0x105   : > { %3660 = vmatmul.msk.f32.gmra.mxu1 %vm1211_vm1, %v5212_v32  ;;  %3683 = vmatpush.msk.msra.mxu2 %vm1224_vm14, %v1196_v3  ;;  %v1076_v36 = vsub.f32 1.5, %v1075_v25  ;;  %v3568_v56 = vadd.f32 -1.0, %v405_v52  ;;  %v690_v51 = vmul.f32 %v674_v11, %v4877_v62  ;;  %v352_v22 = vcvt.s32.f32 %v5556_v5 }
 0x106   : > { %3657 = vmatmul.msk.f32.gmra.mxu0 %vm1211_vm1, %v5295_v7  ;;  %3684 = vmatmul.msk.f32.vlgmr.msra.gmra.mxu2 %vm1211_vm1, %v5140_v47  ;;  %vm438_vm2 = vcmp.gt.f32.partialorder %v422_v46, %v5606_v44  ;;  %v335_v61 = vadd.s32 1664, %v4783_v1  ;;  %v5655_v53 = vadd.f32 %v916_v21, %v900_v42  ;;  %v5658_v4 = vsub.f32 %v5534_v2, %v549_v34 }
 0x107   : > { %v1077_v50 = vmul.f32 %v3962_v48, %v1076_v36  ;;  %v470_v33 = vsel %vm438_vm2, %v3568_v56, %v405_v52  ;;  %v1082_v40 = vand.u32 2147483648, %v5563_v57  ;;  %vm706_vm3 = vcmp.le.f32.partialorder %v690_v51, %v5566_v6 }
 0x108   : > { %v486_v30 = vadd.f32 1.0, %v470_v33  ;;  %v5663_v60 = vadd.f32 %v4793_v9, %v352_v22  ;;  %vm1081_vm9 = vcmp.eq.f32.partialorder %v5563_v57, 0.0  ;;  %3963 = vrsqrt.f32 %v5655_v53 }
 0x109   : > { %v1078_v12 = vmul.f32 %v1077_v50, %v5563_v57  ;;  %v353_v1 = vcvt.s32.f32 %v335_v61  ;;  %v722_v5 = vsel %vm706_vm3, %v674_v11, %v658_v24  ;;  %v582_v2 = vmul.f32 %v4862_v54, %v5658_v4 }
 0x10a   : > { %v502_v48 = vmul.f32 %v486_v30, %v4815_v18  ;;  %v738_v28 = vmul.f32 %v722_v5, %v4877_v62  ;;  %v804_v49 = vmul.f32 %v4889_v8, %v722_v5  ;;  %v869_v17 = vmul.f32 %v5594_v31, %v5594_v31 }
 0x10b   : > { %v1080_v43 = vsel %vm1079_vm11, %v5563_v57, %v1078_v12  ;;  %v598_v63 = vfloor.f32 %v582_v2  ;;  %v386_v27 = vmul.f32 %v4804_v13, %v5663_v60  ;;  %v5689_v15 = vadd.f32 %v4793_v9, %v353_v1 }
 0x10c   : > { %v1083_v41 = vsel %vm1081_vm9, %v1082_v40, %v1080_v43  ;;  %vm518_vm4 = vcmp.le.f32.partialorder %v502_v48, %v5606_v44  ;;  %v754_v19 = vsub.f32 %v5566_v6, %v738_v28  ;;  %v5686_v37 = vadd.f32 -1.0, %v804_v49 }
 0x10d   : > { %3661 = vmatmul.msk.f32.gmra.mxu1 %vm1211_vm1, %v5261_v39  ;;  %v1149_v57 = vsel %vm1137_vm7, %v1083_v41, 1.0  ;;  %v615_v58 = vmul.f32 %v4877_v62, %v598_v63  ;;  %v3583_v35 = vadd.f32 -1.0, %v598_v63  ;;  %v534_v24 = vsel %vm518_vm4, %v486_v30, %v470_v33 }
 0x10e   : > { %v1165_v0 = vsel %vm1136_vm10, %v5540_v16, %v1149_v57  ;;  %3685 = vmatmul.msk.f32.gmra.mxu2 %vm1211_vm1, %v5212_v32  ;;  %v3964_v52 = vpop.eup %3963  ;;  %v837_v23 = vmul.f32 %v4892_v10, %v754_v19  ;;  %v885_v9 = vmul.f32 %v5686_v37, %v5686_v37  ;;  %v776_v25 = vmul.f32 %v4865_v55, %v533_v20 }
 0x10f   : > { %v1181_v6 = vsel %vm1135_vm12, %v5525_v14, %v1165_v0  ;;  %v1037_v42 = vmul.f32 %v3964_v52, %v5655_v53  ;;  %vm631_vm5 = vcmp.gt.f32.partialorder %v615_v58, %v5658_v4  ;;  %v550_v3 = vmul.f32 %v534_v24, %v4815_v18 }
 0x110   : > { %v1197_v16 = vsel %vm1134_vm13, %v5455_v26, %v1181_v6  ;;  %v5711_v14 = vadd.f32 -1.0, %v837_v23  ;;  %v901_v11 = vadd.f32 %v885_v9, %v869_v17  ;;  %v663_v46 = vsel %vm631_vm5, %v3583_v35, %v598_v63 }
 0x111   : > { %3688 = vmatpush.msk.msra.mxu3 %vm1224_vm14, %v1197_v16  ;;  %v1038_v36 = vmul.f32 %v3964_v52, %v1037_v42  ;;  %v679_v20 = vadd.f32 1.0, %v663_v46  ;;  %v5716_v21 = vsub.f32 %v5606_v44, %v550_v3  ;;  %v5720_v34 = vadd.f32 -1.0, %v776_v25 }
 0x112   : > { %3689 = vmatmul.msk.f32.vlgmr.msra.gmra.mxu3 %vm1211_vm1, %v5140_v47  ;;  %v917_v26 = vmul.f32 %v5711_v14, %v5711_v14  ;;  %v402_v56 = vfloor.f32 %v386_v27  ;;  %v387_v51 = vmul.f32 %v4804_v13, %v5689_v15  ;;  %vm1043_vm6 = vcmp.eq.f32.partialorder %v5655_v53, inf }
 0x113   : > { %v1039_v22 = vmul.f32 0.5, %v1038_v36  ;;  %v695_v61 = vmul.f32 %v679_v20, %v4877_v62  ;;  %v583_v47 = vmul.f32 %v4862_v54, %v5716_v21  ;;  %vm1045_vm8 = vcmp.eq.f32.partialorder %v5655_v53, 0.0 }
 0x114   : > { %v5731_v44 = vadd.f32 %v917_v26, %v901_v11  ;;  %v419_v50 = vmul.f32 %v4815_v18, %v402_v56  ;;  %v403_v33 = vfloor.f32 %v387_v51  ;;  %v3565_v30 = vadd.f32 -1.0, %v402_v56 }
 0x115   : > { %3662 = vmatmul.msk.f32.gmra.mxu1 %vm1211_vm1, %v5295_v7  ;;  %v1040_v40 = vsub.f32 1.5, %v1039_v22  ;;  %vm711_vm11 = vcmp.le.f32.partialorder %v695_v61, %v5658_v4  ;;  %v599_v13 = vfloor.f32 %v583_v47  ;;  %v1046_v12 = vand.u32 2147483648, %v5655_v53 }
 0x116   : > { %3686 = vmatmul.msk.f32.gmra.mxu2 %vm1211_vm1, %v5261_v39  ;;  %3965 = vrsqrt.f32 %v5731_v44  ;;  %v874_v1 = vmul.f32 %v5720_v34, %v5720_v34  ;;  %v777_v5 = vmul.f32 %v4865_v55, %v534_v24  ;;  %v727_v48 = vsel %vm711_vm11, %v679_v20, %v663_v46 }
 0x117   : > { %v1041_v2 = vmul.f32 %v3964_v52, %v1040_v40  ;;  %v616_v43 = vmul.f32 %v4877_v62, %v599_v13  ;;  %v3584_v28 = vadd.f32 -1.0, %v599_v13  ;;  %v743_v49 = vmul.f32 %v727_v48, %v4877_v62 }
 0x118   : > { %v809_v17 = vmul.f32 %v4889_v8, %v727_v48  ;;  %vm435_vm15 = vcmp.gt.f32.partialorder %v419_v50, %v5663_v60  ;;  %v420_v41 = vmul.f32 %v4815_v18, %v403_v33  ;;  %v3566_v57 = vadd.f32 -1.0, %v403_v33 }
 0x119   : > { %v1042_v63 = vmul.f32 %v1041_v2, %v5655_v53  ;;  %vm632_vm0 = vcmp.gt.f32.partialorder %v616_v43, %v5716_v21  ;;  %v467_v27 = vsel %vm435_vm15, %v3565_v30, %v402_v56  ;;  %v759_v19 = vsub.f32 %v5658_v4, %v743_v49 }
 0x11a   : > { %3690 = vmatmul.msk.f32.gmra.mxu3 %vm1211_vm1, %v5212_v32  ;;  %v5752_v0 = vadd.f32 -1.0, %v809_v17  ;;  %v664_v58 = vsel %vm632_vm0, %v3584_v28, %v599_v13  ;;  %v483_v35 = vadd.f32 1.0, %v467_v27  ;;  %v5757_v6 = vadd.f32 -1.0, %v777_v5 }
 0x11b   : > { %v1044_v24 = vsel %vm1043_vm6, %v5655_v53, %v1042_v63  ;;  %v680_v52 = vadd.f32 1.0, %v664_v58  ;;  %vm436_vm2 = vcmp.gt.f32.partialorder %v420_v41, %v5689_v15  ;;  %v842_v9 = vmul.f32 %v4892_v10, %v759_v19 }
 0x11c   : > { %v3966_v32 = vpop.eup %3965  ;;  %v1047_v23 = vsel %vm1045_vm8, %v1046_v12, %v1044_v24  ;;  %v890_v4 = vmul.f32 %v5752_v0, %v5752_v0  ;;  %v499_v25 = vmul.f32 %v483_v35, %v4815_v18  ;;  %v468_v11 = vsel %vm436_vm2, %v3566_v57, %v403_v33  ;;  %v5794_v33 = vld [vmem:[%s5115_s21] sm:$0xff] }
 0x11d   : > { %v1146_v16 = vsel %vm1137_vm7, %v1047_v23, 1.0  ;;  %v1049_v42 = vmul.f32 %v3966_v32, %v5731_v44  ;;  %v696_v3 = vmul.f32 %v680_v52, %v4877_v62  ;;  %v5775_v46 = vadd.f32 -1.0, %v842_v9  ;;  %v5830_v23 = vld [vmem:[%s5115_s21 + $0x8] sm:$0xff] }
 0x11e   : > { %3687 = vmatmul.msk.f32.gmra.mxu2 %vm1211_vm1, %v5295_v7  ;;  %v1162_v53 = vsel %vm1136_vm10, %v5634_v59, %v1146_v16  ;;  %v906_v36 = vadd.f32 %v890_v4, %v874_v1  ;;  %vm515_vm3 = vcmp.le.f32.partialorder %v499_v25, %v5663_v60  ;;  %v484_v13 = vadd.f32 1.0, %v468_v11 }
 0x11f   : > { %v1178_v20 = vsel %vm1135_vm12, %v5613_v38, %v1162_v53  ;;  %v1050_v26 = vmul.f32 %v3966_v32, %v1049_v42  ;;  %vm712_vm9 = vcmp.le.f32.partialorder %v696_v3, %v5716_v21  ;;  %v531_v56 = vsel %vm515_vm3, %v483_v35, %v467_v27 }
 0x120   : > { %v1194_v51 = vsel %vm1134_vm13, %v5527_v45, %v1178_v20  ;;  %v922_v59 = vmul.f32 %v5775_v46, %v5775_v46  ;;  %v728_v22 = vsel %vm712_vm9, %v680_v52, %v664_v58  ;;  %v547_v61 = vmul.f32 %v531_v56, %v4815_v18 }
 0x121   : > { %3673 = vmatpush.msk.msra.mxu0 %vm1224_vm14, %v1194_v51  ;;  %v1051_v47 = vmul.f32 0.5, %v1050_v26  ;;  %v744_v38 = vmul.f32 %v728_v22, %v4877_v62  ;;  %v810_v50 = vmul.f32 %v4889_v8, %v728_v22  ;;  %v875_v5 = vmul.f32 %v5757_v6, %v5757_v6 }
 0x122   : > { %3691 = vmatmul.msk.f32.gmra.mxu3 %vm1211_vm1, %v5261_v39  ;;  %3674 = vmatmul.msk.f32.vlgmr.msra.gmra.mxu0 %vm1211_vm1, %v5794_v33  ;;  %v5798_v45 = vadd.f32 %v922_v59, %v906_v36  ;;  %v5801_v40 = vsub.f32 %v5663_v60, %v547_v61  ;;  %v500_v48 = vmul.f32 %v484_v13, %v4815_v18  ;;  %vm1055_vm4 = vcmp.eq.f32.partialorder %v5731_v44, inf }
 0x123   : > { %v1052_v30 = vsub.f32 1.5, %v1051_v47  ;;  %v760_v12 = vsub.f32 %v5716_v21, %v744_v38  ;;  %v5804_v1 = vadd.f32 -1.0, %v810_v50  ;;  %vm1057_vm5 = vcmp.eq.f32.partialorder %v5731_v44, 0.0 }
 0x124   : > { %3967 = vrsqrt.f32 %v5798_v45  ;;  %v580_v2 = vmul.f32 %v4862_v54, %v5801_v40  ;;  %v1058_v28 = vand.u32 2147483648, %v5731_v44  ;;  %vm516_vm6 = vcmp.le.f32.partialorder %v500_v48, %v5689_v15 }
 0x125   : > { %v1053_v43 = vmul.f32 %v3966_v32, %v1052_v30  ;;  %v843_v60 = vmul.f32 %v4892_v10, %v760_v12  ;;  %v891_v21 = vmul.f32 %v5804_v1, %v5804_v1  ;;  %v532_v27 = vsel %vm516_vm6, %v484_v13, %v468_v11 }
 0x126   : > { %v596_v49 = vfloor.f32 %v580_v2  ;;  %v548_v24 = vmul.f32 %v532_v27, %v4815_v18  ;;  %vm1115_vm15 = vcmp.eq.f32.partialorder %v5798_v45, inf  ;;  %v1118_v50 = vand.u32 2147483648, %v5798_v45 }
 0x127   : > { %v1054_v17 = vmul.f32 %v1053_v43, %v5731_v44  ;;  %v5820_v41 = vadd.f32 -1.0, %v843_v60  ;;  %v907_v63 = vadd.f32 %v891_v21, %v875_v5  ;;  %vm1117_vm0 = vcmp.eq.f32.partialorder %v5798_v45, 0.0 }
 0x128   : > { %v613_v57 = vmul.f32 %v4877_v62, %v596_v49  ;;  %v3581_v35 = vadd.f32 -1.0, %v596_v49  ;;  %v5845_v3 = vsub.f32 %v5689_v15, %v548_v24 }
 0x129   : > { %v1056_v19 = vsel %vm1055_vm4, %v5731_v44, %v1054_v17  ;;  %v923_v58 = vmul.f32 %v5820_v41, %v5820_v41  ;;  %v774_v44 = vmul.f32 %v4865_v55, %v531_v56 }
 0x12a   : > { %3692 = vmatmul.msk.f32.gmra.mxu3 %vm1211_vm1, %v5295_v7  ;;  %v3968_v52 = vpop.eup %3967  ;;  %v1059_v32 = vsel %vm1057_vm5, %v1058_v28, %v1056_v19  ;;  %3675 = vmatmul.msk.f32.gmra.mxu0 %vm1211_vm1, %v5830_v23  ;;  %vm629_vm8 = vcmp.gt.f32.partialorder %v613_v57, %v5801_v40  ;;  %v581_v15 = vmul.f32 %v4862_v54, %v5845_v3 }
 0x12b   : > { %v1147_v9 = vsel %vm1137_vm7, %v1059_v32, 1.0  ;;  %v1109_v4 = vmul.f32 %v3968_v52, %v5798_v45  ;;  %v5839_v25 = vadd.f32 %v923_v58, %v907_v63  ;;  %v661_v16 = vsel %vm629_vm8, %v3581_v35, %v596_v49 }
 0x12c   : > { %v1163_v18 = vsel %vm1136_vm10, %v5711_v14, %v1147_v9  ;;  %v677_v42 = vadd.f32 1.0, %v661_v16  ;;  %v5855_v26 = vadd.f32 -1.0, %v774_v44  ;;  %v597_v51 = vfloor.f32 %v581_v15 }
 0x12d   : > { %v1179_v11 = vsel %vm1135_vm12, %v5686_v37, %v1163_v18  ;;  %v1110_v53 = vmul.f32 %v3968_v52, %v1109_v4  ;;  %3969 = vrsqrt.f32 %v5839_v25  ;;  %vm1127_vm9 = vcmp.eq.f32.partialorder %v5839_v25, inf  ;;  %v5922_v18 = vld [vmem:[%s5115_s21 + $0x10] sm:$0xff] }
 0x12e   : > { %v1195_v36 = vsel %vm1134_vm13, %v5594_v31, %v1179_v11  ;;  %v693_v20 = vmul.f32 %v677_v42, %v4877_v62  ;;  %v872_v22 = vmul.f32 %v5855_v26, %v5855_v26  ;;  %v614_v47 = vmul.f32 %v4877_v62, %v597_v51 }
 0x12f   : > { %3678 = vmatpush.msk.msra.mxu1 %vm1224_vm14, %v1195_v36  ;;  %v1111_v14 = vmul.f32 0.5, %v1110_v53  ;;  %v3582_v38 = vadd.f32 -1.0, %v597_v51  ;;  %v1130_v32 = vand.u32 2147483648, %v5839_v25  ;;  %vm1129_vm4 = vcmp.eq.f32.partialorder %v5839_v25, 0.0 }
 0x130   : > { %3679 = vmatmul.msk.f32.vlgmr.msra.gmra.mxu1 %vm1211_vm1, %v5794_v33  ;;  %vm709_vm11 = vcmp.le.f32.partialorder %v693_v20, %v5801_v40  ;;  %vm630_vm2 = vcmp.gt.f32.partialorder %v614_v47, %v5845_v3 }
 0x131   : > { %v1112_v37 = vsub.f32 1.5, %v1111_v14  ;;  %v725_v56 = vsel %vm709_vm11, %v677_v42, %v661_v16  ;;  %v662_v43 = vsel %vm630_vm2, %v3582_v38, %v597_v51  ;;  %v5947_v51 = vld [vmem:[%s5115_s21 + $0x18] sm:$0xff] }
 0x132   : > { %3676 = vmatmul.msk.f32.gmra.mxu0 %vm1211_vm1, %v5261_v39  ;;  %v741_v31 = vmul.f32 %v725_v56, %v4877_v62  ;;  %v807_v59 = vmul.f32 %v4889_v8, %v725_v56  ;;  %v678_v21 = vadd.f32 1.0, %v662_v43 }
 0x133   : > { %v3970_v61 = vpop.eup %3969  ;;  %v1113_v54 = vmul.f32 %v3968_v52, %v1112_v37 }
 0x134   : > { %v1121_v13 = vmul.f32 %v3970_v61, %v5839_v25  ;;  %v757_v39 = vsub.f32 %v5801_v40, %v741_v31  ;;  %v5874_v30 = vadd.f32 -1.0, %v807_v59  ;;  %v775_v40 = vmul.f32 %v4865_v55, %v532_v27 }
 0x135   : > { %v1114_v12 = vmul.f32 %v1113_v54, %v5798_v45  ;;  %v694_v19 = vmul.f32 %v678_v21, %v4877_v62 }
 0x136   : > { %v1122_v5 = vmul.f32 %v3970_v61, %v1121_v13  ;;  %v840_v2 = vmul.f32 %v4892_v10, %v757_v39  ;;  %v888_v48 = vmul.f32 %v5874_v30, %v5874_v30  ;;  %v5902_v35 = vadd.f32 -1.0, %v775_v40 }
 0x137   : > { %v1116_v60 = vsel %vm1115_vm15, %v5798_v45, %v1114_v12  ;;  %vm710_vm3 = vcmp.le.f32.partialorder %v694_v19, %v5845_v3  ;;  %vm3410_vm15 = vcmask 1045508  }
 0x138   : > { %3680 = vmatmul.msk.f32.gmra.mxu1 %vm1211_vm1, %v5830_v23  ;;  %v1119_v28 = vsel %vm1117_vm0, %v1118_v50, %v1116_v60  ;;  %v1123_v49 = vmul.f32 0.5, %v1122_v5  ;;  %v5886_v17 = vadd.f32 -1.0, %v840_v2  ;;  %v904_v63 = vadd.f32 %v888_v48, %v872_v22 }
 0x139   : > { %v1152_v57 = vsel %vm1137_vm7, %v1119_v28, 1.0  ;;  %v873_v16 = vmul.f32 %v5902_v35, %v5902_v35  ;;  %vm3412_vm0 = vcmask 1043456  }
 0x13a   : > { %3677 = vmatmul.msk.f32.gmra.mxu0 %vm1211_vm1, %v5295_v7  ;;  %v1168_v55 = vsel %vm1136_vm10, %v5775_v46, %v1152_v57  ;;  %v1124_v45 = vsub.f32 1.5, %v1123_v49  ;;  %v920_v27 = vmul.f32 %v5886_v17, %v5886_v17  ;;  %v726_v46 = vsel %vm710_vm3, %v678_v21, %v662_v43  ;;  %v5973_v21 = vpop.f32.mrf.mxu0  ;;  %v5977_v28 = vpop.f32.mrf.mxu2 }
 0x13b   : > { %v1184_v58 = vsel %vm1135_vm12, %v5752_v0, %v1168_v55  ;;  %v742_v0 = vmul.f32 %v726_v46, %v4877_v62  ;;  %v808_v44 = vmul.f32 %v4889_v8, %v726_v46 }
 0x13c   : > { %v1200_v7 = vsel %vm1134_vm13, %v5720_v34, %v1184_v58  ;;  %v1125_v24 = vmul.f32 %v3970_v61, %v1124_v45  ;;  %v936_v52 = vadd.f32 %v920_v27, %v904_v63 }
 0x13d   : > { %3703 = vmatpush.msk.msrb.mxu2 %vm1224_vm14, %v1200_v7  ;;  %v758_v34 = vsub.f32 %v5845_v3, %v742_v0  ;;  %v5917_v4 = vadd.f32 -1.0, %v808_v44  ;;  %v5979_v49 = vpop.f32.mrf.mxu3 }
 0x13e   : > { %v1126_v9 = vmul.f32 %v1125_v24, %v5839_v25  ;;  %3971 = vrsqrt.f32 %v936_v52  ;;  %3704 = vmatmul.msk.f32.vlgmr.msrb.gmra.mxu2 %vm1211_vm1, %v5794_v33  ;;  %vm1091_vm5 = vcmp.eq.f32.partialorder %v936_v52, inf  ;;  %v1094_v59 = vand.u32 2147483648, %v936_v52 }
 0x13f   : > { %v841_v42 = vmul.f32 %v4892_v10, %v758_v34  ;;  %v889_v11 = vmul.f32 %v5917_v4, %v5917_v4  ;;  %vm1093_vm6 = vcmp.eq.f32.partialorder %v936_v52, 0.0 }
 0x140   : > { %3681 = vmatmul.msk.f32.gmra.mxu1 %vm1211_vm1, %v5922_v18  ;;  %v1128_v62 = vsel %vm1127_vm9, %v5839_v25, %v1126_v9 }
 0x141   : > { %v1131_v8 = vsel %vm1129_vm4, %v1130_v32, %v1128_v62  ;;  %v3630_v36 = vadd.f32 -1.0, %v841_v42  ;;  %v905_v20 = vadd.f32 %v889_v11, %v873_v16 }
 0x142   : > { %v1153_v3 = vsel %vm1137_vm7, %v1131_v8, 1.0  ;;  %v5998_v45 = vpop.f32.mrf.mxu0  ;;  %v6002_v58 = vpop.f32.mrf.mxu2 }
 0x143   : > { %v1169_v53 = vsel %vm1136_vm10, %v5820_v41, %v1153_v3  ;;  %v921_v37 = vmul.f32 %v3630_v36, %v3630_v36 }
 0x144   : > { %v3972_v14 = vpop.eup %3971  ;;  %v1185_v25 = vsel %vm1135_vm12, %v5804_v1, %v1169_v53 }
 0x145   : > { %v1201_v10 = vsel %vm1134_vm13, %v5757_v6, %v1185_v25  ;;  %v1085_v15 = vmul.f32 %v3972_v14, %v936_v52  ;;  %v937_v41 = vadd.f32 %v921_v37, %v905_v20  ;;  %v6004_v7 = vpop.f32.mrf.mxu3 }
 0x146   : > { %3708 = vmatpush.msk.msrb.mxu3 %vm1224_vm14, %v1201_v10  ;;  %3705 = vmatmul.msk.f32.gmra.mxu2 %vm1211_vm1, %v5830_v23 }
 0x147   : > { %v1086_v56 = vmul.f32 %v3972_v14, %v1085_v15  ;;  %3709 = vmatmul.msk.f32.vlgmr.msrb.gmra.mxu3 %vm1211_vm1, %v5794_v33  ;;  %3973 = vrsqrt.f32 %v937_v41  ;;  %vm1103_vm8 = vcmp.eq.f32.partialorder %v937_v41, inf  ;;  %v1106_v60 = vand.u32 2147483648, %v937_v41 }
 0x148   : > { %3682 = vmatmul.msk.f32.gmra.mxu1 %vm1211_vm1, %v5947_v51  ;;  %vm1105_vm11 = vcmp.eq.f32.partialorder %v937_v41, 0.0  ;;  %3975 = vtanh.f32 %v5973_v21 }
 0x149   : > { %v1087_v1 = vmul.f32 0.5, %v1086_v56  ;;  %3977 = vtanh.f32 %v5998_v45 }
 0x14a   : > { %v6010_v29 = vpop.f32.mrf.mxu0  ;;  %v6014_v24 = vpop.f32.mrf.mxu2 }
 0x14b   : > { %v1088_v6 = vsub.f32 1.5, %v1087_v1 }
 0x14d   : > { %v1089_v31 = vmul.f32 %v3972_v14, %v1088_v6  ;;  %v3974_v22 = vpop.eup %3973  ;;  %v6057_v14 = vld [vmem:[%s4767_s29] sm:$0xff] }
 0x14e   : > { %3706 = vmatmul.msk.f32.gmra.mxu2 %vm1211_vm1, %v5922_v18  ;;  %v1097_v54 = vmul.f32 %v3974_v22, %v937_v41  ;;  %v3976_v0 = vpop.eup %3975 }
 0x14f   : > { %v1090_v61 = vmul.f32 %v1089_v31, %v936_v52  ;;  %3710 = vmatmul.msk.f32.gmra.mxu3 %vm1211_vm1, %v5830_v23  ;;  %v3978_v44 = vpop.eup %3977  ;;  %v6076_v31 = vld [vmem:[%s4767_s29 + $0x8] sm:$0xff] }
 0x150   : > { %v1098_v50 = vmul.f32 %v3974_v22, %v1097_v54 }
 0x151   : > { %v1092_v47 = vsel %vm1091_vm5, %v936_v52, %v1090_v61 }
 0x152   : > { %v1095_v38 = vsel %vm1093_vm6, %v1094_v59, %v1092_v47  ;;  %v1099_v12 = vmul.f32 0.5, %v1098_v50  ;;  %v6032_v46 = vpop.f32.mrf.mxu2  ;;  %v6095_v47 = vld [vmem:[%s4767_s29 + $0x10] sm:$0xff] }
 0x153   : > { %v1150_v13 = vsel %vm1137_vm7, %v1095_v38, 1.0 }
 0x154   : > { %v1166_v39 = vsel %vm1136_vm10, %v5886_v17, %v1150_v13  ;;  %v1100_v48 = vsub.f32 1.5, %v1099_v12 }
 0x155   : > { %v1182_v5 = vsel %vm1135_vm12, %v5874_v30, %v1166_v39 }
 0x156   : > { %v1198_v2 = vsel %vm1134_vm13, %v5855_v26, %v1182_v5  ;;  %3707 = vmatmul.msk.f32.gmra.mxu2 %vm1211_vm1, %v5947_v51  ;;  %v1101_v43 = vmul.f32 %v3974_v22, %v1100_v48  ;;  %v5975_v26 = vpop.f32.mrf.mxu1 }
 0x157   : > { %3693 = vmatpush.msk.msrb.mxu0 %vm1224_vm14, %v1198_v2  ;;  %3711 = vmatmul.msk.f32.gmra.mxu3 %vm1211_vm1, %v5922_v18  ;;  %v6122_v2 = vld [vmem:[%s4767_s29 + $0x18] sm:$0xff] }
 0x158   : > { %3694 = vmatmul.msk.f32.vlgmr.msrb.gmra.mxu0 %vm1211_vm1, %v5794_v33  ;;  %v1102_v30 = vmul.f32 %v1101_v43, %v937_v41 }
 0x15a   : > { %v1104_v40 = vsel %vm1103_vm8, %v937_v41, %v1102_v30  ;;  %v6050_v11 = vpop.f32.mrf.mxu2 }
 0x15b   : > { %v1107_v17 = vsel %vm1105_vm11, %v1106_v60, %v1104_v40 }
 0x15c   : > { %v1151_v63 = vsel %vm1137_vm7, %v1107_v17, 1.0  ;;  %vm1801_vm7 = vcmask 261120  }
 0x15d   : > { %v1167_v57 = vsel %vm1136_vm10, %v3630_v36, %v1151_v63  ;;  %vm3400_vm10 = vcmask 1040384  }
 0x15e   : > { %v1183_v19 = vsel %vm1135_vm12, %v5917_v4, %v1167_v57  ;;  %v6000_v27 = vpop.f32.mrf.mxu1  ;;  %vm3402_vm12 = vcmask 1042434  }
 0x15f   : > { %3712 = vmatmul.msk.f32.gmra.mxu3 %vm1211_vm1, %v5947_v51  ;;  %v1199_v55 = vsel %vm1134_vm13, %v5902_v35, %v1183_v19  ;;  %3979 = vtanh.f32 %v6000_v27  ;;  %vm3406_vm13 = vcmask 1044484  }
 0x160   : > { %3695 = vmatmul.msk.f32.gmra.mxu0 %vm1211_vm1, %v5830_v23  ;;  %3698 = vmatpush.msk.msrb.mxu1 %vm1224_vm14, %v1199_v55  ;;  %3981 = vtanh.f32 %v6010_v29  ;;  %vm3404_vm14 = vcmask 1041408  }
 0x161   : > { %3699 = vmatmul.msk.f32.vlgmr.msrb.gmra.mxu1 %vm1211_vm1, %v5794_v33  ;;  %v6016_v33 = vpop.f32.mrf.mxu3 }
 0x162   : > { %v6067_v1 = vpop.f32.mrf.mxu2 }
 0x165   : > { %v3980_v9 = vpop.eup %3979 }
 0x166   : > { %v6012_v35 = vpop.f32.mrf.mxu1  ;;  %v3982_v34 = vpop.eup %3981 }
 0x167   : > { %3983 = vtanh.f32 %v6012_v35 }
 0x168   : > { %3696 = vmatmul.msk.f32.gmra.mxu0 %vm1211_vm1, %v5922_v18 }
 0x169   : > { %3700 = vmatmul.msk.f32.gmra.mxu1 %vm1211_vm1, %v5830_v23  ;;  %v6027_v23 = vpop.f32.mrf.mxu0  ;;  %v6034_v32 = vpop.f32.mrf.mxu3 }
 0x16a   : > { %3985 = vtanh.f32 %v6027_v23  ;;  %v6086_v61 = vpop.f32.mrf.mxu2 }
 0x16d   : > { %v3984_v4 = vpop.eup %3983 }
 0x16e   : > { %v6029_v52 = vpop.f32.mrf.mxu1 }
 0x16f   : > { %3987 = vtanh.f32 %v6029_v52 }
 0x170   : > { %3697 = vmatmul.msk.f32.gmra.mxu0 %vm1211_vm1, %v5947_v51  ;;  %3989 = vtanh.f32 %v6032_v46  ;;  %v3986_v16 = vpop.eup %3985 }
 0x171   : > { %3701 = vmatmul.msk.f32.gmra.mxu1 %vm1211_vm1, %v5922_v18  ;;  %3991 = vtanh.f32 %v6034_v32  ;;  %v6045_v62 = vpop.f32.mrf.mxu0  ;;  %1826 = vmatpush.msra.mxu0 %v3986_v16  ;;  %v6052_v3 = vpop.f32.mrf.mxu3 }
 0x172   : > { %3993 = vtanh.f32 %v6014_v24  ;;  %v6110_v13 = vpop.f32.mrf.mxu2 }
 0x173   : > { %3995 = vtanh.f32 %v6016_v33  ;;  %1827 = vmatpush.msra.mxu0 %v3982_v34 }
 0x174   : > { %3997 = vtanh.f32 %v6002_v58 }
 0x175   : > { %v3988_v18 = vpop.eup %3987  ;;  %3999 = vtanh.f32 %v5975_v26  ;;  %1828 = vmatpush.msra.mxu0 %v3978_v44 }
 0x176   : > { %v3990_v42 = vpop.eup %3989  ;;  %4001 = vtanh.f32 %v6004_v7  ;;  %1855 = vmatpush.msra.mxu1 %v3988_v18 }
 0x177   : > { %v3992_v53 = vpop.eup %3991  ;;  %4003 = vtanh.f32 %v5977_v28  ;;  %1884 = vmatpush.msra.mxu2 %v3990_v42  ;;  %1829 = vmatpush.msra.mxu0 %v3976_v0 }
 0x178   : > { %v3994_v36 = vpop.eup %3993  ;;  %4005 = vtanh.f32 %v5979_v49  ;;  %1856 = vmatpush.msra.mxu1 %v3984_v4  ;;  %1913 = vmatpush.msra.mxu3 %v3992_v53 }
 0x179   : > { %3702 = vmatmul.msk.f32.gmra.mxu1 %vm1211_vm1, %v5947_v51  ;;  %v3996_v20 = vpop.eup %3995  ;;  %1885 = vmatpush.msra.mxu2 %v3994_v36  ;;  %v6063_v56 = vpop.f32.mrf.mxu0  ;;  %vm3408_vm1 = vcmask 1046534  }
 0x17a   : > { %v6047_v8 = vpop.f32.mrf.mxu1  ;;  %v3998_v25 = vpop.eup %3997  ;;  %1857 = vmatpush.msra.mxu1 %v3980_v9  ;;  %1914 = vmatpush.msra.mxu3 %v3996_v20  ;;  %4007 = vtanh.f32 %v6063_v56 }
 0x17b   : > { %v4000_v10 = vpop.eup %3999  ;;  %1886 = vmatpush.msra.mxu2 %v3998_v25  ;;  %3713 = vmatmul.msk.f32.vlgmr.msra.gmra.mxu0 %vm1801_vm7, %v6057_v14  ;;  %v6069_v6 = vpop.f32.mrf.mxu3 }
 0x17c   : > { %v4002_v15 = vpop.eup %4001  ;;  %1858 = vmatpush.msra.mxu1 %v4000_v10 }
 0x17d   : > { %v4004_v37 = vpop.eup %4003  ;;  %1915 = vmatpush.msra.mxu3 %v4002_v15 }
 0x17e   : > { %v4006_v51 = vpop.eup %4005  ;;  %1887 = vmatpush.msra.mxu2 %v4004_v37 }
 0x17f   : > { %1916 = vmatpush.msra.mxu3 %v4006_v51  ;;  %3721 = vmatmul.msk.f32.vlgmr.msra.gmra.mxu2 %vm1801_vm7, %v6057_v14 }
 0x180   : > { %3725 = vmatmul.msk.f32.vlgmr.msra.gmra.mxu3 %vm1801_vm7, %v6057_v14  ;;  %v4008_v12 = vpop.eup %4007 }
 0x181   : > { %3717 = vmatmul.msk.f32.vlgmr.msra.gmra.mxu1 %vm1801_vm7, %v6057_v14  ;;  %v6082_v59 = vpop.f32.mrf.mxu0 }
 0x182   : > { %v6065_v41 = vpop.f32.mrf.mxu1 }
 0x183   : > { %3714 = vmatmul.msk.f32.gmra.mxu0 %vm1801_vm7, %v6076_v31  ;;  %v6088_v54 = vpop.f32.mrf.mxu3  ;;  %4009 = vtanh.f32 %v6065_v41 }
 0x184   : > { %4011 = vtanh.f32 %v6082_v59 }
 0x187   : > { %3722 = vmatmul.msk.f32.gmra.mxu2 %vm1801_vm7, %v6076_v31 }
 0x188   : > { %3726 = vmatmul.msk.f32.gmra.mxu3 %vm1801_vm7, %v6076_v31 }
 0x189   : > { %3718 = vmatmul.msk.f32.gmra.mxu1 %vm1801_vm7, %v6076_v31  ;;  %v6105_v38 = vpop.f32.mrf.mxu0  ;;  %v4010_v5 = vpop.eup %4009 }
 0x18a   : > { %v6084_v22 = vpop.f32.mrf.mxu1  ;;  %v4012_v48 = vpop.eup %4011 }
 0x18b   : > { %3715 = vmatmul.msk.f32.gmra.mxu0 %vm1801_vm7, %v6095_v47  ;;  %4013 = vtanh.f32 %v6084_v22  ;;  %v6112_v39 = vpop.f32.mrf.mxu3  ;;  %v6132_v17 = vpop.f32.mrf.mxu2 }
 0x18c   : > { %4015 = vtanh.f32 %v6105_v38  ;;  %6817 = vst [vmem:[#allocation17_spill] sm:$0xff] %v6132_v17 }
 0x18f   : > { %3723 = vmatmul.msk.f32.gmra.mxu2 %vm1801_vm7, %v6095_v47 }
 0x190   : > { %3727 = vmatmul.msk.f32.gmra.mxu3 %vm1801_vm7, %v6095_v47 }
 0x191   : > { %3719 = vmatmul.msk.f32.gmra.mxu1 %vm1801_vm7, %v6095_v47  ;;  %v4014_v43 = vpop.eup %4013 }
 0x192   : > { %v6107_v50 = vpop.f32.mrf.mxu1  ;;  %v4016_v60 = vpop.eup %4015 }
 0x193   : > { %4017 = vtanh.f32 %v6107_v50  ;;  %3716 = vmatmul.msk.f32.gmra.mxu0 %vm1801_vm7, %v6122_v2  ;;  %v6150_v16 = vpop.f32.mrf.mxu2 }
 0x194   : > { %4019 = vtanh.f32 %v6110_v13  ;;  %1942 = vmatpush.msrb.mxu0 %v4016_v60  ;;  %6820 = vst [vmem:[#allocation20_spill] sm:$0xff] %v6150_v16 }
 0x195   : > { %4021 = vtanh.f32 %v6112_v39  ;;  %v6134_v63 = vpop.f32.mrf.mxu3 }
 0x196   : > { %4023 = vtanh.f32 %v6045_v62  ;;  %6818 = vst [vmem:[#allocation18_spill] sm:$0xff] %v6134_v63  ;;  %1943 = vmatpush.msrb.mxu0 %v4012_v48 }
 0x197   : > { %4025 = vtanh.f32 %v6086_v61  ;;  %3724 = vmatmul.msk.f32.gmra.mxu2 %vm1801_vm7, %v6122_v2 }
 0x198   : > { %4027 = vtanh.f32 %v6047_v8  ;;  %3728 = vmatmul.msk.f32.gmra.mxu3 %vm1801_vm7, %v6122_v2  ;;  %1944 = vmatpush.msrb.mxu0 %v4008_v12 }
 0x199   : > { %v4018_v30 = vpop.eup %4017  ;;  %3720 = vmatmul.msk.f32.gmra.mxu1 %vm1801_vm7, %v6122_v2  ;;  %4029 = vtanh.f32 %v6088_v54 }
 0x19a   : > { %v4020_v40 = vpop.eup %4019  ;;  %1971 = vmatpush.msrb.mxu1 %v4018_v30  ;;  %4031 = vtanh.f32 %v6067_v1 }
 0x19b   : > { %v4022_v57 = vpop.eup %4021  ;;  %4033 = vtanh.f32 %v6069_v6  ;;  %2000 = vmatpush.msrb.mxu2 %v4020_v40  ;;  %v6164_v20 = vpop.f32.mrf.mxu2 }
 0x19c   : > { %1972 = vmatpush.msrb.mxu1 %v4014_v43  ;;  %v4024_v19 = vpop.eup %4023  ;;  %4035 = vtanh.f32 %v6050_v11  ;;  %2029 = vmatpush.msrb.mxu3 %v4022_v57  ;;  %6822 = vst [vmem:[#allocation22_spill] sm:$0xff] %v6164_v20 }
 0x19d   : > { %v4026_v0 = vpop.eup %4025  ;;  %4037 = vtanh.f32 %v6052_v3  ;;  %1945 = vmatpush.msrb.mxu0 %v4024_v19  ;;  %v6152_v18 = vpop.f32.mrf.mxu3 }
 0x19e   : > { %1973 = vmatpush.msrb.mxu1 %v4010_v5  ;;  %v4028_v44 = vpop.eup %4027  ;;  %2001 = vmatpush.msrb.mxu2 %v4026_v0  ;;  %6821 = vst [vmem:[#allocation21_spill] sm:$0xff] %v6152_v18  ;;  %4039 = vtanh.f32 %v6150_v16 }
 0x19f   : > { %v6143_v55 = vpop.f32.mrf.mxu0  ;;  %v4030_v9 = vpop.eup %4029  ;;  %3729 = vmatmul.msk.f32.vlgmr.msrb.gmra.mxu0 %vm1801_vm7, %v6057_v14  ;;  %4041 = vtanh.f32 %v6164_v20 }
 0x1a0   : > { %6819 = vst [vmem:[#allocation19_spill] sm:$0xff] %v6143_v55  ;;  %1974 = vmatpush.msrb.mxu1 %v4028_v44  ;;  %v4032_v34 = vpop.eup %4031  ;;  %2030 = vmatpush.msrb.mxu3 %v4030_v9 }
 0x1a1   : > { %3733 = vmatmul.msk.f32.vlgmr.msrb.gmra.mxu1 %vm1801_vm7, %v6057_v14  ;;  %v4034_v4 = vpop.eup %4033  ;;  %2002 = vmatpush.msrb.mxu2 %v4032_v34 }
 0x1a2   : > { %v4036_v42 = vpop.eup %4035  ;;  %2031 = vmatpush.msrb.mxu3 %v4034_v4 }
 0x1a3   : > { %v4038_v53 = vpop.eup %4037  ;;  %2003 = vmatpush.msrb.mxu2 %v4036_v42  ;;  %v6182_v37 = vpop.f32.mrf.mxu2 }
 0x1a4   : > { %2032 = vmatpush.msrb.mxu3 %v4038_v53  ;;  %3737 = vmatmul.msk.f32.vlgmr.msrb.gmra.mxu2 %vm1801_vm7, %v6057_v14  ;;  %6825 = vst [vmem:[#allocation25_spill] sm:$0xff] %v6182_v37  ;;  %4043 = vtanh.f32 %v6182_v37  ;;  %v4040_v48 = vpop.eup %4039 }
 0x1a5   : > { %3741 = vmatmul.msk.f32.vlgmr.msrb.gmra.mxu3 %vm1801_vm7, %v6057_v14  ;;  %v6166_v25 = vpop.f32.mrf.mxu3  ;;  %v4042_v43 = vpop.eup %4041 }
 0x1a6   : > { %6823 = vst [vmem:[#allocation23_spill] sm:$0xff] %v6166_v25 }
 0x1a7   : > { %v6154_v36 = vpop.f32.mrf.mxu0  ;;  %3730 = vmatmul.msk.f32.gmra.mxu0 %vm1801_vm7, %v6076_v31 }
 0x1a9   : > { %3734 = vmatmul.msk.f32.gmra.mxu1 %vm1801_vm7, %v6076_v31 }
 0x1aa   : > { %v4044_v60 = vpop.eup %4043 }
 0x1ab   : > { %2116 = vmatpush.msra.mxu2 %v4044_v60 }
 0x1ac   : > { %3738 = vmatmul.msk.f32.gmra.mxu2 %vm1801_vm7, %v6076_v31 }
 0x1ad   : > { %v6168_v10 = vpop.f32.mrf.mxu1  ;;  %3742 = vmatmul.msk.f32.gmra.mxu3 %vm1801_vm7, %v6076_v31  ;;  %v6184_v51 = vpop.f32.mrf.mxu3  ;;  %2117 = vmatpush.msra.mxu2 %v4042_v43 }
 0x1ae   : > { %6824 = vst [vmem:[#allocation24_spill] sm:$0xff] %v6168_v10 }
 0x1af   : > { %v6170_v15 = vpop.f32.mrf.mxu0  ;;  %3731 = vmatmul.msk.f32.gmra.mxu0 %vm1801_vm7, %v6095_v47  ;;  %6826 = vst [vmem:[#allocation26_spill] sm:$0xff] %v6184_v51  ;;  %2118 = vmatpush.msra.mxu2 %v4040_v48 }
 0x1b0   : > { %4045 = vtanh.f32 %v6170_v15 }
 0x1b1   : > { %3735 = vmatmul.msk.f32.gmra.mxu1 %vm1801_vm7, %v6095_v47  ;;  %4047 = vtanh.f32 %v6184_v51 }
 0x1b4   : > { %3739 = vmatmul.msk.f32.gmra.mxu2 %vm1801_vm7, %v6095_v47 }
 0x1b5   : > { %v6186_v12 = vpop.f32.mrf.mxu1  ;;  %3743 = vmatmul.msk.f32.gmra.mxu3 %vm1801_vm7, %v6095_v47 }
 0x1b6   : > { %6827 = vst [vmem:[#allocation27_spill] sm:$0xff] %v6186_v12  ;;  %v4046_v30 = vpop.eup %4045 }
 0x1b7   : > { %v6190_v5 = vpop.f32.mrf.mxu0  ;;  %3732 = vmatmul.msk.f32.gmra.mxu0 %vm1801_vm7, %v6122_v2  ;;  %v4048_v40 = vpop.eup %4047 }
 0x1b8   : > { %4049 = vtanh.f32 %v6190_v5  ;;  %2145 = vmatpush.msra.mxu3 %v4048_v40 }
 0x1b9   : > { %4051 = vtanh.f32 %v6154_v36  ;;  %3736 = vmatmul.msk.f32.gmra.mxu1 %vm1801_vm7, %v6122_v2 }
 0x1ba   : > { %4053 = vtanh.f32 %v6166_v25 }
 0x1bb   : > { %4055 = vtanh.f32 %v6132_v17 }
 0x1bc   : > { %4057 = vtanh.f32 %v6152_v18  ;;  %3740 = vmatmul.msk.f32.gmra.mxu2 %vm1801_vm7, %v6122_v2 }
 0x1bd   : > { %4059 = vtanh.f32 %v6134_v63  ;;  %v6207_v57 = vpop.f32.mrf.mxu1  ;;  %3744 = vmatmul.msk.f32.gmra.mxu3 %vm1801_vm7, %v6122_v2 }
 0x1be   : > { %6828 = vst [vmem:[#allocation28_spill] sm:$0xff] %v6207_v57  ;;  %v4050_v19 = vpop.eup %4049  ;;  %4061 = vtanh.f32 %v6143_v55 }
 0x1bf   : > { %v4052_v0 = vpop.eup %4051  ;;  %2058 = vmatpush.msra.mxu0 %v4050_v19  ;;  %4063 = vtanh.f32 %v6207_v57 }
 0x1c0   : > { %v4054_v44 = vpop.eup %4053 }
 0x1c1   : > { %v4056_v9 = vpop.eup %4055  ;;  %2059 = vmatpush.msra.mxu0 %v4046_v30  ;;  %v6214_v34 = vpop.f32.mrf.mxu2  ;;  %2146 = vmatpush.msra.mxu3 %v4054_v44 }
 0x1c2   : > { %6829 = vst [vmem:[#allocation29_spill] sm:$0xff] %v6214_v34  ;;  %v4058_v4 = vpop.eup %4057  ;;  %2119 = vmatpush.msra.mxu2 %v4056_v9 }
 0x1c3   : > { %v4060_v42 = vpop.eup %4059  ;;  %2060 = vmatpush.msra.mxu0 %v4052_v0  ;;  %2147 = vmatpush.msra.mxu3 %v4058_v4 }
 0x1c4   : > { %v4062_v53 = vpop.eup %4061  ;;  %3753 = vmatmul.msk.f32.vlgmr.msra.gmra.mxu2 %vm1801_vm7, %v6057_v14 }
 0x1c5   : > { %v6217_v43 = vpop.f32.mrf.mxu1  ;;  %2061 = vmatpush.msra.mxu0 %v4062_v53  ;;  %2148 = vmatpush.msra.mxu3 %v4060_v42  ;;  %v4064_v30 = vpop.eup %4063 }
 0x1c6   : > { %6830 = vst [vmem:[#allocation30_spill] sm:$0xff] %v6217_v43  ;;  %4065 = vtanh.f32 %v6217_v43  ;;  %3745 = vmatmul.msk.f32.vlgmr.msra.gmra.mxu0 %vm1801_vm7, %v6057_v14  ;;  %3757 = vmatmul.msk.f32.vlgmr.msra.gmra.mxu3 %vm1801_vm7, %v6057_v14 }
 0x1c7   : > { %4067 = vtanh.f32 %v6186_v12 }
 0x1c8   : > { %4069 = vtanh.f32 %v6168_v10 }
 0x1c9   : > { %v6227_v48 = vpop.f32.mrf.mxu2 }
 0x1ca   : > { %6831 = vst [vmem:[#allocation31_spill] sm:$0xff] %v6227_v48  ;;  %v6229_v60 = vpop.f32.mrf.mxu3 }
 0x1cb   : > { %6832 = vst [vmem:[#allocation32_spill] sm:$0xff] %v6229_v60 }
 0x1cc   : > { %v4066_v40 = vpop.eup %4065  ;;  %3754 = vmatmul.msk.f32.gmra.mxu2 %vm1801_vm7, %v6076_v31 }
 0x1cd   : > { %2087 = vmatpush.msra.mxu1 %v4066_v40  ;;  %v4068_v19 = vpop.eup %4067 }
 0x1ce   : > { %3746 = vmatmul.msk.f32.gmra.mxu0 %vm1801_vm7, %v6076_v31  ;;  %3758 = vmatmul.msk.f32.gmra.mxu3 %vm1801_vm7, %v6076_v31  ;;  %v4070_v44 = vpop.eup %4069 }
 0x1cf   : > { %2088 = vmatpush.msra.mxu1 %v4064_v30 }
 0x1d1   : > { %2089 = vmatpush.msra.mxu1 %v4068_v19  ;;  %v6238_v0 = vpop.f32.mrf.mxu2 }
 0x1d2   : > { %6833 = vst [vmem:[#allocation33_spill] sm:$0xff] %v6238_v0  ;;  %v6240_v9 = vpop.f32.mrf.mxu3 }
 0x1d3   : > { %6834 = vst [vmem:[#allocation34_spill] sm:$0xff] %v6240_v9  ;;  %2090 = vmatpush.msra.mxu1 %v4070_v44 }
 0x1d4   : > { %3749 = vmatmul.msk.f32.vlgmr.msra.gmra.mxu1 %vm1801_vm7, %v6057_v14  ;;  %3755 = vmatmul.msk.f32.gmra.mxu2 %vm1801_vm7, %v6095_v47 }
 0x1d5   : > { %v6244_v4 = vpop.f32.mrf.mxu0 }
 0x1d6   : > { %6835 = vst [vmem:[#allocation35_spill] sm:$0xff] %v6244_v4  ;;  %3747 = vmatmul.msk.f32.gmra.mxu0 %vm1801_vm7, %v6095_v47  ;;  %3759 = vmatmul.msk.f32.gmra.mxu3 %vm1801_vm7, %v6095_v47 }
 0x1d9   : > { %v6252_v42 = vpop.f32.mrf.mxu2 }
 0x1da   : > { %6836 = vst [vmem:[#allocation36_spill] sm:$0xff] %v6252_v42  ;;  %v6254_v53 = vpop.f32.mrf.mxu3  ;;  %4071 = vtanh.f32 %v6252_v42 }
 0x1db   : > { %6837 = vst [vmem:[#allocation37_spill] sm:$0xff] %v6254_v53  ;;  %4073 = vtanh.f32 %v6238_v0 }
 0x1dc   : > { %3750 = vmatmul.msk.f32.gmra.mxu1 %vm1801_vm7, %v6076_v31  ;;  %4075 = vtanh.f32 %v6227_v48  ;;  %3756 = vmatmul.msk.f32.gmra.mxu2 %vm1801_vm7, %v6122_v2 }
 0x1dd   : > { %v6260_v30 = vpop.f32.mrf.mxu0  ;;  %4077 = vtanh.f32 %v6214_v34 }
 0x1de   : > { %6838 = vst [vmem:[#allocation38_spill] sm:$0xff] %v6260_v30  ;;  %3748 = vmatmul.msk.f32.gmra.mxu0 %vm1801_vm7, %v6122_v2  ;;  %v6267_v19 = vpop.f32.mrf.mxu1  ;;  %3760 = vmatmul.msk.f32.gmra.mxu3 %vm1801_vm7, %v6122_v2 }
 0x1df   : > { %6839 = vst [vmem:[#allocation39_spill] sm:$0xff] %v6267_v19 }
 0x1e0   : > { %v4072_v40 = vpop.eup %4071 }
 0x1e1   : > { %2232 = vmatpush.msrb.mxu2 %v4072_v40  ;;  %v4074_v44 = vpop.eup %4073 }
 0x1e2   : > { %v6272_v42 = vpop.f32.mrf.mxu3  ;;  %v4076_v48 = vpop.eup %4075 }
 0x1e3   : > { %6840 = vst [vmem:[#allocation40_spill] sm:$0xff] %v6272_v42  ;;  %4079 = vtanh.f32 %v6272_v42  ;;  %2233 = vmatpush.msrb.mxu2 %v4074_v44  ;;  %v4078_v34 = vpop.eup %4077 }
 0x1e4   : > { %3751 = vmatmul.msk.f32.gmra.mxu1 %vm1801_vm7, %v6095_v47  ;;  %4081 = vtanh.f32 %v6254_v53 }
 0x1e5   : > { %v6277_v0 = vpop.f32.mrf.mxu0  ;;  %2234 = vmatpush.msrb.mxu2 %v4076_v48  ;;  %4083 = vtanh.f32 %v6240_v9 }
 0x1e6   : > { %6841 = vst [vmem:[#allocation41_spill] sm:$0xff] %v6277_v0  ;;  %v6281_v40 = vpop.f32.mrf.mxu1  ;;  %4085 = vtanh.f32 %v6229_v60 }
 0x1e7   : > { %2235 = vmatpush.msrb.mxu2 %v4078_v34  ;;  %6842 = vst [vmem:[#allocation42_spill] sm:$0xff] %v6281_v40  ;;  %4087 = vtanh.f32 %v6277_v0 }
 0x1e8   : > { %3769 = vmatmul.msk.f32.vlgmr.msrb.gmra.mxu2 %vm1801_vm7, %v6057_v14 }
 0x1e9   : > { %v4080_v42 = vpop.eup %4079 }
 0x1ea   : > { %2261 = vmatpush.msrb.mxu3 %v4080_v42  ;;  %v4082_v44 = vpop.eup %4081 }
 0x1eb   : > { %v4084_v53 = vpop.eup %4083 }
 0x1ec   : > { %3752 = vmatmul.msk.f32.gmra.mxu1 %vm1801_vm7, %v6122_v2  ;;  %2262 = vmatpush.msrb.mxu3 %v4082_v44  ;;  %v4086_v34 = vpop.eup %4085 }
 0x1ed   : > { %v6289_v48 = vpop.f32.mrf.mxu0  ;;  %v4088_v42 = vpop.eup %4087 }
 0x1ee   : > { %6843 = vst [vmem:[#allocation43_spill] sm:$0xff] %v6289_v48  ;;  %4089 = vtanh.f32 %v6289_v48  ;;  %2263 = vmatpush.msrb.mxu3 %v4084_v53  ;;  %v6293_v9 = vpop.f32.mrf.mxu1 }
 0x1ef   : > { %4091 = vtanh.f32 %v6260_v30  ;;  %6844 = vst [vmem:[#allocation44_spill] sm:$0xff] %v6293_v9 }
 0x1f0   : > { %2264 = vmatpush.msrb.mxu3 %v4086_v34  ;;  %3770 = vmatmul.msk.f32.gmra.mxu2 %vm1801_vm7, %v6076_v31  ;;  %4093 = vtanh.f32 %v6244_v4 }
 0x1f1   : > { %3773 = vmatmul.msk.f32.vlgmr.msrb.gmra.mxu3 %vm1801_vm7, %v6057_v14  ;;  %4095 = vtanh.f32 %v6293_v9 }
 0x1f4   : > { %v4090_v44 = vpop.eup %4089 }
 0x1f5   : > { %2174 = vmatpush.msrb.mxu0 %v4090_v44  ;;  %v4092_v0 = vpop.eup %4091 }
 0x1f6   : > { %v6301_v53 = vpop.f32.mrf.mxu1  ;;  %v4094_v34 = vpop.eup %4093 }
 0x1f7   : > { %2175 = vmatpush.msrb.mxu0 %v4088_v42  ;;  %6845 = vst [vmem:[#allocation45_spill] sm:$0xff] %v6301_v53  ;;  %4097 = vtanh.f32 %v6301_v53  ;;  %v4096_v42 = vpop.eup %4095 }
 0x1f8   : > { %3771 = vmatmul.msk.f32.gmra.mxu2 %vm1801_vm7, %v6095_v47  ;;  %4099 = vtanh.f32 %v6281_v40  ;;  %v1831_v9 = vpop.f32.mrf.mxu0 }
 0x1f9   : > { %2176 = vmatpush.msrb.mxu0 %v4092_v0  ;;  %3774 = vmatmul.msk.f32.gmra.mxu3 %vm1801_vm7, %v6076_v31  ;;  %4101 = vtanh.f32 %v6267_v19  ;;  %v2278_v37 = vadd.f32 %v1831_v9, %v5973_v21 }
 0x1fb   : > { %2177 = vmatpush.msrb.mxu0 %v4094_v34 }
 0x1fc   : > { %3761 = vmatmul.msk.f32.vlgmr.msrb.gmra.mxu0 %vm1801_vm7, %v6057_v14 }
 0x1fd   : > { %v4098_v44 = vpop.eup %4097 }
 0x1fe   : > { %2203 = vmatpush.msrb.mxu1 %v4098_v44  ;;  %v1860_v4 = vpop.f32.mrf.mxu1  ;;  %v4100_v0 = vpop.eup %4099 }
 0x1ff   : > { %v4102_v34 = vpop.eup %4101 }
 0x200   : > { %3772 = vmatmul.msk.f32.gmra.mxu2 %vm1801_vm7, %v6122_v2  ;;  %2204 = vmatpush.msrb.mxu1 %v4096_v42  ;;  %v1834_v19 = vpop.f32.mrf.mxu0 }
 0x201   : > { %3775 = vmatmul.msk.f32.gmra.mxu3 %vm1801_vm7, %v6095_v47  ;;  %v2294_v25 = vadd.f32 %v1834_v19, %v5998_v45 }
 0x202   : > { %2205 = vmatpush.msrb.mxu1 %v4100_v0  ;;  %v1889_v40 = vpop.f32.mrf.mxu2 }
 0x203   : > { %v1918_v53 = vpop.f32.mrf.mxu3 }
 0x204   : > { %3762 = vmatmul.msk.f32.gmra.mxu0 %vm1801_vm7, %v6076_v31  ;;  %2206 = vmatpush.msrb.mxu1 %v4102_v34 }
 0x205   : > { %3765 = vmatmul.msk.f32.vlgmr.msrb.gmra.mxu1 %vm1801_vm7, %v6057_v14 }
 0x206   : > { %v1863_v44 = vpop.f32.mrf.mxu1 }
 0x207   : > { %v2295_v51 = vadd.f32 %v1863_v44, %v6000_v27 }
 0x208   : > { %v1837_v42 = vpop.f32.mrf.mxu0 }
 0x209   : > { %3776 = vmatmul.msk.f32.gmra.mxu3 %vm1801_vm7, %v6122_v2  ;;  %v2310_v60 = vadd.f32 %v1837_v42, %v6010_v29  ;;  %v2279_v42 = vadd.f32 %v1860_v4, %v5975_v26 }
 0x20a   : > { %v1892_v30 = vpop.f32.mrf.mxu2 }
 0x20b   : > { %v1921_v34 = vpop.f32.mrf.mxu3 }
 0x20c   : > { %3763 = vmatmul.msk.f32.gmra.mxu0 %vm1801_vm7, %v6095_v47 }
 0x20d   : > { %3766 = vmatmul.msk.f32.gmra.mxu1 %vm1801_vm7, %v6076_v31 }
 0x20e   : > { %v1866_v0 = vpop.f32.mrf.mxu1 }
 0x20f   : > { %v2311_v18 = vadd.f32 %v1866_v0, %v6012_v35  ;;  %v2296_v0 = vadd.f32 %v1892_v30, %v6002_v58 }
 0x210   : > { %v1840_v48 = vpop.f32.mrf.mxu0 }
 0x211   : > { %v2326_v10 = vadd.f32 %v1840_v48, %v6027_v23 }
 0x212   : > { %v1895_v12 = vpop.f32.mrf.mxu2 }
 0x213   : > { %v1924_v57 = vpop.f32.mrf.mxu3  ;;  %4103 = vtanh.f32 %v2326_v10 }
 0x214   : > { %3764 = vmatmul.msk.f32.gmra.mxu0 %vm1801_vm7, %v6122_v2  ;;  %v2313_v4 = vadd.f32 %v1924_v57, %v6016_v33 }
 0x215   : > { %3767 = vmatmul.msk.f32.gmra.mxu1 %vm1801_vm7, %v6095_v47 }
 0x216   : > { %v1869_v63 = vpop.f32.mrf.mxu1 }
 0x217   : > { %v2327_v43 = vadd.f32 %v1869_v63, %v6029_v52 }
 0x219   : > { %4105 = vtanh.f32 %v2327_v43  ;;  %v4104_v63 = vpop.eup %4103 }
 0x21a   : > { %4107 = vtanh.f32 %v2310_v60  ;;  %v1898_v10 = vpop.f32.mrf.mxu2  ;;  %2418 = vmatpush.msra.mxu0 %v4104_v63  ;;  %v2297_v63 = vadd.f32 %v1921_v34, %v6004_v7 }
 0x21b   : > { %4109 = vtanh.f32 %v2311_v18  ;;  %v2328_v43 = vadd.f32 %v1898_v10, %v6032_v46  ;;  %v1927_v60 = vpop.f32.mrf.mxu3  ;;  %v2312_v18 = vadd.f32 %v1895_v12, %v6014_v24  ;;  %v2280_v12 = vadd.f32 %v1889_v40, %v5977_v28 }
 0x21c   : > { %4111 = vtanh.f32 %v2294_v25  ;;  %v6340_v48 = vpop.f32.mrf.mxu0  ;;  %v2329_v25 = vadd.f32 %v1927_v60, %v6034_v32  ;;  %v2281_v60 = vadd.f32 %v1918_v53, %v5979_v49 }
 0x21d   : > { %3768 = vmatmul.msk.f32.gmra.mxu1 %vm1801_vm7, %v6122_v2  ;;  %4113 = vtanh.f32 %v2295_v51 }
 0x21e   : > { %4115 = vtanh.f32 %v2278_v37  ;;  %v6342_v19 = vpop.f32.mrf.mxu1 }
 0x21f   : > { %v4106_v44 = vpop.eup %4105  ;;  %4117 = vtanh.f32 %v2279_v42 }
 0x220   : > { %v4108_v9 = vpop.eup %4107  ;;  %2447 = vmatpush.msra.mxu1 %v4106_v44  ;;  %4119 = vtanh.f32 %v2328_v43 }
 0x221   : > { %v4110_v51 = vpop.eup %4109  ;;  %2419 = vmatpush.msra.mxu0 %v4108_v9  ;;  %4121 = vtanh.f32 %v2329_v25 }
 0x222   : > { %v4112_v37 = vpop.eup %4111  ;;  %2448 = vmatpush.msra.mxu1 %v4110_v51  ;;  %4123 = vtanh.f32 %v2312_v18 }
 0x223   : > { %v4114_v42 = vpop.eup %4113  ;;  %2420 = vmatpush.msra.mxu0 %v4112_v37  ;;  %4125 = vtanh.f32 %v2313_v4 }
 0x224   : > { %v4116_v10 = vpop.eup %4115  ;;  %2449 = vmatpush.msra.mxu1 %v4114_v42  ;;  %v1950_v57 = vpop.f32.mrf.mxu0  ;;  %4127 = vtanh.f32 %v2296_v0 }
 0x225   : > { %v4118_v44 = vpop.eup %4117  ;;  %2421 = vmatpush.msra.mxu0 %v4116_v10  ;;  %4129 = vtanh.f32 %v2297_v63 }
 0x226   : > { %v1979_v30 = vpop.f32.mrf.mxu1  ;;  %2450 = vmatpush.msra.mxu1 %v4118_v44  ;;  %3777 = vmatmul.msk.f32.vlgmr.msra.gmra.mxu0 %vm1801_vm7, %v6057_v14  ;;  %v4120_v34 = vpop.eup %4119  ;;  %4131 = vtanh.f32 %v2280_v12 }
 0x227   : > { %3781 = vmatmul.msk.f32.vlgmr.msra.gmra.mxu1 %vm1801_vm7, %v6057_v14  ;;  %v6356_v40 = vpop.f32.mrf.mxu2  ;;  %v4122_v43 = vpop.eup %4121  ;;  %4133 = vtanh.f32 %v2281_v60  ;;  %2476 = vmatpush.msra.mxu2 %v4120_v34 }
 0x228   : > { %v6358_v53 = vpop.f32.mrf.mxu3  ;;  %v4124_v9 = vpop.eup %4123  ;;  %2505 = vmatpush.msra.mxu3 %v4122_v43 }
 0x229   : > { %v4126_v18 = vpop.eup %4125  ;;  %2477 = vmatpush.msra.mxu2 %v4124_v9 }
 0x22a   : > { %v4128_v25 = vpop.eup %4127  ;;  %2506 = vmatpush.msra.mxu3 %v4126_v18  ;;  %v2298_v18 = vadd.f32 %v1950_v57, %v6063_v56 }
 0x22b   : > { %v4130_v51 = vpop.eup %4129  ;;  %2478 = vmatpush.msra.mxu2 %v4128_v25 }
 0x22c   : > { %v1953_v4 = vpop.f32.mrf.mxu0  ;;  %v4132_v37 = vpop.eup %4131  ;;  %2507 = vmatpush.msra.mxu3 %v4130_v51  ;;  %v2299_v51 = vadd.f32 %v1979_v30, %v6065_v41 }
 0x22d   : > { %v4134_v42 = vpop.eup %4133  ;;  %2479 = vmatpush.msra.mxu2 %v4132_v37  ;;  %v2314_v44 = vadd.f32 %v1953_v4, %v6082_v59  ;;  %v2282_v37 = vadd.f32 %v6340_v48, %v6045_v62 }
 0x22e   : > { %v1982_v0 = vpop.f32.mrf.mxu1  ;;  %3778 = vmatmul.msk.f32.gmra.mxu0 %vm1801_vm7, %v6076_v31  ;;  %2508 = vmatpush.msra.mxu3 %v4134_v42 }
 0x22f   : > { %3782 = vmatmul.msk.f32.gmra.mxu1 %vm1801_vm7, %v6076_v31  ;;  %v2008_v63 = vpop.f32.mrf.mxu2  ;;  %3785 = vmatmul.msk.f32.vlgmr.msra.gmra.mxu2 %vm1801_vm7, %v6057_v14  ;;  %v2315_v43 = vadd.f32 %v1982_v0, %v6084_v22  ;;  %v2283_v0 = vadd.f32 %v6342_v19, %v6047_v8 }
 0x230   : > { %v2037_v10 = vpop.f32.mrf.mxu3  ;;  %3789 = vmatmul.msk.f32.vlgmr.msra.gmra.mxu3 %vm1801_vm7, %v6057_v14 }
 0x234   : > { %v1956_v12 = vpop.f32.mrf.mxu0 }
 0x235   : > { %v2330_v60 = vadd.f32 %v1956_v12, %v6105_v38 }
 0x236   : > { %v1985_v34 = vpop.f32.mrf.mxu1  ;;  %3779 = vmatmul.msk.f32.gmra.mxu0 %vm1801_vm7, %v6095_v47 }
 0x237   : > { %v2331_v9 = vadd.f32 %v1985_v34, %v6107_v50  ;;  %3783 = vmatmul.msk.f32.gmra.mxu1 %vm1801_vm7, %v6095_v47  ;;  %4135 = vtanh.f32 %v2330_v60  ;;  %v2011_v25 = vpop.f32.mrf.mxu2  ;;  %3786 = vmatmul.msk.f32.gmra.mxu2 %vm1801_vm7, %v6076_v31 }
 0x238   : > { %v2040_v4 = vpop.f32.mrf.mxu3  ;;  %3790 = vmatmul.msk.f32.gmra.mxu3 %vm1801_vm7, %v6076_v31  ;;  %v2316_v48 = vadd.f32 %v2011_v25, %v6086_v61 }
 0x239   : > { %4137 = vtanh.f32 %v2331_v9  ;;  %v2317_v25 = vadd.f32 %v2040_v4, %v6088_v54  ;;  %v2285_v4 = vadd.f32 %v6358_v53, %v6052_v3 }
 0x23a   : > { %4139 = vtanh.f32 %v2314_v44 }
 0x23b   : > { %4141 = vtanh.f32 %v2315_v43 }
 0x23c   : > { %4143 = vtanh.f32 %v2298_v18 }
 0x23d   : > { %4145 = vtanh.f32 %v2299_v51  ;;  %v4136_v57 = vpop.eup %4135 }
 0x23e   : > { %4147 = vtanh.f32 %v2282_v37  ;;  %3780 = vmatmul.msk.f32.gmra.mxu0 %vm1801_vm7, %v6122_v2  ;;  %v2300_v37 = vadd.f32 %v2008_v63, %v6067_v1 }
 0x23f   : > { %v4138_v30 = vpop.eup %4137  ;;  %4149 = vtanh.f32 %v2283_v0  ;;  %3784 = vmatmul.msk.f32.gmra.mxu1 %vm1801_vm7, %v6122_v2  ;;  %2534 = vmatpush.msrb.mxu0 %v4136_v57  ;;  %v2014_v12 = vpop.f32.mrf.mxu2  ;;  %v2301_v57 = vadd.f32 %v2037_v10, %v6069_v6 }
 0x240   : > { %v4140_v42 = vpop.eup %4139  ;;  %2563 = vmatpush.msrb.mxu1 %v4138_v30  ;;  %3787 = vmatmul.msk.f32.gmra.mxu2 %vm1801_vm7, %v6095_v47  ;;  %v2332_v60 = vadd.f32 %v2014_v12, %v6110_v13  ;;  %v2043_v34 = vpop.f32.mrf.mxu3  ;;  %v2284_v30 = vadd.f32 %v6356_v40, %v6050_v11 }
 0x241   : > { %v4142_v19 = vpop.eup %4141  ;;  %2535 = vmatpush.msrb.mxu0 %v4140_v42  ;;  %3791 = vmatmul.msk.f32.gmra.mxu3 %vm1801_vm7, %v6095_v47  ;;  %v2333_v9 = vadd.f32 %v2043_v34, %v6112_v39 }
 0x242   : > { %v4144_v43 = vpop.eup %4143  ;;  %2564 = vmatpush.msrb.mxu1 %v4142_v19  ;;  %4151 = vtanh.f32 %v2332_v60 }
 0x243   : > { %v6393_v44 = vpop.f32.mrf.mxu0  ;;  %v4146_v18 = vpop.eup %4145  ;;  %2536 = vmatpush.msrb.mxu0 %v4144_v43  ;;  %4153 = vtanh.f32 %v2316_v48 }
 0x244   : > { %v4148_v51 = vpop.eup %4147  ;;  %2565 = vmatpush.msrb.mxu1 %v4146_v18  ;;  %4155 = vtanh.f32 %v2333_v9 }
 0x245   : > { %v4150_v0 = vpop.eup %4149  ;;  %2537 = vmatpush.msrb.mxu0 %v4148_v51  ;;  %4157 = vtanh.f32 %v2317_v25 }
 0x246   : > { %2566 = vmatpush.msrb.mxu1 %v4150_v0  ;;  %3793 = vmatmul.msk.f32.vlgmr.msrb.gmra.mxu0 %vm1801_vm7, %v6057_v14  ;;  %4159 = vtanh.f32 %v2300_v37 }
 0x247   : > { %3797 = vmatmul.msk.f32.vlgmr.msrb.gmra.mxu1 %vm1801_vm7, %v6057_v14  ;;  %v2121_v63 = vpop.f32.mrf.mxu2  ;;  %4161 = vtanh.f32 %v2301_v57 }
 0x248   : > { %3788 = vmatmul.msk.f32.gmra.mxu2 %vm1801_vm7, %v6122_v2  ;;  %v4152_v10 = vpop.eup %4151  ;;  %4163 = vtanh.f32 %v2284_v30 }
 0x249   : > { %v6412_v40 = vpop.f32.mrf.mxu3  ;;  %3792 = vmatmul.msk.f32.gmra.mxu3 %vm1801_vm7, %v6122_v2  ;;  %v4154_v48 = vpop.eup %4153  ;;  %2592 = vmatpush.msrb.mxu2 %v4152_v10  ;;  %4165 = vtanh.f32 %v2285_v4 }
 0x24a   : > { %v4156_v53 = vpop.eup %4155 }
 0x24b   : > { %v2066_v42 = vpop.f32.mrf.mxu0  ;;  %2621 = vmatpush.msrb.mxu3 %v4156_v53  ;;  %2593 = vmatpush.msrb.mxu2 %v4154_v48  ;;  %v4158_v12 = vpop.eup %4157  ;;  %v2286_v53 = vadd.f32 %v6393_v44, %v6143_v55 }
 0x24c   : > { %v4160_v19 = vpop.eup %4159  ;;  %v2302_v48 = vadd.f32 %v2066_v42, %v6154_v36 }
 0x24d   : > { %2622 = vmatpush.msrb.mxu3 %v4158_v12  ;;  %v4162_v60 = vpop.eup %4161  ;;  %2594 = vmatpush.msrb.mxu2 %v4160_v19  ;;  %v2288_v19 = vadd.f32 %v2121_v63, %v6132_v17  ;;  %v6846_v63 = vld [vmem:[#allocation25_spill] sm:$0xff] }
 0x24e   : > { %3794 = vmatmul.msk.f32.gmra.mxu0 %vm1801_vm7, %v6076_v31  ;;  %v4164_v43 = vpop.eup %4163 }
 0x24f   : > { %3798 = vmatmul.msk.f32.gmra.mxu1 %vm1801_vm7, %v6076_v31  ;;  %2623 = vmatpush.msrb.mxu3 %v4162_v60  ;;  %v2124_v9 = vpop.f32.mrf.mxu2  ;;  %v4166_v18 = vpop.eup %4165 }
 0x250   : > { %2595 = vmatpush.msrb.mxu2 %v4164_v43  ;;  %v2304_v43 = vadd.f32 %v2124_v9, %v6150_v16 }
 0x251   : > { %v6418_v34 = vpop.f32.mrf.mxu1  ;;  %v2153_v51 = vpop.f32.mrf.mxu3  ;;  %2624 = vmatpush.msrb.mxu3 %v4166_v18  ;;  %3801 = vmatmul.msk.f32.vlgmr.msrb.gmra.mxu2 %vm1801_vm7, %v6057_v14 }
 0x252   : > { %3805 = vmatmul.msk.f32.vlgmr.msrb.gmra.mxu3 %vm1801_vm7, %v6057_v14 }
 0x253   : > { %v2069_v25 = vpop.f32.mrf.mxu0 }
 0x254   : > { %v2318_v57 = vadd.f32 %v2069_v25, %v6170_v15 }
 0x256   : > { %3795 = vmatmul.msk.f32.gmra.mxu0 %vm1801_vm7, %v6095_v47 }
 0x257   : > { %3799 = vmatmul.msk.f32.gmra.mxu1 %vm1801_vm7, %v6095_v47  ;;  %v2127_v4 = vpop.f32.mrf.mxu2 }
 0x258   : > { %v2320_v44 = vadd.f32 %v2127_v4, %v6164_v20 }
 0x259   : > { %v2095_v37 = vpop.f32.mrf.mxu1  ;;  %3802 = vmatmul.msk.f32.gmra.mxu2 %vm1801_vm7, %v6076_v31  ;;  %v2156_v10 = vpop.f32.mrf.mxu3 }
 0x25a   : > { %3806 = vmatmul.msk.f32.gmra.mxu3 %vm1801_vm7, %v6076_v31 }
 0x25b   : > { %v2072_v0 = vpop.f32.mrf.mxu0 }
 0x25c   : > { %v2334_v30 = vadd.f32 %v2072_v0, %v6190_v5 }
 0x25e   : > { %4167 = vtanh.f32 %v2334_v30  ;;  %3796 = vmatmul.msk.f32.gmra.mxu0 %vm1801_vm7, %v6122_v2  ;;  %v6847_v30 = vld [vmem:[#allocation26_spill] sm:$0xff] }
 0x25f   : > { %4169 = vtanh.f32 %v2318_v57  ;;  %3800 = vmatmul.msk.f32.gmra.mxu1 %vm1801_vm7, %v6122_v2  ;;  %v2130_v18 = vpop.f32.mrf.mxu2 }
 0x260   : > { %4171 = vtanh.f32 %v2302_v48  ;;  %v2336_v57 = vadd.f32 %v2130_v18, %v6846_v63  ;;  %v6854_v18 = vld [vmem:[#allocation24_spill] sm:$0xff]  ;;  %v6861_v63 = vld [vmem:[#allocation34_spill] sm:$0xff] }
 0x261   : > { %v2098_v12 = vpop.f32.mrf.mxu1  ;;  %4173 = vtanh.f32 %v2286_v53  ;;  %3803 = vmatmul.msk.f32.gmra.mxu2 %vm1801_vm7, %v6095_v47  ;;  %v2159_v25 = vpop.f32.mrf.mxu3  ;;  %v6848_v53 = vld [vmem:[#allocation23_spill] sm:$0xff] }
 0x262   : > { %3807 = vmatmul.msk.f32.gmra.mxu3 %vm1801_vm7, %v6095_v47  ;;  %4175 = vtanh.f32 %v2288_v19  ;;  %v2337_v9 = vadd.f32 %v2159_v25, %v6847_v30  ;;  %v2321_v17 = vadd.f32 %v2156_v10, %v6848_v53  ;;  %v6850_v47 = vld [vmem:[#allocation30_spill] sm:$0xff]  ;;  %v6851_v19 = vld [vmem:[#allocation21_spill] sm:$0xff]  ;;  %v2287_v25 = vadd.f32 %v6418_v34, %v6854_v18 }
 0x263   : > { %4177 = vtanh.f32 %v2304_v43  ;;  %v2305_v55 = vadd.f32 %v2153_v51, %v6851_v19  ;;  %v6852_v43 = vld [vmem:[#allocation27_spill] sm:$0xff] }
 0x264   : > { %v4168_v60 = vpop.eup %4167  ;;  %4179 = vtanh.f32 %v2320_v44  ;;  %v6853_v44 = vld [vmem:[#allocation18_spill] sm:$0xff] }
 0x265   : > { %2650 = vmatpush.msra.mxu0 %v4168_v60  ;;  %v4170_v42 = vpop.eup %4169  ;;  %v6849_v60 = vld [vmem:[#allocation28_spill] sm:$0xff]  ;;  %4181 = vtanh.f32 %v2336_v57 }
 0x266   : > { %v4172_v0 = vpop.eup %4171  ;;  %v2319_v16 = vadd.f32 %v2098_v12, %v6849_v60  ;;  %4183 = vtanh.f32 %v2337_v9  ;;  %v2289_v12 = vadd.f32 %v6412_v40, %v6853_v44 }
 0x267   : > { %2651 = vmatpush.msra.mxu0 %v4170_v42  ;;  %v4174_v4 = vpop.eup %4173  ;;  %v2303_v42 = vadd.f32 %v2095_v37, %v6852_v43 }
 0x268   : > { %v4176_v10 = vpop.eup %4175 }
 0x269   : > { %v2101_v48 = vpop.f32.mrf.mxu1  ;;  %2652 = vmatpush.msra.mxu0 %v4172_v0  ;;  %3804 = vmatmul.msk.f32.gmra.mxu2 %vm1801_vm7, %v6122_v2  ;;  %v4178_v51 = vpop.eup %4177 }
 0x26a   : > { %v2335_v20 = vadd.f32 %v2101_v48, %v6850_v47  ;;  %3808 = vmatmul.msk.f32.gmra.mxu3 %vm1801_vm7, %v6122_v2 }
 0x26b   : > { %2653 = vmatpush.msra.mxu0 %v4174_v4  ;;  %v2237_v37 = vpop.f32.mrf.mxu2 }
 0x26c   : > { %4185 = vtanh.f32 %v2335_v20  ;;  %3809 = vmatmul.msk.f32.vlgmr.msra.gmra.mxu0 %vm1801_vm7, %v6057_v14  ;;  %v4180_v20 = vpop.eup %4179 }
 0x26d   : > { %4187 = vtanh.f32 %v2321_v17  ;;  %v4182_v14 = vpop.eup %4181 }
 0x26e   : > { %4189 = vtanh.f32 %v2319_v16  ;;  %v4184_v0 = vpop.eup %4183  ;;  %2708 = vmatpush.msra.mxu2 %v4182_v14 }
 0x26f   : > { %4191 = vtanh.f32 %v2305_v55  ;;  %2737 = vmatpush.msra.mxu3 %v4184_v0 }
 0x270   : > { %4193 = vtanh.f32 %v2303_v42  ;;  %2709 = vmatpush.msra.mxu2 %v4180_v20  ;;  %v6470_v42 = vld [vmem:[%s4767_s29] sm:$0xff] }
 0x271   : > { %4195 = vtanh.f32 %v2289_v12 }
 0x272   : > { %v4186_v57 = vpop.eup %4185  ;;  %4197 = vtanh.f32 %v2287_v25  ;;  %2710 = vmatpush.msra.mxu2 %v4178_v51  ;;  %v6479_v51 = vld [vmem:[%s4767_s29 + $0x10] sm:$0xff]  ;;  %v6484_v25 = vld [vmem:[%s4767_s29 + $0x8] sm:$0xff] }
 0x273   : > { %v4188_v17 = vpop.eup %4187  ;;  %2679 = vmatpush.msra.mxu1 %v4186_v57  ;;  %v2240_v48 = vpop.f32.mrf.mxu2 }
 0x274   : > { %v4190_v40 = vpop.eup %4189  ;;  %v2266_v9 = vpop.f32.mrf.mxu3  ;;  %2738 = vmatpush.msra.mxu3 %v4188_v17  ;;  %3810 = vmatmul.msk.f32.gmra.mxu0 %vm1801_vm7, %v6076_v31  ;;  %v6855_v17 = vld [vmem:[#allocation33_spill] sm:$0xff] }
 0x275   : > { %v4192_v55 = vpop.eup %4191  ;;  %2680 = vmatpush.msra.mxu1 %v4190_v40  ;;  %2711 = vmatpush.msra.mxu2 %v4176_v10 }
 0x276   : > { %v4194_v16 = vpop.eup %4193  ;;  %2739 = vmatpush.msra.mxu3 %v4192_v55  ;;  %3817 = vmatmul.msk.f32.vlgmr.msra.gmra.mxu2 %vm1801_vm7, %v6470_v42  ;;  %v6856_v55 = vld [vmem:[#allocation36_spill] sm:$0xff] }
 0x277   : > { %v4196_v34 = vpop.eup %4195  ;;  %2681 = vmatpush.msra.mxu1 %v4194_v16 }
 0x278   : > { %v4198_v4 = vpop.eup %4197  ;;  %2740 = vmatpush.msra.mxu3 %v4196_v34 }
 0x279   : > { %v2179_v12 = vpop.f32.mrf.mxu0  ;;  %2682 = vmatpush.msra.mxu1 %v4198_v4  ;;  %3821 = vmatmul.msk.f32.vlgmr.msra.gmra.mxu3 %vm1801_vm7, %v6470_v42  ;;  %v6857_v4 = vld [vmem:[#allocation31_spill] sm:$0xff] }
 0x27a   : > { %3813 = vmatmul.msk.f32.vlgmr.msra.gmra.mxu1 %vm1801_vm7, %v6470_v42  ;;  %v2308_v44 = vadd.f32 %v2240_v48, %v6857_v4  ;;  %v6510_v48 = vld [vmem:[%s4767_s29 + $0x18] sm:$0xff]  ;;  %s311_s29 = sadd.s32 3, %s4785_s17  ;;  %s6690_s17 = sld [smem:[#allocation4 + %s4694_s30]] }
 0x27b   : > { %v2243_v10 = vpop.f32.mrf.mxu2 }
 0x27c   : > { %v2269_v31 = vpop.f32.mrf.mxu3  ;;  %3811 = vmatmul.msk.f32.gmra.mxu0 %vm1801_vm7, %v6479_v51  ;;  %v2324_v40 = vadd.f32 %v2243_v10, %v6855_v17  ;;  %v6860_v17 = vld [vmem:[#allocation37_spill] sm:$0xff] }
 0x27d   : > { %v2309_v43 = vadd.f32 %v2269_v31, %v6861_v63 }
 0x27e   : > { %3818 = vmatmul.msk.f32.gmra.mxu2 %vm1801_vm7, %v6484_v25 }
 0x280   : > { %s3550_s30 = sshll.u32 %s6690_s17, 4 }
 0x281   : > { %v2182_v20 = vpop.f32.mrf.mxu0  ;;  %3822 = vmatmul.msk.f32.gmra.mxu3 %vm1801_vm7, %v6484_v25  ;;  %p295_p0 = scmp.lt.s32.totalorder %s3550_s30, 111 }
 0x282   : > { %3814 = vmatmul.msk.f32.gmra.mxu1 %vm1801_vm7, %v6484_v25  ;;  %v6492_v14 = vpop.f32.mrf.mxu1 }
 0x283   : > { %v2246_v57 = vpop.f32.mrf.mxu2  ;;  %s6912_s30 = smov (!%p295_p0, %s3550_s30), 111 }
 0x284   : > { %v2272_v0 = vpop.f32.mrf.mxu3  ;;  %3812 = vmatmul.msk.f32.gmra.mxu0 %vm1801_vm7, %v6122_v2  ;;  %v2340_v16 = vadd.f32 %v2246_v57, %v6856_v55  ;;  %v6858_v2 = vld [vmem:[#allocation29_spill] sm:$0xff]  ;;  %v6859_v57 = vld [vmem:[#allocation40_spill] sm:$0xff]  ;;  %s298_s23 = sadd.s32 %s3861_s20, %s6912_s30 }
 0x285   : > { %v2292_v19 = vadd.f32 %v2237_v37, %v6858_v2  ;;  %v2325_v30 = vadd.f32 %v2272_v0, %v6860_v17  ;;  %s6706_s25 = scalar_lea.vmem %s6754_s6, %s298_s23 }
 0x286   : > { %3819 = vmatmul.msk.f32.gmra.mxu2 %vm1801_vm7, %v6479_v51  ;;  %4199 = vtanh.f32 %v2340_v16  ;;  %v6862_v16 = vld [vmem:[#allocation32_spill] sm:$0xff] }
 0x287   : > { %4201 = vtanh.f32 %v2324_v40  ;;  %v2293_v37 = vadd.f32 %v2266_v9, %v6862_v16  ;;  %v6863_v40 = vld [vmem:[#allocation41_spill] sm:$0xff] }
 0x288   : > { %4203 = vtanh.f32 %v2308_v44 }
 0x289   : > { %v2185_v34 = vpop.f32.mrf.mxu0  ;;  %3823 = vmatmul.msk.f32.gmra.mxu3 %vm1801_vm7, %v6479_v51  ;;  %4205 = vtanh.f32 %v2292_v19  ;;  %v6864_v19 = vld [vmem:[#allocation43_spill] sm:$0xff] }
 0x28a   : > { %3815 = vmatmul.msk.f32.gmra.mxu1 %vm1801_vm7, %v6479_v51  ;;  %v2211_v53 = vpop.f32.mrf.mxu1  ;;  %v2322_v0 = vadd.f32 %v2185_v34, %v6863_v40 }
 0x28c   : > { %v2275_v10 = vpop.f32.mrf.mxu3  ;;  %v4200_v18 = vpop.eup %4199 }
 0x28d   : > { %v2341_v55 = vadd.f32 %v2275_v10, %v6859_v57  ;;  %2824 = vmatpush.msrb.mxu2 %v4200_v18  ;;  %v4202_v44 = vpop.eup %4201  ;;  %v6866_v57 = vld [vmem:[#allocation35_spill] sm:$0xff] }
 0x28e   : > { %3820 = vmatmul.msk.f32.gmra.mxu2 %vm1801_vm7, %v6510_v48  ;;  %v4204_v31 = vpop.eup %4203  ;;  %v2290_v17 = vadd.f32 %v2179_v12, %v6866_v57  ;;  %v6868_v12 = vld [vmem:[#allocation45_spill] sm:$0xff] }
 0x28f   : > { %4207 = vtanh.f32 %v2341_v55  ;;  %2825 = vmatpush.msrb.mxu2 %v4202_v44  ;;  %v6865_v55 = vld [vmem:[#allocation38_spill] sm:$0xff]  ;;  %v4206_v16 = vpop.eup %4205  ;;  %v6867_v44 = vld [vmem:[#allocation44_spill] sm:$0xff] }
 0x290   : > { %4209 = vtanh.f32 %v2325_v30  ;;  %v2306_v63 = vadd.f32 %v2182_v20, %v6865_v55 }
 0x291   : > { %v2188_v4 = vpop.f32.mrf.mxu0  ;;  %3824 = vmatmul.msk.f32.gmra.mxu3 %vm1801_vm7, %v6510_v48  ;;  %4211 = vtanh.f32 %v2309_v43  ;;  %2826 = vmatpush.msrb.mxu2 %v4204_v31 }
 0x292   : > { %v2338_v10 = vadd.f32 %v2188_v4, %v6864_v19  ;;  %3816 = vmatmul.msk.f32.gmra.mxu1 %vm1801_vm7, %v6510_v48  ;;  %v2214_v9 = vpop.f32.mrf.mxu1 }
 0x293   : > { %2827 = vmatpush.msrb.mxu2 %v4206_v16 }
 0x294   : > { %4213 = vtanh.f32 %v2338_v10  ;;  %v2323_v10 = vadd.f32 %v2214_v9, %v6867_v44 }
 0x295   : > { %4215 = vtanh.f32 %v2293_v37  ;;  %v4208_v18 = vpop.eup %4207 }
 0x296   : > { %4217 = vtanh.f32 %v2322_v0  ;;  %2853 = vmatpush.msrb.mxu3 %v4208_v18  ;;  %v4210_v30 = vpop.eup %4209  ;;  %3833 = vmatmul.msk.f32.vlgmr.msrb.gmra.mxu2 %vm1801_vm7, %v6470_v42  ;;  %v6870_v18 = vld [vmem:[#allocation39_spill] sm:$0xff] }
 0x297   : > { %4219 = vtanh.f32 %v2306_v63  ;;  %v4212_v43 = vpop.eup %4211  ;;  %v6869_v63 = vld [vmem:[#allocation42_spill] sm:$0xff] }
 0x298   : > { %2854 = vmatpush.msrb.mxu3 %v4210_v30  ;;  %4221 = vtanh.f32 %v2290_v17  ;;  %v2307_v31 = vadd.f32 %v2211_v53, %v6869_v63  ;;  %v2291_v30 = vadd.f32 %v6492_v14, %v6870_v18 }
 0x29a   : > { %v4214_v34 = vpop.eup %4213  ;;  %2855 = vmatpush.msrb.mxu3 %v4212_v43  ;;  %v2217_v37 = vpop.f32.mrf.mxu1 }
 0x29b   : > { %v4216_v20 = vpop.eup %4215  ;;  %2766 = vmatpush.msrb.mxu0 %v4214_v34  ;;  %v2339_v0 = vadd.f32 %v2217_v37, %v6868_v12 }
 0x29c   : > { %v4218_v4 = vpop.eup %4217  ;;  %2856 = vmatpush.msrb.mxu3 %v4216_v20 }
 0x29d   : > { %2767 = vmatpush.msrb.mxu0 %v4218_v4  ;;  %v4220_v16 = vpop.eup %4219  ;;  %3837 = vmatmul.msk.f32.vlgmr.msrb.gmra.mxu3 %vm1801_vm7, %v6470_v42  ;;  %4223 = vtanh.f32 %v2339_v0 }
 0x29e   : > { %v4222_v17 = vpop.eup %4221  ;;  %3834 = vmatmul.msk.f32.gmra.mxu2 %vm1801_vm7, %v6484_v25  ;;  %4225 = vtanh.f32 %v2323_v10 }
 0x29f   : > { %2768 = vmatpush.msrb.mxu0 %v4220_v16  ;;  %4227 = vtanh.f32 %v2307_v31 }
 0x2a0   : > { %4229 = vtanh.f32 %v2291_v30 }
 0x2a1   : > { %2769 = vmatpush.msrb.mxu0 %v4222_v17 }
 0x2a2   : > { %3825 = vmatmul.msk.f32.vlgmr.msrb.gmra.mxu0 %vm1801_vm7, %v6470_v42 }
 0x2a3   : > { %v4224_v9 = vpop.eup %4223  ;;  %v2423_v43 = vpop.f32.mrf.mxu0 }
 0x2a4   : > { %2795 = vmatpush.msrb.mxu1 %v4224_v9  ;;  %v2452_v53 = vpop.f32.mrf.mxu1  ;;  %v4226_v34 = vpop.eup %4225 }
 0x2a5   : > { %3838 = vmatmul.msk.f32.gmra.mxu3 %vm1801_vm7, %v6484_v25  ;;  %v4228_v14 = vpop.eup %4227  ;;  %v2871_v12 = vadd.f32 %v2452_v53, %v5975_v26 }
 0x2a6   : > { %2796 = vmatpush.msrb.mxu1 %v4226_v34  ;;  %3835 = vmatmul.msk.f32.gmra.mxu2 %vm1801_vm7, %v6479_v51  ;;  %v4230_v20 = vpop.eup %4229 }
 0x2a8   : > { %2797 = vmatpush.msrb.mxu1 %v4228_v14 }
 0x2aa   : > { %3826 = vmatmul.msk.f32.gmra.mxu0 %vm1801_vm7, %v6484_v25  ;;  %2798 = vmatpush.msrb.mxu1 %v4230_v20 }
 0x2ab   : > { %3829 = vmatmul.msk.f32.vlgmr.msrb.gmra.mxu1 %vm1801_vm7, %v6470_v42  ;;  %v2426_v4 = vpop.f32.mrf.mxu0 }
 0x2ac   : > { %v2455_v37 = vpop.f32.mrf.mxu1  ;;  %v2886_v18 = vadd.f32 %v2426_v4, %v5998_v45 }
 0x2ad   : > { %3839 = vmatmul.msk.f32.gmra.mxu3 %vm1801_vm7, %v6479_v51  ;;  %v2887_v63 = vadd.f32 %v2455_v37, %v6000_v27 }
 0x2ae   : > { %3836 = vmatmul.msk.f32.gmra.mxu2 %vm1801_vm7, %v6510_v48 }
 0x2b2   : > { %3827 = vmatmul.msk.f32.gmra.mxu0 %vm1801_vm7, %v6479_v51  ;;  %v2481_v0 = vpop.f32.mrf.mxu2 }
 0x2b3   : > { %3830 = vmatmul.msk.f32.gmra.mxu1 %vm1801_vm7, %v6484_v25  ;;  %v2429_v10 = vpop.f32.mrf.mxu0  ;;  %v2510_v16 = vpop.f32.mrf.mxu3 }
 0x2b4   : > { %v2458_v42 = vpop.f32.mrf.mxu1  ;;  %v2902_v30 = vadd.f32 %v2429_v10, %v6010_v29 }
 0x2b5   : > { %3840 = vmatmul.msk.f32.gmra.mxu3 %vm1801_vm7, %v6510_v48  ;;  %v2903_v14 = vadd.f32 %v2458_v42, %v6012_v35 }
 0x2ba   : > { %3828 = vmatmul.msk.f32.gmra.mxu0 %vm1801_vm7, %v6510_v48  ;;  %v2484_v17 = vpop.f32.mrf.mxu2 }
 0x2bb   : > { %3831 = vmatmul.msk.f32.gmra.mxu1 %vm1801_vm7, %v6479_v51  ;;  %v2432_v31 = vpop.f32.mrf.mxu0  ;;  %v2513_v34 = vpop.f32.mrf.mxu3  ;;  %v2870_v51 = vadd.f32 %v2423_v43, %v5973_v21 }
 0x2bc   : > { %v2918_v9 = vadd.f32 %v2432_v31, %v6027_v23  ;;  %v2461_v25 = vpop.f32.mrf.mxu1 }
 0x2bd   : > { %v2919_v20 = vadd.f32 %v2461_v25, %v6029_v52  ;;  %v2889_v25 = vadd.f32 %v2513_v34, %v6004_v7 }
 0x2be   : > { %4231 = vtanh.f32 %v2918_v9  ;;  %v2888_v9 = vadd.f32 %v2484_v17, %v6002_v58 }
 0x2bf   : > { %4233 = vtanh.f32 %v2919_v20  ;;  %v2873_v20 = vadd.f32 %v2510_v16, %v5979_v49 }
 0x2c0   : > { %4235 = vtanh.f32 %v2902_v30 }
 0x2c1   : > { %4237 = vtanh.f32 %v2903_v14  ;;  %v2872_v14 = vadd.f32 %v2481_v0, %v5977_v28 }
 0x2c2   : > { %4239 = vtanh.f32 %v2886_v18 }
 0x2c3   : > { %3832 = vmatmul.msk.f32.gmra.mxu1 %vm1801_vm7, %v6510_v48  ;;  %4241 = vtanh.f32 %v2887_v63  ;;  %v6568_v29 = vpop.f32.mrf.mxu0  ;;  %v2487_v35 = vpop.f32.mrf.mxu2 }
 0x2c4   : > { %v4232_v23 = vpop.eup %4231  ;;  %4243 = vtanh.f32 %v2870_v51  ;;  %v6570_v45 = vpop.f32.mrf.mxu1  ;;  %v2904_v31 = vadd.f32 %v2487_v35, %v6014_v24 }
 0x2c5   : > { %v2516_v27 = vpop.f32.mrf.mxu3  ;;  %v4234_v52 = vpop.eup %4233  ;;  %4245 = vtanh.f32 %v2871_v12  ;;  %3014 = vmatpush.msra.mxu0 %v4232_v23 }
 0x2c6   : > { %v4236_v21 = vpop.eup %4235  ;;  %3034 = vmatpush.msra.mxu1 %v4234_v52  ;;  %v2905_v30 = vadd.f32 %v2516_v27, %v6016_v33 }
 0x2c7   : > { %v4238_v26 = vpop.eup %4237  ;;  %3015 = vmatpush.msra.mxu0 %v4236_v21 }
 0x2c8   : > { %v4240_v18 = vpop.eup %4239  ;;  %3035 = vmatpush.msra.mxu1 %v4238_v26 }
 0x2c9   : > { %v4242_v43 = vpop.eup %4241  ;;  %3016 = vmatpush.msra.mxu0 %v4240_v18 }
 0x2ca   : > { %v4244_v48 = vpop.eup %4243  ;;  %3036 = vmatpush.msra.mxu1 %v4242_v43 }
 0x2cb   : > { %v4246_v63 = vpop.eup %4245  ;;  %v2542_v53 = vpop.f32.mrf.mxu0  ;;  %3017 = vmatpush.msra.mxu0 %v4244_v48 }
 0x2cc   : > { %v2490_v4 = vpop.f32.mrf.mxu2  ;;  %v2571_v37 = vpop.f32.mrf.mxu1  ;;  %3037 = vmatpush.msra.mxu1 %v4246_v63  ;;  %v2890_v18 = vadd.f32 %v2542_v53, %v6063_v56 }
 0x2cd   : > { %v2920_v10 = vadd.f32 %v2490_v4, %v6032_v46  ;;  %v2519_v12 = vpop.f32.mrf.mxu3  ;;  %v2891_v48 = vadd.f32 %v2571_v37, %v6065_v41 }
 0x2ce   : > { %v2921_v42 = vadd.f32 %v2519_v12, %v6034_v32 }
 0x2cf   : > { %4247 = vtanh.f32 %v2920_v10 }
 0x2d0   : > { %4249 = vtanh.f32 %v2921_v42 }
 0x2d1   : > { %4251 = vtanh.f32 %v2904_v31 }
 0x2d2   : > { %4253 = vtanh.f32 %v2905_v30 }
 0x2d3   : > { %v2545_v46 = vpop.f32.mrf.mxu0  ;;  %4255 = vtanh.f32 %v2888_v9 }
 0x2d4   : > { %v2574_v51 = vpop.f32.mrf.mxu1  ;;  %4257 = vtanh.f32 %v2889_v25  ;;  %v6580_v32 = vpop.f32.mrf.mxu2  ;;  %v2906_v34 = vadd.f32 %v2545_v46, %v6082_v59  ;;  %v2874_v59 = vadd.f32 %v6568_v29, %v6045_v62 }
 0x2d5   : > { %v4248_v24 = vpop.eup %4247  ;;  %4259 = vtanh.f32 %v2872_v14  ;;  %v6582_v33 = vpop.f32.mrf.mxu3  ;;  %v2907_v52 = vadd.f32 %v2574_v51, %v6084_v22 }
 0x2d6   : > { %v4250_v58 = vpop.eup %4249  ;;  %4261 = vtanh.f32 %v2873_v20  ;;  %3054 = vmatpush.msra.mxu2 %v4248_v24  ;;  %v2876_v20 = vadd.f32 %v6580_v32, %v6050_v11 }
 0x2d7   : > { %v4252_v7 = vpop.eup %4251  ;;  %3074 = vmatpush.msra.mxu3 %v4250_v58 }
 0x2d8   : > { %v4254_v28 = vpop.eup %4253  ;;  %3055 = vmatpush.msra.mxu2 %v4252_v7 }
 0x2d9   : > { %v4256_v0 = vpop.eup %4255  ;;  %3075 = vmatpush.msra.mxu3 %v4254_v28 }
 0x2da   : > { %v4258_v49 = vpop.eup %4257  ;;  %3056 = vmatpush.msra.mxu2 %v4256_v0 }
 0x2db   : > { %v2548_v16 = vpop.f32.mrf.mxu0  ;;  %v4260_v17 = vpop.eup %4259  ;;  %3076 = vmatpush.msra.mxu3 %v4258_v49 }
 0x2dc   : > { %v2922_v35 = vadd.f32 %v2548_v16, %v6105_v38  ;;  %v2577_v23 = vpop.f32.mrf.mxu1  ;;  %v4262_v27 = vpop.eup %4261  ;;  %3057 = vmatpush.msra.mxu2 %v4260_v17  ;;  %v2875_v38 = vadd.f32 %v6570_v45, %v6047_v8 }
 0x2dd   : > { %v2923_v21 = vadd.f32 %v2577_v23, %v6107_v50  ;;  %v2600_v26 = vpop.f32.mrf.mxu2  ;;  %v2629_v43 = vpop.f32.mrf.mxu3  ;;  %3077 = vmatpush.msra.mxu3 %v4262_v27 }
 0x2de   : > { %4263 = vtanh.f32 %v2922_v35  ;;  %v2892_v25 = vadd.f32 %v2600_v26, %v6067_v1  ;;  %v2893_v14 = vadd.f32 %v2629_v43, %v6069_v6  ;;  %v6871_v35 = vld [vmem:[#allocation19_spill] sm:$0xff] }
 0x2df   : > { %4265 = vtanh.f32 %v2923_v21 }
 0x2e0   : > { %4267 = vtanh.f32 %v2906_v34 }
 0x2e1   : > { %4269 = vtanh.f32 %v2907_v52  ;;  %v6613_v52 = vld [vmem:[%s4774_s19] sm:$0x1]  ;;  %s312_s19 = sld [smem:[#allocation5 + %s311_s29]] }
 0x2e2   : > { %4271 = vtanh.f32 %v2890_v18  ;;  %3841 = vmatmul.msk.f32.vlgmr.msra.gmra.mxu0 %vm1801_vm7, %v6613_v52  ;;  %3842 = vmatmul.msk.f32.vlgmr.msra.gmra.mxu1 %vm1801_vm7, %v6613_v52 }
 0x2e3   : > { %4273 = vtanh.f32 %v2891_v48  ;;  %3843 = vmatmul.msk.f32.vlgmr.msra.gmra.mxu2 %vm1801_vm7, %v6613_v52  ;;  %3844 = vmatmul.msk.f32.vlgmr.msra.gmra.mxu3 %vm1801_vm7, %v6613_v52  ;;  %v6872_v48 = vld [vmem:[#allocation24_spill] sm:$0xff] }
 0x2e4   : > { %v4264_v22 = vpop.eup %4263  ;;  %4275 = vtanh.f32 %v2874_v59 }
 0x2e5   : > { %v4266_v50 = vpop.eup %4265  ;;  %4277 = vtanh.f32 %v2875_v38  ;;  %v2603_v56 = vpop.f32.mrf.mxu2  ;;  %3094 = vmatpush.msrb.mxu0 %v4264_v22  ;;  %v6873_v22 = vld [vmem:[#allocation27_spill] sm:$0xff] }
 0x2e6   : > { %v4268_v63 = vpop.eup %4267  ;;  %v2632_v53 = vpop.f32.mrf.mxu3  ;;  %3114 = vmatpush.msrb.mxu1 %v4266_v50  ;;  %v2908_v10 = vadd.f32 %v2603_v56, %v6086_v61  ;;  %v2877_v61 = vadd.f32 %v6582_v33, %v6052_v3 }
 0x2e7   : > { %v4270_v41 = vpop.eup %4269  ;;  %3095 = vmatpush.msrb.mxu0 %v4268_v63  ;;  %v2909_v31 = vadd.f32 %v2632_v53, %v6088_v54  ;;  %v6875_v53 = vld [vmem:[#allocation25_spill] sm:$0xff] }
 0x2e8   : > { %v4272_v62 = vpop.eup %4271  ;;  %3115 = vmatpush.msrb.mxu1 %v4270_v41 }
 0x2e9   : > { %v2655_v4 = vpop.f32.mrf.mxu0  ;;  %v4274_v29 = vpop.eup %4273  ;;  %3096 = vmatpush.msrb.mxu0 %v4272_v62 }
 0x2ea   : > { %v4276_v8 = vpop.eup %4275  ;;  %3116 = vmatpush.msrb.mxu1 %v4274_v29  ;;  %v2878_v23 = vadd.f32 %v2655_v4, %v6871_v35  ;;  %v6876_v4 = vld [vmem:[#allocation26_spill] sm:$0xff]  ;;  %v6877_v29 = vld [vmem:[#allocation23_spill] sm:$0xff] }
 0x2eb   : > { %v4278_v45 = vpop.eup %4277  ;;  %3097 = vmatpush.msrb.mxu0 %v4276_v8  ;;  %v6882_v35 = vld [vmem:[#allocation31_spill] sm:$0xff] }
 0x2ec   : > { %3117 = vmatpush.msrb.mxu1 %v4278_v45  ;;  %3845 = vmatmul.msk.f32.vlgmr.msrb.gmra.mxu0 %vm1801_vm7, %v6613_v52  ;;  %v6878_v45 = vld [vmem:[#allocation20_spill] sm:$0xff] }
 0x2ed   : > { %v2606_v37 = vpop.f32.mrf.mxu2  ;;  %3846 = vmatmul.msk.f32.vlgmr.msrb.gmra.mxu1 %vm1801_vm7, %v6613_v52 }
 0x2ee   : > { %v2924_v12 = vadd.f32 %v2606_v37, %v6110_v13  ;;  %v2635_v42 = vpop.f32.mrf.mxu3 }
 0x2ef   : > { %v2925_v9 = vadd.f32 %v2635_v42, %v6112_v39 }
 0x2f0   : > { %4279 = vtanh.f32 %v2924_v12  ;;  %v6879_v12 = vld [vmem:[#allocation21_spill] sm:$0xff] }
 0x2f1   : > { %v2658_v30 = vpop.f32.mrf.mxu0  ;;  %4281 = vtanh.f32 %v2925_v9 }
 0x2f2   : > { %4283 = vtanh.f32 %v2908_v10  ;;  %v2894_v17 = vadd.f32 %v2658_v30, %v6154_v36 }
 0x2f3   : > { %4285 = vtanh.f32 %v2909_v31  ;;  %v6880_v31 = vld [vmem:[#allocation17_spill] sm:$0xff] }
 0x2f4   : > { %4287 = vtanh.f32 %v2892_v25  ;;  %v6881_v25 = vld [vmem:[#allocation18_spill] sm:$0xff] }
 0x2f5   : > { %4289 = vtanh.f32 %v2893_v14 }
 0x2f6   : > { %v4280_v13 = vpop.eup %4279  ;;  %4291 = vtanh.f32 %v2876_v20 }
 0x2f7   : > { %v2684_v54 = vpop.f32.mrf.mxu1  ;;  %v4282_v39 = vpop.eup %4281  ;;  %4293 = vtanh.f32 %v2877_v61  ;;  %3134 = vmatpush.msrb.mxu2 %v4280_v13 }
 0x2f8   : > { %v4284_v46 = vpop.eup %4283  ;;  %3154 = vmatpush.msrb.mxu3 %v4282_v39  ;;  %v2879_v59 = vadd.f32 %v2684_v54, %v6872_v48 }
 0x2f9   : > { %v2661_v1 = vpop.f32.mrf.mxu0  ;;  %v4286_v6 = vpop.eup %4285  ;;  %3135 = vmatpush.msrb.mxu2 %v4284_v46 }
 0x2fa   : > { %v6604_v51 = vpop.f32.mrf.mxu2  ;;  %v4288_v11 = vpop.eup %4287  ;;  %3155 = vmatpush.msrb.mxu3 %v4286_v6  ;;  %v2910_v49 = vadd.f32 %v2661_v1, %v6170_v15 }
 0x2fb   : > { %v4290_v3 = vpop.eup %4289  ;;  %3136 = vmatpush.msrb.mxu2 %v4288_v11  ;;  %v2880_v30 = vadd.f32 %v6604_v51, %v6880_v31 }
 0x2fc   : > { %v6606_v32 = vpop.f32.mrf.mxu3  ;;  %v4292_v24 = vpop.eup %4291  ;;  %3156 = vmatpush.msrb.mxu3 %v4290_v3 }
 0x2fd   : > { %v4294_v33 = vpop.eup %4293  ;;  %3137 = vmatpush.msrb.mxu2 %v4292_v24  ;;  %v2881_v14 = vadd.f32 %v6606_v32, %v6881_v25 }
 0x2fe   : > { %3157 = vmatpush.msrb.mxu3 %v4294_v33  ;;  %3847 = vmatmul.msk.f32.vlgmr.msrb.gmra.mxu2 %vm1801_vm7, %v6613_v52 }
 0x2ff   : > { %v2687_v58 = vpop.f32.mrf.mxu1  ;;  %3848 = vmatmul.msk.f32.vlgmr.msrb.gmra.mxu3 %vm1801_vm7, %v6613_v52 }
 0x300   : > { %v2895_v50 = vadd.f32 %v2687_v58, %v6873_v22 }
 0x301   : > { %v2664_v7 = vpop.f32.mrf.mxu0 }
 0x302   : > { %v2926_v28 = vadd.f32 %v2664_v7, %v6190_v5  ;;  %v2716_v0 = vpop.f32.mrf.mxu2 }
 0x303   : > { %v2896_v37 = vadd.f32 %v2716_v0, %v6878_v45 }
 0x304   : > { %4295 = vtanh.f32 %v2926_v28  ;;  %v2745_v16 = vpop.f32.mrf.mxu3 }
 0x305   : > { %4297 = vtanh.f32 %v2910_v49  ;;  %v2897_v42 = vadd.f32 %v2745_v16, %v6879_v12 }
 0x306   : > { %4299 = vtanh.f32 %v2894_v17 }
 0x307   : > { %v2690_v34 = vpop.f32.mrf.mxu1  ;;  %4301 = vtanh.f32 %v2878_v23 }
 0x308   : > { %v2911_v18 = vadd.f32 %v2690_v34, %v6849_v60  ;;  %v6874_v60 = vld [vmem:[#allocation22_spill] sm:$0xff] }
 0x30a   : > { %v4296_v27 = vpop.eup %4295  ;;  %v2719_v21 = vpop.f32.mrf.mxu2 }
 0x30b   : > { %3174 = vmatpush.msra.mxu0 %v4296_v27  ;;  %v4298_v36 = vpop.eup %4297 }
 0x30c   : > { %v2748_v26 = vpop.f32.mrf.mxu3  ;;  %v4300_v5 = vpop.eup %4299 }
 0x30d   : > { %3175 = vmatpush.msra.mxu0 %v4298_v36  ;;  %v4302_v38 = vpop.eup %4301  ;;  %v2913_v8 = vadd.f32 %v2748_v26, %v6877_v29  ;;  %v6884_v36 = vld [vmem:[#allocation36_spill] sm:$0xff] }
 0x30f   : > { %v2693_v15 = vpop.f32.mrf.mxu1  ;;  %3176 = vmatpush.msra.mxu0 %v4300_v5 }
 0x310   : > { %v2927_v43 = vadd.f32 %v2693_v15, %v6850_v47  ;;  %v2912_v47 = vadd.f32 %v2719_v21, %v6874_v60  ;;  %v6883_v21 = vld [vmem:[#allocation33_spill] sm:$0xff] }
 0x311   : > { %3177 = vmatpush.msra.mxu0 %v4302_v38  ;;  %v6885_v38 = vld [vmem:[#allocation37_spill] sm:$0xff] }
 0x312   : > { %4303 = vtanh.f32 %v2927_v43  ;;  %v2722_v56 = vpop.f32.mrf.mxu2  ;;  %3849 = vmatmul.msk.f32.vlgmr.msra.gmra.mxu0 %vm1801_vm7, %v6613_v52 }
 0x313   : > { %4305 = vtanh.f32 %v2911_v18  ;;  %v2928_v41 = vadd.f32 %v2722_v56, %v6875_v53 }
 0x314   : > { %v2751_v63 = vpop.f32.mrf.mxu3  ;;  %4307 = vtanh.f32 %v2879_v59 }
 0x315   : > { %v2929_v62 = vadd.f32 %v2751_v63, %v6876_v4  ;;  %4309 = vtanh.f32 %v2895_v50  ;;  %v6886_v50 = vld [vmem:[#allocation40_spill] sm:$0xff] }
 0x316   : > { %4311 = vtanh.f32 %v2928_v41  ;;  %v6888_v41 = vld [vmem:[#allocation32_spill] sm:$0xff] }
 0x317   : > { %4313 = vtanh.f32 %v2929_v62 }
 0x318   : > { %v4304_v10 = vpop.eup %4303  ;;  %4315 = vtanh.f32 %v2912_v47 }
 0x319   : > { %3194 = vmatpush.msra.mxu1 %v4304_v10  ;;  %v4306_v9 = vpop.eup %4305  ;;  %4317 = vtanh.f32 %v2913_v8  ;;  %v6889_v10 = vld [vmem:[#allocation45_spill] sm:$0xff] }
 0x31a   : > { %v4308_v20 = vpop.eup %4307  ;;  %4319 = vtanh.f32 %v2896_v37  ;;  %v2829_v54 = vpop.f32.mrf.mxu2 }
 0x31b   : > { %3195 = vmatpush.msra.mxu1 %v4306_v9  ;;  %v4310_v61 = vpop.eup %4309  ;;  %4321 = vtanh.f32 %v2897_v42  ;;  %v2884_v34 = vadd.f32 %v2829_v54, %v6858_v2 }
 0x31c   : > { %v4312_v13 = vpop.eup %4311  ;;  %4323 = vtanh.f32 %v2880_v30  ;;  %v6890_v30 = vld [vmem:[#allocation42_spill] sm:$0xff] }
 0x31d   : > { %3196 = vmatpush.msra.mxu1 %v4310_v61  ;;  %v4314_v39 = vpop.eup %4313  ;;  %4325 = vtanh.f32 %v2881_v14  ;;  %3214 = vmatpush.msra.mxu2 %v4312_v13  ;;  %v6891_v14 = vld [vmem:[#allocation39_spill] sm:$0xff] }
 0x31e   : > { %v4316_v1 = vpop.eup %4315  ;;  %3234 = vmatpush.msra.mxu3 %v4314_v39  ;;  %4327 = vtanh.f32 %v2884_v34 }
 0x31f   : > { %v2771_v46 = vpop.f32.mrf.mxu0  ;;  %3197 = vmatpush.msra.mxu1 %v4308_v20  ;;  %v4318_v6 = vpop.eup %4317  ;;  %3215 = vmatpush.msra.mxu2 %v4316_v1  ;;  %v6678_v1 = vstv %s312_s19 }
 0x320   : > { %3850 = vmatmul.msk.f32.vlgmr.msra.gmra.mxu1 %vm1801_vm7, %v6613_v52  ;;  %v4320_v51 = vpop.eup %4319  ;;  %v2858_v11 = vpop.f32.mrf.mxu3  ;;  %3235 = vmatpush.msra.mxu3 %v4318_v6  ;;  %v2882_v63 = vadd.f32 %v2771_v46, %v6866_v57 }
 0x321   : > { %v4322_v32 = vpop.eup %4321  ;;  %3216 = vmatpush.msra.mxu2 %v4320_v51 }
 0x322   : > { %v4324_v3 = vpop.eup %4323  ;;  %3236 = vmatpush.msra.mxu3 %v4322_v32  ;;  %v2832_v33 = vpop.f32.mrf.mxu2 }
 0x323   : > { %v4326_v24 = vpop.eup %4325  ;;  %3217 = vmatpush.msra.mxu2 %v4324_v3  ;;  %v2900_v23 = vadd.f32 %v2832_v33, %v6882_v35 }
 0x324   : > { %3237 = vmatpush.msra.mxu3 %v4326_v24  ;;  %3851 = vmatmul.msk.f32.vlgmr.msra.gmra.mxu2 %vm1801_vm7, %v6613_v52  ;;  %v4328_v60 = vpop.eup %4327 }
 0x325   : > { %3852 = vmatmul.msk.f32.vlgmr.msra.gmra.mxu3 %vm1801_vm7, %v6613_v52 }
 0x327   : > { %v2774_v58 = vpop.f32.mrf.mxu0 }
 0x328   : > { %v2861_v7 = vpop.f32.mrf.mxu3  ;;  %v2800_v28 = vpop.f32.mrf.mxu1  ;;  %v2898_v48 = vadd.f32 %v2774_v58, %v6865_v55  ;;  %v2885_v55 = vadd.f32 %v2858_v11, %v6888_v41 }
 0x329   : > { %v2883_v20 = vadd.f32 %v2800_v28, %v6891_v14 }
 0x32a   : > { %v2835_v0 = vpop.f32.mrf.mxu2 }
 0x32b   : > { %v2916_v26 = vadd.f32 %v2835_v0, %v6883_v21 }
 0x32f   : > { %v2777_v49 = vpop.f32.mrf.mxu0 }
 0x330   : > { %v2864_v16 = vpop.f32.mrf.mxu3  ;;  %v2803_v17 = vpop.f32.mrf.mxu1  ;;  %v2914_v5 = vadd.f32 %v2777_v49, %v6863_v40  ;;  %v6887_v40 = vld [vmem:[#allocation34_spill] sm:$0xff] }
 0x331   : > { %v2917_v22 = vadd.f32 %v2864_v16, %v6885_v38  ;;  %v2901_v47 = vadd.f32 %v2861_v7, %v6887_v40  ;;  %v2899_v9 = vadd.f32 %v2803_v17, %v6890_v30 }
 0x332   : > { %v2838_v27 = vpop.f32.mrf.mxu2 }
 0x333   : > { %v2932_v15 = vadd.f32 %v2838_v27, %v6884_v36 }
 0x335   : > { %4329 = vtanh.f32 %v2932_v15 }
 0x336   : > { %4331 = vtanh.f32 %v2900_v23 }
 0x337   : > { %v2780_v18 = vpop.f32.mrf.mxu0  ;;  %4333 = vtanh.f32 %v2916_v26 }
 0x338   : > { %v2930_v43 = vadd.f32 %v2780_v18, %v6864_v19  ;;  %v2867_v59 = vpop.f32.mrf.mxu3  ;;  %v2806_v2 = vpop.f32.mrf.mxu1 }
 0x339   : > { %v2933_v56 = vadd.f32 %v2867_v59, %v6886_v50  ;;  %v2915_v37 = vadd.f32 %v2806_v2, %v6867_v44 }
 0x33a   : > { %4335 = vtanh.f32 %v2930_v43 }
 0x33b   : > { %4337 = vtanh.f32 %v2914_v5  ;;  %v4330_v53 = vpop.eup %4329 }
 0x33c   : > { %4339 = vtanh.f32 %v2933_v56  ;;  %v4332_v19 = vpop.eup %4331  ;;  %3294 = vmatpush.msrb.mxu2 %v4330_v53 }
 0x33d   : > { %4341 = vtanh.f32 %v2898_v48  ;;  %v4334_v4 = vpop.eup %4333 }
 0x33e   : > { %4343 = vtanh.f32 %v2917_v22  ;;  %3295 = vmatpush.msrb.mxu2 %v4334_v4 }
 0x33f   : > { %4345 = vtanh.f32 %v2882_v63 }
 0x340   : > { %v4336_v62 = vpop.eup %4335  ;;  %4347 = vtanh.f32 %v2901_v47  ;;  %v2809_v8 = vpop.f32.mrf.mxu1  ;;  %3296 = vmatpush.msrb.mxu2 %v4332_v19 }
 0x341   : > { %v4338_v29 = vpop.eup %4337  ;;  %3254 = vmatpush.msrb.mxu0 %v4336_v62  ;;  %4349 = vtanh.f32 %v2885_v55  ;;  %v2931_v12 = vadd.f32 %v2809_v8, %v6889_v10 }
 0x342   : > { %v4340_v57 = vpop.eup %4339  ;;  %3297 = vmatpush.msrb.mxu2 %v4328_v60 }
 0x343   : > { %v4342_v45 = vpop.eup %4341  ;;  %3255 = vmatpush.msrb.mxu0 %v4338_v29  ;;  %3314 = vmatpush.msrb.mxu3 %v4340_v57  ;;  %4351 = vtanh.f32 %v2931_v12 }
 0x344   : > { %v4344_v42 = vpop.eup %4343  ;;  %3855 = vmatmul.msk.f32.vlgmr.msrb.gmra.mxu2 %vm1801_vm7, %v6613_v52  ;;  %4353 = vtanh.f32 %v2915_v37 }
 0x345   : > { %v4346_v31 = vpop.eup %4345  ;;  %3256 = vmatpush.msrb.mxu0 %v4342_v45  ;;  %3315 = vmatpush.msrb.mxu3 %v4344_v42  ;;  %4355 = vtanh.f32 %v2899_v9 }
 0x346   : > { %v4348_v25 = vpop.eup %4347  ;;  %4357 = vtanh.f32 %v2883_v20 }
 0x347   : > { %3257 = vmatpush.msrb.mxu0 %v4346_v31  ;;  %3316 = vmatpush.msrb.mxu3 %v4348_v25  ;;  %v4350_v44 = vpop.eup %4349 }
 0x348   : > { %3853 = vmatmul.msk.f32.vlgmr.msrb.gmra.mxu0 %vm1801_vm7, %v6613_v52 }
 0x349   : > { %3317 = vmatpush.msrb.mxu3 %v4350_v44  ;;  %v4352_v61 = vpop.eup %4351 }
 0x34a   : > { %3856 = vmatmul.msk.f32.vlgmr.msrb.gmra.mxu3 %vm1801_vm7, %v6613_v52  ;;  %3274 = vmatpush.msrb.mxu1 %v4352_v61  ;;  %v4354_v54 = vpop.eup %4353 }
 0x34b   : > { %v4356_v13 = vpop.eup %4355 }
 0x34c   : > { %3275 = vmatpush.msrb.mxu1 %v4354_v54  ;;  %v4358_v39 = vpop.eup %4357 }
 0x34e   : > { %3276 = vmatpush.msrb.mxu1 %v4356_v13 }
 0x350   : > { %3277 = vmatpush.msrb.mxu1 %v4358_v39 }
 0x351   : > { %3854 = vmatmul.msk.f32.vlgmr.msrb.gmra.mxu1 %vm1801_vm7, %v6613_v52 }
 0x35f   : > { %v3019_v46 = vpop.f32.mrf.mxu0  ;;  %v3039_v6 = vpop.f32.mrf.mxu1 }
 0x360   : > { %v3040_v51 = vadd.f32 %v3039_v6, %v6678_v1  ;;  %v3020_v11 = vadd.f32 %v3019_v46, %v6678_v1 }
 0x362   : > { %4359 = vtanh.f32 %v3040_v51 }
 0x363   : > { %4361 = vtanh.f32 %v3020_v11 }
 0x366   : > { %v3059_v32 = vpop.f32.mrf.mxu2  ;;  %v3079_v24 = vpop.f32.mrf.mxu3 }
 0x367   : > { %v3060_v3 = vadd.f32 %v3059_v32, %v6678_v1  ;;  %v3080_v52 = vadd.f32 %v3079_v24, %v6678_v1 }
 0x368   : > { %v4360_v0 = vpop.eup %4359 }
 0x369   : > { %v3099_v33 = vpop.f32.mrf.mxu0  ;;  %4363 = vtanh.f32 %v3060_v3  ;;  %v4362_v49 = vpop.eup %4361  ;;  %v3339_v34 = vand.u32 2147483647, %v4360_v0 }
 0x36a   : > { %v3100_v58 = vadd.f32 %v3099_v33, %v6678_v1  ;;  %v3119_v7 = vpop.f32.mrf.mxu1  ;;  %4365 = vtanh.f32 %v3080_v52  ;;  %v3338_v18 = vand.u32 2147483647, %v4362_v49 }
 0x36b   : > { %v3120_v28 = vadd.f32 %v3119_v7, %v6678_v1  ;;  %v3355_v48 = vsub.f32 1.0, %v3339_v34 }
 0x36c   : > { %4367 = vtanh.f32 %v3100_v58  ;;  %v3354_v63 = vsub.f32 1.0, %v3338_v18 }
 0x36d   : > { %4369 = vtanh.f32 %v3120_v28  ;;  %v3386_v60 = vrot.slane %v3355_v48, 7 }
 0x36f   : > { %v4364_v17 = vpop.eup %4363  ;;  %v3401_v29 = vsel %vm3400_vm10, %v3354_v63, %v3386_v60 }
 0x370   : > { %v4366_v27 = vpop.eup %4365  ;;  %v3340_v21 = vand.u32 2147483647, %v4364_v17 }
 0x371   : > { %v3341_v15 = vand.u32 2147483647, %v4366_v27 }
 0x372   : > { %v4368_v36 = vpop.eup %4367  ;;  %v3356_v59 = vsub.f32 1.0, %v3340_v21 }
 0x373   : > { %v4370_v5 = vpop.eup %4369  ;;  %v3342_v43 = vand.u32 2147483647, %v4368_v36  ;;  %v3357_v2 = vsub.f32 1.0, %v3341_v15 }
 0x374   : > { %v3343_v38 = vand.u32 2147483647, %v4370_v5  ;;  %v3387_v40 = vrot.slane %v3356_v59, 6 }
 0x375   : > { %v3358_v22 = vsub.f32 1.0, %v3342_v43  ;;  %v3388_v47 = vrot.slane %v3357_v2, 5 }
 0x376   : > { %v3359_v50 = vsub.f32 1.0, %v3343_v38 }
 0x377   : > { %v3389_v41 = vrot.slane %v3358_v22, 4  ;;  %v3403_v57 = vsel %vm3402_vm12, %v3387_v40, %v3388_v47 }
 0x378   : > { %v3390_v55 = vrot.slane %v3359_v50, 3  ;;  %v3405_v12 = vsel %vm3404_vm14, %v3401_v29, %v3403_v57 }
 0x37a   : > { %v3407_v37 = vsel %vm3406_vm13, %v3389_v41, %v3390_v55 }
 0x381   : > { %v3139_v16 = vpop.f32.mrf.mxu2 }
 0x382   : > { %v3140_v35 = vadd.f32 %v3139_v16, %v6678_v1  ;;  %v3159_v23 = vpop.f32.mrf.mxu3 }
 0x383   : > { %v3160_v26 = vadd.f32 %v3159_v23, %v6678_v1 }
 0x384   : > { %4371 = vtanh.f32 %v3140_v35 }
 0x385   : > { %4373 = vtanh.f32 %v3160_v26 }
 0x38a   : > { %v4372_v56 = vpop.eup %4371 }
 0x38b   : > { %v4374_v53 = vpop.eup %4373  ;;  %v3344_v19 = vand.u32 2147483647, %v4372_v56 }
 0x38c   : > { %v3345_v4 = vand.u32 2147483647, %v4374_v53 }
 0x38d   : > { %v3360_v62 = vsub.f32 1.0, %v3344_v19 }
 0x38e   : > { %v3361_v8 = vsub.f32 1.0, %v3345_v4 }
 0x38f   : > { %v3391_v45 = vrot.slane %v3360_v62, 2  ;;  %v3179_v9 = vpop.f32.mrf.mxu0 }
 0x390   : > { %v3392_v10 = vrot.slane %v3361_v8, 1  ;;  %v3180_v39 = vadd.f32 %v3179_v9, %v6678_v1 }
 0x392   : > { %v3409_v42 = vsel %vm3408_vm1, %v3391_v45, %v3392_v10 }
 0x393   : > { %v3411_v31 = vsel %vm3410_vm15, %v3407_v37, %v3409_v42 }
 0x394   : > { %v3413_v30 = vsel %vm3412_vm0, %v3405_v12, %v3411_v31 }
 0x395   : > { %3423 = vst [vmem:[%s6706_s25] sm:$0xff] %v3413_v30 }
 0x39d   : > { %v3199_v25 = vpop.f32.mrf.mxu1 }
 0x39e   : > { %v3200_v44 = vadd.f32 %v3199_v25, %v6678_v1 }
 0x3a0   : > { %4375 = vtanh.f32 %v3200_v44 }
 0x3a6   : > { %v4376_v11 = vpop.eup %4375 }
 0x3a7   : > { %v3219_v14 = vpop.f32.mrf.mxu2  ;;  %v3347_v28 = vand.u32 2147483647, %v4376_v11 }
 0x3a8   : > { %v3239_v20 = vpop.f32.mrf.mxu3  ;;  %v3220_v61 = vadd.f32 %v3219_v14, %v6678_v1 }
 0x3a9   : > { %v3240_v54 = vadd.f32 %v3239_v20, %v6678_v1  ;;  %v3363_v27 = vsub.f32 1.0, %v3347_v28 }
 0x3aa   : > { %4377 = vtanh.f32 %v3220_v61 }
 0x3ab   : > { %4379 = vtanh.f32 %v3240_v54  ;;  %v3393_v59 = vrot.slane %v3363_v27, 7 }
 0x3ac   : > { %4381 = vtanh.f32 %v3180_v39 }
 0x3b0   : > { %v4378_v3 = vpop.eup %4377 }
 0x3b1   : > { %v4380_v33 = vpop.eup %4379  ;;  %v3348_v16 = vand.u32 2147483647, %v4378_v3 }
 0x3b2   : > { %v4382_v52 = vpop.eup %4381  ;;  %v3349_v17 = vand.u32 2147483647, %v4380_v33 }
 0x3b3   : > { %v3346_v23 = vand.u32 2147483647, %v4382_v52  ;;  %v3364_v26 = vsub.f32 1.0, %v3348_v16 }
 0x3b4   : > { %v3365_v36 = vsub.f32 1.0, %v3349_v17 }
 0x3b5   : > { %v3362_v48 = vsub.f32 1.0, %v3346_v23 }
 0x3b6   : > { %v3395_v38 = vrot.slane %v3365_v36, 5 }
 0x3b7   : > { %v3414_v40 = vsel %vm3400_vm10, %v3362_v48, %v3393_v59 }
 0x3c5   : > { %v3259_v13 = vpop.f32.mrf.mxu0 }
 0x3c6   : > { %v3260_v46 = vadd.f32 %v3259_v13, %v6678_v1 }
 0x3c7   : > { %v3299_v6 = vpop.f32.mrf.mxu2 }
 0x3c8   : > { %v3300_v51 = vadd.f32 %v3299_v6, %v6678_v1  ;;  %4383 = vtanh.f32 %v3260_v46 }
 0x3ca   : > { %4385 = vtanh.f32 %v3300_v51 }
 0x3cd   : > { %v3319_v32 = vpop.f32.mrf.mxu3 }
 0x3ce   : > { %v3320_v24 = vadd.f32 %v3319_v32, %v6678_v1  ;;  %v3279_v58 = vpop.f32.mrf.mxu1  ;;  %v4384_v7 = vpop.eup %4383 }
 0x3cf   : > { %v3280_v0 = vadd.f32 %v3279_v58, %v6678_v1  ;;  %v3350_v35 = vand.u32 2147483647, %v4384_v7  ;;  %v3394_v1 = vrot.slane %v3364_v26, 6 }
 0x3d0   : > { %4387 = vtanh.f32 %v3320_v24  ;;  %v4386_v49 = vpop.eup %4385 }
 0x3d1   : > { %4389 = vtanh.f32 %v3280_v0  ;;  %v3352_v34 = vand.u32 2147483647, %v4386_v49  ;;  %v3366_v18 = vsub.f32 1.0, %v3350_v35  ;;  %v3415_v47 = vsel %vm3402_vm12, %v3394_v1, %v3395_v38 }
 0x3d2   : > { %v3416_v55 = vsel %vm3404_vm14, %v3414_v40, %v3415_v47 }
 0x3d3   : > { %v3368_v15 = vsub.f32 1.0, %v3352_v34  ;;  %v3396_v63 = vrot.slane %v3366_v18, 4 }
 0x3d5   : > { %v3398_v50 = vrot.slane %v3368_v15, 2 }
 0x3d6   : > { %v4388_v21 = vpop.eup %4387 }
 0x3d7   : > { %v3353_v5 = vand.u32 2147483647, %v4388_v21  ;;  %v4390_v43 = vpop.eup %4389 }
 0x3d8   : > { %v3351_v22 = vand.u32 2147483647, %v4390_v43 }
 0x3d9   : > { %v3369_v2 = vsub.f32 1.0, %v3353_v5 }
 0x3da   : > { %v3367_v60 = vsub.f32 1.0, %v3351_v22 }
 0x3db   : > { %v3399_v56 = vrot.slane %v3369_v2, 1 }
 0x3dc   : > { %v3397_v53 = vrot.slane %v3367_v60, 3 }
 0x3dd   : > { %v3418_v19 = vsel %vm3408_vm1, %v3398_v50, %v3399_v56 }
 0x3de   : > { %v3417_v41 = vsel %vm3406_vm13, %v3396_v63, %v3397_v53 }
 0x3df   : > { %v3419_v4 = vsel %vm3410_vm15, %v3417_v41, %v3418_v19 }
 0x3e0   : > { %v3420_v62 = vsel %vm3412_vm0, %v3416_v55, %v3419_v4 }
 0x3e1   : > { %3424 = vst [vmem:[%s6706_s25 + $0x8] sm:$0xff] %v3420_v62 }
 0x3e2 PF: > { %p37_p3 = scmp.ge.s32.totalorder %s4646_s13, 14   ;;  %s6892_s0 = smov %s4539_s1 }
 0x3e3   : > { %s6893_s1 = smov %s4543_s9  ;;  %s6894_s9 = smov %s4739_s26 }
 0x3e4   : > { %s6895_s10 = smov %s4551_s11  ;;  %s6896_s11 = smov %s4555_s2 }
 0x3e5   : > { %s6897_s2 = smov %s4669_s24  ;;  %s6898_s12 = smov %s4646_s13 }
 0x3e6   :  { %39 = sbr.rel (!%p37_p3) target bundleno = 16 (0x10), region = 88 }
 0x3eb   :  { %3459 = vsyncpa [#allocation7], 1 }
 0x3ec   :  { %3461 = vsyncpa [#allocation7 + $0x1], 1 }
 0x3ed   :  { %3462 = vsyncpa [#allocation9], 1 }
 0x3ee   :  { %3464 = vsyncpa [#allocation9 + $0x1], 1 }

</bundles_post_ra>
